<compile_context>
chip_gen: v6e
topology: v6e:2x2x1
jax: 0.10.0
libtpu: 0.0.40
codegen_flags: <defaults>
</compile_context>

<pallas_src>
import functools

import jax
import jax.numpy as jnp
from jax.experimental import pallas as pl
from jax.experimental.pallas import tpu as pltpu


# ---------------------------------------------------------------------------
# Single fused kernel: conv1+pool -> conv2+pool -> conv3+pool -> fc1 -> fc2
# ---------------------------------------------------------------------------
def _net_kernel(a1_ref, w1_ref, b1_ref, w2_ref, b2_ref, w3_ref, b3_ref,
                wf1_ref, bf1_ref, wf2_ref, bf2_ref,
                o_ref,
                xk2_ref, xk3_ref, pool1_ref, pool2_ref, pool3_ref, p3_ref,
                *, tb):
    f32, bf16 = jnp.float32, jnp.bfloat16

    # Zero the padded kx-grouped im2col scratches once per grid step; the
    # interior is fully overwritten for every image, only the zero halo
    # (= the conv padding) is relied upon across images.
    xk2_ref[...] = jnp.zeros(xk2_ref.shape, f32)
    xk3_ref[...] = jnp.zeros(xk3_ref.shape, f32)

    b1 = b1_ref[...]
    b2 = b2_ref[...]
    b3 = b3_ref[...]

    def pool2x2(acc, pref, ho, wa, c):
        """acc rows are ordered r = y*wa + x; 2x2 max-pool via stride-2 reads."""
        pref[...] = acc.reshape(ho, 2 * wa, c)
        wo = wa // 2
        return jnp.maximum(
            jnp.maximum(pref[:, pl.ds(0, wo, 2), :],
                        pref[:, pl.ds(1, wo, 2), :]),
            jnp.maximum(pref[:, pl.ds(wa, wo, 2), :],
                        pref[:, pl.ds(wa + 1, wo, 2), :]))

    def scatter_kx(dst_ref, pooled, h, w, c):
        """dst[yy, x, kx*c + ci] = zero_pad2(pooled)[yy - 2, x + kx - 2, ci]."""
        for kx in range(5):
            d0 = max(0, 2 - kx)
            d1 = min(w, w + 2 - kx)
            s0 = max(0, kx - 2)
            dst_ref[2:2 + h, d0:d1, kx * c:(kx + 1) * c] = \
                pooled[:, s0:s0 + (d1 - d0), :]

    def conv_kx_grouped(xk_ref, w_ref, bias, h, w, cout):
        """5 sublane-aligned slab slices (one per ky), each a K=5*Cin matmul."""
        kdim = xk_ref.shape[-1]
        acc = jnp.zeros((h * w, cout), f32)
        for ky in range(5):
            a = xk_ref[ky:ky + h].reshape(h * w, kdim).astype(bf16)
            acc = acc + jnp.dot(a, w_ref[ky], preferred_element_type=f32)
        return acc + bias

    for i in range(tb):
        # conv1: full im2col (K=75) -> single MXU matmul, bias, fused pool.
        acc1 = jnp.dot(a1_ref[i], w1_ref[...], preferred_element_type=f32) + b1
        p1 = pool2x2(acc1, pool1_ref, 16, 32, 32)                 # (16,16,32)

        # conv2: kx folded into K (K=160), 5 aligned matmuls, bias, pool.
        scatter_kx(xk2_ref, p1, 16, 16, 32)
        acc2 = conv_kx_grouped(xk2_ref, w2_ref, b2, 16, 16, 32)
        p2 = pool2x2(acc2, pool2_ref, 8, 16, 32)                  # (8,8,32)

        # conv3: same structure, Cout=64.
        scatter_kx(xk3_ref, p2, 8, 8, 32)
        acc3 = conv_kx_grouped(xk3_ref, w3_ref, b3, 8, 8, 64)
        p3 = pool2x2(acc3, pool3_ref, 4, 8, 64)                   # (4,4,64)

        p3_ref[i] = p3

    # Fused fc head for the whole image block:
    # fc1 (1024->64) as 16 K=64 matmuls over spatial positions (weights were
    # pre-permuted to NHWC order), then fc2 (64->10).
    h = jnp.zeros((tb, 64), f32)
    for p in range(16):
        xp = p3_ref[:, p // 4, p % 4, :].astype(bf16)             # (tb, 64)
        h = h + jnp.dot(xp, wf1_ref[p], preferred_element_type=f32)
    h = h + bf1_ref[...]
    out = jnp.dot(h.astype(bf16), wf2_ref[...],
                  preferred_element_type=f32) + bf2_ref[...]
    o_ref[0] = out


def _pick_block(batch, max_tb=8):
    """Largest image-block size that divides B, <= max_tb, and (if possible)
    keeps >= 2 grid blocks so v7x's two TensorCores both get work."""
    divisors = [t for t in range(1, min(batch, max_tb) + 1) if batch % t == 0]
    multi = [t for t in divisors if batch // t >= 2]
    return max(multi) if multi else max(divisors)


def net_forward(x_nchw, prepared):
    B = x_nchw.shape[0]
    # Layout glue done once in the wrapper: NCHW->NHWC, bf16 for the MXU, and
    # the FULL 25-tap im2col for conv1 only (K = 75 < 128 -> one matmul).
    x = jnp.transpose(x_nchw, (0, 2, 3, 1)).astype(jnp.bfloat16)
    xp = jnp.pad(x, ((0, 0), (2, 2), (2, 2), (0, 0)))
    patches = [xp[:, ky:ky + 32, kx:kx + 32, :]
               for ky in range(5) for kx in range(5)]
    a1 = jnp.concatenate(patches, axis=-1).reshape(B, 32 * 32, 75)

    tb = _pick_block(B)
    g = B // tb

    out = pl.pallas_call(
        functools.partial(_net_kernel, tb=tb),
        out_shape=jax.ShapeDtypeStruct((g, tb, 10), jnp.float32),
        grid=(g,),
        in_specs=[
            pl.BlockSpec((tb, 32 * 32, 75), lambda i: (i, 0, 0)),  # conv1 im2col
            pl.BlockSpec((75, 32), lambda i: (0, 0)),              # resident weights
            pl.BlockSpec((1, 32), lambda i: (0, 0)),
            pl.BlockSpec((5, 160, 32), lambda i: (0, 0, 0)),
            pl.BlockSpec((1, 32), lambda i: (0, 0)),
            pl.BlockSpec((5, 160, 64), lambda i: (0, 0, 0)),
            pl.BlockSpec((1, 64), lambda i: (0, 0)),
            pl.BlockSpec((16, 64, 64), lambda i: (0, 0, 0)),
            pl.BlockSpec((1, 64), lambda i: (0, 0)),
            pl.BlockSpec((64, 10), lambda i: (0, 0)),
            pl.BlockSpec((1, 10), lambda i: (0, 0)),
        ],
        out_specs=pl.BlockSpec((1, tb, 10), lambda i: (i, 0, 0)),
        scratch_shapes=[
            pltpu.VMEM((20, 16, 160), jnp.float32),   # conv2 padded kx-im2col
            pltpu.VMEM((12, 8, 160), jnp.float32),    # conv3 padded kx-im2col
            pltpu.VMEM((16, 64, 32), jnp.float32),    # pool-1 staging
            pltpu.VMEM((8, 32, 32), jnp.float32),     # pool-2 staging
            pltpu.VMEM((4, 16, 64), jnp.float32),     # pool-3 staging
            pltpu.VMEM((tb, 4, 4, 64), jnp.float32),  # fc-head input buffer
        ],
        compiler_params=pltpu.CompilerParams(
            dimension_semantics=("parallel",)),
    )(a1,
      prepared["c1_w"], prepared["c1_b"],
      prepared["c2_w"], prepared["c2_b"],
      prepared["c3_w"], prepared["c3_b"],
      prepared["f1_w"], prepared["f1_b"],
      prepared["f2_w"], prepared["f2_b"])
    return out.reshape(B, 10)


# ---------------------------------------------------------------------------
# Parameters (PyTorch layout) + one-time preparation for the kernel
# ---------------------------------------------------------------------------
def init_params(key):
    ks = jax.random.split(key, 10)
    s = 0.05
    return {
        "conv1_w": s * jax.random.normal(ks[0], (32, 3, 5, 5), jnp.float32),
        "conv1_b": s * jax.random.normal(ks[1], (32,), jnp.float32),
        "conv2_w": s * jax.random.normal(ks[2], (32, 32, 5, 5), jnp.float32),
        "conv2_b": s * jax.random.normal(ks[3], (32,), jnp.float32),
        "conv3_w": s * jax.random.normal(ks[4], (64, 32, 5, 5), jnp.float32),
        "conv3_b": s * jax.random.normal(ks[5], (64,), jnp.float32),
        "fc1_w": s * jax.random.normal(ks[6], (64, 1024), jnp.float32),
        "fc1_b": s * jax.random.normal(ks[7], (64,), jnp.float32),
        "fc2_w": s * jax.random.normal(ks[8], (10, 64), jnp.float32),
        "fc2_b": s * jax.random.normal(ks[9], (10,), jnp.float32),
    }


def prepare_params(p):
    """One-time weight re-layout (outside the forward). Weights -> bf16 for
    the MXU; biases stay f32 (accumulation/epilogue is f32 in-kernel)."""
    bf16 = jnp.bfloat16

    def kx_grouped(w):  # (Cout,Cin,5,5) -> (5, 5*Cin, Cout); [ky][kx*Cin+ci]
        co, ci = w.shape[0], w.shape[1]
        return jnp.transpose(w, (2, 3, 1, 0)).reshape(5, 5 * ci, co)

    # conv1 full-im2col weight: [(ky*5+kx)*3 + ci, co]
    w1 = jnp.transpose(p["conv1_w"], (2, 3, 1, 0)).reshape(75, 32)

    # fc1 consumes NHWC order; PyTorch flatten order is f = c*16 + (h*4+w).
    f1 = jnp.transpose(p["fc1_w"].reshape(64, 64, 16), (2, 1, 0))  # (p, c, n)

    return {
        "c1_w": w1.astype(bf16),
        "c1_b": p["conv1_b"].reshape(1, 32),
        "c2_w": kx_grouped(p["conv2_w"]).astype(bf16),
        "c2_b": p["conv2_b"].reshape(1, 32),
        "c3_w": kx_grouped(p["conv3_w"]).astype(bf16),
        "c3_b": p["conv3_b"].reshape(1, 64),
        "f1_w": f1.astype(bf16),
        "f1_b": p["fc1_b"].reshape(1, 64),
        "f2_w": p["fc2_w"].T.astype(bf16),
        "f2_b": p["fc2_b"].reshape(1, 10),
    }


# ---------------------------------------------------------------------------
# Pure-JAX (XLA, f32) reference of the PyTorch module, for an in-script check
# ---------------------------------------------------------------------------
def reference_forward(x, p):
    def conv(x, w, b):
        y = jax.lax.conv_general_dilated(
            x, w, window_strides=(1, 1), padding=((2, 2), (2, 2)),
            dimension_numbers=("NCHW", "OIHW", "NCHW"))
        return y + b.reshape(1, -1, 1, 1)

    def pool(x):
        return jnp.maximum(
            jnp.maximum(x[:, :, 0::2, 0::2], x[:, :, 0::2, 1::2]),
            jnp.maximum(x[:, :, 1::2, 0::2], x[:, :, 1::2, 1::2]))

    x = pool(conv(x, p["conv1_w"], p["conv1_b"]))
    x = pool(conv(x, p["conv2_w"], p["conv2_b"]))
    x = pool(conv(x, p["conv3_w"], p["conv3_b"]))
    x = x.reshape(x.shape[0], -1)
    x = x @ p["fc1_w"].T + p["fc1_b"]
    x = x @ p["fc2_w"].T + p["fc2_b"]
    return x


if __name__ == "__main__":
    key = jax.random.PRNGKey(0)
    pkey, xkey = jax.random.split(key)
    params = init_params(pkey)
    prepared = prepare_params(params)

    # Input must be (B, 3, 32, 32) so Flatten yields 64*4*4 = 1024 features.
    x = jax.random.normal(xkey, (2, 3, 32, 32), jnp.float32)

    out = jax.jit(net_forward)(x, prepared)
    out = jax.block_until_ready(out)
    assert out.shape == (2, 10) and out.dtype == jnp.float32

    # Semantics check against the f32 XLA reference of the PyTorch module
    # (bf16 MXU inputs + f32 accumulation comfortably fit this tolerance).
    ref = jax.block_until_ready(jax.jit(reference_forward)(x, params))
    err = float(jnp.max(jnp.abs(out - ref)))
    scale = float(jnp.max(jnp.abs(ref)))
    assert err <= 5e-2 * scale + 5e-3, f"mismatch vs reference: {err} (scale {scale})"

    print("KERNEL_OK")
</pallas_src>

<mosaic_0001>
module attributes {stable_mosaic.version = 11 : i64} {
  func.func @_net_kernel(%arg0: i32, %arg1: memref<1x1024x75xbf16, #tpu.memory_space<vmem>>, %arg2: memref<75x32xbf16, #tpu.memory_space<vmem>>, %arg3: memref<1x32xf32, #tpu.memory_space<vmem>>, %arg4: memref<5x160x32xbf16, #tpu.memory_space<vmem>>, %arg5: memref<1x32xf32, #tpu.memory_space<vmem>>, %arg6: memref<5x160x64xbf16, #tpu.memory_space<vmem>>, %arg7: memref<1x64xf32, #tpu.memory_space<vmem>>, %arg8: memref<16x64x64xbf16, #tpu.memory_space<vmem>>, %arg9: memref<1x64xf32, #tpu.memory_space<vmem>>, %arg10: memref<64x10xbf16, #tpu.memory_space<vmem>>, %arg11: memref<1x10xf32, #tpu.memory_space<vmem>>, %arg12: memref<1x1x10xf32, #tpu.memory_space<vmem>>, %arg13: memref<20x16x160xf32, #tpu.memory_space<vmem>>, %arg14: memref<12x8x160xf32, #tpu.memory_space<vmem>>, %arg15: memref<16x64x32xf32, #tpu.memory_space<vmem>>, %arg16: memref<8x32x32xf32, #tpu.memory_space<vmem>>, %arg17: memref<4x16x64xf32, #tpu.memory_space<vmem>>, %arg18: memref<1x4x4x64xf32, #tpu.memory_space<vmem>>) attributes {dimension_semantics = [#tpu.dimension_semantics<parallel>], iteration_bounds = array<i64: 2>, scalar_prefetch = 0 : i64, scratch_operands = 6 : i64, tpu.core_type = #tpu.core_type<tc>, window_params = [{transform_indices = @transform_0, window_bounds = array<i64: 1, 1024, 75>}, {pipeline_mode = #tpu.pipeline_mode<synchronous>, transform_indices = @transform_1, window_bounds = array<i64: 75, 32>}, {pipeline_mode = #tpu.pipeline_mode<synchronous>, transform_indices = @transform_2, window_bounds = array<i64: 1, 32>}, {pipeline_mode = #tpu.pipeline_mode<synchronous>, transform_indices = @transform_3, window_bounds = array<i64: 5, 160, 32>}, {pipeline_mode = #tpu.pipeline_mode<synchronous>, transform_indices = @transform_4, window_bounds = array<i64: 1, 32>}, {pipeline_mode = #tpu.pipeline_mode<synchronous>, transform_indices = @transform_5, window_bounds = array<i64: 5, 160, 64>}, {pipeline_mode = #tpu.pipeline_mode<synchronous>, transform_indices = @transform_6, window_bounds = array<i64: 1, 64>}, {pipeline_mode = #tpu.pipeline_mode<synchronous>, transform_indices = @transform_7, window_bounds = array<i64: 16, 64, 64>}, {pipeline_mode = #tpu.pipeline_mode<synchronous>, transform_indices = @transform_8, window_bounds = array<i64: 1, 64>}, {pipeline_mode = #tpu.pipeline_mode<synchronous>, transform_indices = @transform_9, window_bounds = array<i64: 64, 10>}, {pipeline_mode = #tpu.pipeline_mode<synchronous>, transform_indices = @transform_10, window_bounds = array<i64: 1, 10>}, {transform_indices = @transform_11, window_bounds = array<i64: 1, 1, 10>}]} {
    %cst = arith.constant 0.000000e+00 : f32
    %0 = vector.broadcast %cst : f32 to vector<20x16x160xf32>
    %c0 = arith.constant 0 : index
    %c0_0 = arith.constant 0 : index
    %c0_1 = arith.constant 0 : index
    %1 = vector.load %arg13[%c0, %c0_0, %c0_1] : memref<20x16x160xf32, #tpu.memory_space<vmem>>, vector<20x16x160xf32>
    tpu.vector_store %arg13[%c0, %c0_0, %c0_1], %0 {strides = array<i32>} : memref<20x16x160xf32, #tpu.memory_space<vmem>>, vector<20x16x160xf32>,
    %cst_2 = arith.constant 0.000000e+00 : f32
    %2 = vector.broadcast %cst_2 : f32 to vector<12x8x160xf32>
    %c0_3 = arith.constant 0 : index
    %c0_4 = arith.constant 0 : index
    %c0_5 = arith.constant 0 : index
    %3 = vector.load %arg14[%c0_3, %c0_4, %c0_5] : memref<12x8x160xf32, #tpu.memory_space<vmem>>, vector<12x8x160xf32>
    tpu.vector_store %arg14[%c0_3, %c0_4, %c0_5], %2 {strides = array<i32>} : memref<12x8x160xf32, #tpu.memory_space<vmem>>, vector<12x8x160xf32>,
    %c0_6 = arith.constant 0 : index
    %c0_7 = arith.constant 0 : index
    %4 = vector.load %arg3[%c0_6, %c0_7] : memref<1x32xf32, #tpu.memory_space<vmem>>, vector<1x32xf32>
    %c0_8 = arith.constant 0 : index
    %c0_9 = arith.constant 0 : index
    %5 = vector.load %arg5[%c0_8, %c0_9] : memref<1x32xf32, #tpu.memory_space<vmem>>, vector<1x32xf32>
    %c0_10 = arith.constant 0 : index
    %c0_11 = arith.constant 0 : index
    %6 = vector.load %arg7[%c0_10, %c0_11] : memref<1x64xf32, #tpu.memory_space<vmem>>, vector<1x64xf32>
    %c0_12 = arith.constant 0 : index
    %c0_13 = arith.constant 0 : index
    %c0_14 = arith.constant 0 : index
    %7 = vector.load %arg1[%c0_12, %c0_13, %c0_14] : memref<1x1024x75xbf16, #tpu.memory_space<vmem>>, vector<1x1024x75xbf16>
    %8 = vector.shape_cast %7 : vector<1x1024x75xbf16> to vector<1024x75xbf16>
    %c0_15 = arith.constant 0 : index
    %c0_16 = arith.constant 0 : index
    %9 = vector.load %arg2[%c0_15, %c0_16] : memref<75x32xbf16, #tpu.memory_space<vmem>>, vector<75x32xbf16>
    %cst_17 = arith.constant dense<0.000000e+00> : vector<1024x32xf32>
    %10 = tpu.matmul %8, %9, %cst_17 {dimension_numbers = #tpu.dot_dimension_numbers<[1], [0], [0], [1], [0, 0, 1, 1], [], []>} : vector<1024x75xbf16>, vector<75x32xbf16>, vector<1024x32xf32> -> vector<1024x32xf32>
    %11 = vector.broadcast %4 : vector<1x32xf32> to vector<1024x32xf32>
    %12 = arith.addf %10, %11 : vector<1024x32xf32>
    %13 = vector.shape_cast %12 : vector<1024x32xf32> to vector<16x64x32xf32>
    %c0_18 = arith.constant 0 : index
    %c0_19 = arith.constant 0 : index
    %c0_20 = arith.constant 0 : index
    %14 = vector.load %arg15[%c0_18, %c0_19, %c0_20] : memref<16x64x32xf32, #tpu.memory_space<vmem>>, vector<16x64x32xf32>
    tpu.vector_store %arg15[%c0_18, %c0_19, %c0_20], %13 {strides = array<i32>} : memref<16x64x32xf32, #tpu.memory_space<vmem>>, vector<16x64x32xf32>,
    %c0_21 = arith.constant 0 : index
    %c0_22 = arith.constant 0 : index
    %c0_23 = arith.constant 0 : index
    %15 = tpu.strided_load %arg15[%c0_21, %c0_22, %c0_23] {strides = array<i32: 1, 2, 1>} : memref<16x64x32xf32, #tpu.memory_space<vmem>>, vector<16x16x32xf32>
    %c0_24 = arith.constant 0 : index
    %c1 = arith.constant 1 : index
    %c0_25 = arith.constant 0 : index
    %16 = tpu.strided_load %arg15[%c0_24, %c1, %c0_25] {strides = array<i32: 1, 2, 1>} : memref<16x64x32xf32, #tpu.memory_space<vmem>>, vector<16x16x32xf32>
    %17 = arith.maximumf %15, %16 : vector<16x16x32xf32>
    %c0_26 = arith.constant 0 : index
    %c32 = arith.constant 32 : index
    %c0_27 = arith.constant 0 : index
    %18 = tpu.strided_load %arg15[%c0_26, %c32, %c0_27] {strides = array<i32: 1, 2, 1>} : memref<16x64x32xf32, #tpu.memory_space<vmem>>, vector<16x16x32xf32>
    %c0_28 = arith.constant 0 : index
    %c33 = arith.constant 33 : index
    %c0_29 = arith.constant 0 : index
    %19 = tpu.strided_load %arg15[%c0_28, %c33, %c0_29] {strides = array<i32: 1, 2, 1>} : memref<16x64x32xf32, #tpu.memory_space<vmem>>, vector<16x16x32xf32>
    %20 = arith.maximumf %18, %19 : vector<16x16x32xf32>
    %21 = arith.maximumf %17, %20 : vector<16x16x32xf32>
    %22 = vector.extract_strided_slice %21 {offsets = [0, 0, 0], sizes = [16, 14, 32], strides = [1, 1, 1]} : vector<16x16x32xf32> to vector<16x14x32xf32>
    %c2 = arith.constant 2 : index
    %c2_30 = arith.constant 2 : index
    %c0_31 = arith.constant 0 : index
    %23 = vector.load %arg13[%c2, %c2_30, %c0_31] : memref<20x16x160xf32, #tpu.memory_space<vmem>>, vector<16x14x32xf32>
    tpu.vector_store %arg13[%c2, %c2_30, %c0_31], %22 {strides = array<i32>} : memref<20x16x160xf32, #tpu.memory_space<vmem>>, vector<16x14x32xf32>,
    %24 = vector.extract_strided_slice %21 {offsets = [0, 0, 0], sizes = [16, 15, 32], strides = [1, 1, 1]} : vector<16x16x32xf32> to vector<16x15x32xf32>
    %c2_32 = arith.constant 2 : index
    %c1_33 = arith.constant 1 : index
    %c32_34 = arith.constant 32 : index
    %25 = vector.load %arg13[%c2_32, %c1_33, %c32_34] : memref<20x16x160xf32, #tpu.memory_space<vmem>>, vector<16x15x32xf32>
    tpu.vector_store %arg13[%c2_32, %c1_33, %c32_34], %24 {strides = array<i32>} : memref<20x16x160xf32, #tpu.memory_space<vmem>>, vector<16x15x32xf32>,
    %c2_35 = arith.constant 2 : index
    %c0_36 = arith.constant 0 : index
    %c64 = arith.constant 64 : index
    %26 = vector.load %arg13[%c2_35, %c0_36, %c64] : memref<20x16x160xf32, #tpu.memory_space<vmem>>, vector<16x16x32xf32>
    tpu.vector_store %arg13[%c2_35, %c0_36, %c64], %21 {strides = array<i32>} : memref<20x16x160xf32, #tpu.memory_space<vmem>>, vector<16x16x32xf32>,
    %27 = vector.extract_strided_slice %21 {offsets = [0, 1, 0], sizes = [16, 15, 32], strides = [1, 1, 1]} : vector<16x16x32xf32> to vector<16x15x32xf32>
    %c2_37 = arith.constant 2 : index
    %c0_38 = arith.constant 0 : index
    %c96 = arith.constant 96 : index
    %28 = vector.load %arg13[%c2_37, %c0_38, %c96] : memref<20x16x160xf32, #tpu.memory_space<vmem>>, vector<16x15x32xf32>
    tpu.vector_store %arg13[%c2_37, %c0_38, %c96], %27 {strides = array<i32>} : memref<20x16x160xf32, #tpu.memory_space<vmem>>, vector<16x15x32xf32>,
    %29 = vector.extract_strided_slice %21 {offsets = [0, 2, 0], sizes = [16, 14, 32], strides = [1, 1, 1]} : vector<16x16x32xf32> to vector<16x14x32xf32>
    %c2_39 = arith.constant 2 : index
    %c0_40 = arith.constant 0 : index
    %c128 = arith.constant 128 : index
    %30 = vector.load %arg13[%c2_39, %c0_40, %c128] : memref<20x16x160xf32, #tpu.memory_space<vmem>>, vector<16x14x32xf32>
    tpu.vector_store %arg13[%c2_39, %c0_40, %c128], %29 {strides = array<i32>} : memref<20x16x160xf32, #tpu.memory_space<vmem>>, vector<16x14x32xf32>,
    %cst_41 = arith.constant 0.000000e+00 : f32
    %31 = vector.broadcast %cst_41 : f32 to vector<256x32xf32>
    %c0_42 = arith.constant 0 : index
    %c0_43 = arith.constant 0 : index
    %c0_44 = arith.constant 0 : index
    %32 = vector.load %arg13[%c0_42, %c0_43, %c0_44] : memref<20x16x160xf32, #tpu.memory_space<vmem>>, vector<16x16x160xf32>
    %33 = vector.shape_cast %32 : vector<16x16x160xf32> to vector<256x160xf32>
    %34 = arith.truncf %33 : vector<256x160xf32> to vector<256x160xbf16>
    %c0_45 = arith.constant 0 : index
    %c0_46 = arith.constant 0 : index
    %c0_47 = arith.constant 0 : index
    %35 = vector.load %arg4[%c0_45, %c0_46, %c0_47] : memref<5x160x32xbf16, #tpu.memory_space<vmem>>, vector<1x160x32xbf16>
    %36 = vector.shape_cast %35 : vector<1x160x32xbf16> to vector<160x32xbf16>
    %cst_48 = arith.constant dense<0.000000e+00> : vector<256x32xf32>
    %37 = tpu.matmul %34, %36, %cst_48 {dimension_numbers = #tpu.dot_dimension_numbers<[1], [0], [0], [1], [0, 0, 1, 1], [], []>} : vector<256x160xbf16>, vector<160x32xbf16>, vector<256x32xf32> -> vector<256x32xf32>
    %38 = arith.addf %31, %37 : vector<256x32xf32>
    %c1_49 = arith.constant 1 : index
    %c0_50 = arith.constant 0 : index
    %c0_51 = arith.constant 0 : index
    %39 = vector.load %arg13[%c1_49, %c0_50, %c0_51] : memref<20x16x160xf32, #tpu.memory_space<vmem>>, vector<16x16x160xf32>
    %40 = vector.shape_cast %39 : vector<16x16x160xf32> to vector<256x160xf32>
    %41 = arith.truncf %40 : vector<256x160xf32> to vector<256x160xbf16>
    %c1_52 = arith.constant 1 : index
    %c0_53 = arith.constant 0 : index
    %c0_54 = arith.constant 0 : index
    %42 = vector.load %arg4[%c1_52, %c0_53, %c0_54] : memref<5x160x32xbf16, #tpu.memory_space<vmem>>, vector<1x160x32xbf16>
    %43 = vector.shape_cast %42 : vector<1x160x32xbf16> to vector<160x32xbf16>
    %cst_55 = arith.constant dense<0.000000e+00> : vector<256x32xf32>
    %44 = tpu.matmul %41, %43, %cst_55 {dimension_numbers = #tpu.dot_dimension_numbers<[1], [0], [0], [1], [0, 0, 1, 1], [], []>} : vector<256x160xbf16>, vector<160x32xbf16>, vector<256x32xf32> -> vector<256x32xf32>
    %45 = arith.addf %38, %44 : vector<256x32xf32>
    %c2_56 = arith.constant 2 : index
    %c0_57 = arith.constant 0 : index
    %c0_58 = arith.constant 0 : index
    %46 = vector.load %arg13[%c2_56, %c0_57, %c0_58] : memref<20x16x160xf32, #tpu.memory_space<vmem>>, vector<16x16x160xf32>
    %47 = vector.shape_cast %46 : vector<16x16x160xf32> to vector<256x160xf32>
    %48 = arith.truncf %47 : vector<256x160xf32> to vector<256x160xbf16>
    %c2_59 = arith.constant 2 : index
    %c0_60 = arith.constant 0 : index
    %c0_61 = arith.constant 0 : index
    %49 = vector.load %arg4[%c2_59, %c0_60, %c0_61] : memref<5x160x32xbf16, #tpu.memory_space<vmem>>, vector<1x160x32xbf16>
    %50 = vector.shape_cast %49 : vector<1x160x32xbf16> to vector<160x32xbf16>
    %cst_62 = arith.constant dense<0.000000e+00> : vector<256x32xf32>
    %51 = tpu.matmul %48, %50, %cst_62 {dimension_numbers = #tpu.dot_dimension_numbers<[1], [0], [0], [1], [0, 0, 1, 1], [], []>} : vector<256x160xbf16>, vector<160x32xbf16>, vector<256x32xf32> -> vector<256x32xf32>
    %52 = arith.addf %45, %51 : vector<256x32xf32>
    %c3 = arith.constant 3 : index
    %c0_63 = arith.constant 0 : index
    %c0_64 = arith.constant 0 : index
    %53 = vector.load %arg13[%c3, %c0_63, %c0_64] : memref<20x16x160xf32, #tpu.memory_space<vmem>>, vector<16x16x160xf32>
    %54 = vector.shape_cast %53 : vector<16x16x160xf32> to vector<256x160xf32>
    %55 = arith.truncf %54 : vector<256x160xf32> to vector<256x160xbf16>
    %c3_65 = arith.constant 3 : index
    %c0_66 = arith.constant 0 : index
    %c0_67 = arith.constant 0 : index
    %56 = vector.load %arg4[%c3_65, %c0_66, %c0_67] : memref<5x160x32xbf16, #tpu.memory_space<vmem>>, vector<1x160x32xbf16>
    %57 = vector.shape_cast %56 : vector<1x160x32xbf16> to vector<160x32xbf16>
    %cst_68 = arith.constant dense<0.000000e+00> : vector<256x32xf32>
    %58 = tpu.matmul %55, %57, %cst_68 {dimension_numbers = #tpu.dot_dimension_numbers<[1], [0], [0], [1], [0, 0, 1, 1], [], []>} : vector<256x160xbf16>, vector<160x32xbf16>, vector<256x32xf32> -> vector<256x32xf32>
    %59 = arith.addf %52, %58 : vector<256x32xf32>
    %c4 = arith.constant 4 : index
    %c0_69 = arith.constant 0 : index
    %c0_70 = arith.constant 0 : index
    %60 = vector.load %arg13[%c4, %c0_69, %c0_70] : memref<20x16x160xf32, #tpu.memory_space<vmem>>, vector<16x16x160xf32>
    %61 = vector.shape_cast %60 : vector<16x16x160xf32> to vector<256x160xf32>
    %62 = arith.truncf %61 : vector<256x160xf32> to vector<256x160xbf16>
    %c4_71 = arith.constant 4 : index
    %c0_72 = arith.constant 0 : index
    %c0_73 = arith.constant 0 : index
    %63 = vector.load %arg4[%c4_71, %c0_72, %c0_73] : memref<5x160x32xbf16, #tpu.memory_space<vmem>>, vector<1x160x32xbf16>
    %64 = vector.shape_cast %63 : vector<1x160x32xbf16> to vector<160x32xbf16>
    %cst_74 = arith.constant dense<0.000000e+00> : vector<256x32xf32>
    %65 = tpu.matmul %62, %64, %cst_74 {dimension_numbers = #tpu.dot_dimension_numbers<[1], [0], [0], [1], [0, 0, 1, 1], [], []>} : vector<256x160xbf16>, vector<160x32xbf16>, vector<256x32xf32> -> vector<256x32xf32>
    %66 = arith.addf %59, %65 : vector<256x32xf32>
    %67 = vector.broadcast %5 : vector<1x32xf32> to vector<256x32xf32>
    %68 = arith.addf %66, %67 : vector<256x32xf32>
    %69 = vector.shape_cast %68 : vector<256x32xf32> to vector<8x32x32xf32>
    %c0_75 = arith.constant 0 : index
    %c0_76 = arith.constant 0 : index
    %c0_77 = arith.constant 0 : index
    %70 = vector.load %arg16[%c0_75, %c0_76, %c0_77] : memref<8x32x32xf32, #tpu.memory_space<vmem>>, vector<8x32x32xf32>
    tpu.vector_store %arg16[%c0_75, %c0_76, %c0_77], %69 {strides = array<i32>} : memref<8x32x32xf32, #tpu.memory_space<vmem>>, vector<8x32x32xf32>,
    %c0_78 = arith.constant 0 : index
    %c0_79 = arith.constant 0 : index
    %c0_80 = arith.constant 0 : index
    %71 = tpu.strided_load %arg16[%c0_78, %c0_79, %c0_80] {strides = array<i32: 1, 2, 1>} : memref<8x32x32xf32, #tpu.memory_space<vmem>>, vector<8x8x32xf32>
    %c0_81 = arith.constant 0 : index
    %c1_82 = arith.constant 1 : index
    %c0_83 = arith.constant 0 : index
    %72 = tpu.strided_load %arg16[%c0_81, %c1_82, %c0_83] {strides = array<i32: 1, 2, 1>} : memref<8x32x32xf32, #tpu.memory_space<vmem>>, vector<8x8x32xf32>
    %73 = arith.maximumf %71, %72 : vector<8x8x32xf32>
    %c0_84 = arith.constant 0 : index
    %c16 = arith.constant 16 : index
    %c0_85 = arith.constant 0 : index
    %74 = tpu.strided_load %arg16[%c0_84, %c16, %c0_85] {strides = array<i32: 1, 2, 1>} : memref<8x32x32xf32, #tpu.memory_space<vmem>>, vector<8x8x32xf32>
    %c0_86 = arith.constant 0 : index
    %c17 = arith.constant 17 : index
    %c0_87 = arith.constant 0 : index
    %75 = tpu.strided_load %arg16[%c0_86, %c17, %c0_87] {strides = array<i32: 1, 2, 1>} : memref<8x32x32xf32, #tpu.memory_space<vmem>>, vector<8x8x32xf32>
    %76 = arith.maximumf %74, %75 : vector<8x8x32xf32>
    %77 = arith.maximumf %73, %76 : vector<8x8x32xf32>
    %78 = vector.extract_strided_slice %77 {offsets = [0, 0, 0], sizes = [8, 6, 32], strides = [1, 1, 1]} : vector<8x8x32xf32> to vector<8x6x32xf32>
    %c2_88 = arith.constant 2 : index
    %c2_89 = arith.constant 2 : index
    %c0_90 = arith.constant 0 : index
    %79 = vector.load %arg14[%c2_88, %c2_89, %c0_90] : memref<12x8x160xf32, #tpu.memory_space<vmem>>, vector<8x6x32xf32>
    tpu.vector_store %arg14[%c2_88, %c2_89, %c0_90], %78 {strides = array<i32>} : memref<12x8x160xf32, #tpu.memory_space<vmem>>, vector<8x6x32xf32>,
    %80 = vector.extract_strided_slice %77 {offsets = [0, 0, 0], sizes = [8, 7, 32], strides = [1, 1, 1]} : vector<8x8x32xf32> to vector<8x7x32xf32>
    %c2_91 = arith.constant 2 : index
    %c1_92 = arith.constant 1 : index
    %c32_93 = arith.constant 32 : index
    %81 = vector.load %arg14[%c2_91, %c1_92, %c32_93] : memref<12x8x160xf32, #tpu.memory_space<vmem>>, vector<8x7x32xf32>
    tpu.vector_store %arg14[%c2_91, %c1_92, %c32_93], %80 {strides = array<i32>} : memref<12x8x160xf32, #tpu.memory_space<vmem>>, vector<8x7x32xf32>,
    %c2_94 = arith.constant 2 : index
    %c0_95 = arith.constant 0 : index
    %c64_96 = arith.constant 64 : index
    %82 = vector.load %arg14[%c2_94, %c0_95, %c64_96] : memref<12x8x160xf32, #tpu.memory_space<vmem>>, vector<8x8x32xf32>
    tpu.vector_store %arg14[%c2_94, %c0_95, %c64_96], %77 {strides = array<i32>} : memref<12x8x160xf32, #tpu.memory_space<vmem>>, vector<8x8x32xf32>,
    %83 = vector.extract_strided_slice %77 {offsets = [0, 1, 0], sizes = [8, 7, 32], strides = [1, 1, 1]} : vector<8x8x32xf32> to vector<8x7x32xf32>
    %c2_97 = arith.constant 2 : index
    %c0_98 = arith.constant 0 : index
    %c96_99 = arith.constant 96 : index
    %84 = vector.load %arg14[%c2_97, %c0_98, %c96_99] : memref<12x8x160xf32, #tpu.memory_space<vmem>>, vector<8x7x32xf32>
    tpu.vector_store %arg14[%c2_97, %c0_98, %c96_99], %83 {strides = array<i32>} : memref<12x8x160xf32, #tpu.memory_space<vmem>>, vector<8x7x32xf32>,
    %85 = vector.extract_strided_slice %77 {offsets = [0, 2, 0], sizes = [8, 6, 32], strides = [1, 1, 1]} : vector<8x8x32xf32> to vector<8x6x32xf32>
    %c2_100 = arith.constant 2 : index
    %c0_101 = arith.constant 0 : index
    %c128_102 = arith.constant 128 : index
    %86 = vector.load %arg14[%c2_100, %c0_101, %c128_102] : memref<12x8x160xf32, #tpu.memory_space<vmem>>, vector<8x6x32xf32>
    tpu.vector_store %arg14[%c2_100, %c0_101, %c128_102], %85 {strides = array<i32>} : memref<12x8x160xf32, #tpu.memory_space<vmem>>, vector<8x6x32xf32>,
    %cst_103 = arith.constant 0.000000e+00 : f32
    %87 = vector.broadcast %cst_103 : f32 to vector<64x64xf32>
    %c0_104 = arith.constant 0 : index
    %c0_105 = arith.constant 0 : index
    %c0_106 = arith.constant 0 : index
    %88 = vector.load %arg14[%c0_104, %c0_105, %c0_106] : memref<12x8x160xf32, #tpu.memory_space<vmem>>, vector<8x8x160xf32>
    %89 = vector.shape_cast %88 : vector<8x8x160xf32> to vector<64x160xf32>
    %90 = arith.truncf %89 : vector<64x160xf32> to vector<64x160xbf16>
    %c0_107 = arith.constant 0 : index
    %c0_108 = arith.constant 0 : index
    %c0_109 = arith.constant 0 : index
    %91 = vector.load %arg6[%c0_107, %c0_108, %c0_109] : memref<5x160x64xbf16, #tpu.memory_space<vmem>>, vector<1x160x64xbf16>
    %92 = vector.shape_cast %91 : vector<1x160x64xbf16> to vector<160x64xbf16>
    %cst_110 = arith.constant dense<0.000000e+00> : vector<64x64xf32>
    %93 = tpu.matmul %90, %92, %cst_110 {dimension_numbers = #tpu.dot_dimension_numbers<[1], [0], [0], [1], [0, 0, 1, 1], [], []>} : vector<64x160xbf16>, vector<160x64xbf16>, vector<64x64xf32> -> vector<64x64xf32>
    %94 = arith.addf %87, %93 : vector<64x64xf32>
    %c1_111 = arith.constant 1 : index
    %c0_112 = arith.constant 0 : index
    %c0_113 = arith.constant 0 : index
    %95 = vector.load %arg14[%c1_111, %c0_112, %c0_113] : memref<12x8x160xf32, #tpu.memory_space<vmem>>, vector<8x8x160xf32>
    %96 = vector.shape_cast %95 : vector<8x8x160xf32> to vector<64x160xf32>
    %97 = arith.truncf %96 : vector<64x160xf32> to vector<64x160xbf16>
    %c1_114 = arith.constant 1 : index
    %c0_115 = arith.constant 0 : index
    %c0_116 = arith.constant 0 : index
    %98 = vector.load %arg6[%c1_114, %c0_115, %c0_116] : memref<5x160x64xbf16, #tpu.memory_space<vmem>>, vector<1x160x64xbf16>
    %99 = vector.shape_cast %98 : vector<1x160x64xbf16> to vector<160x64xbf16>
    %cst_117 = arith.constant dense<0.000000e+00> : vector<64x64xf32>
    %100 = tpu.matmul %97, %99, %cst_117 {dimension_numbers = #tpu.dot_dimension_numbers<[1], [0], [0], [1], [0, 0, 1, 1], [], []>} : vector<64x160xbf16>, vector<160x64xbf16>, vector<64x64xf32> -> vector<64x64xf32>
    %101 = arith.addf %94, %100 : vector<64x64xf32>
    %c2_118 = arith.constant 2 : index
    %c0_119 = arith.constant 0 : index
    %c0_120 = arith.constant 0 : index
    %102 = vector.load %arg14[%c2_118, %c0_119, %c0_120] : memref<12x8x160xf32, #tpu.memory_space<vmem>>, vector<8x8x160xf32>
    %103 = vector.shape_cast %102 : vector<8x8x160xf32> to vector<64x160xf32>
    %104 = arith.truncf %103 : vector<64x160xf32> to vector<64x160xbf16>
    %c2_121 = arith.constant 2 : index
    %c0_122 = arith.constant 0 : index
    %c0_123 = arith.constant 0 : index
    %105 = vector.load %arg6[%c2_121, %c0_122, %c0_123] : memref<5x160x64xbf16, #tpu.memory_space<vmem>>, vector<1x160x64xbf16>
    %106 = vector.shape_cast %105 : vector<1x160x64xbf16> to vector<160x64xbf16>
    %cst_124 = arith.constant dense<0.000000e+00> : vector<64x64xf32>
    %107 = tpu.matmul %104, %106, %cst_124 {dimension_numbers = #tpu.dot_dimension_numbers<[1], [0], [0], [1], [0, 0, 1, 1], [], []>} : vector<64x160xbf16>, vector<160x64xbf16>, vector<64x64xf32> -> vector<64x64xf32>
    %108 = arith.addf %101, %107 : vector<64x64xf32>
    %c3_125 = arith.constant 3 : index
    %c0_126 = arith.constant 0 : index
    %c0_127 = arith.constant 0 : index
    %109 = vector.load %arg14[%c3_125, %c0_126, %c0_127] : memref<12x8x160xf32, #tpu.memory_space<vmem>>, vector<8x8x160xf32>
    %110 = vector.shape_cast %109 : vector<8x8x160xf32> to vector<64x160xf32>
    %111 = arith.truncf %110 : vector<64x160xf32> to vector<64x160xbf16>
    %c3_128 = arith.constant 3 : index
    %c0_129 = arith.constant 0 : index
    %c0_130 = arith.constant 0 : index
    %112 = vector.load %arg6[%c3_128, %c0_129, %c0_130] : memref<5x160x64xbf16, #tpu.memory_space<vmem>>, vector<1x160x64xbf16>
    %113 = vector.shape_cast %112 : vector<1x160x64xbf16> to vector<160x64xbf16>
    %cst_131 = arith.constant dense<0.000000e+00> : vector<64x64xf32>
    %114 = tpu.matmul %111, %113, %cst_131 {dimension_numbers = #tpu.dot_dimension_numbers<[1], [0], [0], [1], [0, 0, 1, 1], [], []>} : vector<64x160xbf16>, vector<160x64xbf16>, vector<64x64xf32> -> vector<64x64xf32>
    %115 = arith.addf %108, %114 : vector<64x64xf32>
    %c4_132 = arith.constant 4 : index
    %c0_133 = arith.constant 0 : index
    %c0_134 = arith.constant 0 : index
    %116 = vector.load %arg14[%c4_132, %c0_133, %c0_134] : memref<12x8x160xf32, #tpu.memory_space<vmem>>, vector<8x8x160xf32>
    %117 = vector.shape_cast %116 : vector<8x8x160xf32> to vector<64x160xf32>
    %118 = arith.truncf %117 : vector<64x160xf32> to vector<64x160xbf16>
    %c4_135 = arith.constant 4 : index
    %c0_136 = arith.constant 0 : index
    %c0_137 = arith.constant 0 : index
    %119 = vector.load %arg6[%c4_135, %c0_136, %c0_137] : memref<5x160x64xbf16, #tpu.memory_space<vmem>>, vector<1x160x64xbf16>
    %120 = vector.shape_cast %119 : vector<1x160x64xbf16> to vector<160x64xbf16>
    %cst_138 = arith.constant dense<0.000000e+00> : vector<64x64xf32>
    %121 = tpu.matmul %118, %120, %cst_138 {dimension_numbers = #tpu.dot_dimension_numbers<[1], [0], [0], [1], [0, 0, 1, 1], [], []>} : vector<64x160xbf16>, vector<160x64xbf16>, vector<64x64xf32> -> vector<64x64xf32>
    %122 = arith.addf %115, %121 : vector<64x64xf32>
    %123 = vector.broadcast %6 : vector<1x64xf32> to vector<64x64xf32>
    %124 = arith.addf %122, %123 : vector<64x64xf32>
    %125 = vector.shape_cast %124 : vector<64x64xf32> to vector<4x16x64xf32>
    %c0_139 = arith.constant 0 : index
    %c0_140 = arith.constant 0 : index
    %c0_141 = arith.constant 0 : index
    %126 = vector.load %arg17[%c0_139, %c0_140, %c0_141] : memref<4x16x64xf32, #tpu.memory_space<vmem>>, vector<4x16x64xf32>
    tpu.vector_store %arg17[%c0_139, %c0_140, %c0_141], %125 {strides = array<i32>} : memref<4x16x64xf32, #tpu.memory_space<vmem>>, vector<4x16x64xf32>,
    %c0_142 = arith.constant 0 : index
    %c0_143 = arith.constant 0 : index
    %c0_144 = arith.constant 0 : index
    %127 = tpu.strided_load %arg17[%c0_142, %c0_143, %c0_144] {strides = array<i32: 1, 2, 1>} : memref<4x16x64xf32, #tpu.memory_space<vmem>>, vector<4x4x64xf32>
    %c0_145 = arith.constant 0 : index
    %c1_146 = arith.constant 1 : index
    %c0_147 = arith.constant 0 : index
    %128 = tpu.strided_load %arg17[%c0_145, %c1_146, %c0_147] {strides = array<i32: 1, 2, 1>} : memref<4x16x64xf32, #tpu.memory_space<vmem>>, vector<4x4x64xf32>
    %129 = arith.maximumf %127, %128 : vector<4x4x64xf32>
    %c0_148 = arith.constant 0 : index
    %c8 = arith.constant 8 : index
    %c0_149 = arith.constant 0 : index
    %130 = tpu.strided_load %arg17[%c0_148, %c8, %c0_149] {strides = array<i32: 1, 2, 1>} : memref<4x16x64xf32, #tpu.memory_space<vmem>>, vector<4x4x64xf32>
    %c0_150 = arith.constant 0 : index
    %c9 = arith.constant 9 : index
    %c0_151 = arith.constant 0 : index
    %131 = tpu.strided_load %arg17[%c0_150, %c9, %c0_151] {strides = array<i32: 1, 2, 1>} : memref<4x16x64xf32, #tpu.memory_space<vmem>>, vector<4x4x64xf32>
    %132 = arith.maximumf %130, %131 : vector<4x4x64xf32>
    %133 = arith.maximumf %129, %132 : vector<4x4x64xf32>
    %c0_152 = arith.constant 0 : index
    %c0_153 = arith.constant 0 : index
    %c0_154 = arith.constant 0 : index
    %c0_155 = arith.constant 0 : index
    %134 = vector.load %arg18[%c0_152, %c0_153, %c0_154, %c0_155] : memref<1x4x4x64xf32, #tpu.memory_space<vmem>>, vector<1x4x4x64xf32>
    %135 = vector.shape_cast %134 : vector<1x4x4x64xf32> to vector<4x4x64xf32>
    %136 = vector.shape_cast %133 : vector<4x4x64xf32> to vector<1x4x4x64xf32>
    tpu.vector_store %arg18[%c0_152, %c0_153, %c0_154, %c0_155], %136 {strides = array<i32>} : memref<1x4x4x64xf32, #tpu.memory_space<vmem>>, vector<1x4x4x64xf32>,
    %cst_156 = arith.constant 0.000000e+00 : f32
    %137 = vector.broadcast %cst_156 : f32 to vector<1x64xf32>
    %c0_157 = arith.constant 0 : index
    %c0_158 = arith.constant 0 : index
    %c0_159 = arith.constant 0 : index
    %c0_160 = arith.constant 0 : index
    %138 = vector.load %arg18[%c0_157, %c0_158, %c0_159, %c0_160] : memref<1x4x4x64xf32, #tpu.memory_space<vmem>>, vector<1x1x1x64xf32>
    %139 = vector.shape_cast %138 : vector<1x1x1x64xf32> to vector<1x64xf32>
    %140 = arith.truncf %139 : vector<1x64xf32> to vector<1x64xbf16>
    %c0_161 = arith.constant 0 : index
    %c0_162 = arith.constant 0 : index
    %c0_163 = arith.constant 0 : index
    %141 = vector.load %arg8[%c0_161, %c0_162, %c0_163] : memref<16x64x64xbf16, #tpu.memory_space<vmem>>, vector<1x64x64xbf16>
    %142 = vector.shape_cast %141 : vector<1x64x64xbf16> to vector<64x64xbf16>
    %cst_164 = arith.constant dense<0.000000e+00> : vector<1x64xf32>
    %143 = tpu.matmul %140, %142, %cst_164 {dimension_numbers = #tpu.dot_dimension_numbers<[1], [0], [0], [1], [0, 0, 1, 1], [], []>} : vector<1x64xbf16>, vector<64x64xbf16>, vector<1x64xf32> -> vector<1x64xf32>
    %144 = arith.addf %137, %143 : vector<1x64xf32>
    %c0_165 = arith.constant 0 : index
    %c0_166 = arith.constant 0 : index
    %c1_167 = arith.constant 1 : index
    %c0_168 = arith.constant 0 : index
    %145 = vector.load %arg18[%c0_165, %c0_166, %c1_167, %c0_168] : memref<1x4x4x64xf32, #tpu.memory_space<vmem>>, vector<1x1x1x64xf32>
    %146 = vector.shape_cast %145 : vector<1x1x1x64xf32> to vector<1x64xf32>
    %147 = arith.truncf %146 : vector<1x64xf32> to vector<1x64xbf16>
    %c1_169 = arith.constant 1 : index
    %c0_170 = arith.constant 0 : index
    %c0_171 = arith.constant 0 : index
    %148 = vector.load %arg8[%c1_169, %c0_170, %c0_171] : memref<16x64x64xbf16, #tpu.memory_space<vmem>>, vector<1x64x64xbf16>
    %149 = vector.shape_cast %148 : vector<1x64x64xbf16> to vector<64x64xbf16>
    %cst_172 = arith.constant dense<0.000000e+00> : vector<1x64xf32>
    %150 = tpu.matmul %147, %149, %cst_172 {dimension_numbers = #tpu.dot_dimension_numbers<[1], [0], [0], [1], [0, 0, 1, 1], [], []>} : vector<1x64xbf16>, vector<64x64xbf16>, vector<1x64xf32> -> vector<1x64xf32>
    %151 = arith.addf %144, %150 : vector<1x64xf32>
    %c0_173 = arith.constant 0 : index
    %c0_174 = arith.constant 0 : index
    %c2_175 = arith.constant 2 : index
    %c0_176 = arith.constant 0 : index
    %152 = vector.load %arg18[%c0_173, %c0_174, %c2_175, %c0_176] : memref<1x4x4x64xf32, #tpu.memory_space<vmem>>, vector<1x1x1x64xf32>
    %153 = vector.shape_cast %152 : vector<1x1x1x64xf32> to vector<1x64xf32>
    %154 = arith.truncf %153 : vector<1x64xf32> to vector<1x64xbf16>
    %c2_177 = arith.constant 2 : index
    %c0_178 = arith.constant 0 : index
    %c0_179 = arith.constant 0 : index
    %155 = vector.load %arg8[%c2_177, %c0_178, %c0_179] : memref<16x64x64xbf16, #tpu.memory_space<vmem>>, vector<1x64x64xbf16>
    %156 = vector.shape_cast %155 : vector<1x64x64xbf16> to vector<64x64xbf16>
    %cst_180 = arith.constant dense<0.000000e+00> : vector<1x64xf32>
    %157 = tpu.matmul %154, %156, %cst_180 {dimension_numbers = #tpu.dot_dimension_numbers<[1], [0], [0], [1], [0, 0, 1, 1], [], []>} : vector<1x64xbf16>, vector<64x64xbf16>, vector<1x64xf32> -> vector<1x64xf32>
    %158 = arith.addf %151, %157 : vector<1x64xf32>
    %c0_181 = arith.constant 0 : index
    %c0_182 = arith.constant 0 : index
    %c3_183 = arith.constant 3 : index
    %c0_184 = arith.constant 0 : index
    %159 = vector.load %arg18[%c0_181, %c0_182, %c3_183, %c0_184] : memref<1x4x4x64xf32, #tpu.memory_space<vmem>>, vector<1x1x1x64xf32>
    %160 = vector.shape_cast %159 : vector<1x1x1x64xf32> to vector<1x64xf32>
    %161 = arith.truncf %160 : vector<1x64xf32> to vector<1x64xbf16>
    %c3_185 = arith.constant 3 : index
    %c0_186 = arith.constant 0 : index
    %c0_187 = arith.constant 0 : index
    %162 = vector.load %arg8[%c3_185, %c0_186, %c0_187] : memref<16x64x64xbf16, #tpu.memory_space<vmem>>, vector<1x64x64xbf16>
    %163 = vector.shape_cast %162 : vector<1x64x64xbf16> to vector<64x64xbf16>
    %cst_188 = arith.constant dense<0.000000e+00> : vector<1x64xf32>
    %164 = tpu.matmul %161, %163, %cst_188 {dimension_numbers = #tpu.dot_dimension_numbers<[1], [0], [0], [1], [0, 0, 1, 1], [], []>} : vector<1x64xbf16>, vector<64x64xbf16>, vector<1x64xf32> -> vector<1x64xf32>
    %165 = arith.addf %158, %164 : vector<1x64xf32>
    %c0_189 = arith.constant 0 : index
    %c1_190 = arith.constant 1 : index
    %c0_191 = arith.constant 0 : index
    %c0_192 = arith.constant 0 : index
    %166 = vector.load %arg18[%c0_189, %c1_190, %c0_191, %c0_192] : memref<1x4x4x64xf32, #tpu.memory_space<vmem>>, vector<1x1x1x64xf32>
    %167 = vector.shape_cast %166 : vector<1x1x1x64xf32> to vector<1x64xf32>
    %168 = arith.truncf %167 : vector<1x64xf32> to vector<1x64xbf16>
    %c4_193 = arith.constant 4 : index
    %c0_194 = arith.constant 0 : index
    %c0_195 = arith.constant 0 : index
    %169 = vector.load %arg8[%c4_193, %c0_194, %c0_195] : memref<16x64x64xbf16, #tpu.memory_space<vmem>>, vector<1x64x64xbf16>
    %170 = vector.shape_cast %169 : vector<1x64x64xbf16> to vector<64x64xbf16>
    %cst_196 = arith.constant dense<0.000000e+00> : vector<1x64xf32>
    %171 = tpu.matmul %168, %170, %cst_196 {dimension_numbers = #tpu.dot_dimension_numbers<[1], [0], [0], [1], [0, 0, 1, 1], [], []>} : vector<1x64xbf16>, vector<64x64xbf16>, vector<1x64xf32> -> vector<1x64xf32>
    %172 = arith.addf %165, %171 : vector<1x64xf32>
    %c0_197 = arith.constant 0 : index
    %c1_198 = arith.constant 1 : index
    %c1_199 = arith.constant 1 : index
    %c0_200 = arith.constant 0 : index
    %173 = vector.load %arg18[%c0_197, %c1_198, %c1_199, %c0_200] : memref<1x4x4x64xf32, #tpu.memory_space<vmem>>, vector<1x1x1x64xf32>
    %174 = vector.shape_cast %173 : vector<1x1x1x64xf32> to vector<1x64xf32>
    %175 = arith.truncf %174 : vector<1x64xf32> to vector<1x64xbf16>
    %c5 = arith.constant 5 : index
    %c0_201 = arith.constant 0 : index
    %c0_202 = arith.constant 0 : index
    %176 = vector.load %arg8[%c5, %c0_201, %c0_202] : memref<16x64x64xbf16, #tpu.memory_space<vmem>>, vector<1x64x64xbf16>
    %177 = vector.shape_cast %176 : vector<1x64x64xbf16> to vector<64x64xbf16>
    %cst_203 = arith.constant dense<0.000000e+00> : vector<1x64xf32>
    %178 = tpu.matmul %175, %177, %cst_203 {dimension_numbers = #tpu.dot_dimension_numbers<[1], [0], [0], [1], [0, 0, 1, 1], [], []>} : vector<1x64xbf16>, vector<64x64xbf16>, vector<1x64xf32> -> vector<1x64xf32>
    %179 = arith.addf %172, %178 : vector<1x64xf32>
    %c0_204 = arith.constant 0 : index
    %c1_205 = arith.constant 1 : index
    %c2_206 = arith.constant 2 : index
    %c0_207 = arith.constant 0 : index
    %180 = vector.load %arg18[%c0_204, %c1_205, %c2_206, %c0_207] : memref<1x4x4x64xf32, #tpu.memory_space<vmem>>, vector<1x1x1x64xf32>
    %181 = vector.shape_cast %180 : vector<1x1x1x64xf32> to vector<1x64xf32>
    %182 = arith.truncf %181 : vector<1x64xf32> to vector<1x64xbf16>
    %c6 = arith.constant 6 : index
    %c0_208 = arith.constant 0 : index
    %c0_209 = arith.constant 0 : index
    %183 = vector.load %arg8[%c6, %c0_208, %c0_209] : memref<16x64x64xbf16, #tpu.memory_space<vmem>>, vector<1x64x64xbf16>
    %184 = vector.shape_cast %183 : vector<1x64x64xbf16> to vector<64x64xbf16>
    %cst_210 = arith.constant dense<0.000000e+00> : vector<1x64xf32>
    %185 = tpu.matmul %182, %184, %cst_210 {dimension_numbers = #tpu.dot_dimension_numbers<[1], [0], [0], [1], [0, 0, 1, 1], [], []>} : vector<1x64xbf16>, vector<64x64xbf16>, vector<1x64xf32> -> vector<1x64xf32>
    %186 = arith.addf %179, %185 : vector<1x64xf32>
    %c0_211 = arith.constant 0 : index
    %c1_212 = arith.constant 1 : index
    %c3_213 = arith.constant 3 : index
    %c0_214 = arith.constant 0 : index
    %187 = vector.load %arg18[%c0_211, %c1_212, %c3_213, %c0_214] : memref<1x4x4x64xf32, #tpu.memory_space<vmem>>, vector<1x1x1x64xf32>
    %188 = vector.shape_cast %187 : vector<1x1x1x64xf32> to vector<1x64xf32>
    %189 = arith.truncf %188 : vector<1x64xf32> to vector<1x64xbf16>
    %c7 = arith.constant 7 : index
    %c0_215 = arith.constant 0 : index
    %c0_216 = arith.constant 0 : index
    %190 = vector.load %arg8[%c7, %c0_215, %c0_216] : memref<16x64x64xbf16, #tpu.memory_space<vmem>>, vector<1x64x64xbf16>
    %191 = vector.shape_cast %190 : vector<1x64x64xbf16> to vector<64x64xbf16>
    %cst_217 = arith.constant dense<0.000000e+00> : vector<1x64xf32>
    %192 = tpu.matmul %189, %191, %cst_217 {dimension_numbers = #tpu.dot_dimension_numbers<[1], [0], [0], [1], [0, 0, 1, 1], [], []>} : vector<1x64xbf16>, vector<64x64xbf16>, vector<1x64xf32> -> vector<1x64xf32>
    %193 = arith.addf %186, %192 : vector<1x64xf32>
    %c0_218 = arith.constant 0 : index
    %c2_219 = arith.constant 2 : index
    %c0_220 = arith.constant 0 : index
    %c0_221 = arith.constant 0 : index
    %194 = vector.load %arg18[%c0_218, %c2_219, %c0_220, %c0_221] : memref<1x4x4x64xf32, #tpu.memory_space<vmem>>, vector<1x1x1x64xf32>
    %195 = vector.shape_cast %194 : vector<1x1x1x64xf32> to vector<1x64xf32>
    %196 = arith.truncf %195 : vector<1x64xf32> to vector<1x64xbf16>
    %c8_222 = arith.constant 8 : index
    %c0_223 = arith.constant 0 : index
    %c0_224 = arith.constant 0 : index
    %197 = vector.load %arg8[%c8_222, %c0_223, %c0_224] : memref<16x64x64xbf16, #tpu.memory_space<vmem>>, vector<1x64x64xbf16>
    %198 = vector.shape_cast %197 : vector<1x64x64xbf16> to vector<64x64xbf16>
    %cst_225 = arith.constant dense<0.000000e+00> : vector<1x64xf32>
    %199 = tpu.matmul %196, %198, %cst_225 {dimension_numbers = #tpu.dot_dimension_numbers<[1], [0], [0], [1], [0, 0, 1, 1], [], []>} : vector<1x64xbf16>, vector<64x64xbf16>, vector<1x64xf32> -> vector<1x64xf32>
    %200 = arith.addf %193, %199 : vector<1x64xf32>
    %c0_226 = arith.constant 0 : index
    %c2_227 = arith.constant 2 : index
    %c1_228 = arith.constant 1 : index
    %c0_229 = arith.constant 0 : index
    %201 = vector.load %arg18[%c0_226, %c2_227, %c1_228, %c0_229] : memref<1x4x4x64xf32, #tpu.memory_space<vmem>>, vector<1x1x1x64xf32>
    %202 = vector.shape_cast %201 : vector<1x1x1x64xf32> to vector<1x64xf32>
    %203 = arith.truncf %202 : vector<1x64xf32> to vector<1x64xbf16>
    %c9_230 = arith.constant 9 : index
    %c0_231 = arith.constant 0 : index
    %c0_232 = arith.constant 0 : index
    %204 = vector.load %arg8[%c9_230, %c0_231, %c0_232] : memref<16x64x64xbf16, #tpu.memory_space<vmem>>, vector<1x64x64xbf16>
    %205 = vector.shape_cast %204 : vector<1x64x64xbf16> to vector<64x64xbf16>
    %cst_233 = arith.constant dense<0.000000e+00> : vector<1x64xf32>
    %206 = tpu.matmul %203, %205, %cst_233 {dimension_numbers = #tpu.dot_dimension_numbers<[1], [0], [0], [1], [0, 0, 1, 1], [], []>} : vector<1x64xbf16>, vector<64x64xbf16>, vector<1x64xf32> -> vector<1x64xf32>
    %207 = arith.addf %200, %206 : vector<1x64xf32>
    %c0_234 = arith.constant 0 : index
    %c2_235 = arith.constant 2 : index
    %c2_236 = arith.constant 2 : index
    %c0_237 = arith.constant 0 : index
    %208 = vector.load %arg18[%c0_234, %c2_235, %c2_236, %c0_237] : memref<1x4x4x64xf32, #tpu.memory_space<vmem>>, vector<1x1x1x64xf32>
    %209 = vector.shape_cast %208 : vector<1x1x1x64xf32> to vector<1x64xf32>
    %210 = arith.truncf %209 : vector<1x64xf32> to vector<1x64xbf16>
    %c10 = arith.constant 10 : index
    %c0_238 = arith.constant 0 : index
    %c0_239 = arith.constant 0 : index
    %211 = vector.load %arg8[%c10, %c0_238, %c0_239] : memref<16x64x64xbf16, #tpu.memory_space<vmem>>, vector<1x64x64xbf16>
    %212 = vector.shape_cast %211 : vector<1x64x64xbf16> to vector<64x64xbf16>
    %cst_240 = arith.constant dense<0.000000e+00> : vector<1x64xf32>
    %213 = tpu.matmul %210, %212, %cst_240 {dimension_numbers = #tpu.dot_dimension_numbers<[1], [0], [0], [1], [0, 0, 1, 1], [], []>} : vector<1x64xbf16>, vector<64x64xbf16>, vector<1x64xf32> -> vector<1x64xf32>
    %214 = arith.addf %207, %213 : vector<1x64xf32>
    %c0_241 = arith.constant 0 : index
    %c2_242 = arith.constant 2 : index
    %c3_243 = arith.constant 3 : index
    %c0_244 = arith.constant 0 : index
    %215 = vector.load %arg18[%c0_241, %c2_242, %c3_243, %c0_244] : memref<1x4x4x64xf32, #tpu.memory_space<vmem>>, vector<1x1x1x64xf32>
    %216 = vector.shape_cast %215 : vector<1x1x1x64xf32> to vector<1x64xf32>
    %217 = arith.truncf %216 : vector<1x64xf32> to vector<1x64xbf16>
    %c11 = arith.constant 11 : index
    %c0_245 = arith.constant 0 : index
    %c0_246 = arith.constant 0 : index
    %218 = vector.load %arg8[%c11, %c0_245, %c0_246] : memref<16x64x64xbf16, #tpu.memory_space<vmem>>, vector<1x64x64xbf16>
    %219 = vector.shape_cast %218 : vector<1x64x64xbf16> to vector<64x64xbf16>
    %cst_247 = arith.constant dense<0.000000e+00> : vector<1x64xf32>
    %220 = tpu.matmul %217, %219, %cst_247 {dimension_numbers = #tpu.dot_dimension_numbers<[1], [0], [0], [1], [0, 0, 1, 1], [], []>} : vector<1x64xbf16>, vector<64x64xbf16>, vector<1x64xf32> -> vector<1x64xf32>
    %221 = arith.addf %214, %220 : vector<1x64xf32>
    %c0_248 = arith.constant 0 : index
    %c3_249 = arith.constant 3 : index
    %c0_250 = arith.constant 0 : index
    %c0_251 = arith.constant 0 : index
    %222 = vector.load %arg18[%c0_248, %c3_249, %c0_250, %c0_251] : memref<1x4x4x64xf32, #tpu.memory_space<vmem>>, vector<1x1x1x64xf32>
    %223 = vector.shape_cast %222 : vector<1x1x1x64xf32> to vector<1x64xf32>
    %224 = arith.truncf %223 : vector<1x64xf32> to vector<1x64xbf16>
    %c12 = arith.constant 12 : index
    %c0_252 = arith.constant 0 : index
    %c0_253 = arith.constant 0 : index
    %225 = vector.load %arg8[%c12, %c0_252, %c0_253] : memref<16x64x64xbf16, #tpu.memory_space<vmem>>, vector<1x64x64xbf16>
    %226 = vector.shape_cast %225 : vector<1x64x64xbf16> to vector<64x64xbf16>
    %cst_254 = arith.constant dense<0.000000e+00> : vector<1x64xf32>
    %227 = tpu.matmul %224, %226, %cst_254 {dimension_numbers = #tpu.dot_dimension_numbers<[1], [0], [0], [1], [0, 0, 1, 1], [], []>} : vector<1x64xbf16>, vector<64x64xbf16>, vector<1x64xf32> -> vector<1x64xf32>
    %228 = arith.addf %221, %227 : vector<1x64xf32>
    %c0_255 = arith.constant 0 : index
    %c3_256 = arith.constant 3 : index
    %c1_257 = arith.constant 1 : index
    %c0_258 = arith.constant 0 : index
    %229 = vector.load %arg18[%c0_255, %c3_256, %c1_257, %c0_258] : memref<1x4x4x64xf32, #tpu.memory_space<vmem>>, vector<1x1x1x64xf32>
    %230 = vector.shape_cast %229 : vector<1x1x1x64xf32> to vector<1x64xf32>
    %231 = arith.truncf %230 : vector<1x64xf32> to vector<1x64xbf16>
    %c13 = arith.constant 13 : index
    %c0_259 = arith.constant 0 : index
    %c0_260 = arith.constant 0 : index
    %232 = vector.load %arg8[%c13, %c0_259, %c0_260] : memref<16x64x64xbf16, #tpu.memory_space<vmem>>, vector<1x64x64xbf16>
    %233 = vector.shape_cast %232 : vector<1x64x64xbf16> to vector<64x64xbf16>
    %cst_261 = arith.constant dense<0.000000e+00> : vector<1x64xf32>
    %234 = tpu.matmul %231, %233, %cst_261 {dimension_numbers = #tpu.dot_dimension_numbers<[1], [0], [0], [1], [0, 0, 1, 1], [], []>} : vector<1x64xbf16>, vector<64x64xbf16>, vector<1x64xf32> -> vector<1x64xf32>
    %235 = arith.addf %228, %234 : vector<1x64xf32>
    %c0_262 = arith.constant 0 : index
    %c3_263 = arith.constant 3 : index
    %c2_264 = arith.constant 2 : index
    %c0_265 = arith.constant 0 : index
    %236 = vector.load %arg18[%c0_262, %c3_263, %c2_264, %c0_265] : memref<1x4x4x64xf32, #tpu.memory_space<vmem>>, vector<1x1x1x64xf32>
    %237 = vector.shape_cast %236 : vector<1x1x1x64xf32> to vector<1x64xf32>
    %238 = arith.truncf %237 : vector<1x64xf32> to vector<1x64xbf16>
    %c14 = arith.constant 14 : index
    %c0_266 = arith.constant 0 : index
    %c0_267 = arith.constant 0 : index
    %239 = vector.load %arg8[%c14, %c0_266, %c0_267] : memref<16x64x64xbf16, #tpu.memory_space<vmem>>, vector<1x64x64xbf16>
    %240 = vector.shape_cast %239 : vector<1x64x64xbf16> to vector<64x64xbf16>
    %cst_268 = arith.constant dense<0.000000e+00> : vector<1x64xf32>
    %241 = tpu.matmul %238, %240, %cst_268 {dimension_numbers = #tpu.dot_dimension_numbers<[1], [0], [0], [1], [0, 0, 1, 1], [], []>} : vector<1x64xbf16>, vector<64x64xbf16>, vector<1x64xf32> -> vector<1x64xf32>
    %242 = arith.addf %235, %241 : vector<1x64xf32>
    %c0_269 = arith.constant 0 : index
    %c3_270 = arith.constant 3 : index
    %c3_271 = arith.constant 3 : index
    %c0_272 = arith.constant 0 : index
    %243 = vector.load %arg18[%c0_269, %c3_270, %c3_271, %c0_272] : memref<1x4x4x64xf32, #tpu.memory_space<vmem>>, vector<1x1x1x64xf32>
    %244 = vector.shape_cast %243 : vector<1x1x1x64xf32> to vector<1x64xf32>
    %245 = arith.truncf %244 : vector<1x64xf32> to vector<1x64xbf16>
    %c15 = arith.constant 15 : index
    %c0_273 = arith.constant 0 : index
    %c0_274 = arith.constant 0 : index
    %246 = vector.load %arg8[%c15, %c0_273, %c0_274] : memref<16x64x64xbf16, #tpu.memory_space<vmem>>, vector<1x64x64xbf16>
    %247 = vector.shape_cast %246 : vector<1x64x64xbf16> to vector<64x64xbf16>
    %cst_275 = arith.constant dense<0.000000e+00> : vector<1x64xf32>
    %248 = tpu.matmul %245, %247, %cst_275 {dimension_numbers = #tpu.dot_dimension_numbers<[1], [0], [0], [1], [0, 0, 1, 1], [], []>} : vector<1x64xbf16>, vector<64x64xbf16>, vector<1x64xf32> -> vector<1x64xf32>
    %249 = arith.addf %242, %248 : vector<1x64xf32>
    %c0_276 = arith.constant 0 : index
    %c0_277 = arith.constant 0 : index
    %250 = vector.load %arg9[%c0_276, %c0_277] : memref<1x64xf32, #tpu.memory_space<vmem>>, vector<1x64xf32>
    %251 = arith.addf %249, %250 : vector<1x64xf32>
    %252 = arith.truncf %251 : vector<1x64xf32> to vector<1x64xbf16>
    %c0_278 = arith.constant 0 : index
    %c0_279 = arith.constant 0 : index
    %253 = vector.load %arg10[%c0_278, %c0_279] : memref<64x10xbf16, #tpu.memory_space<vmem>>, vector<64x10xbf16>
    %cst_280 = arith.constant dense<0.000000e+00> : vector<1x10xf32>
    %254 = tpu.matmul %252, %253, %cst_280 {dimension_numbers = #tpu.dot_dimension_numbers<[1], [0], [0], [1], [0, 0, 1, 1], [], []>} : vector<1x64xbf16>, vector<64x10xbf16>, vector<1x10xf32> -> vector<1x10xf32>
    %c0_281 = arith.constant 0 : index
    %c0_282 = arith.constant 0 : index
    %255 = vector.load %arg11[%c0_281, %c0_282] : memref<1x10xf32, #tpu.memory_space<vmem>>, vector<1x10xf32>
    %256 = arith.addf %254, %255 : vector<1x10xf32>
    %c0_283 = arith.constant 0 : index
    %c0_284 = arith.constant 0 : index
    %c0_285 = arith.constant 0 : index
    %257 = vector.load %arg12[%c0_283, %c0_284, %c0_285] : memref<1x1x10xf32, #tpu.memory_space<vmem>>, vector<1x1x10xf32>
    %258 = vector.shape_cast %257 : vector<1x1x10xf32> to vector<1x10xf32>
    %259 = vector.shape_cast %256 : vector<1x10xf32> to vector<1x1x10xf32>
    tpu.vector_store %arg12[%c0_283, %c0_284, %c0_285], %259 {strides = array<i32>} : memref<1x1x10xf32, #tpu.memory_space<vmem>>, vector<1x1x10xf32>,
    return
  }
  func.func @transform_0(%arg0: i32) -> (i32, i32, i32) {
    %c0_i32 = arith.constant 0 : i32
    %c0_i32_0 = arith.constant 0 : i32
    %c0_i32_1 = arith.constant 0 : i32
    return %arg0, %c0_i32, %c0_i32_0 : i32, i32, i32
  }
  func.func @transform_1(%arg0: i32) -> (i32, i32) {
    %c0_i32 = arith.constant 0 : i32
    %c0_i32_0 = arith.constant 0 : i32
    %c0_i32_1 = arith.constant 0 : i32
    return %c0_i32, %c0_i32_0 : i32, i32
  }
  func.func @transform_2(%arg0: i32) -> (i32, i32) {
    %c0_i32 = arith.constant 0 : i32
    %c0_i32_0 = arith.constant 0 : i32
    %c0_i32_1 = arith.constant 0 : i32
    return %c0_i32, %c0_i32_0 : i32, i32
  }
  func.func @transform_3(%arg0: i32) -> (i32, i32, i32) {
    %c0_i32 = arith.constant 0 : i32
    %c0_i32_0 = arith.constant 0 : i32
    %c0_i32_1 = arith.constant 0 : i32
    %c0_i32_2 = arith.constant 0 : i32
    return %c0_i32, %c0_i32_0, %c0_i32_1 : i32, i32, i32
  }
  func.func @transform_4(%arg0: i32) -> (i32, i32) {
    %c0_i32 = arith.constant 0 : i32
    %c0_i32_0 = arith.constant 0 : i32
    %c0_i32_1 = arith.constant 0 : i32
    return %c0_i32, %c0_i32_0 : i32, i32
  }
  func.func @transform_5(%arg0: i32) -> (i32, i32, i32) {
    %c0_i32 = arith.constant 0 : i32
    %c0_i32_0 = arith.constant 0 : i32
    %c0_i32_1 = arith.constant 0 : i32
    %c0_i32_2 = arith.constant 0 : i32
    return %c0_i32, %c0_i32_0, %c0_i32_1 : i32, i32, i32
  }
  func.func @transform_6(%arg0: i32) -> (i32, i32) {
    %c0_i32 = arith.constant 0 : i32
    %c0_i32_0 = arith.constant 0 : i32
    %c0_i32_1 = arith.constant 0 : i32
    return %c0_i32, %c0_i32_0 : i32, i32
  }
  func.func @transform_7(%arg0: i32) -> (i32, i32, i32) {
    %c0_i32 = arith.constant 0 : i32
    %c0_i32_0 = arith.constant 0 : i32
    %c0_i32_1 = arith.constant 0 : i32
    %c0_i32_2 = arith.constant 0 : i32
    return %c0_i32, %c0_i32_0, %c0_i32_1 : i32, i32, i32
  }
  func.func @transform_8(%arg0: i32) -> (i32, i32) {
    %c0_i32 = arith.constant 0 : i32
    %c0_i32_0 = arith.constant 0 : i32
    %c0_i32_1 = arith.constant 0 : i32
    return %c0_i32, %c0_i32_0 : i32, i32
  }
  func.func @transform_9(%arg0: i32) -> (i32, i32) {
    %c0_i32 = arith.constant 0 : i32
    %c0_i32_0 = arith.constant 0 : i32
    %c0_i32_1 = arith.constant 0 : i32
    return %c0_i32, %c0_i32_0 : i32, i32
  }
  func.func @transform_10(%arg0: i32) -> (i32, i32) {
    %c0_i32 = arith.constant 0 : i32
    %c0_i32_0 = arith.constant 0 : i32
    %c0_i32_1 = arith.constant 0 : i32
    return %c0_i32, %c0_i32_0 : i32, i32
  }
  func.func @transform_11(%arg0: i32) -> (i32, i32, i32) {
    %c0_i32 = arith.constant 0 : i32
    %c0_i32_0 = arith.constant 0 : i32
    %c0_i32_1 = arith.constant 0 : i32
    return %arg0, %c0_i32, %c0_i32_0 : i32, i32, i32
  }
}

</mosaic_0001>

<bundles_post_ra>
// kernel: net_forward.1
= control target key start
LH: loop header
LB: loop body
LE: loop exit
PB: predicated region body
PF: predicated region fallthrough
CT: control target
= control target key end

     0   :  { %s12038_s0 = inlined_call_operand.vmem [shape: bf16[2,1024,75], index: 0, kind: input, shape index: {}]   ;;  %s12039_s1 = inlined_call_operand.vmem [shape: bf16[75,32], index: 1, kind: input, shape index: {}]   ;;  %s12040_s2 = inlined_call_operand.vmem [shape: f32[1,32], index: 2, kind: input, shape index: {}]   ;;  %s12041_s3 = inlined_call_operand.vmem [shape: bf16[5,160,32], index: 3, kind: input, shape index: {}]   ;;  %s12042_s4 = inlined_call_operand.vmem [shape: f32[1,32], index: 4, kind: input, shape index: {}]   ;;  %s12043_s5 = inlined_call_operand.vmem [shape: bf16[5,160,64], index: 5, kind: input, shape index: {}]   ;;  %s12044_s6 = inlined_call_operand.vmem [shape: f32[1,64], index: 6, kind: input, shape index: {}]   ;;  %s12045_s7 = inlined_call_operand.vmem [shape: bf16[16,64,64], index: 7, kind: input, shape index: {}]   ;;  %s12046_s8 = inlined_call_operand.vmem [shape: f32[1,64], index: 8, kind: input, shape index: {}]   ;;  %s12047_s9 = inlined_call_operand.vmem [shape: bf16[64,10], index: 9, kind: input, shape index: {}]   ;;  %s12048_s10 = inlined_call_operand.vmem [shape: f32[1,10], index: 10, kind: input, shape index: {}]   ;;  %s12049_s11 = inlined_call_operand.hbm [shape: f32[2,1,10], index: 11, kind: output, shape index: {}]  }
   0x1   :  { %12052 = sst [smem:[#allocation82_spill]] %s12038_s0 }
   0x2   :  { %16 = vsyncpa [#allocation9], 0 }
   0x3   :  { %18 = vsyncpa [#allocation9 + $0x1], 0  ;;  %s9357_s17 = smov 0   ;;  %s9359_s18 = smov 0  }
   0x4   :  { %s9361_s19 = smov 0   ;;  %s9363_s20 = smov 0  }
   0x5 LB: > { %s9378_s21 = sadd.s32 4294967295, %s9286_s20   ;;  %s7731_s22 = sadd.s32 4294967294, %s9286_s20   ;;  %s9286_s20 = sphi %s9363_s20, %s12202_s20   ;;  %s9282_s19 = sphi %s9361_s19, %s12201_s19   ;;  %s9278_s18 = sphi %s9359_s18, %s12200_s18   ;;  %s9274_s17 = sphi %s9357_s17, %s12199_s17  }
   0x6   : > { %s9382_s23 = sadd.s32 1, %s9286_s20   ;;  %s267_s24 = sadd.s32 1, %s9282_s19 }
   0x7   : > { %s264_s25 = ssub.s32 %s9286_s20, %s9382_s23  ;;  %p277_p0 = scmp.ne.s32.totalorder %s9282_s19, %s9278_s18 }
   0x8   : > { %p265_p1 = scmp.eq.s32.totalorder %s264_s25, 0  ;;  %p278_p2 = scmp.eq.s32.totalorder %s9378_s21, 1 }
   0x9   : > { %p283_p3 = scmp.ne.s32.totalorder %s9278_s18, %s9274_s17  ;;  %p284_p4 = scmp.eq.s32.totalorder %s7731_s22, 1 }
   0xa   : > { %s9393_s26 = scalar_select %p265_p1, %s9282_s19, %s267_s24  }
   0xb   : > { %p9395_p5 = por %p278_p2, %p277_p0  ;;  %p9399_p6 = por %p284_p4, %p283_p3 }
   0xc   : > { %p7734_p7 = scmp.ge.s32.totalorder %s9286_s20, 1  ;;  %p340_p8 = scmp.lt.s32.totalorder %s9286_s20, 3 }
   0xe   : > { %p341_p9 = pnand %p7734_p7, %p340_p8 }
  0x10   : > { %344 = sbr.rel (%p341_p9) target bundleno = 2047 (0x7ff), region = 64 }
  0x15   : > { %v8984_v0 = vld [vmem:[%s12039_s1 + $0x20] sm:$0x3f]   ;;  %vm1179_vm0 = vcmask 1044480   ;;  %vm1180_vm1 = vcmask 1045504   ;;  %v9288_v1 = vmov 65535   ;;  %v8985_v4 = vld [vmem:[%s12039_s1 + $0x18] sm:$0xff]  }
  0x16   : > { %v1181_v2 = vsel %vm1179_vm0, 4294967295, %v9288_v1  ;;  %p379_p10 = scmp.lt.s32.totalorder %s9378_s21, 1  ;;  %v8986_v6 = vld [vmem:[%s12039_s1 + $0x10] sm:$0xff]   ;;  %vm986_vm2 = vcmask 613376   ;;  %s12055_s0 = sld [smem:[#allocation82_spill]]  ;;  %v8987_v8 = vld [vmem:[%s12039_s1 + $0x8] sm:$0xff]  }
  0x17   : > { %v1182_v3 = vsel %vm1180_vm1, %v1181_v2, 0  ;;  %v8988_v9 = vld [vmem:[%s12039_s1] sm:$0xff]   ;;  %v9039_v28 = vld [vmem:[%s12041_s3 + $0x88] sm:$0xff]   ;;  %v12050_v29 = vmov 0   ;;  %v9043_v33 = vld [vmem:[%s12041_s3 + $0x78] sm:$0xff]   ;;  %vm386_vm3 = vcmask 261120  }
  0x18   : > { %v1184_v5 = vand.u32 %v8984_v0, %v1182_v3  ;;  %s380_s16 = scalar_select %p379_p10, %s9378_s21, 1  ;;  %3299 = vmatprep.subr.bf16.mxu1 %v12050_v29  ;;  %v9040_v31 = vld [vmem:[%s12041_s3 + $0x80] sm:$0xff]   ;;  %v9044_v35 = vld [vmem:[%s12041_s3 + $0x70] sm:$0xff]   ;;  %v9047_v37 = vld [vmem:[%s12041_s3 + $0x68] sm:$0xff]   ;;  %v9290_v43 = vmov 0.0   ;;  %v9291_v54 = vmov 0.0|0.0  }
  0x19   : > { %3300 = vmatpush1.bf16.msra.mxu1 %v9039_v28  ;;  %v9048_v39 = vld [vmem:[%s12041_s3 + $0x60] sm:$0xff]   ;;  %v9051_v41 = vld [vmem:[%s12041_s3 + $0x58] sm:$0xff]   ;;  %397 = vst.msk [vmem:[#allocation2 + $0x58] sm:$0xff] %vm386_vm3, %v9290_v43  ;;  %385 = vst [vmem:[#allocation2] sm:$0xff] %v9290_v43  ;;  %vm2925_vm4 = vcmask 259072   ;;  %vm2324_vm5 = vcmask 261122  }
  0x1a   : > { %8596 = vmatprep.subr.bf16.mxu0 %v1184_v5  ;;  %s8441_s22 = sshll.u32 %s380_s16, 9  ;;  %3301 = vmatprep.subr.bf16.mxu1 %v12050_v29  ;;  %387 = vst.msk [vmem:[#allocation2 + $0x8] sm:$0xff] %vm386_vm3, %v9290_v43  ;;  %389 = vst.msk [vmem:[#allocation2 + $0x18] sm:$0xff] %vm386_vm3, %v9290_v43  ;;  %v9052_v44 = vld [vmem:[%s12041_s3 + $0x50] sm:$0xff]   ;;  %v9055_v46 = vld [vmem:[%s12041_s3 + $0x98] sm:$0xff]   ;;  %vm2242_vm6 = vcmask 1041408  }
  0x1b   : > { %8597 = vmatpush3.bf16.msra.mxu0 %v1184_v5  ;;  %391 = vst.msk [vmem:[#allocation2 + $0x28] sm:$0xff] %vm386_vm3, %v9290_v43  ;;  %393 = vst.msk [vmem:[#allocation2 + $0x38] sm:$0xff] %vm386_vm3, %v9290_v43  ;;  %v9056_v49 = vld [vmem:[%s12041_s3 + $0x90] sm:$0xff]   ;;  %s9293_s30 = smov 32   ;;  %vm2357_vm7 = vcmask 1040384   ;;  %s9294_s14 = smov 96  }
  0x1c   : > { %8598 = vmatprep.subr.bf16.mxu0 %v8985_v4  ;;  %s9420_s29 = scalar_lea.vmem %s12055_s0, %s8441_s22  ;;  %394 = vst [vmem:[#allocation2 + $0x40] sm:$0xff] %v9290_v43  ;;  %395 = vst.msk [vmem:[#allocation2 + $0x48] sm:$0xff] %vm386_vm3, %v9290_v43  ;;  %s9292_s22 = smov 64   ;;  %vm2665_vm8 = vcmask 1046528   ;;  %vm2502_vm9 = vcmask 523521   ;;  %vm2632_vm10 = vcmask 785920  }
  0x1d   : > { %v8989_v7 = vld [vmem:[%s9420_s29] sm:$0xff]   ;;  %v8990_v10 = vld [vmem:[%s9420_s29 + $0x8] sm:$0xff]   ;;  %v8991_v11 = vld [vmem:[%s9420_s29 + $0x10] sm:$0xff]   ;;  %3302 = vmatpush1.bf16.msra.mxu1 %v9040_v31  ;;  %396 = vst [vmem:[#allocation2 + $0x50] sm:$0xff] %v9290_v43  ;;  %vm2504_vm11 = vcmask 523520   ;;  %vm2812_vm12 = vcmask 1047296  }
  0x1e   : > { %8606 = vmatprep.mubr.msk.bf16.mxu0 %vm986_vm2, %v8989_v7  ;;  %v8992_v12 = vld [vmem:[%s9420_s29 + $0x18] sm:$0xff]   ;;  %v8993_v13 = vld [vmem:[%s9420_s29 + $0x20] sm:$0xff]   ;;  %v8994_v14 = vld [vmem:[%s9420_s29 + $0x28] sm:$0xff]   ;;  %3303 = vmatprep.subr.bf16.mxu1 %v12050_v29  ;;  %398 = vst [vmem:[#allocation2 + $0x60] sm:$0xff] %v9290_v43  ;;  %vm2810_vm13 = vcmask 1048320   ;;  %vm9295_vm14 = vmmov 0  }
  0x1f   : > { %8599 = vmatpush3.bf16.msra.mxu0 %v8985_v4  ;;  %v8995_v15 = vld [vmem:[%s9420_s29 + $0x30] sm:$0xff]   ;;  %v8996_v16 = vld [vmem:[%s9420_s29 + $0x38] sm:$0xff]   ;;  %v8997_v17 = vld [vmem:[%s9420_s29 + $0x40] sm:$0xff]   ;;  %399 = vst.msk [vmem:[#allocation2 + $0x68] sm:$0xff] %vm386_vm3, %v9290_v43  ;;  %vm6261_vm15 = vcmask 523264   ;;  %vm6313_vm0 = vcmask 519168  }
  0x20   : > { %8600 = vmatprep.subr.bf16.mxu0 %v8986_v6  ;;  %v8998_v18 = vld [vmem:[%s9420_s29 + $0x48] sm:$0xff]   ;;  %v8999_v19 = vld [vmem:[%s9420_s29 + $0x50] sm:$0xff]   ;;  %v9000_v20 = vld [vmem:[%s9420_s29 + $0x58] sm:$0xff]   ;;  %400 = vst [vmem:[#allocation2 + $0x70] sm:$0xff] %v9290_v43  ;;  %s8438_s15 = sshll.u32 %s9378_s21, 4 }
  0x21   : > { %v9001_v21 = vld [vmem:[%s9420_s29 + $0x60] sm:$0xff]   ;;  %v9002_v22 = vld [vmem:[%s9420_s29 + $0x68] sm:$0xff]   ;;  %v9003_v23 = vld [vmem:[%s9420_s29 + $0x70] sm:$0xff]   ;;  %3304 = vmatpush1.bf16.msra.mxu1 %v9043_v33  ;;  %401 = vst.msk [vmem:[#allocation2 + $0x78] sm:$0xff] %vm386_vm3, %v9290_v43  ;;  %s11997_s13 = scalar_lea.hbm %s12049_s11, %s8438_s15 }
  0x22   : > { %v9004_v24 = vld [vmem:[%s9420_s29 + $0x78] sm:$0xff]   ;;  %v9005_v25 = vld [vmem:[%s9420_s29 + $0x80] sm:$0xff]   ;;  %v9006_v26 = vld [vmem:[%s9420_s29 + $0x88] sm:$0xff]   ;;  %3305 = vmatprep.subr.bf16.mxu1 %v12050_v29  ;;  %402 = vst [vmem:[#allocation2 + $0x80] sm:$0xff] %v9290_v43 }
  0x23   : > { %8601 = vmatpush3.bf16.msra.mxu0 %v8986_v6  ;;  %v9007_v27 = vld [vmem:[%s9420_s29 + $0x90] sm:$0xff]   ;;  %v9008_v30 = vld [vmem:[%s9420_s29 + $0x98] sm:$0xff]   ;;  %v9009_v32 = vld [vmem:[%s9420_s29 + $0xa0] sm:$0xff]   ;;  %403 = vst.msk [vmem:[#allocation2 + $0x88] sm:$0xff] %vm386_vm3, %v9290_v43 }
  0x24   : > { %8602 = vmatprep.subr.bf16.mxu0 %v8987_v8  ;;  %v9010_v34 = vld [vmem:[%s9420_s29 + $0xa8] sm:$0xff]   ;;  %v9011_v36 = vld [vmem:[%s9420_s29 + $0xb0] sm:$0xff]   ;;  %v9012_v38 = vld [vmem:[%s9420_s29 + $0xb8] sm:$0xff]   ;;  %404 = vst [vmem:[#allocation2 + $0x90] sm:$0xff] %v9290_v43 }
  0x25   : > { %3306 = vmatpush1.bf16.msra.mxu1 %v9044_v35  ;;  %v9013_v40 = vld [vmem:[%s9420_s29 + $0xc0] sm:$0xff]   ;;  %v9508_v42 = vld [vmem:[%s9420_s29 + $0xc8] sm:$0xff]   ;;  %405 = vst.msk [vmem:[#allocation2 + $0x98] sm:$0xff] %vm386_vm3, %v9290_v43  ;;  %406 = vst [vmem:[#allocation2 + $0xa0] sm:$0xff] %v9290_v43 }
  0x26   : > { %3307 = vmatprep.subr.bf16.mxu1 %v12050_v29  ;;  %407 = vst.msk [vmem:[#allocation2 + $0xa8] sm:$0xff] %vm386_vm3, %v9290_v43  ;;  %408 = vst [vmem:[#allocation2 + $0xb0] sm:$0xff] %v9290_v43  ;;  %v9015_v45 = vld [vmem:[%s9420_s29 + $0xd0] sm:$0xff]   ;;  %v9016_v47 = vld [vmem:[%s9420_s29 + $0xd8] sm:$0xff]  }
  0x27   : > { %8603 = vmatpush3.bf16.msra.mxu0 %v8987_v8  ;;  %409 = vst.msk [vmem:[#allocation2 + $0xb8] sm:$0xff] %vm386_vm3, %v9290_v43  ;;  %410 = vst [vmem:[#allocation2 + $0xc0] sm:$0xff] %v9290_v43  ;;  %v9017_v48 = vld [vmem:[%s9420_s29 + $0xe0] sm:$0xff]   ;;  %v3075_v50 = vld [vmem:[#allocation2 + $0x28] sm:$0xff] }
  0x28   : > { %8604 = vmatprep.subr.bf16.mxu0 %v8988_v9  ;;  %411 = vst.msk [vmem:[#allocation2 + $0xc8] sm:$0xff] %vm386_vm3, %v9290_v43  ;;  %412 = vst [vmem:[#allocation2 + $0xd0] sm:$0xff] %v9290_v43  ;;  %v3077_v51 = vld [vmem:[#allocation2 + $0x38] sm:$0xff]  ;;  %v9018_v53 = vld [vmem:[%s9420_s29 + $0xe8] sm:$0xff]  }
  0x29   : > { %3308 = vmatpush1.bf16.msra.mxu1 %v9047_v37  ;;  %413 = vst.msk [vmem:[#allocation2 + $0xd8] sm:$0xff] %vm386_vm3, %v9290_v43  ;;  %414 = vst [vmem:[#allocation2 + $0xe0] sm:$0xff] %v9290_v43  ;;  %v3139_v52 = vpack.c.bf16 %v3077_v51, %v3075_v50  ;;  %v9019_v55 = vld [vmem:[%s9420_s29 + $0xf0] sm:$0xff]   ;;  %v9020_v56 = vld [vmem:[%s9420_s29 + $0xf8] sm:$0xff]  }
  0x2a   : > { %3309 = vmatprep.subr.bf16.mxu1 %v12050_v29  ;;  %415 = vst.msk [vmem:[#allocation2 + $0xe8] sm:$0xff] %vm386_vm3, %v9290_v43  ;;  %416 = vst [vmem:[#allocation2 + $0xf0] sm:$0xff] %v9290_v43  ;;  %v9021_v57 = vld [vmem:[%s9420_s29 + $0x100] sm:$0xff]   ;;  %v9022_v58 = vld [vmem:[%s9420_s29 + $0x108] sm:$0xff]  }
  0x2b   : > { %8605 = vmatpush3.bf16.msra.mxu0 %v8988_v9  ;;  %417 = vst.msk [vmem:[#allocation2 + $0xf8] sm:$0xff] %vm386_vm3, %v9290_v43  ;;  %418 = vst [vmem:[#allocation2 + $0x100] sm:$0xff] %v9290_v43  ;;  %7901 = vmatprep.mubr.msk.bf16.mxu1 %vm386_vm3, %v3139_v52  ;;  %v9023_v59 = vld [vmem:[%s9420_s29 + $0x110] sm:$0xff]   ;;  %v9024_v60 = vld [vmem:[%s9420_s29 + $0x118] sm:$0xff]  }
  0x2c   : > { %3954 = vmatprep.subr.bf16.mxu0 %v12050_v29  ;;  %419 = vst.msk [vmem:[#allocation2 + $0x108] sm:$0xff] %vm386_vm3, %v9290_v43  ;;  %420 = vst [vmem:[#allocation2 + $0x110] sm:$0xff] %v9290_v43  ;;  %v9025_v61 = vld [vmem:[%s9420_s29 + $0x120] sm:$0xff]   ;;  %v9026_v62 = vld [vmem:[%s9420_s29 + $0x128] sm:$0xff]  }
  0x2d   : > { %3310 = vmatpush1.bf16.msra.mxu1 %v9048_v39  ;;  %421 = vst.msk [vmem:[#allocation2 + $0x118] sm:$0xff] %vm386_vm3, %v9290_v43  ;;  %422 = vst [vmem:[#allocation2 + $0x120] sm:$0xff] %v9290_v43  ;;  %v9027_v63 = vld [vmem:[%s9420_s29 + $0x130] sm:$0xff]   ;;  %v9028_v0 = vld [vmem:[%s9420_s29 + $0x138] sm:$0xff]  }
  0x2e   : > { %8607 = vmatmul.mubr.msk.bf16.vlgmr.msra.gmra.mxu0 %vm986_vm2, %v8990_v10  ;;  %3311 = vmatprep.subr.bf16.mxu1 %v12050_v29  ;;  %423 = vst.msk [vmem:[#allocation2 + $0x128] sm:$0xff] %vm386_vm3, %v9290_v43  ;;  %424 = vst [vmem:[#allocation2 + $0x130] sm:$0xff] %v9290_v43  ;;  %v9029_v1 = vld [vmem:[%s9420_s29 + $0x140] sm:$0xff]   ;;  %v9030_v2 = vld [vmem:[%s9420_s29 + $0x148] sm:$0xff]  }
  0x2f   : > { %8610 = vmatprep.mubr.msk.bf16.mxu0 %vm986_vm2, %v8991_v11  ;;  %425 = vst.msk [vmem:[#allocation2 + $0x138] sm:$0xff] %vm386_vm3, %v9290_v43  ;;  %426 = vst [vmem:[#allocation2 + $0x140] sm:$0xff] %v9290_v43  ;;  %v9031_v3 = vld [vmem:[%s9420_s29 + $0x150] sm:$0xff]   ;;  %v9032_v4 = vld [vmem:[%s9420_s29 + $0x158] sm:$0xff]  }
  0x30   : > { %427 = vst.msk [vmem:[#allocation2 + $0x148] sm:$0xff] %vm386_vm3, %v9290_v43  ;;  %428 = vst [vmem:[#allocation2 + $0x150] sm:$0xff] %v9290_v43  ;;  %v9033_v5 = vld [vmem:[%s9420_s29 + $0x160] sm:$0xff]   ;;  %v9034_v6 = vld [vmem:[%s9420_s29 + $0x168] sm:$0xff]  }
  0x31   : > { %3312 = vmatpush1.bf16.msra.mxu1 %v9051_v41  ;;  %429 = vst.msk [vmem:[#allocation2 + $0x158] sm:$0xff] %vm386_vm3, %v9290_v43  ;;  %430 = vst [vmem:[#allocation2 + $0x160] sm:$0xff] %v9290_v43  ;;  %v9035_v7 = vld [vmem:[%s9420_s29 + $0x170] sm:$0xff]   ;;  %v9036_v8 = vld [vmem:[%s9420_s29 + $0x178] sm:$0xff]  }
  0x32   : > { %3313 = vmatprep.subr.bf16.mxu1 %v12050_v29  ;;  %431 = vst.msk [vmem:[#allocation2 + $0x168] sm:$0xff] %vm386_vm3, %v9290_v43  ;;  %432 = vst [vmem:[#allocation2 + $0x170] sm:$0xff] %v9290_v43  ;;  %v9037_v9 = vld [vmem:[%s9420_s29 + $0x180] sm:$0xff]   ;;  %v9038_v10 = vld [vmem:[%s9420_s29 + $0x188] sm:$0xff]  }
  0x33   : > { %433 = vst.msk [vmem:[#allocation2 + $0x178] sm:$0xff] %vm386_vm3, %v9290_v43  ;;  %434 = vst [vmem:[#allocation2 + $0x180] sm:$0xff] %v9290_v43  ;;  %v9063_v11 = vld [vmem:[%s12041_s3 + $0xd8] sm:$0xff]   ;;  %v9046_v33 = vld [vmem:[%s9420_s29 + $0x1a8] sm:$0xff]  }
  0x34   : > { %435 = vst.msk [vmem:[#allocation2 + $0x188] sm:$0xff] %vm386_vm3, %v9290_v43  ;;  %436 = vst [vmem:[#allocation2 + $0x190] sm:$0xff] %v9290_v43  ;;  %3955 = vmatpush1.bf16.msra.mxu0 %v9063_v11  ;;  %v9053_v50 = vld [vmem:[%s9420_s29 + $0x1c0] sm:$0xff]  }
  0x35   : > { %437 = vst.msk [vmem:[#allocation2 + $0x198] sm:$0xff] %vm386_vm3, %v9290_v43  ;;  %438 = vst [vmem:[#allocation2 + $0x1a0] sm:$0xff] %v9290_v43  ;;  %3314 = vmatpush1.bf16.msra.mxu1 %v9052_v44  ;;  %3956 = vmatprep.subr.bf16.mxu0 %v12050_v29  ;;  %v9050_v44 = vld [vmem:[%s9420_s29 + $0x1b8] sm:$0xff]  }
  0x36   : > { %8611 = vmatmul.mubr.msk.bf16.gmra.mxu0 %vm986_vm2, %v8992_v12  ;;  %439 = vst.msk [vmem:[#allocation2 + $0x1a8] sm:$0xff] %vm386_vm3, %v9290_v43  ;;  %440 = vst [vmem:[#allocation2 + $0x1b0] sm:$0xff] %v9290_v43  ;;  %3327 = vmatprep.subr.bf16.mxu1 %v12050_v29  ;;  %v9041_v12 = vld [vmem:[%s9420_s29 + $0x190] sm:$0xff]  }
  0x37   : > { %8614 = vmatprep.mubr.msk.bf16.mxu0 %vm986_vm2, %v8993_v13  ;;  %441 = vst.msk [vmem:[#allocation2 + $0x1b8] sm:$0xff] %vm386_vm3, %v9290_v43  ;;  %442 = vst [vmem:[#allocation2 + $0x1c0] sm:$0xff] %v9290_v43  ;;  %v9725_v13 = vld [vmem:[%s12040_s2] ss:$0 sm:$0xff] }
  0x38   : > { %443 = vst.msk [vmem:[#allocation2 + $0x1c8] sm:$0xff] %vm386_vm3, %v9290_v43  ;;  %444 = vst [vmem:[#allocation2 + $0x1d0] sm:$0xff] %v9290_v43 }
  0x39   : > { %445 = vst.msk [vmem:[#allocation2 + $0x1d8] sm:$0xff] %vm386_vm3, %v9290_v43  ;;  %446 = vst [vmem:[#allocation2 + $0x1e0] sm:$0xff] %v9290_v43  ;;  %3328 = vmatpush2.bf16.msra.mxu1 %v9055_v46 }
  0x3a   : > { %447 = vst.msk [vmem:[#allocation2 + $0x1e8] sm:$0xff] %vm386_vm3, %v9290_v43  ;;  %448 = vst [vmem:[#allocation2 + $0x1f0] sm:$0xff] %v9290_v43  ;;  %3329 = vmatprep.subr.bf16.mxu1 %v12050_v29 }
  0x3b   : > { %449 = vst.msk [vmem:[#allocation2 + $0x1f8] sm:$0xff] %vm386_vm3, %v9290_v43  ;;  %450 = vst [vmem:[#allocation2 + $0x200] sm:$0xff] %v9290_v43 }
  0x3c   : > { %451 = vst.msk [vmem:[#allocation2 + $0x208] sm:$0xff] %vm386_vm3, %v9290_v43  ;;  %452 = vst [vmem:[#allocation2 + $0x210] sm:$0xff] %v9290_v43 }
  0x3d   : > { %453 = vst.msk [vmem:[#allocation2 + $0x218] sm:$0xff] %vm386_vm3, %v9290_v43  ;;  %454 = vst [vmem:[#allocation2 + $0x220] sm:$0xff] %v9290_v43  ;;  %3330 = vmatpush2.bf16.msra.mxu1 %v9056_v49 }
  0x3e   : > { %8615 = vmatmul.mubr.msk.bf16.gmra.mxu0 %vm986_vm2, %v8994_v14  ;;  %455 = vst.msk [vmem:[#allocation2 + $0x228] sm:$0xff] %vm386_vm3, %v9290_v43  ;;  %456 = vst [vmem:[#allocation2 + $0x230] sm:$0xff] %v9290_v43  ;;  %3568 = vmatprep.subr.bf16.mxu1 %v12050_v29 }
  0x3f   : > { %8618 = vmatprep.mubr.msk.bf16.mxu0 %vm986_vm2, %v8995_v15  ;;  %457 = vst.msk [vmem:[#allocation2 + $0x238] sm:$0xff] %vm386_vm3, %v9290_v43  ;;  %459 = vst.msk [vmem:[#allocation2 + $0x248] sm:$0xff] %vm386_vm3, %v9290_v43  ;;  %v9064_v15 = vld [vmem:[%s12041_s3 + $0xd0] sm:$0xff]  }
  0x40   : > { %461 = vst.msk [vmem:[#allocation2 + $0x258] sm:$0xff] %vm386_vm3, %v9290_v43  ;;  %463 = vst.msk [vmem:[#allocation2 + $0x268] sm:$0xff] %vm386_vm3, %v9290_v43  ;;  %3332 = vmatmul.mubr.bf16.vlgmr.msra.gmra.mxu1 %v9291_v54  ;;  %3957 = vmatpush1.bf16.msra.mxu0 %v9064_v15 }
  0x41   : > { %465 = vst.msk [vmem:[#allocation2 + $0x278] sm:$0xff] %vm386_vm3, %v9290_v43  ;;  %467 = vst.msk [vmem:[#allocation3 + $0x8] sm:$0xff] %vm386_vm3, %v9290_v43  ;;  %3958 = vmatprep.subr.bf16.mxu0 %v12050_v29 }
  0x42   : > { %469 = vst.msk [vmem:[#allocation3 + $0x18] sm:$0xff] %vm386_vm3, %v9290_v43  ;;  %470 = vst [vmem:[#allocation3 + $0x20] sm:$0xff] %v9290_v43 }
  0x43   : > { %471 = vst.msk [vmem:[#allocation3 + $0x28] sm:$0xff] %vm386_vm3, %v9290_v43  ;;  %472 = vst [vmem:[#allocation3 + $0x30] sm:$0xff] %v9290_v43 }
  0x44   : > { %473 = vst.msk [vmem:[#allocation3 + $0x38] sm:$0xff] %vm386_vm3, %v9290_v43  ;;  %474 = vst [vmem:[#allocation3 + $0x40] sm:$0xff] %v9290_v43 }
  0x45   : > { %475 = vst.msk [vmem:[#allocation3 + $0x48] sm:$0xff] %vm386_vm3, %v9290_v43  ;;  %476 = vst [vmem:[#allocation3 + $0x50] sm:$0xff] %v9290_v43 }
  0x46   : > { %8619 = vmatmul.mubr.msk.bf16.gmra.mxu0 %vm986_vm2, %v8996_v16  ;;  %477 = vst.msk [vmem:[#allocation3 + $0x58] sm:$0xff] %vm386_vm3, %v9290_v43  ;;  %478 = vst [vmem:[#allocation3 + $0x60] sm:$0xff] %v9290_v43 }
  0x47   : > { %8622 = vmatprep.mubr.msk.bf16.mxu0 %vm986_vm2, %v8997_v17  ;;  %479 = vst.msk [vmem:[#allocation3 + $0x68] sm:$0xff] %vm386_vm3, %v9290_v43  ;;  %480 = vst [vmem:[#allocation3 + $0x70] sm:$0xff] %v9290_v43 }
  0x48   : > { %481 = vst.msk [vmem:[#allocation3 + $0x78] sm:$0xff] %vm386_vm3, %v9290_v43  ;;  %482 = vst [vmem:[#allocation3 + $0x80] sm:$0xff] %v9290_v43 }
  0x49   : > { %483 = vst.msk [vmem:[#allocation3 + $0x88] sm:$0xff] %vm386_vm3, %v9290_v43  ;;  %484 = vst [vmem:[#allocation3 + $0x90] sm:$0xff] %v9290_v43 }
  0x4a   : > { %485 = vst.msk [vmem:[#allocation3 + $0x98] sm:$0xff] %vm386_vm3, %v9290_v43  ;;  %487 = vst.msk [vmem:[#allocation3 + $0xa8] sm:$0xff] %vm386_vm3, %v9290_v43 }
  0x4b   : > { %489 = vst.msk [vmem:[#allocation3 + $0xb8] sm:$0xff] %vm386_vm3, %v9290_v43 }
  0x4e   : > { %8623 = vmatmul.mubr.msk.bf16.gmra.mxu0 %vm986_vm2, %v8998_v18 }
  0x4f   : > { %8626 = vmatprep.mubr.msk.bf16.mxu0 %vm986_vm2, %v8999_v19 }
  0x56   : > { %8627 = vmatmul.mubr.msk.bf16.gmra.mxu0 %vm986_vm2, %v9000_v20  ;;  %v9042_v20 = vld [vmem:[%s9420_s29 + $0x198] sm:$0xff]  }
  0x57   : > { %8630 = vmatprep.mubr.msk.bf16.mxu0 %vm986_vm2, %v9001_v21  ;;  %v9065_v21 = vld [vmem:[%s12041_s3 + $0xc8] sm:$0xff]  }
  0x58   : > { %3959 = vmatpush1.bf16.msra.mxu0 %v9065_v21 }
  0x59   : > { %3960 = vmatprep.subr.bf16.mxu0 %v12050_v29 }
  0x5e   : > { %8631 = vmatmul.mubr.msk.bf16.gmra.mxu0 %vm986_vm2, %v9002_v22 }
  0x5f   : > { %8634 = vmatprep.mubr.msk.bf16.mxu0 %vm986_vm2, %v9003_v23  ;;  %v9045_v23 = vld [vmem:[%s9420_s29 + $0x1a0] sm:$0xff]  }
  0x66   : > { %8635 = vmatmul.mubr.msk.bf16.gmra.mxu0 %vm986_vm2, %v9004_v24 }
  0x67   : > { %8638 = vmatprep.mubr.msk.bf16.mxu0 %vm986_vm2, %v9005_v25 }
  0x6e   : > { %8639 = vmatmul.mubr.msk.bf16.gmra.mxu0 %vm986_vm2, %v9006_v26 }
  0x6f   : > { %8642 = vmatprep.mubr.msk.bf16.mxu0 %vm986_vm2, %v9007_v27  ;;  %v9066_v27 = vld [vmem:[%s12041_s3 + $0xc0] sm:$0xff]  }
  0x70   : > { %3961 = vmatpush1.bf16.msra.mxu0 %v9066_v27 }
  0x71   : > { %3962 = vmatprep.subr.bf16.mxu0 %v12050_v29 }
  0x76   : > { %8643 = vmatmul.mubr.msk.bf16.gmra.mxu0 %vm986_vm2, %v9008_v30 }
  0x77   : > { %8646 = vmatprep.mubr.msk.bf16.mxu0 %vm986_vm2, %v9009_v32 }
  0x7e   : > { %8647 = vmatmul.mubr.msk.bf16.gmra.mxu0 %vm986_vm2, %v9010_v34  ;;  %v9067_v34 = vld [vmem:[%s12041_s3 + $0xb8] sm:$0xff]  }
  0x7f   : > { %8650 = vmatprep.mubr.msk.bf16.mxu0 %vm986_vm2, %v9011_v36  ;;  %v9049_v36 = vld [vmem:[%s9420_s29 + $0x1b0] sm:$0xff]   ;;  %3963 = vmatpush1.bf16.msra.mxu0 %v9067_v34 }
  0x80   : > { %3964 = vmatprep.subr.bf16.mxu0 %v12050_v29 }
  0x86   : > { %8651 = vmatmul.mubr.msk.bf16.gmra.mxu0 %vm986_vm2, %v9012_v38 }
  0x87   : > { %8654 = vmatprep.mubr.msk.bf16.mxu0 %vm986_vm2, %v9013_v40  ;;  %v9068_v40 = vld [vmem:[%s12041_s3 + $0xb0] sm:$0xff]  }
  0x88   : > { %3965 = vmatpush1.bf16.msra.mxu0 %v9068_v40 }
  0x89   : > { %3966 = vmatprep.subr.bf16.mxu0 %v12050_v29 }
  0x8e   : > { %8655 = vmatmul.mubr.msk.bf16.gmra.mxu0 %vm986_vm2, %v9508_v42 }
  0x8f   : > { %8658 = vmatprep.mubr.msk.bf16.mxu0 %vm986_vm2, %v9015_v45 }
  0x96   : > { %8659 = vmatmul.mubr.msk.bf16.gmra.mxu0 %vm986_vm2, %v9016_v47 }
  0x97   : > { %8662 = vmatprep.mubr.msk.bf16.mxu0 %vm986_vm2, %v9017_v48  ;;  %v9069_v48 = vld [vmem:[%s12041_s3 + $0xa8] sm:$0xff]  }
  0x98   : > { %3967 = vmatpush1.bf16.msra.mxu0 %v9069_v48 }
  0x99   : > { %3968 = vmatprep.subr.bf16.mxu0 %v12050_v29 }
  0x9e   : > { %8663 = vmatmul.mubr.msk.bf16.gmra.mxu0 %vm986_vm2, %v9018_v53 }
  0x9f   : > { %8666 = vmatprep.mubr.msk.bf16.mxu0 %vm986_vm2, %v9019_v55 }
  0xa6   : > { %8667 = vmatmul.mubr.msk.bf16.gmra.mxu0 %vm986_vm2, %v9020_v56 }
  0xa7   : > { %8670 = vmatprep.mubr.msk.bf16.mxu0 %vm986_vm2, %v9021_v57 }
  0xae   : > { %8671 = vmatmul.mubr.msk.bf16.gmra.mxu0 %vm986_vm2, %v9022_v58 }
  0xaf   : > { %8674 = vmatprep.mubr.msk.bf16.mxu0 %vm986_vm2, %v9023_v59 }
  0xb6   : > { %8675 = vmatmul.mubr.msk.bf16.gmra.mxu0 %vm986_vm2, %v9024_v60 }
  0xb7   : > { %8678 = vmatprep.mubr.msk.bf16.mxu0 %vm986_vm2, %v9025_v61 }
  0xbe   : > { %8679 = vmatmul.mubr.msk.bf16.gmra.mxu0 %vm986_vm2, %v9026_v62  ;;  %v9070_v62 = vld [vmem:[%s12041_s3 + $0xa0] sm:$0xff]  }
  0xbf   : > { %8682 = vmatprep.mubr.msk.bf16.mxu0 %vm986_vm2, %v9027_v63  ;;  %3969 = vmatpush1.bf16.msra.mxu0 %v9070_v62 }
  0xc0   : > { %3982 = vmatprep.subr.bf16.mxu0 %v12050_v29 }
  0xc6   : > { %8683 = vmatmul.mubr.msk.bf16.gmra.mxu0 %vm986_vm2, %v9028_v0 }
  0xc7   : > { %8686 = vmatprep.mubr.msk.bf16.mxu0 %vm986_vm2, %v9029_v1 }
  0xce   : > { %8687 = vmatmul.mubr.msk.bf16.gmra.mxu0 %vm986_vm2, %v9030_v2 }
  0xcf   : > { %8690 = vmatprep.mubr.msk.bf16.mxu0 %vm986_vm2, %v9031_v3 }
  0xd6   : > { %8691 = vmatmul.mubr.msk.bf16.gmra.mxu0 %vm986_vm2, %v9032_v4 }
  0xd7   : > { %8694 = vmatprep.mubr.msk.bf16.mxu0 %vm986_vm2, %v9033_v5 }
  0xde   : > { %8695 = vmatmul.mubr.msk.bf16.gmra.mxu0 %vm986_vm2, %v9034_v6 }
  0xdf   : > { %8698 = vmatprep.mubr.msk.bf16.mxu0 %vm986_vm2, %v9035_v7 }
  0xe6   : > { %8699 = vmatmul.mubr.msk.bf16.gmra.mxu0 %vm986_vm2, %v9036_v8  ;;  %v9054_v8 = vld [vmem:[%s9420_s29 + $0x1c8] sm:$0xff]  }
  0xe7   : > { %8702 = vmatprep.mubr.msk.bf16.mxu0 %vm986_vm2, %v9037_v9  ;;  %v9071_v9 = vld [vmem:[%s12041_s3 + $0xe8] sm:$0xff]  }
  0xe8   : > { %3983 = vmatpush2.bf16.msra.mxu0 %v9071_v9 }
  0xe9   : > { %3984 = vmatprep.subr.bf16.mxu0 %v12050_v29 }
  0xee   : > { %v8608_v14 = vpop.f32.mrf.mxu0  ;;  %8703 = vmatmul.mubr.msk.bf16.gmra.mxu0 %vm986_vm2, %v9038_v10 }
  0xef   : > { %v1229_v16 = vadd.f32 %v8608_v14, %v9725_v13  ;;  %8706 = vmatprep.mubr.msk.bf16.mxu0 %vm986_vm2, %v9041_v12  ;;  %v9057_v14 = vld [vmem:[%s9420_s29 + $0x1d0] sm:$0xff]  }
  0xf0   : > { %v1220_v17 = vpop.f32.mrf.mxu0 }
  0xf1   : > { %1733 = vst.msk [vmem:[#allocation4 + $0x10] sm:$0xff] %vm386_vm3, %v1229_v16  ;;  %v1221_v18 = vadd.f32 %v9725_v13, %v1220_v17 }
  0xf2   : > { %v8609_v19 = vpop.f32.mrf.mxu0 }
  0xf3   : > { %1731 = vst.msk [vmem:[#allocation4] sm:$0xff] %vm386_vm3, %v1221_v18  ;;  %v1232_v22 = vadd.f32 %v8609_v19, %v9725_v13 }
  0xf4   : > { %v1223_v24 = vpop.f32.mrf.mxu0 }
  0xf5   : > { %1734 = vst.msk [vmem:[#allocation4 + $0x18] sm:$0xff] %vm386_vm3, %v1232_v22  ;;  %v1224_v25 = vadd.f32 %v9725_v13, %v1223_v24 }
  0xf6   : > { %v8612_v26 = vpop.f32.mrf.mxu0  ;;  %8707 = vmatmul.mubr.msk.bf16.gmra.mxu0 %vm986_vm2, %v9042_v20 }
  0xf7   : > { %1732 = vst.msk [vmem:[#allocation4 + $0x8] sm:$0xff] %vm386_vm3, %v1224_v25  ;;  %v1245_v28 = vadd.f32 %v8612_v26, %v9725_v13  ;;  %8710 = vmatprep.mubr.msk.bf16.mxu0 %vm986_vm2, %v9045_v23  ;;  %v9072_v23 = vld [vmem:[%s12041_s3 + $0xe0] sm:$0xff]  }
  0xf8   : > { %v1236_v30 = vpop.f32.mrf.mxu0  ;;  %3985 = vmatpush2.bf16.msra.mxu0 %v9072_v23 }
  0xf9   : > { %1737 = vst.msk [vmem:[#allocation4 + $0x30] sm:$0xff] %vm386_vm3, %v1245_v28  ;;  %v1237_v31 = vadd.f32 %v9725_v13, %v1236_v30  ;;  %4792 = vmatprep.subr.bf16.mxu0 %v12050_v29 }
  0xfa   : > { %v8613_v32 = vpop.f32.mrf.mxu0 }
  0xfb   : > { %1735 = vst.msk [vmem:[#allocation4 + $0x20] sm:$0xff] %vm386_vm3, %v1237_v31  ;;  %v1248_v35 = vadd.f32 %v8613_v32, %v9725_v13  ;;  %v9058_v32 = vld [vmem:[%s9420_s29 + $0x1d8] sm:$0xff]  }
  0xfc   : > { %v1239_v37 = vpop.f32.mrf.mxu0  ;;  %v1861_v46 = vld [vmem:[#allocation4 + $0x10] ss:$2 sm:$0xff]  ;;  %v1925_v47 = vld [vmem:[#allocation4 + $0x11] ss:$2 sm:$0xff] }
  0xfd   : > { %1738 = vst.msk [vmem:[#allocation4 + $0x38] sm:$0xff] %vm386_vm3, %v1248_v35  ;;  %v1240_v38 = vadd.f32 %v9725_v13, %v1239_v37  ;;  %v1987_v57 = vmax.f32 %v1861_v46, %v1925_v47  ;;  %v9059_v37 = vld [vmem:[%s9420_s29 + $0x1e0] sm:$0xff]  }
  0xfe   : > { %v8616_v39 = vpop.f32.mrf.mxu0  ;;  %8711 = vmatmul.mubr.msk.bf16.gmra.mxu0 %vm986_vm2, %v9046_v33  ;;  %v1859_v51 = vld [vmem:[#allocation4] ss:$2 sm:$0xff]  ;;  %v1923_v55 = vld [vmem:[#allocation4 + $0x1] ss:$2 sm:$0xff] }
  0xff   : > { %1736 = vst.msk [vmem:[#allocation4 + $0x28] sm:$0xff] %vm386_vm3, %v1240_v38  ;;  %v1261_v41 = vadd.f32 %v8616_v39, %v9725_v13  ;;  %8714 = vmatprep.mubr.msk.bf16.mxu0 %vm986_vm2, %v9049_v36  ;;  %v1986_v1 = vmax.f32 %v1859_v51, %v1923_v55 }
 0x100   : > { %v1252_v42 = vpop.f32.mrf.mxu0 }
 0x101   : > { %1741 = vst.msk [vmem:[#allocation4 + $0x50] sm:$0xff] %vm386_vm3, %v1261_v41  ;;  %v1253_v43 = vadd.f32 %v9725_v13, %v1252_v42 }
 0x102   : > { %v8617_v45 = vpop.f32.mrf.mxu0 }
 0x103   : > { %1739 = vst.msk [vmem:[#allocation4 + $0x40] sm:$0xff] %vm386_vm3, %v1253_v43  ;;  %v1264_v49 = vadd.f32 %v8617_v45, %v9725_v13 }
 0x104   : > { %v1255_v52 = vpop.f32.mrf.mxu0  ;;  %v2021_v53 = vld [vmem:[#allocation4 + $0x30] ss:$2 sm:$0xff]  ;;  %v2085_v54 = vld [vmem:[#allocation4 + $0x31] ss:$2 sm:$0xff] }
 0x105   : > { %1742 = vst.msk [vmem:[#allocation4 + $0x58] sm:$0xff] %vm386_vm3, %v1264_v49  ;;  %v1256_v56 = vadd.f32 %v9725_v13, %v1255_v52  ;;  %v2147_v58 = vmax.f32 %v2021_v53, %v2085_v54 }
 0x106   : > { %v8620_v59 = vpop.f32.mrf.mxu0  ;;  %8715 = vmatmul.mubr.msk.bf16.gmra.mxu0 %vm986_vm2, %v9050_v44  ;;  %v2019_v60 = vld [vmem:[#allocation4 + $0x20] ss:$2 sm:$0xff]  ;;  %v2083_v61 = vld [vmem:[#allocation4 + $0x21] ss:$2 sm:$0xff] }
 0x107   : > { %1740 = vst.msk [vmem:[#allocation4 + $0x48] sm:$0xff] %vm386_vm3, %v1256_v56  ;;  %v1277_v63 = vadd.f32 %v8620_v59, %v9725_v13  ;;  %v9793_v0 = vmax.f32 %v1987_v57, %v2147_v58  ;;  %8718 = vmatprep.mubr.msk.bf16.mxu0 %vm986_vm2, %v9053_v50  ;;  %v2146_v2 = vmax.f32 %v2019_v60, %v2083_v61  ;;  %v9060_v61 = vld [vmem:[%s9420_s29 + $0x1e8] sm:$0xff]  }
 0x108   : > { %v1268_v3 = vpop.f32.mrf.mxu0 }
 0x109   : > { %1745 = vst.msk [vmem:[#allocation4 + $0x70] sm:$0xff] %vm386_vm3, %v1277_v63  ;;  %v1269_v4 = vadd.f32 %v9725_v13, %v1268_v3  ;;  %2538 = vrot.lane.b32.xlu1 %v9793_v0, %s9292_s22  ;;  %v2845_v5 = vrot.slane %v9793_v0, 2  ;;  %v2178_v6 = vmax.f32 %v1986_v1, %v2146_v2  ;;  %v2244_v17 = vrot.slane %v9793_v0, 6  ;;  %v9061_v1 = vld [vmem:[%s9420_s29 + $0x1f0] sm:$0xff]  }
 0x10a   : > { %v8621_v7 = vpop.f32.mrf.mxu0  ;;  %v2359_v21 = vrot.slane %v9793_v0, 7  ;;  %v2667_v25 = vrot.slane %v9793_v0, 1 }
 0x10b   : > { %1743 = vst.msk [vmem:[#allocation4 + $0x60] sm:$0xff] %vm386_vm3, %v1269_v4  ;;  %v1280_v10 = vadd.f32 %v8621_v7, %v9725_v13  ;;  %v2844_v11 = vrot.slane %v2178_v6, 2  ;;  %v2358_v12 = vrot.slane %v2178_v6, 7  ;;  %v2243_v16 = vrot.slane %v2178_v6, 6 }
 0x10c   : > { %2926 = vst.msk [vmem:[#allocation2 + $0x58] sm:$0x3f] %vm2925_vm4, %v2845_v5  ;;  %v1271_v15 = vpop.f32.mrf.mxu0  ;;  %v2666_v28 = vrot.slane %v2178_v6, 1  ;;  %v1865_v33 = vld [vmem:[#allocation4 + $0x50] ss:$2 sm:$0xff] }
 0x10d   : > { %1746 = vst.msk [vmem:[#allocation4 + $0x78] sm:$0xff] %vm386_vm3, %v1280_v10  ;;  %v1272_v18 = vadd.f32 %v9725_v13, %v1271_v15  ;;  %2536 = vrot.lane.b32.xlu1 %v2178_v6, %s9292_s22  ;;  %v2846_v19 = vsel %vm1180_vm1, %v2844_v11, %v2845_v5  ;;  %2406 = vrot.lane.b32.xlu0 %v2358_v12, %s9293_s30  ;;  %v1929_v34 = vld [vmem:[#allocation4 + $0x51] ss:$2 sm:$0xff] }
 0x10e   : > { %2924 = vst.msk [vmem:[#allocation2 + $0x48] sm:$0xff] %vm386_vm3, %v2846_v19  ;;  %v8624_v20 = vpop.f32.mrf.mxu0  ;;  %8719 = vmatmul.mubr.msk.bf16.gmra.mxu0 %vm986_vm2, %v9054_v8  ;;  %v2245_v22 = vsel %vm2242_vm6, %v2243_v16, %v2244_v17  ;;  %v2360_v27 = vsel %vm2357_vm7, %v2358_v12, %v2359_v21  ;;  %v1863_v36 = vld [vmem:[#allocation4 + $0x40] ss:$2 sm:$0xff]  ;;  %v2668_v39 = vsel %vm2665_vm8, %v2666_v28, %v2667_v25  ;;  %v1927_v42 = vld [vmem:[#allocation4 + $0x41] ss:$2 sm:$0xff]  ;;  %v9062_v19 = vld [vmem:[%s9420_s29 + $0x1f8] sm:$0xff]  }
 0x10f   : > { %2325 = vst.msk [vmem:[#allocation2 + $0x40] sm:$0xfc] %vm2324_vm5, %v2243_v16  ;;  %v1293_v24 = vadd.f32 %v8624_v20, %v9725_v13  ;;  %8722 = vmatprep.mubr.msk.bf16.mxu0 %vm986_vm2, %v9057_v14  ;;  %v1989_v46 = vmax.f32 %v1865_v33, %v1929_v34  ;;  %v1988_v54 = vmax.f32 %v1863_v36, %v1927_v42 }
 0x110   : > { %1744 = vst.msk [vmem:[#allocation4 + $0x68] sm:$0xff] %vm386_vm3, %v1272_v18  ;;  %2326 = vst.msk [vmem:[#allocation2 + $0x50] sm:$0xff] %vm386_vm3, %v2245_v22  ;;  %v1284_v26 = vpop.f32.mrf.mxu0 }
 0x111   : > { %1749 = vst.msk [vmem:[#allocation4 + $0x90] sm:$0xff] %vm386_vm3, %v1293_v24  ;;  %v1285_v30 = vadd.f32 %v9725_v13, %v1284_v26  ;;  %2716 = vrot.lane.b32.xlu1 %v2667_v25, %s9294_s14  ;;  %2408 = vrot.lane.b32.xlu0 %v2360_v27, %s9293_s30 }
 0x112   : > { %v8625_v31 = vpop.f32.mrf.mxu0 }
 0x113   : > { %1747 = vst.msk [vmem:[#allocation4 + $0x80] sm:$0xff] %vm386_vm3, %v1285_v30  ;;  %v1296_v35 = vadd.f32 %v8625_v31, %v9725_v13  ;;  %v3081_v45 = vld [vmem:[#allocation2 + $0x58] sm:$0xff] }
 0x114   : > { %v1287_v38 = vpop.f32.mrf.mxu0  ;;  %v2025_v40 = vld [vmem:[#allocation4 + $0x70] ss:$2 sm:$0xff]  ;;  %v2089_v41 = vld [vmem:[#allocation4 + $0x71] ss:$2 sm:$0xff] }
 0x115   : > { %1750 = vst.msk [vmem:[#allocation4 + $0x98] sm:$0xff] %vm386_vm3, %v1296_v35  ;;  %v1288_v43 = vadd.f32 %v9725_v13, %v1287_v38  ;;  %2714 = vrot.lane.b32.xlu0 %v2668_v39, %s9294_s14  ;;  %v3079_v44 = vld [vmem:[#allocation2 + $0x48] sm:$0xff]  ;;  %v2149_v47 = vmax.f32 %v2025_v40, %v2089_v41 }
 0x116   : > { %v8628_v48 = vpop.f32.mrf.mxu0  ;;  %8723 = vmatmul.mubr.msk.bf16.gmra.mxu0 %vm986_vm2, %v9058_v32  ;;  %v9845_v49 = vpack.c.bf16 %v3081_v45, %v3079_v44 }
 0x117   : > { %v2023_v50 = vld [vmem:[#allocation4 + $0x60] ss:$2 sm:$0xff]  ;;  %v2087_v51 = vld [vmem:[#allocation4 + $0x61] ss:$2 sm:$0xff]  ;;  %1748 = vst.msk [vmem:[#allocation4 + $0x88] sm:$0xff] %vm386_vm3, %v1288_v43  ;;  %v1309_v52 = vadd.f32 %v8628_v48, %v9725_v13  ;;  %v2181_v53 = vmax.f32 %v1989_v46, %v2149_v47  ;;  %8726 = vmatprep.mubr.msk.bf16.mxu0 %vm986_vm2, %v9059_v37 }
 0x118   : > { %v2148_v55 = vmax.f32 %v2023_v50, %v2087_v51  ;;  %v1300_v56 = vpop.f32.mrf.mxu0  ;;  %7902 = vmatprep.mubr.msk.bf16.mxu1 %vm386_vm3, %v9845_v49 }
 0x119   : > { %1753 = vst.msk [vmem:[#allocation4 + $0xb0] sm:$0xff] %vm386_vm3, %v1309_v52  ;;  %v1301_v57 = vadd.f32 %v9725_v13, %v1300_v56  ;;  %v2848_v58 = vrot.slane %v2181_v53, 2  ;;  %2542 = vrot.lane.b32.xlu1 %v2181_v53, %s9292_s22  ;;  %v2670_v0 = vrot.slane %v2181_v53, 1  ;;  %v2247_v5 = vrot.slane %v2181_v53, 6 }
 0x11a   : > { %v2180_v59 = vmax.f32 %v1988_v54, %v2148_v55  ;;  %v8629_v60 = vpop.f32.mrf.mxu0  ;;  %v2362_v9 = vrot.slane %v2181_v53, 7 }
 0x11b   : > { %1751 = vst.msk [vmem:[#allocation4 + $0xa0] sm:$0xff] %vm386_vm3, %v1301_v57  ;;  %v1312_v62 = vadd.f32 %v8629_v60, %v9725_v13 }
 0x11c   : > { %2928 = vst.msk [vmem:[#allocation2 + $0x78] sm:$0x3f] %vm2925_vm4, %v2848_v58  ;;  %v2847_v63 = vrot.slane %v2180_v59, 2  ;;  %2540 = vrot.lane.b32.xlu0 %v2180_v59, %s9292_s22  ;;  %v1303_v2 = vpop.f32.mrf.mxu0  ;;  %v2361_v3 = vrot.slane %v2180_v59, 7  ;;  %v2246_v4 = vrot.slane %v2180_v59, 6  ;;  %v2669_v10 = vrot.slane %v2180_v59, 1 }
 0x11d   : > { %1754 = vst.msk [vmem:[#allocation4 + $0xb8] sm:$0xff] %vm386_vm3, %v1312_v62  ;;  %v1304_v7 = vadd.f32 %v9725_v13, %v1303_v2  ;;  %2720 = vrot.lane.b32.xlu1 %v2670_v0, %s9294_s14  ;;  %v1869_v20 = vld [vmem:[#allocation4 + $0x90] ss:$2 sm:$0xff]  ;;  %v1933_v21 = vld [vmem:[#allocation4 + $0x91] ss:$2 sm:$0xff] }
 0x11e   : > { %v2849_v6 = vsel %vm1180_vm1, %v2847_v63, %v2848_v58  ;;  %v8632_v8 = vpop.f32.mrf.mxu0  ;;  %8727 = vmatmul.mubr.msk.bf16.gmra.mxu0 %vm986_vm2, %v9060_v61  ;;  %2327 = vst.msk [vmem:[#allocation2 + $0x60] sm:$0xfc] %vm2324_vm5, %v2246_v4  ;;  %v2248_v11 = vsel %vm2242_vm6, %v2246_v4, %v2247_v5  ;;  %v2363_v15 = vsel %vm2357_vm7, %v2361_v3, %v2362_v9  ;;  %v1867_v23 = vld [vmem:[#allocation4 + $0x80] ss:$2 sm:$0xff]  ;;  %v1931_v27 = vld [vmem:[#allocation4 + $0x81] ss:$2 sm:$0xff] }
 0x11f   : > { %2927 = vst.msk [vmem:[#allocation2 + $0x68] sm:$0xff] %vm386_vm3, %v2849_v6  ;;  %1752 = vst.msk [vmem:[#allocation4 + $0xa8] sm:$0xff] %vm386_vm3, %v1304_v7  ;;  %v1325_v12 = vadd.f32 %v8632_v8, %v9725_v13  ;;  %8730 = vmatprep.mubr.msk.bf16.mxu0 %vm986_vm2, %v9061_v1  ;;  %v2671_v18 = vsel %vm2665_vm8, %v2669_v10, %v2670_v0  ;;  %v1991_v30 = vmax.f32 %v1869_v20, %v1933_v21 }
 0x120   : > { %2410 = vrot.lane.b32.xlu0 %v2361_v3, %s9293_s30  ;;  %2328 = vst.msk [vmem:[#allocation2 + $0x70] sm:$0xff] %vm386_vm3, %v2248_v11  ;;  %v1316_v14 = vpop.f32.mrf.mxu0  ;;  %v1990_v37 = vmax.f32 %v1867_v23, %v1931_v27 }
 0x121   : > { %1757 = vst.msk [vmem:[#allocation4 + $0xd0] sm:$0xff] %vm386_vm3, %v1325_v12  ;;  %v1317_v16 = vadd.f32 %v9725_v13, %v1316_v14  ;;  %2412 = vrot.lane.b32.xlu1 %v2363_v15, %s9293_s30 }
 0x122   : > { %v8633_v17 = vpop.f32.mrf.mxu0 }
 0x123   : > { %1755 = vst.msk [vmem:[#allocation4 + $0xc0] sm:$0xff] %vm386_vm3, %v1317_v16  ;;  %v1328_v22 = vadd.f32 %v8633_v17, %v9725_v13 }
 0x124   : > { %2718 = vrot.lane.b32.xlu0 %v2671_v18, %s9294_s14  ;;  %v1319_v24 = vpop.f32.mrf.mxu0  ;;  %v2029_v25 = vld [vmem:[#allocation4 + $0xb0] ss:$2 sm:$0xff]  ;;  %v2093_v26 = vld [vmem:[#allocation4 + $0xb1] ss:$2 sm:$0xff] }
 0x125   : > { %1758 = vst.msk [vmem:[#allocation4 + $0xd8] sm:$0xff] %vm386_vm3, %v1328_v22  ;;  %v1320_v28 = vadd.f32 %v9725_v13, %v1319_v24  ;;  %v2151_v31 = vmax.f32 %v2029_v25, %v2093_v26 }
 0x126   : > { %v8636_v32 = vpop.f32.mrf.mxu0  ;;  %8731 = vmatmul.mubr.msk.bf16.gmra.mxu0 %vm986_vm2, %v9062_v19  ;;  %v2027_v33 = vld [vmem:[#allocation4 + $0xa0] ss:$2 sm:$0xff]  ;;  %v2091_v34 = vld [vmem:[#allocation4 + $0xa1] ss:$2 sm:$0xff] }
 0x127   : > { %1756 = vst.msk [vmem:[#allocation4 + $0xc8] sm:$0xff] %vm386_vm3, %v1320_v28  ;;  %v1341_v35 = vadd.f32 %v8636_v32, %v9725_v13  ;;  %7973 = vmatprep.mubr.msk.bf16.mxu0 %vm386_vm3, %v9845_v49  ;;  %v2183_v36 = vmax.f32 %v1991_v30, %v2151_v31  ;;  %v2150_v38 = vmax.f32 %v2027_v33, %v2091_v34 }
 0x128   : > { %v1332_v39 = vpop.f32.mrf.mxu0 }
 0x129   : > { %1761 = vst.msk [vmem:[#allocation4 + $0xf0] sm:$0xff] %vm386_vm3, %v1341_v35  ;;  %v1333_v40 = vadd.f32 %v9725_v13, %v1332_v39  ;;  %v2851_v41 = vrot.slane %v2183_v36, 2  ;;  %2546 = vrot.lane.b32.xlu1 %v2183_v36, %s9292_s22  ;;  %v2182_v42 = vmax.f32 %v1990_v37, %v2150_v38  ;;  %v2673_v46 = vrot.slane %v2183_v36, 1 }
 0x12a   : > { %v8637_v43 = vpop.f32.mrf.mxu0  ;;  %v2250_v50 = vrot.slane %v2183_v36, 6  ;;  %v2365_v54 = vrot.slane %v2183_v36, 7 }
 0x12b   : > { %1759 = vst.msk [vmem:[#allocation4 + $0xe0] sm:$0xff] %vm386_vm3, %v1333_v40  ;;  %v1344_v44 = vadd.f32 %v8637_v43, %v9725_v13  ;;  %v2850_v45 = vrot.slane %v2182_v42, 2  ;;  %2544 = vrot.lane.b32.xlu0 %v2182_v42, %s9292_s22  ;;  %v2364_v48 = vrot.slane %v2182_v42, 7  ;;  %v2249_v49 = vrot.slane %v2182_v42, 6 }
 0x12c   : > { %2930 = vst.msk [vmem:[#allocation2 + $0x98] sm:$0x3f] %vm2925_vm4, %v2851_v41  ;;  %v1335_v47 = vpop.f32.mrf.mxu0  ;;  %v2672_v55 = vrot.slane %v2182_v42, 1  ;;  %v1873_v63 = vld [vmem:[#allocation4 + $0xd0] ss:$2 sm:$0xff] }
 0x12d   : > { %1762 = vst.msk [vmem:[#allocation4 + $0xf8] sm:$0xff] %vm386_vm3, %v1344_v44  ;;  %v2852_v51 = vsel %vm1180_vm1, %v2850_v45, %v2851_v41  ;;  %v1336_v52 = vadd.f32 %v9725_v13, %v1335_v47  ;;  %2724 = vrot.lane.b32.xlu1 %v2673_v46, %s9294_s14  ;;  %v2251_v56 = vsel %vm2242_vm6, %v2249_v49, %v2250_v50  ;;  %v1937_v0 = vld [vmem:[#allocation4 + $0xd1] ss:$2 sm:$0xff] }
 0x12e   : > { %2929 = vst.msk [vmem:[#allocation2 + $0x88] sm:$0xff] %vm386_vm3, %v2852_v51  ;;  %v8640_v53 = vpop.f32.mrf.mxu0  ;;  %2330 = vst.msk [vmem:[#allocation2 + $0x90] sm:$0xff] %vm386_vm3, %v2251_v56  ;;  %v2366_v59 = vsel %vm2357_vm7, %v2364_v48, %v2365_v54  ;;  %v2674_v62 = vsel %vm2665_vm8, %v2672_v55, %v2673_v46  ;;  %v1871_v2 = vld [vmem:[#allocation4 + $0xc0] ss:$2 sm:$0xff]  ;;  %v1935_v6 = vld [vmem:[#allocation4 + $0xc1] ss:$2 sm:$0xff]  ;;  %v1993_v8 = vmax.f32 %v1873_v63, %v1937_v0 }
 0x12f   : > { %2329 = vst.msk [vmem:[#allocation2 + $0x80] sm:$0xfc] %vm2324_vm5, %v2249_v49  ;;  %v1357_v57 = vadd.f32 %v8640_v53, %v9725_v13  ;;  %2414 = vrot.lane.b32.xlu0 %v2364_v48, %s9293_s30  ;;  %v1992_v16 = vmax.f32 %v1871_v2, %v1935_v6 }
 0x130   : > { %1760 = vst.msk [vmem:[#allocation4 + $0xe8] sm:$0xff] %vm386_vm3, %v1336_v52  ;;  %v1348_v58 = vpop.f32.mrf.mxu0 }
 0x131   : > { %1765 = vst.msk [vmem:[#allocation4 + $0x110] sm:$0xff] %vm386_vm3, %v1357_v57  ;;  %v1349_v60 = vadd.f32 %v9725_v13, %v1348_v58  ;;  %2416 = vrot.lane.b32.xlu1 %v2366_v59, %s9293_s30 }
 0x132   : > { %v8641_v61 = vpop.f32.mrf.mxu0 }
 0x133   : > { %1763 = vst.msk [vmem:[#allocation4 + $0x100] sm:$0xff] %vm386_vm3, %v1349_v60  ;;  %v1360_v1 = vadd.f32 %v8641_v61, %v9725_v13  ;;  %2722 = vrot.lane.b32.xlu0 %v2674_v62, %s9294_s14 }
 0x134   : > { %v1351_v3 = vpop.f32.mrf.mxu0  ;;  %v2033_v4 = vld [vmem:[#allocation4 + $0xf0] ss:$2 sm:$0xff]  ;;  %v2097_v5 = vld [vmem:[#allocation4 + $0xf1] ss:$2 sm:$0xff] }
 0x135   : > { %1766 = vst.msk [vmem:[#allocation4 + $0x118] sm:$0xff] %vm386_vm3, %v1360_v1  ;;  %v1352_v7 = vadd.f32 %v9725_v13, %v1351_v3  ;;  %v2153_v9 = vmax.f32 %v2033_v4, %v2097_v5 }
 0x136   : > { %v8644_v10 = vpop.f32.mrf.mxu0 }
 0x137   : > { %v2031_v11 = vld [vmem:[#allocation4 + $0xe0] ss:$2 sm:$0xff]  ;;  %v2095_v12 = vld [vmem:[#allocation4 + $0xe1] ss:$2 sm:$0xff]  ;;  %1764 = vst.msk [vmem:[#allocation4 + $0x108] sm:$0xff] %vm386_vm3, %v1352_v7  ;;  %v1373_v14 = vadd.f32 %v8644_v10, %v9725_v13  ;;  %v2185_v15 = vmax.f32 %v1993_v8, %v2153_v9 }
 0x138   : > { %v2152_v17 = vmax.f32 %v2031_v11, %v2095_v12  ;;  %v1364_v18 = vpop.f32.mrf.mxu0 }
 0x139   : > { %1769 = vst.msk [vmem:[#allocation4 + $0x130] sm:$0xff] %vm386_vm3, %v1373_v14  ;;  %v1365_v19 = vadd.f32 %v9725_v13, %v1364_v18  ;;  %v2854_v20 = vrot.slane %v2185_v15, 2  ;;  %2550 = vrot.lane.b32.xlu1 %v2185_v15, %s9292_s22  ;;  %v2676_v25 = vrot.slane %v2185_v15, 1  ;;  %v2253_v30 = vrot.slane %v2185_v15, 6 }
 0x13a   : > { %v2184_v21 = vmax.f32 %v1992_v16, %v2152_v17  ;;  %v8645_v22 = vpop.f32.mrf.mxu0  ;;  %v2368_v34 = vrot.slane %v2185_v15, 7 }
 0x13b   : > { %1767 = vst.msk [vmem:[#allocation4 + $0x120] sm:$0xff] %vm386_vm3, %v1365_v19  ;;  %v1376_v23 = vadd.f32 %v8645_v22, %v9725_v13 }
 0x13c   : > { %2932 = vst.msk [vmem:[#allocation2 + $0xb8] sm:$0x3f] %vm2925_vm4, %v2854_v20  ;;  %v2853_v24 = vrot.slane %v2184_v21, 2  ;;  %2548 = vrot.lane.b32.xlu0 %v2184_v21, %s9292_s22  ;;  %v1367_v26 = vpop.f32.mrf.mxu0  ;;  %v2367_v27 = vrot.slane %v2184_v21, 7  ;;  %v2252_v28 = vrot.slane %v2184_v21, 6  ;;  %v2675_v35 = vrot.slane %v2184_v21, 1 }
 0x13d   : > { %1770 = vst.msk [vmem:[#allocation4 + $0x138] sm:$0xff] %vm386_vm3, %v1376_v23  ;;  %v1368_v32 = vadd.f32 %v9725_v13, %v1367_v26  ;;  %2728 = vrot.lane.b32.xlu1 %v2676_v25, %s9294_s14  ;;  %v1877_v43 = vld [vmem:[#allocation4 + $0x110] ss:$2 sm:$0xff]  ;;  %v1941_v44 = vld [vmem:[#allocation4 + $0x111] ss:$2 sm:$0xff] }
 0x13e   : > { %v2855_v31 = vsel %vm1180_vm1, %v2853_v24, %v2854_v20  ;;  %v8648_v33 = vpop.f32.mrf.mxu0  ;;  %2331 = vst.msk [vmem:[#allocation2 + $0xa0] sm:$0xfc] %vm2324_vm5, %v2252_v28  ;;  %v2254_v36 = vsel %vm2242_vm6, %v2252_v28, %v2253_v30  ;;  %v2369_v39 = vsel %vm2357_vm7, %v2367_v27, %v2368_v34  ;;  %v2677_v42 = vsel %vm2665_vm8, %v2675_v35, %v2676_v25  ;;  %v1875_v46 = vld [vmem:[#allocation4 + $0x100] ss:$2 sm:$0xff]  ;;  %v1939_v50 = vld [vmem:[#allocation4 + $0x101] ss:$2 sm:$0xff] }
 0x13f   : > { %2931 = vst.msk [vmem:[#allocation2 + $0xa8] sm:$0xff] %vm386_vm3, %v2855_v31  ;;  %1768 = vst.msk [vmem:[#allocation4 + $0x128] sm:$0xff] %vm386_vm3, %v1368_v32  ;;  %v1389_v37 = vadd.f32 %v8648_v33, %v9725_v13  ;;  %v1995_v52 = vmax.f32 %v1877_v43, %v1941_v44  ;;  %v1994_v59 = vmax.f32 %v1875_v46, %v1939_v50 }
 0x140   : > { %2418 = vrot.lane.b32.xlu0 %v2367_v27, %s9293_s30  ;;  %2332 = vst.msk [vmem:[#allocation2 + $0xb0] sm:$0xff] %vm386_vm3, %v2254_v36  ;;  %v1380_v38 = vpop.f32.mrf.mxu0 }
 0x141   : > { %1773 = vst.msk [vmem:[#allocation4 + $0x150] sm:$0xff] %vm386_vm3, %v1389_v37  ;;  %v1381_v40 = vadd.f32 %v9725_v13, %v1380_v38  ;;  %2420 = vrot.lane.b32.xlu1 %v2369_v39, %s9293_s30 }
 0x142   : > { %v8649_v41 = vpop.f32.mrf.mxu0 }
 0x143   : > { %1771 = vst.msk [vmem:[#allocation4 + $0x140] sm:$0xff] %vm386_vm3, %v1381_v40  ;;  %v1392_v45 = vadd.f32 %v8649_v41, %v9725_v13 }
 0x144   : > { %2726 = vrot.lane.b32.xlu0 %v2677_v42, %s9294_s14  ;;  %v1383_v47 = vpop.f32.mrf.mxu0  ;;  %v2037_v48 = vld [vmem:[#allocation4 + $0x130] ss:$2 sm:$0xff]  ;;  %v2101_v49 = vld [vmem:[#allocation4 + $0x131] ss:$2 sm:$0xff] }
 0x145   : > { %1774 = vst.msk [vmem:[#allocation4 + $0x158] sm:$0xff] %vm386_vm3, %v1392_v45  ;;  %v1384_v51 = vadd.f32 %v9725_v13, %v1383_v47  ;;  %v2155_v53 = vmax.f32 %v2037_v48, %v2101_v49 }
 0x146   : > { %v8652_v54 = vpop.f32.mrf.mxu0  ;;  %v2035_v55 = vld [vmem:[#allocation4 + $0x120] ss:$2 sm:$0xff]  ;;  %v2099_v56 = vld [vmem:[#allocation4 + $0x121] ss:$2 sm:$0xff] }
 0x147   : > { %1772 = vst.msk [vmem:[#allocation4 + $0x148] sm:$0xff] %vm386_vm3, %v1384_v51  ;;  %v1405_v57 = vadd.f32 %v8652_v54, %v9725_v13  ;;  %v2187_v58 = vmax.f32 %v1995_v52, %v2155_v53  ;;  %v2154_v60 = vmax.f32 %v2035_v55, %v2099_v56 }
 0x148   : > { %v1396_v61 = vpop.f32.mrf.mxu0 }
 0x149   : > { %1777 = vst.msk [vmem:[#allocation4 + $0x170] sm:$0xff] %vm386_vm3, %v1405_v57  ;;  %v1397_v62 = vadd.f32 %v9725_v13, %v1396_v61  ;;  %v2857_v63 = vrot.slane %v2187_v58, 2  ;;  %2554 = vrot.lane.b32.xlu1 %v2187_v58, %s9292_s22  ;;  %v2186_v0 = vmax.f32 %v1994_v59, %v2154_v60  ;;  %v2679_v4 = vrot.slane %v2187_v58, 1 }
 0x14a   : > { %v8653_v1 = vpop.f32.mrf.mxu0  ;;  %v2256_v8 = vrot.slane %v2187_v58, 6  ;;  %v2371_v12 = vrot.slane %v2187_v58, 7 }
 0x14b   : > { %1775 = vst.msk [vmem:[#allocation4 + $0x160] sm:$0xff] %vm386_vm3, %v1397_v62  ;;  %v1408_v2 = vadd.f32 %v8653_v1, %v9725_v13  ;;  %v2856_v3 = vrot.slane %v2186_v0, 2  ;;  %2552 = vrot.lane.b32.xlu0 %v2186_v0, %s9292_s22  ;;  %v2370_v6 = vrot.slane %v2186_v0, 7  ;;  %v2255_v7 = vrot.slane %v2186_v0, 6 }
 0x14c   : > { %2934 = vst.msk [vmem:[#allocation2 + $0xd8] sm:$0x3f] %vm2925_vm4, %v2857_v63  ;;  %v1399_v5 = vpop.f32.mrf.mxu0  ;;  %v2678_v14 = vrot.slane %v2186_v0, 1  ;;  %v1881_v22 = vld [vmem:[#allocation4 + $0x150] ss:$2 sm:$0xff] }
 0x14d   : > { %1778 = vst.msk [vmem:[#allocation4 + $0x178] sm:$0xff] %vm386_vm3, %v1408_v2  ;;  %v2858_v9 = vsel %vm1180_vm1, %v2856_v3, %v2857_v63  ;;  %v1400_v10 = vadd.f32 %v9725_v13, %v1399_v5  ;;  %2732 = vrot.lane.b32.xlu1 %v2679_v4, %s9294_s14  ;;  %v2257_v15 = vsel %vm2242_vm6, %v2255_v7, %v2256_v8  ;;  %v1945_v23 = vld [vmem:[#allocation4 + $0x151] ss:$2 sm:$0xff] }
 0x14e   : > { %2933 = vst.msk [vmem:[#allocation2 + $0xc8] sm:$0xff] %vm386_vm3, %v2858_v9  ;;  %v8656_v11 = vpop.f32.mrf.mxu0  ;;  %2334 = vst.msk [vmem:[#allocation2 + $0xd0] sm:$0xff] %vm386_vm3, %v2257_v15  ;;  %v2372_v18 = vsel %vm2357_vm7, %v2370_v6, %v2371_v12  ;;  %v2680_v21 = vsel %vm2665_vm8, %v2678_v14, %v2679_v4  ;;  %v1879_v25 = vld [vmem:[#allocation4 + $0x140] ss:$2 sm:$0xff]  ;;  %v1943_v30 = vld [vmem:[#allocation4 + $0x141] ss:$2 sm:$0xff]  ;;  %v1997_v32 = vmax.f32 %v1881_v22, %v1945_v23 }
 0x14f   : > { %2333 = vst.msk [vmem:[#allocation2 + $0xc0] sm:$0xfc] %vm2324_vm5, %v2255_v7  ;;  %v1421_v16 = vadd.f32 %v8656_v11, %v9725_v13  ;;  %2422 = vrot.lane.b32.xlu0 %v2370_v6, %s9293_s30  ;;  %v1996_v39 = vmax.f32 %v1879_v25, %v1943_v30 }
 0x150   : > { %1776 = vst.msk [vmem:[#allocation4 + $0x168] sm:$0xff] %vm386_vm3, %v1400_v10  ;;  %v1412_v17 = vpop.f32.mrf.mxu0 }
 0x151   : > { %1781 = vst.msk [vmem:[#allocation4 + $0x190] sm:$0xff] %vm386_vm3, %v1421_v16  ;;  %v1413_v19 = vadd.f32 %v9725_v13, %v1412_v17  ;;  %2424 = vrot.lane.b32.xlu1 %v2372_v18, %s9293_s30 }
 0x152   : > { %v8657_v20 = vpop.f32.mrf.mxu0 }
 0x153   : > { %1779 = vst.msk [vmem:[#allocation4 + $0x180] sm:$0xff] %vm386_vm3, %v1413_v19  ;;  %v1424_v24 = vadd.f32 %v8657_v20, %v9725_v13  ;;  %2730 = vrot.lane.b32.xlu0 %v2680_v21, %s9294_s14 }
 0x154   : > { %v1415_v26 = vpop.f32.mrf.mxu0  ;;  %v2041_v27 = vld [vmem:[#allocation4 + $0x170] ss:$2 sm:$0xff]  ;;  %v2105_v28 = vld [vmem:[#allocation4 + $0x171] ss:$2 sm:$0xff] }
 0x155   : > { %1782 = vst.msk [vmem:[#allocation4 + $0x198] sm:$0xff] %vm386_vm3, %v1424_v24  ;;  %v1416_v31 = vadd.f32 %v9725_v13, %v1415_v26  ;;  %v2157_v33 = vmax.f32 %v2041_v27, %v2105_v28 }
 0x156   : > { %v8660_v34 = vpop.f32.mrf.mxu0 }
 0x157   : > { %v2039_v35 = vld [vmem:[#allocation4 + $0x160] ss:$2 sm:$0xff]  ;;  %v2103_v36 = vld [vmem:[#allocation4 + $0x161] ss:$2 sm:$0xff]  ;;  %1780 = vst.msk [vmem:[#allocation4 + $0x188] sm:$0xff] %vm386_vm3, %v1416_v31  ;;  %v1437_v37 = vadd.f32 %v8660_v34, %v9725_v13  ;;  %v2189_v38 = vmax.f32 %v1997_v32, %v2157_v33 }
 0x158   : > { %v2156_v40 = vmax.f32 %v2039_v35, %v2103_v36  ;;  %v1428_v41 = vpop.f32.mrf.mxu0 }
 0x159   : > { %1785 = vst.msk [vmem:[#allocation4 + $0x1b0] sm:$0xff] %vm386_vm3, %v1437_v37  ;;  %v1429_v42 = vadd.f32 %v9725_v13, %v1428_v41  ;;  %v2860_v43 = vrot.slane %v2189_v38, 2  ;;  %2558 = vrot.lane.b32.xlu1 %v2189_v38, %s9292_s22  ;;  %v2682_v48 = vrot.slane %v2189_v38, 1  ;;  %v2259_v52 = vrot.slane %v2189_v38, 6 }
 0x15a   : > { %v2188_v44 = vmax.f32 %v1996_v39, %v2156_v40  ;;  %v8661_v45 = vpop.f32.mrf.mxu0  ;;  %v2374_v56 = vrot.slane %v2189_v38, 7 }
 0x15b   : > { %1783 = vst.msk [vmem:[#allocation4 + $0x1a0] sm:$0xff] %vm386_vm3, %v1429_v42  ;;  %v1440_v46 = vadd.f32 %v8661_v45, %v9725_v13  ;;  %v10033_v42 = vld [vmem:[%s12040_s2] ss:$0 sm:$0xff] }
 0x15c   : > { %2936 = vst.msk [vmem:[#allocation2 + $0xf8] sm:$0x3f] %vm2925_vm4, %v2860_v43  ;;  %v2859_v47 = vrot.slane %v2188_v44, 2  ;;  %2556 = vrot.lane.b32.xlu0 %v2188_v44, %s9292_s22  ;;  %v1431_v49 = vpop.f32.mrf.mxu0  ;;  %v2373_v50 = vrot.slane %v2188_v44, 7  ;;  %v2258_v51 = vrot.slane %v2188_v44, 6  ;;  %v2681_v57 = vrot.slane %v2188_v44, 1 }
 0x15d   : > { %1786 = vst.msk [vmem:[#allocation4 + $0x1b8] sm:$0xff] %vm386_vm3, %v1440_v46  ;;  %v1432_v54 = vadd.f32 %v9725_v13, %v1431_v49  ;;  %2736 = vrot.lane.b32.xlu1 %v2682_v48, %s9294_s14  ;;  %v1885_v1 = vld [vmem:[#allocation4 + $0x190] ss:$2 sm:$0xff]  ;;  %v1949_v2 = vld [vmem:[#allocation4 + $0x191] ss:$2 sm:$0xff] }
 0x15e   : > { %v2861_v53 = vsel %vm1180_vm1, %v2859_v47, %v2860_v43  ;;  %v8664_v55 = vpop.f32.mrf.mxu0  ;;  %2335 = vst.msk [vmem:[#allocation2 + $0xe0] sm:$0xfc] %vm2324_vm5, %v2258_v51  ;;  %v2260_v58 = vsel %vm2242_vm6, %v2258_v51, %v2259_v52  ;;  %v2375_v61 = vsel %vm2357_vm7, %v2373_v50, %v2374_v56  ;;  %v2683_v0 = vsel %vm2665_vm8, %v2681_v57, %v2682_v48  ;;  %v1883_v4 = vld [vmem:[#allocation4 + $0x180] ss:$2 sm:$0xff]  ;;  %v1947_v8 = vld [vmem:[#allocation4 + $0x181] ss:$2 sm:$0xff] }
 0x15f   : > { %2935 = vst.msk [vmem:[#allocation2 + $0xe8] sm:$0xff] %vm386_vm3, %v2861_v53  ;;  %1784 = vst.msk [vmem:[#allocation4 + $0x1a8] sm:$0xff] %vm386_vm3, %v1432_v54  ;;  %v1453_v59 = vadd.f32 %v8664_v55, %v9725_v13  ;;  %v1999_v10 = vmax.f32 %v1885_v1, %v1949_v2  ;;  %v1998_v18 = vmax.f32 %v1883_v4, %v1947_v8 }
 0x160   : > { %2426 = vrot.lane.b32.xlu0 %v2373_v50, %s9293_s30  ;;  %2336 = vst.msk [vmem:[#allocation2 + $0xf0] sm:$0xff] %vm386_vm3, %v2260_v58  ;;  %v1444_v60 = vpop.f32.mrf.mxu0 }
 0x161   : > { %1789 = vst.msk [vmem:[#allocation4 + $0x1d0] sm:$0xff] %vm386_vm3, %v1453_v59  ;;  %v1445_v62 = vadd.f32 %v9725_v13, %v1444_v60  ;;  %2428 = vrot.lane.b32.xlu1 %v2375_v61, %s9293_s30  ;;  %v9073_v59 = vld [vmem:[%s12041_s3 + $0x38] sm:$0xff]  }
 0x162   : > { %v8665_v63 = vpop.f32.mrf.mxu0  ;;  %3569 = vmatpush1.bf16.msra.mxu1 %v9073_v59 }
 0x163   : > { %1787 = vst.msk [vmem:[#allocation4 + $0x1c0] sm:$0xff] %vm386_vm3, %v1445_v62  ;;  %v1456_v3 = vadd.f32 %v8665_v63, %v9725_v13  ;;  %3570 = vmatprep.subr.bf16.mxu1 %v12050_v29 }
 0x164   : > { %2734 = vrot.lane.b32.xlu0 %v2683_v0, %s9294_s14  ;;  %v1447_v5 = vpop.f32.mrf.mxu0  ;;  %v2045_v6 = vld [vmem:[#allocation4 + $0x1b0] ss:$2 sm:$0xff]  ;;  %v2109_v7 = vld [vmem:[#allocation4 + $0x1b1] ss:$2 sm:$0xff] }
 0x165   : > { %1790 = vst.msk [vmem:[#allocation4 + $0x1d8] sm:$0xff] %vm386_vm3, %v1456_v3  ;;  %v1448_v9 = vadd.f32 %v9725_v13, %v1447_v5  ;;  %v2159_v11 = vmax.f32 %v2045_v6, %v2109_v7 }
 0x166   : > { %v8668_v12 = vpop.f32.mrf.mxu0  ;;  %v2043_v14 = vld [vmem:[#allocation4 + $0x1a0] ss:$2 sm:$0xff]  ;;  %v2107_v15 = vld [vmem:[#allocation4 + $0x1a1] ss:$2 sm:$0xff] }
 0x167   : > { %1788 = vst.msk [vmem:[#allocation4 + $0x1c8] sm:$0xff] %vm386_vm3, %v1448_v9  ;;  %v1469_v16 = vadd.f32 %v8668_v12, %v9725_v13  ;;  %v2191_v17 = vmax.f32 %v1999_v10, %v2159_v11  ;;  %v2158_v19 = vmax.f32 %v2043_v14, %v2107_v15 }
 0x168   : > { %v1460_v20 = vpop.f32.mrf.mxu0 }
 0x169   : > { %1793 = vst.msk [vmem:[#allocation4 + $0x1f0] sm:$0xff] %vm386_vm3, %v1469_v16  ;;  %v1461_v21 = vadd.f32 %v9725_v13, %v1460_v20  ;;  %v2863_v22 = vrot.slane %v2191_v17, 2  ;;  %2562 = vrot.lane.b32.xlu1 %v2191_v17, %s9292_s22  ;;  %v2190_v23 = vmax.f32 %v1998_v18, %v2158_v19  ;;  %v2685_v27 = vrot.slane %v2191_v17, 1 }
 0x16a   : > { %v8669_v24 = vpop.f32.mrf.mxu0  ;;  %v2262_v32 = vrot.slane %v2191_v17, 6  ;;  %v2377_v36 = vrot.slane %v2191_v17, 7 }
 0x16b   : > { %1791 = vst.msk [vmem:[#allocation4 + $0x1e0] sm:$0xff] %vm386_vm3, %v1461_v21  ;;  %v1472_v25 = vadd.f32 %v8669_v24, %v9725_v13  ;;  %v2862_v26 = vrot.slane %v2190_v23, 2  ;;  %2560 = vrot.lane.b32.xlu0 %v2190_v23, %s9292_s22  ;;  %v2376_v30 = vrot.slane %v2190_v23, 7  ;;  %v2261_v31 = vrot.slane %v2190_v23, 6 }
 0x16c   : > { %2938 = vst.msk [vmem:[#allocation2 + $0x118] sm:$0x3f] %vm2925_vm4, %v2863_v22  ;;  %v1463_v28 = vpop.f32.mrf.mxu0  ;;  %v2684_v37 = vrot.slane %v2190_v23, 1  ;;  %v1889_v45 = vld [vmem:[#allocation4 + $0x1d0] ss:$2 sm:$0xff] }
 0x16d   : > { %1794 = vst.msk [vmem:[#allocation4 + $0x1f8] sm:$0xff] %vm386_vm3, %v1472_v25  ;;  %v2864_v33 = vsel %vm1180_vm1, %v2862_v26, %v2863_v22  ;;  %v1464_v34 = vadd.f32 %v9725_v13, %v1463_v28  ;;  %2740 = vrot.lane.b32.xlu1 %v2685_v27, %s9294_s14  ;;  %v2263_v38 = vsel %vm2242_vm6, %v2261_v31, %v2262_v32  ;;  %v1953_v46 = vld [vmem:[#allocation4 + $0x1d1] ss:$2 sm:$0xff] }
 0x16e   : > { %2937 = vst.msk [vmem:[#allocation2 + $0x108] sm:$0xff] %vm386_vm3, %v2864_v33  ;;  %v8672_v35 = vpop.f32.mrf.mxu0  ;;  %2338 = vst.msk [vmem:[#allocation2 + $0x110] sm:$0xff] %vm386_vm3, %v2263_v38  ;;  %v2378_v41 = vsel %vm2357_vm7, %v2376_v30, %v2377_v36  ;;  %v1887_v48 = vld [vmem:[#allocation4 + $0x1c0] ss:$2 sm:$0xff]  ;;  %v1951_v52 = vld [vmem:[#allocation4 + $0x1c1] ss:$2 sm:$0xff]  ;;  %v2001_v54 = vmax.f32 %v1889_v45, %v1953_v46 }
 0x16f   : > { %2337 = vst.msk [vmem:[#allocation2 + $0x100] sm:$0xfc] %vm2324_vm5, %v2261_v31  ;;  %v1485_v39 = vadd.f32 %v8672_v35, %v9725_v13  ;;  %2430 = vrot.lane.b32.xlu0 %v2376_v30, %s9293_s30  ;;  %v2686_v13 = vsel %vm2665_vm8, %v2684_v37, %v2685_v27  ;;  %v2000_v62 = vmax.f32 %v1887_v48, %v1951_v52  ;;  %v9074_v45 = vld [vmem:[%s12041_s3 + $0x30] sm:$0xff]  }
 0x170   : > { %1792 = vst.msk [vmem:[#allocation4 + $0x1e8] sm:$0xff] %vm386_vm3, %v1464_v34  ;;  %v1476_v40 = vpop.f32.mrf.mxu0  ;;  %3571 = vmatpush1.bf16.msra.mxu1 %v9074_v45 }
 0x171   : > { %1797 = vst.msk [vmem:[#allocation4 + $0x210] sm:$0xff] %vm386_vm3, %v1485_v39  ;;  %v1477_v43 = vadd.f32 %v10033_v42, %v1476_v40  ;;  %2432 = vrot.lane.b32.xlu1 %v2378_v41, %s9293_s30  ;;  %3572 = vmatprep.subr.bf16.mxu1 %v12050_v29 }
 0x172   : > { %v8673_v44 = vpop.f32.mrf.mxu0 }
 0x173   : > { %1795 = vst.msk [vmem:[#allocation4 + $0x200] sm:$0xff] %vm386_vm3, %v1477_v43  ;;  %v1488_v47 = vadd.f32 %v10033_v42, %v8673_v44  ;;  %2738 = vrot.lane.b32.xlu0 %v2686_v13, %s9294_s14 }
 0x174   : > { %v1479_v49 = vpop.f32.mrf.mxu0  ;;  %v2049_v50 = vld [vmem:[#allocation4 + $0x1f0] ss:$2 sm:$0xff]  ;;  %v2113_v51 = vld [vmem:[#allocation4 + $0x1f1] ss:$2 sm:$0xff] }
 0x175   : > { %1798 = vst.msk [vmem:[#allocation4 + $0x218] sm:$0xff] %vm386_vm3, %v1488_v47  ;;  %v1480_v53 = vadd.f32 %v10033_v42, %v1479_v49  ;;  %v2161_v55 = vmax.f32 %v2049_v50, %v2113_v51 }
 0x176   : > { %v8676_v56 = vpop.f32.mrf.mxu0 }
 0x177   : > { %v2047_v57 = vld [vmem:[#allocation4 + $0x1e0] ss:$2 sm:$0xff]  ;;  %v2111_v58 = vld [vmem:[#allocation4 + $0x1e1] ss:$2 sm:$0xff]  ;;  %1796 = vst.msk [vmem:[#allocation4 + $0x208] sm:$0xff] %vm386_vm3, %v1480_v53  ;;  %v1501_v60 = vadd.f32 %v10033_v42, %v8676_v56  ;;  %v2193_v61 = vmax.f32 %v2001_v54, %v2161_v55 }
 0x178   : > { %v2160_v63 = vmax.f32 %v2047_v57, %v2111_v58  ;;  %v1492_v0 = vpop.f32.mrf.mxu0 }
 0x179   : > { %1801 = vst.msk [vmem:[#allocation4 + $0x230] sm:$0xff] %vm386_vm3, %v1501_v60  ;;  %v1493_v1 = vadd.f32 %v10033_v42, %v1492_v0  ;;  %v2866_v2 = vrot.slane %v2193_v61, 2  ;;  %2566 = vrot.lane.b32.xlu1 %v2193_v61, %s9292_s22  ;;  %v2688_v8 = vrot.slane %v2193_v61, 1  ;;  %v2265_v12 = vrot.slane %v2193_v61, 6 }
 0x17a   : > { %v2192_v3 = vmax.f32 %v2000_v62, %v2160_v63  ;;  %v8677_v4 = vpop.f32.mrf.mxu0  ;;  %v2380_v17 = vrot.slane %v2193_v61, 7 }
 0x17b   : > { %1799 = vst.msk [vmem:[#allocation4 + $0x220] sm:$0xff] %vm386_vm3, %v1493_v1  ;;  %v1504_v5 = vadd.f32 %v10033_v42, %v8677_v4  ;;  %v2539_v6 = vpop.permute.xlu1 %2538 }
 0x17c   : > { %2940 = vst.msk [vmem:[#allocation2 + $0x138] sm:$0x3f] %vm2925_vm4, %v2866_v2  ;;  %v2865_v7 = vrot.slane %v2192_v3, 2  ;;  %2564 = vrot.lane.b32.xlu0 %v2192_v3, %s9292_s22  ;;  %v1495_v9 = vpop.f32.mrf.mxu0  ;;  %v2379_v10 = vrot.slane %v2192_v3, 7  ;;  %v2264_v11 = vrot.slane %v2192_v3, 6  ;;  %v2687_v18 = vrot.slane %v2192_v3, 1 }
 0x17d   : > { %1802 = vst.msk [vmem:[#allocation4 + $0x238] sm:$0xff] %vm386_vm3, %v1504_v5  ;;  %v1496_v15 = vadd.f32 %v10033_v42, %v1495_v9  ;;  %2744 = vrot.lane.b32.xlu1 %v2688_v8, %s9294_s14  ;;  %v1893_v28 = vld [vmem:[#allocation4 + $0x210] ss:$2 sm:$0xff]  ;;  %v1957_v30 = vld [vmem:[#allocation4 + $0x211] ss:$2 sm:$0xff] }
 0x17e   : > { %v2867_v14 = vsel %vm1180_vm1, %v2865_v7, %v2866_v2  ;;  %v8680_v16 = vpop.f32.mrf.mxu0  ;;  %2339 = vst.msk [vmem:[#allocation2 + $0x120] sm:$0xfc] %vm2324_vm5, %v2264_v11  ;;  %v2266_v19 = vsel %vm2242_vm6, %v2264_v11, %v2265_v12  ;;  %v2381_v24 = vsel %vm2357_vm7, %v2379_v10, %v2380_v17  ;;  %v2689_v27 = vsel %vm2665_vm8, %v2687_v18, %v2688_v8  ;;  %v1891_v33 = vld [vmem:[#allocation4 + $0x200] ss:$2 sm:$0xff]  ;;  %v1955_v37 = vld [vmem:[#allocation4 + $0x201] ss:$2 sm:$0xff] }
 0x17f   : > { %2939 = vst.msk [vmem:[#allocation2 + $0x128] sm:$0xff] %vm386_vm3, %v2867_v14  ;;  %1800 = vst.msk [vmem:[#allocation4 + $0x228] sm:$0xff] %vm386_vm3, %v1496_v15  ;;  %v1517_v20 = vadd.f32 %v10033_v42, %v8680_v16  ;;  %v2537_v21 = vpop.permute.xlu1 %2536  ;;  %v2407_v22 = vpop.permute.xlu0 %2406  ;;  %v2003_v40 = vmax.f32 %v1893_v28, %v1957_v30  ;;  %v2002_v49 = vmax.f32 %v1891_v33, %v1955_v37  ;;  %v3085_v16 = vld [vmem:[#allocation2 + $0x78] sm:$0xff] }
 0x180   : > { %2434 = vrot.lane.b32.xlu0 %v2379_v10, %s9293_s30  ;;  %2340 = vst.msk [vmem:[#allocation2 + $0x130] sm:$0xff] %vm386_vm3, %v2266_v19  ;;  %v1508_v23 = vpop.f32.mrf.mxu0 }
 0x181   : > { %2503 = vst.msk [vmem:[#allocation2 + $0x40] sm:$0xfe] %vm2502_vm9, %v2407_v22  ;;  %v1509_v25 = vadd.f32 %v10033_v42, %v1508_v23  ;;  %2436 = vrot.lane.b32.xlu1 %v2381_v24, %s9293_s30 }
 0x182   : > { %1805 = vst.msk [vmem:[#allocation4 + $0x250] sm:$0xff] %vm386_vm3, %v1517_v20  ;;  %v8681_v26 = vpop.f32.mrf.mxu0 }
 0x183   : > { %2633 = vst.msk [vmem:[#allocation2 + $0x40] sm:$0xff] %vm2632_vm10, %v2537_v21  ;;  %v1520_v31 = vadd.f32 %v10033_v42, %v8681_v26  ;;  %v2409_v32 = vpop.permute.xlu0 %2408  ;;  %v2717_v38 = vpop.permute.xlu1 %2716 }
 0x184   : > { %1803 = vst.msk [vmem:[#allocation4 + $0x240] sm:$0xff] %vm386_vm3, %v1509_v25  ;;  %2742 = vrot.lane.b32.xlu0 %v2689_v27, %s9294_s14  ;;  %v1511_v34 = vpop.f32.mrf.mxu0  ;;  %v2053_v35 = vld [vmem:[#allocation4 + $0x230] ss:$2 sm:$0xff]  ;;  %v2117_v36 = vld [vmem:[#allocation4 + $0x231] ss:$2 sm:$0xff]  ;;  %v9075_v27 = vld [vmem:[%s12041_s3 + $0x28] sm:$0xff]  }
 0x185   : > { %2505 = vst.msk [vmem:[#allocation2 + $0x50] sm:$0xff] %vm2504_vm11, %v2409_v32  ;;  %v1512_v39 = vadd.f32 %v10033_v42, %v1511_v34  ;;  %v2163_v41 = vmax.f32 %v2053_v35, %v2117_v36  ;;  %3573 = vmatpush1.bf16.msra.mxu1 %v9075_v27 }
 0x186   : > { %1806 = vst.msk [vmem:[#allocation4 + $0x258] sm:$0xff] %vm386_vm3, %v1520_v31  ;;  %v8684_v43 = vpop.f32.mrf.mxu0  ;;  %v2051_v44 = vld [vmem:[#allocation4 + $0x220] ss:$2 sm:$0xff]  ;;  %v2115_v13 = vld [vmem:[#allocation4 + $0x221] ss:$2 sm:$0xff]  ;;  %3574 = vmatprep.subr.bf16.mxu1 %v12050_v29 }
 0x187   : > { %2634 = vst.msk [vmem:[#allocation2 + $0x50] sm:$0xff] %vm2632_vm10, %v2539_v6  ;;  %v1533_v46 = vadd.f32 %v10033_v42, %v8684_v43  ;;  %v2715_v47 = vpop.permute.xlu0 %2714  ;;  %v2195_v48 = vmax.f32 %v2003_v40, %v2163_v41  ;;  %v2162_v50 = vmax.f32 %v2051_v44, %v2115_v13  ;;  %v3083_v6 = vld [vmem:[#allocation2 + $0x68] sm:$0xff] }
 0x188   : > { %2813 = vst.msk [vmem:[#allocation2 + $0x50] sm:$0x7f] %vm2812_vm12, %v2717_v38  ;;  %v1524_v51 = vpop.f32.mrf.mxu0  ;;  %v3143_v19 = vpack.c.bf16 %v3085_v16, %v3083_v6 }
 0x189   : > { %1804 = vst.msk [vmem:[#allocation4 + $0x248] sm:$0xff] %vm386_vm3, %v1512_v39  ;;  %1809 = vst.msk [vmem:[#allocation4 + $0x270] sm:$0xff] %vm386_vm3, %v1533_v46  ;;  %v1525_v52 = vadd.f32 %v10033_v42, %v1524_v51  ;;  %v2869_v53 = vrot.slane %v2195_v48, 2  ;;  %2570 = vrot.lane.b32.xlu1 %v2195_v48, %s9292_s22  ;;  %v2194_v54 = vmax.f32 %v2002_v49, %v2162_v50  ;;  %v2691_v59 = vrot.slane %v2195_v48, 1 }
 0x18a   : > { %2811 = vst.msk [vmem:[#allocation2 + $0x40] sm:$0xff] %vm2810_vm13, %v2715_v47  ;;  %v8685_v55 = vpop.f32.mrf.mxu0  ;;  %v2268_v63 = vrot.slane %v2195_v48, 6  ;;  %v2383_v4 = vrot.slane %v2195_v48, 7 }
 0x18b   : > { %1807 = vst.msk [vmem:[#allocation4 + $0x260] sm:$0xff] %vm386_vm3, %v1525_v52  ;;  %v1536_v56 = vadd.f32 %v10033_v42, %v8685_v55  ;;  %v2543_v57 = vpop.permute.xlu1 %2542  ;;  %v2868_v58 = vrot.slane %v2194_v54, 2  ;;  %2568 = vrot.lane.b32.xlu0 %v2194_v54, %s9292_s22  ;;  %v2382_v61 = vrot.slane %v2194_v54, 7  ;;  %v2267_v62 = vrot.slane %v2194_v54, 6  ;;  %v3087_v55 = vld [vmem:[#allocation2 + $0x88] sm:$0xff] }
 0x18c   : > { %2942 = vst.msk [vmem:[#allocation2 + $0x158] sm:$0x3f] %vm2925_vm4, %v2869_v53  ;;  %v1527_v60 = vpop.f32.mrf.mxu0  ;;  %v2690_v5 = vrot.slane %v2194_v54, 1 }
 0x18d   : > { %1810 = vst.msk [vmem:[#allocation4 + $0x278] sm:$0xff] %vm386_vm3, %v1536_v56  ;;  %v2870_v0 = vsel %vm1180_vm1, %v2868_v58, %v2869_v53  ;;  %v1528_v1 = vadd.f32 %v10033_v42, %v1527_v60  ;;  %2748 = vrot.lane.b32.xlu1 %v2691_v59, %s9294_s14  ;;  %v2269_v7 = vsel %vm2242_vm6, %v2267_v62, %v2268_v63  ;;  %v1897_v22 = vld [vmem:[#allocation4 + $0x250] ss:$2 sm:$0xff]  ;;  %v1961_v23 = vld [vmem:[#allocation4 + $0x251] ss:$2 sm:$0xff]  ;;  %v9076_v63 = vld [vmem:[%s12041_s3 + $0x20] sm:$0xff]  }
 0x18e   : > { %v2541_v2 = vpop.permute.xlu0 %2540  ;;  %2941 = vst.msk [vmem:[#allocation2 + $0x148] sm:$0xff] %vm386_vm3, %v2870_v0  ;;  %v8688_v3 = vpop.f32.mrf.mxu0  ;;  %2342 = vst.msk [vmem:[#allocation2 + $0x150] sm:$0xff] %vm386_vm3, %v2269_v7  ;;  %v2384_v14 = vsel %vm2357_vm7, %v2382_v61, %v2383_v4  ;;  %v2692_v21 = vsel %vm2665_vm8, %v2690_v5, %v2691_v59  ;;  %v2005_v35 = vmax.f32 %v1897_v22, %v1961_v23  ;;  %3575 = vmatpush1.bf16.msra.mxu1 %v9076_v63 }
 0x18f   : > { %2341 = vst.msk [vmem:[#allocation2 + $0x140] sm:$0xfc] %vm2324_vm5, %v2267_v62  ;;  %v1549_v8 = vadd.f32 %v10033_v42, %v8688_v3  ;;  %v2721_v9 = vpop.permute.xlu1 %2720  ;;  %2438 = vrot.lane.b32.xlu0 %v2382_v61, %s9293_s30  ;;  %v3080_v11 = vld [vmem:[#allocation2 + $0x50] sm:$0xff]  ;;  %v3089_v3 = vld [vmem:[#allocation2 + $0x98] sm:$0xff]  ;;  %3576 = vmatprep.subr.bf16.mxu1 %v12050_v29 }
 0x190   : > { %1808 = vst.msk [vmem:[#allocation4 + $0x268] sm:$0xff] %vm386_vm3, %v1528_v1  ;;  %v1540_v12 = vpop.f32.mrf.mxu0  ;;  %v1895_v26 = vld [vmem:[#allocation4 + $0x240] ss:$2 sm:$0xff]  ;;  %v1959_v32 = vld [vmem:[#allocation4 + $0x241] ss:$2 sm:$0xff] }
 0x191   : > { %v3078_v10 = vld [vmem:[#allocation2 + $0x40] sm:$0xff]  ;;  %1813 = vst.msk [vmem:[#allocation4 + $0x290] sm:$0xff] %vm386_vm3, %v1549_v8  ;;  %v1541_v17 = vadd.f32 %v10033_v42, %v1540_v12  ;;  %2440 = vrot.lane.b32.xlu1 %v2384_v14, %s9293_s30  ;;  %v2004_v43 = vmax.f32 %v1895_v26, %v1959_v32  ;;  %v3145_v8 = vpack.c.bf16 %v3089_v3, %v3087_v55 }
 0x192   : > { %v3140_v15 = vpack.c.bf16 %v3080_v11, %v3078_v10  ;;  %v2411_v18 = vpop.permute.xlu0 %2410  ;;  %v8689_v20 = vpop.f32.mrf.mxu0 }
 0x193   : > { %2506 = vst.msk [vmem:[#allocation2 + $0x60] sm:$0xfe] %vm2502_vm9, %v2411_v18  ;;  %v1552_v24 = vadd.f32 %v10033_v42, %v8689_v20  ;;  %v2413_v25 = vpop.permute.xlu1 %2412  ;;  %2746 = vrot.lane.b32.xlu0 %v2692_v21, %s9294_s14 }
 0x194   : > { %3340 = vmatmul.mubr.bf16.gmra.mxu1 %v3140_v15  ;;  %3987 = vmatmul.mubr.bf16.vlgmr.msra.gmra.mxu0 %v3140_v15  ;;  %1811 = vst.msk [vmem:[#allocation4 + $0x280] sm:$0xff] %vm386_vm3, %v1541_v17  ;;  %v1543_v28 = vpop.f32.mrf.mxu0  ;;  %v2057_v30 = vld [vmem:[#allocation4 + $0x270] ss:$2 sm:$0xff]  ;;  %v2121_v31 = vld [vmem:[#allocation4 + $0x271] ss:$2 sm:$0xff] }
 0x195   : > { %2635 = vst.msk [vmem:[#allocation2 + $0x60] sm:$0xff] %vm2632_vm10, %v2541_v2  ;;  %7903 = vmatprep.mubr.msk.bf16.mxu1 %vm386_vm3, %v3143_v19  ;;  %7974 = vmatprep.mubr.msk.bf16.mxu0 %vm386_vm3, %v3143_v19  ;;  %v1544_v33 = vadd.f32 %v10033_v42, %v1543_v28  ;;  %v2165_v36 = vmax.f32 %v2057_v30, %v2121_v31 }
 0x196   : > { %2507 = vst.msk [vmem:[#allocation2 + $0x70] sm:$0xff] %vm2504_vm11, %v2413_v25  ;;  %v2719_v34 = vpop.permute.xlu0 %2718  ;;  %v8692_v37 = vpop.f32.mrf.mxu0 }
 0x197   : > { %1814 = vst.msk [vmem:[#allocation4 + $0x298] sm:$0xff] %vm386_vm3, %v1552_v24  ;;  %v2055_v38 = vld [vmem:[#allocation4 + $0x260] ss:$2 sm:$0xff]  ;;  %v2119_v39 = vld [vmem:[#allocation4 + $0x261] ss:$2 sm:$0xff]  ;;  %1812 = vst.msk [vmem:[#allocation4 + $0x288] sm:$0xff] %vm386_vm3, %v1544_v33  ;;  %v1565_v40 = vadd.f32 %v10033_v42, %v8692_v37  ;;  %v2197_v41 = vmax.f32 %v2005_v35, %v2165_v36 }
 0x198   : > { %2636 = vst.msk [vmem:[#allocation2 + $0x70] sm:$0xff] %vm2632_vm10, %v2543_v57  ;;  %v2164_v44 = vmax.f32 %v2055_v38, %v2119_v39  ;;  %v1556_v13 = vpop.f32.mrf.mxu0 }
 0x199   : > { %2815 = vst.msk [vmem:[#allocation2 + $0x70] sm:$0x7f] %vm2812_vm12, %v2721_v9  ;;  %v1557_v45 = vadd.f32 %v10033_v42, %v1556_v13  ;;  %v2872_v46 = vrot.slane %v2197_v41, 2  ;;  %2574 = vrot.lane.b32.xlu1 %v2197_v41, %s9292_s22  ;;  %v2694_v52 = vrot.slane %v2197_v41, 1  ;;  %v2271_v57 = vrot.slane %v2197_v41, 6 }
 0x19a   : > { %2814 = vst.msk [vmem:[#allocation2 + $0x60] sm:$0xff] %vm2810_vm13, %v2719_v34  ;;  %v2196_v47 = vmax.f32 %v2004_v43, %v2164_v44  ;;  %v8693_v48 = vpop.f32.mrf.mxu0  ;;  %v2386_v2 = vrot.slane %v2197_v41, 7 }
 0x19b   : > { %1817 = vst.msk [vmem:[#allocation4 + $0x2b0] sm:$0xff] %vm386_vm3, %v1565_v40  ;;  %1815 = vst.msk [vmem:[#allocation4 + $0x2a0] sm:$0xff] %vm386_vm3, %v1557_v45  ;;  %v1568_v49 = vadd.f32 %v10033_v42, %v8693_v48  ;;  %v2547_v50 = vpop.permute.xlu1 %2546 }
 0x19c   : > { %2944 = vst.msk [vmem:[#allocation2 + $0x178] sm:$0x3f] %vm2925_vm4, %v2872_v46  ;;  %v2871_v51 = vrot.slane %v2196_v47, 2  ;;  %2572 = vrot.lane.b32.xlu0 %v2196_v47, %s9292_s22  ;;  %v1559_v53 = vpop.f32.mrf.mxu0  ;;  %v2385_v54 = vrot.slane %v2196_v47, 7  ;;  %v2270_v56 = vrot.slane %v2196_v47, 6  ;;  %v2693_v4 = vrot.slane %v2196_v47, 1 }
 0x19d   : > { %1818 = vst.msk [vmem:[#allocation4 + $0x2b8] sm:$0xff] %vm386_vm3, %v1568_v49  ;;  %v1560_v59 = vadd.f32 %v10033_v42, %v1559_v53  ;;  %2752 = vrot.lane.b32.xlu1 %v2694_v52, %s9294_s14  ;;  %v2545_v60 = vpop.permute.xlu0 %2544  ;;  %v3091_v49 = vld [vmem:[#allocation2 + $0xa8] sm:$0xff] }
 0x19e   : > { %v2873_v58 = vsel %vm1180_vm1, %v2871_v51, %v2872_v46  ;;  %v8696_v0 = vpop.f32.mrf.mxu0  ;;  %2343 = vst.msk [vmem:[#allocation2 + $0x160] sm:$0xfc] %vm2324_vm5, %v2270_v56  ;;  %v2272_v5 = vsel %vm2242_vm6, %v2270_v56, %v2271_v57  ;;  %v2387_v10 = vsel %vm2357_vm7, %v2385_v54, %v2386_v2  ;;  %v2695_v15 = vsel %vm2665_vm8, %v2693_v4, %v2694_v52  ;;  %v1901_v16 = vld [vmem:[#allocation4 + $0x290] ss:$2 sm:$0xff]  ;;  %v1965_v17 = vld [vmem:[#allocation4 + $0x291] ss:$2 sm:$0xff] }
 0x19f   : > { %2943 = vst.msk [vmem:[#allocation2 + $0x168] sm:$0xff] %vm386_vm3, %v2873_v58  ;;  %1816 = vst.msk [vmem:[#allocation4 + $0x2a8] sm:$0xff] %vm386_vm3, %v1560_v59  ;;  %v1581_v6 = vadd.f32 %v10033_v42, %v8696_v0  ;;  %v2725_v7 = vpop.permute.xlu1 %2724  ;;  %v1899_v20 = vld [vmem:[#allocation4 + $0x280] ss:$2 sm:$0xff]  ;;  %v1963_v24 = vld [vmem:[#allocation4 + $0x281] ss:$2 sm:$0xff]  ;;  %v2007_v27 = vmax.f32 %v1901_v16, %v1965_v17 }
 0x1a0   : > { %v3084_v62 = vld [vmem:[#allocation2 + $0x70] sm:$0xff]  ;;  %2442 = vrot.lane.b32.xlu0 %v2385_v54, %s9293_s30  ;;  %2344 = vst.msk [vmem:[#allocation2 + $0x170] sm:$0xff] %vm386_vm3, %v2272_v5  ;;  %v1572_v9 = vpop.f32.mrf.mxu0  ;;  %v2006_v35 = vmax.f32 %v1899_v20, %v1963_v24  ;;  %v9077_v46 = vld [vmem:[%s12041_s3 + $0x18] sm:$0xff]  }
 0x1a1   : > { %v3082_v61 = vld [vmem:[#allocation2 + $0x60] sm:$0xff]  ;;  %1821 = vst.msk [vmem:[#allocation4 + $0x2d0] sm:$0xff] %vm386_vm3, %v1581_v6  ;;  %v1573_v11 = vadd.f32 %v10033_v42, %v1572_v9  ;;  %2444 = vrot.lane.b32.xlu1 %v2387_v10, %s9293_s30  ;;  %v2415_v12 = vpop.permute.xlu0 %2414  ;;  %3577 = vmatpush1.bf16.msra.mxu1 %v9077_v46 }
 0x1a2   : > { %v3142_v1 = vpack.c.bf16 %v3084_v62, %v3082_v61  ;;  %2508 = vst.msk [vmem:[#allocation2 + $0x80] sm:$0xfe] %vm2502_vm9, %v2415_v12  ;;  %v8697_v14 = vpop.f32.mrf.mxu0  ;;  %3578 = vmatprep.subr.bf16.mxu1 %v12050_v29 }
 0x1a3   : > { %1819 = vst.msk [vmem:[#allocation4 + $0x2c0] sm:$0xff] %vm386_vm3, %v1573_v11  ;;  %v1584_v18 = vadd.f32 %v10033_v42, %v8697_v14  ;;  %v2417_v19 = vpop.permute.xlu1 %2416 }
 0x1a4   : > { %3348 = vmatmul.mubr.bf16.gmra.mxu1 %v3142_v1  ;;  %3995 = vmatmul.mubr.bf16.gmra.mxu0 %v3142_v1  ;;  %2637 = vst.msk [vmem:[#allocation2 + $0x80] sm:$0xff] %vm2632_vm10, %v2545_v60  ;;  %v1575_v21 = vpop.f32.mrf.mxu0  ;;  %v2061_v22 = vld [vmem:[#allocation4 + $0x2b0] ss:$2 sm:$0xff]  ;;  %v2125_v23 = vld [vmem:[#allocation4 + $0x2b1] ss:$2 sm:$0xff] }
 0x1a5   : > { %7904 = vmatprep.mubr.msk.bf16.mxu1 %vm386_vm3, %v3145_v8  ;;  %7975 = vmatprep.mubr.msk.bf16.mxu0 %vm386_vm3, %v3145_v8  ;;  %2509 = vst.msk [vmem:[#allocation2 + $0x90] sm:$0xff] %vm2504_vm11, %v2417_v19  ;;  %v1576_v25 = vadd.f32 %v10033_v42, %v1575_v21  ;;  %v2723_v26 = vpop.permute.xlu0 %2722  ;;  %v2167_v28 = vmax.f32 %v2061_v22, %v2125_v23  ;;  %v3093_v60 = vld [vmem:[#allocation2 + $0xb8] sm:$0xff] }
 0x1a6   : > { %2750 = vrot.lane.b32.xlu0 %v2695_v15, %s9294_s14  ;;  %1822 = vst.msk [vmem:[#allocation4 + $0x2d8] sm:$0xff] %vm386_vm3, %v1584_v18  ;;  %v8700_v30 = vpop.f32.mrf.mxu0  ;;  %v2059_v31 = vld [vmem:[#allocation4 + $0x2a0] ss:$2 sm:$0xff]  ;;  %v2123_v32 = vld [vmem:[#allocation4 + $0x2a1] ss:$2 sm:$0xff]  ;;  %v3147_v1 = vpack.c.bf16 %v3093_v60, %v3091_v49 }
 0x1a7   : > { %2638 = vst.msk [vmem:[#allocation2 + $0x90] sm:$0xff] %vm2632_vm10, %v2547_v50  ;;  %v1597_v33 = vadd.f32 %v10033_v42, %v8700_v30  ;;  %v2199_v34 = vmax.f32 %v2007_v27, %v2167_v28  ;;  %v2166_v36 = vmax.f32 %v2059_v31, %v2123_v32 }
 0x1a8   : > { %2817 = vst.msk [vmem:[#allocation2 + $0x90] sm:$0x7f] %vm2812_vm12, %v2725_v7  ;;  %v1588_v37 = vpop.f32.mrf.mxu0 }
 0x1a9   : > { %2816 = vst.msk [vmem:[#allocation2 + $0x80] sm:$0xff] %vm2810_vm13, %v2723_v26  ;;  %v1589_v38 = vadd.f32 %v10033_v42, %v1588_v37  ;;  %v2875_v39 = vrot.slane %v2199_v34, 2  ;;  %2578 = vrot.lane.b32.xlu1 %v2199_v34, %s9292_s22  ;;  %v2198_v40 = vmax.f32 %v2006_v35, %v2166_v36  ;;  %v2697_v45 = vrot.slane %v2199_v34, 1 }
 0x1aa   : > { %1820 = vst.msk [vmem:[#allocation4 + $0x2c8] sm:$0xff] %vm386_vm3, %v1576_v25  ;;  %1825 = vst.msk [vmem:[#allocation4 + $0x2f0] sm:$0xff] %vm386_vm3, %v1597_v33  ;;  %v8701_v41 = vpop.f32.mrf.mxu0  ;;  %v2274_v51 = vrot.slane %v2199_v34, 6  ;;  %v2389_v59 = vrot.slane %v2199_v34, 7  ;;  %v9078_v25 = vld [vmem:[%s12041_s3 + $0x10] sm:$0xff]  }
 0x1ab   : > { %1823 = vst.msk [vmem:[#allocation4 + $0x2e0] sm:$0xff] %vm386_vm3, %v1589_v38  ;;  %v1600_v43 = vadd.f32 %v10033_v42, %v8701_v41  ;;  %v2551_v44 = vpop.permute.xlu1 %2550  ;;  %v2874_v13 = vrot.slane %v2198_v40, 2  ;;  %2576 = vrot.lane.b32.xlu0 %v2198_v40, %s9292_s22  ;;  %v2388_v48 = vrot.slane %v2198_v40, 7  ;;  %v2273_v50 = vrot.slane %v2198_v40, 6  ;;  %3579 = vmatpush1.bf16.msra.mxu1 %v9078_v25 }
 0x1ac   : > { %2946 = vst.msk [vmem:[#allocation2 + $0x198] sm:$0x3f] %vm2925_vm4, %v2875_v39  ;;  %v1591_v47 = vpop.f32.mrf.mxu0  ;;  %v2696_v61 = vrot.slane %v2198_v40, 1  ;;  %3580 = vmatprep.subr.bf16.mxu1 %v12050_v29 }
 0x1ad   : > { %1826 = vst.msk [vmem:[#allocation4 + $0x2f8] sm:$0xff] %vm386_vm3, %v1600_v43  ;;  %v2876_v52 = vsel %vm1180_vm1, %v2874_v13, %v2875_v39  ;;  %v1592_v53 = vadd.f32 %v10033_v42, %v1591_v47  ;;  %2756 = vrot.lane.b32.xlu1 %v2697_v45, %s9294_s14  ;;  %v2275_v62 = vsel %vm2242_vm6, %v2273_v50, %v2274_v51  ;;  %v1905_v8 = vld [vmem:[#allocation4 + $0x2d0] ss:$2 sm:$0xff]  ;;  %v1969_v9 = vld [vmem:[#allocation4 + $0x2d1] ss:$2 sm:$0xff]  ;;  %v3095_v43 = vld [vmem:[#allocation2 + $0xc8] sm:$0xff] }
 0x1ae   : > { %v2549_v54 = vpop.permute.xlu0 %2548  ;;  %2945 = vst.msk [vmem:[#allocation2 + $0x188] sm:$0xff] %vm386_vm3, %v2876_v52  ;;  %v8704_v57 = vpop.f32.mrf.mxu0  ;;  %2346 = vst.msk [vmem:[#allocation2 + $0x190] sm:$0xff] %vm386_vm3, %v2275_v62  ;;  %v2390_v3 = vsel %vm2357_vm7, %v2388_v48, %v2389_v59  ;;  %v2698_v7 = vsel %vm2665_vm8, %v2696_v61, %v2697_v45  ;;  %v2009_v20 = vmax.f32 %v1905_v8, %v1969_v9 }
 0x1af   : > { %v3088_v56 = vld [vmem:[#allocation2 + $0x90] sm:$0xff]  ;;  %2345 = vst.msk [vmem:[#allocation2 + $0x180] sm:$0xfc] %vm2324_vm5, %v2273_v50  ;;  %v1613_v63 = vadd.f32 %v10033_v42, %v8704_v57  ;;  %v2729_v0 = vpop.permute.xlu1 %2728  ;;  %2446 = vrot.lane.b32.xlu0 %v2388_v48, %s9293_s30 }
 0x1b0   : > { %v3086_v55 = vld [vmem:[#allocation2 + $0x80] sm:$0xff]  ;;  %1824 = vst.msk [vmem:[#allocation4 + $0x2e8] sm:$0xff] %vm386_vm3, %v1592_v53  ;;  %v1604_v2 = vpop.f32.mrf.mxu0  ;;  %v3097_v53 = vld [vmem:[#allocation2 + $0xd8] sm:$0xff] }
 0x1b1   : > { %v3144_v58 = vpack.c.bf16 %v3088_v56, %v3086_v55  ;;  %1829 = vst.msk [vmem:[#allocation4 + $0x310] sm:$0xff] %vm386_vm3, %v1613_v63  ;;  %v1605_v4 = vadd.f32 %v10033_v42, %v1604_v2  ;;  %2448 = vrot.lane.b32.xlu1 %v2390_v3, %s9293_s30  ;;  %v1903_v12 = vld [vmem:[#allocation4 + $0x2c0] ss:$2 sm:$0xff]  ;;  %v1967_v17 = vld [vmem:[#allocation4 + $0x2c1] ss:$2 sm:$0xff] }
 0x1b2   : > { %v2419_v5 = vpop.permute.xlu0 %2418  ;;  %v8705_v6 = vpop.f32.mrf.mxu0  ;;  %v2008_v28 = vmax.f32 %v1903_v12, %v1967_v17 }
 0x1b3   : > { %3356 = vmatmul.mubr.bf16.gmra.mxu1 %v3144_v58  ;;  %4003 = vmatmul.mubr.bf16.gmra.mxu0 %v3144_v58  ;;  %2510 = vst.msk [vmem:[#allocation2 + $0xa0] sm:$0xfe] %vm2502_vm9, %v2419_v5  ;;  %v1616_v10 = vadd.f32 %v10033_v42, %v8705_v6  ;;  %v2421_v11 = vpop.permute.xlu1 %2420  ;;  %v3149_v58 = vpack.c.bf16 %v3097_v53, %v3095_v43 }
 0x1b4   : > { %7905 = vmatprep.mubr.msk.bf16.mxu1 %vm386_vm3, %v3147_v1  ;;  %7976 = vmatprep.mubr.msk.bf16.mxu0 %vm386_vm3, %v3147_v1  ;;  %1827 = vst.msk [vmem:[#allocation4 + $0x300] sm:$0xff] %vm386_vm3, %v1605_v4  ;;  %v1607_v14 = vpop.f32.mrf.mxu0  ;;  %v2065_v15 = vld [vmem:[#allocation4 + $0x2f0] ss:$2 sm:$0xff]  ;;  %v2129_v16 = vld [vmem:[#allocation4 + $0x2f1] ss:$2 sm:$0xff] }
 0x1b5   : > { %2639 = vst.msk [vmem:[#allocation2 + $0xa0] sm:$0xff] %vm2632_vm10, %v2549_v54  ;;  %2754 = vrot.lane.b32.xlu0 %v2698_v7, %s9294_s14  ;;  %v1608_v18 = vadd.f32 %v10033_v42, %v1607_v14  ;;  %v2169_v21 = vmax.f32 %v2065_v15, %v2129_v16 }
 0x1b6   : > { %2511 = vst.msk [vmem:[#allocation2 + $0xb0] sm:$0xff] %vm2504_vm11, %v2421_v11  ;;  %v2727_v19 = vpop.permute.xlu0 %2726  ;;  %v8708_v22 = vpop.f32.mrf.mxu0 }
 0x1b7   : > { %1830 = vst.msk [vmem:[#allocation4 + $0x318] sm:$0xff] %vm386_vm3, %v1616_v10  ;;  %v2063_v23 = vld [vmem:[#allocation4 + $0x2e0] ss:$2 sm:$0xff]  ;;  %v2127_v24 = vld [vmem:[#allocation4 + $0x2e1] ss:$2 sm:$0xff]  ;;  %1828 = vst.msk [vmem:[#allocation4 + $0x308] sm:$0xff] %vm386_vm3, %v1608_v18  ;;  %v1629_v26 = vadd.f32 %v10033_v42, %v8708_v22  ;;  %v2201_v27 = vmax.f32 %v2009_v20, %v2169_v21 }
 0x1b8   : > { %2640 = vst.msk [vmem:[#allocation2 + $0xb0] sm:$0xff] %vm2632_vm10, %v2551_v44  ;;  %v2168_v30 = vmax.f32 %v2063_v23, %v2127_v24  ;;  %v1620_v31 = vpop.f32.mrf.mxu0  ;;  %v9079_v18 = vld [vmem:[%s12041_s3 + $0x8] sm:$0xff]  }
 0x1b9   : > { %2819 = vst.msk [vmem:[#allocation2 + $0xb0] sm:$0x7f] %vm2812_vm12, %v2729_v0  ;;  %v1621_v32 = vadd.f32 %v10033_v42, %v1620_v31  ;;  %v2878_v33 = vrot.slane %v2201_v27, 2  ;;  %2582 = vrot.lane.b32.xlu1 %v2201_v27, %s9292_s22  ;;  %v2700_v39 = vrot.slane %v2201_v27, 1  ;;  %v2277_v13 = vrot.slane %v2201_v27, 6  ;;  %3581 = vmatpush1.bf16.msra.mxu1 %v9079_v18 }
 0x1ba   : > { %2818 = vst.msk [vmem:[#allocation2 + $0xa0] sm:$0xff] %vm2810_vm13, %v2727_v19  ;;  %v2200_v34 = vmax.f32 %v2008_v28, %v2168_v30  ;;  %v8709_v35 = vpop.f32.mrf.mxu0  ;;  %v2392_v52 = vrot.slane %v2201_v27, 7  ;;  %v10258_v19 = vpop.f32.mrf.mxu1  ;;  %3582 = vmatprep.subr.bf16.mxu1 %v12050_v29 }
 0x1bb   : > { %1833 = vst.msk [vmem:[#allocation4 + $0x330] sm:$0xff] %vm386_vm3, %v1629_v26  ;;  %1831 = vst.msk [vmem:[#allocation4 + $0x320] sm:$0xff] %vm386_vm3, %v1621_v32  ;;  %v1632_v36 = vadd.f32 %v10033_v42, %v8709_v35  ;;  %v2555_v37 = vpop.permute.xlu1 %2554 }
 0x1bc   : > { %2948 = vst.msk [vmem:[#allocation2 + $0x1b8] sm:$0x3f] %vm2925_vm4, %v2878_v33  ;;  %v2877_v38 = vrot.slane %v2200_v34, 2  ;;  %2580 = vrot.lane.b32.xlu0 %v2200_v34, %s9292_s22  ;;  %v1623_v40 = vpop.f32.mrf.mxu0  ;;  %v2391_v41 = vrot.slane %v2200_v34, 7  ;;  %v2276_v44 = vrot.slane %v2200_v34, 6  ;;  %v2699_v54 = vrot.slane %v2200_v34, 1  ;;  %v3335_v25 = vpop.f32.mrf.mxu1 }
 0x1bd   : > { %1834 = vst.msk [vmem:[#allocation4 + $0x338] sm:$0xff] %vm386_vm3, %v1632_v36  ;;  %v1624_v46 = vadd.f32 %v10033_v42, %v1623_v40  ;;  %2760 = vrot.lane.b32.xlu1 %v2700_v39, %s9294_s14  ;;  %v2553_v47 = vpop.permute.xlu0 %2552 }
 0x1be   : > { %v2879_v45 = vsel %vm1180_vm1, %v2877_v38, %v2878_v33  ;;  %v8712_v50 = vpop.f32.mrf.mxu0  ;;  %2347 = vst.msk [vmem:[#allocation2 + $0x1a0] sm:$0xfc] %vm2324_vm5, %v2276_v44  ;;  %v2278_v55 = vsel %vm2242_vm6, %v2276_v44, %v2277_v13  ;;  %v2393_v60 = vsel %vm2357_vm7, %v2391_v41, %v2392_v52  ;;  %v2701_v0 = vsel %vm2665_vm8, %v2699_v54, %v2700_v39  ;;  %v1909_v1 = vld [vmem:[#allocation4 + $0x310] ss:$2 sm:$0xff]  ;;  %v1973_v2 = vld [vmem:[#allocation4 + $0x311] ss:$2 sm:$0xff] }
 0x1bf   : > { %2947 = vst.msk [vmem:[#allocation2 + $0x1a8] sm:$0xff] %vm386_vm3, %v2879_v45  ;;  %1832 = vst.msk [vmem:[#allocation4 + $0x328] sm:$0xff] %vm386_vm3, %v1624_v46  ;;  %v1645_v56 = vadd.f32 %v10033_v42, %v8712_v50  ;;  %v2733_v57 = vpop.permute.xlu1 %2732  ;;  %v1907_v5 = vld [vmem:[#allocation4 + $0x300] ss:$2 sm:$0xff]  ;;  %v1971_v9 = vld [vmem:[#allocation4 + $0x301] ss:$2 sm:$0xff]  ;;  %v2011_v12 = vmax.f32 %v1909_v1, %v1973_v2  ;;  %v10274_v45 = vpop.f32.mrf.mxu1 }
 0x1c0   : > { %v3092_v49 = vld [vmem:[#allocation2 + $0xb0] sm:$0xff]  ;;  %2450 = vrot.lane.b32.xlu0 %v2391_v41, %s9293_s30  ;;  %2348 = vst.msk [vmem:[#allocation2 + $0x1b0] sm:$0xff] %vm386_vm3, %v2278_v55  ;;  %v1636_v59 = vpop.f32.mrf.mxu0  ;;  %v2010_v22 = vmax.f32 %v1907_v5, %v1971_v9 }
 0x1c1   : > { %v3090_v48 = vld [vmem:[#allocation2 + $0xa0] sm:$0xff]  ;;  %1837 = vst.msk [vmem:[#allocation4 + $0x350] sm:$0xff] %vm386_vm3, %v1645_v56  ;;  %v1637_v61 = vadd.f32 %v10033_v42, %v1636_v59  ;;  %2452 = vrot.lane.b32.xlu1 %v2393_v60, %s9293_s30  ;;  %v2423_v62 = vpop.permute.xlu0 %2422  ;;  %v3338_v55 = vpop.f32.mrf.mxu1 }
 0x1c2   : > { %v3146_v51 = vpack.c.bf16 %v3092_v49, %v3090_v48  ;;  %2512 = vst.msk [vmem:[#allocation2 + $0xc0] sm:$0xfe] %vm2502_vm9, %v2423_v62  ;;  %v8713_v63 = vpop.f32.mrf.mxu0  ;;  %v3101_v49 = vld [vmem:[#allocation2 + $0xf8] sm:$0xff] }
 0x1c3   : > { %1835 = vst.msk [vmem:[#allocation4 + $0x340] sm:$0xff] %vm386_vm3, %v1637_v61  ;;  %v1648_v3 = vadd.f32 %v10033_v42, %v8713_v63  ;;  %v2425_v4 = vpop.permute.xlu1 %2424 }
 0x1c4   : > { %3364 = vmatmul.mubr.bf16.gmra.mxu1 %v3146_v51  ;;  %4011 = vmatmul.mubr.bf16.gmra.mxu0 %v3146_v51  ;;  %2641 = vst.msk [vmem:[#allocation2 + $0xc0] sm:$0xff] %vm2632_vm10, %v2553_v47  ;;  %v1639_v6 = vpop.f32.mrf.mxu0  ;;  %v2069_v7 = vld [vmem:[#allocation4 + $0x330] ss:$2 sm:$0xff]  ;;  %v2133_v8 = vld [vmem:[#allocation4 + $0x331] ss:$2 sm:$0xff] }
 0x1c5   : > { %7906 = vmatprep.mubr.msk.bf16.mxu1 %vm386_vm3, %v3149_v58  ;;  %7977 = vmatprep.mubr.msk.bf16.mxu0 %vm386_vm3, %v3149_v58  ;;  %2513 = vst.msk [vmem:[#allocation2 + $0xd0] sm:$0xff] %vm2504_vm11, %v2425_v4  ;;  %v1640_v10 = vadd.f32 %v10033_v42, %v1639_v6  ;;  %v2731_v11 = vpop.permute.xlu0 %2730  ;;  %v2171_v14 = vmax.f32 %v2069_v7, %v2133_v8 }
 0x1c6   : > { %2758 = vrot.lane.b32.xlu0 %v2701_v0, %s9294_s14  ;;  %1838 = vst.msk [vmem:[#allocation4 + $0x358] sm:$0xff] %vm386_vm3, %v1648_v3  ;;  %v8716_v15 = vpop.f32.mrf.mxu0  ;;  %v2067_v16 = vld [vmem:[#allocation4 + $0x320] ss:$2 sm:$0xff]  ;;  %v2131_v17 = vld [vmem:[#allocation4 + $0x321] ss:$2 sm:$0xff] }
 0x1c7   : > { %2642 = vst.msk [vmem:[#allocation2 + $0xd0] sm:$0xff] %vm2632_vm10, %v2555_v37  ;;  %v1661_v20 = vadd.f32 %v10033_v42, %v8716_v15  ;;  %v2203_v21 = vmax.f32 %v2011_v12, %v2171_v14  ;;  %v2170_v23 = vmax.f32 %v2067_v16, %v2131_v17  ;;  %v3099_v37 = vld [vmem:[#allocation2 + $0xe8] sm:$0xff]  ;;  %v9080_v3 = vld [vmem:[%s12041_s3] sm:$0xff]  }
 0x1c8   : > { %2821 = vst.msk [vmem:[#allocation2 + $0xd0] sm:$0x7f] %vm2812_vm12, %v2733_v57  ;;  %v1652_v24 = vpop.f32.mrf.mxu0  ;;  %v3151_v54 = vpack.c.bf16 %v3101_v49, %v3099_v37  ;;  %3583 = vmatpush1.bf16.msra.mxu1 %v9080_v3 }
 0x1c9   : > { %2820 = vst.msk [vmem:[#allocation2 + $0xc0] sm:$0xff] %vm2810_vm13, %v2731_v11  ;;  %v1653_v26 = vadd.f32 %v10033_v42, %v1652_v24  ;;  %v2881_v27 = vrot.slane %v2203_v21, 2  ;;  %2586 = vrot.lane.b32.xlu1 %v2203_v21, %s9292_s22  ;;  %v2202_v28 = vmax.f32 %v2010_v22, %v2170_v23  ;;  %v2703_v34 = vrot.slane %v2203_v21, 1  ;;  %3596 = vmatprep.subr.bf16.mxu1 %v12050_v29 }
 0x1ca   : > { %1836 = vst.msk [vmem:[#allocation4 + $0x348] sm:$0xff] %vm386_vm3, %v1640_v10  ;;  %1841 = vst.msk [vmem:[#allocation4 + $0x370] sm:$0xff] %vm386_vm3, %v1661_v20  ;;  %v8717_v30 = vpop.f32.mrf.mxu0  ;;  %v2280_v39 = vrot.slane %v2203_v21, 6  ;;  %v2395_v48 = vrot.slane %v2203_v21, 7 }
 0x1cb   : > { %1839 = vst.msk [vmem:[#allocation4 + $0x360] sm:$0xff] %vm386_vm3, %v1653_v26  ;;  %v1664_v31 = vadd.f32 %v10033_v42, %v8717_v30  ;;  %v2559_v32 = vpop.permute.xlu1 %2558  ;;  %v2880_v33 = vrot.slane %v2202_v28, 2  ;;  %2584 = vrot.lane.b32.xlu0 %v2202_v28, %s9292_s22  ;;  %v2394_v36 = vrot.slane %v2202_v28, 7  ;;  %v2279_v38 = vrot.slane %v2202_v28, 6 }
 0x1cc   : > { %2950 = vst.msk [vmem:[#allocation2 + $0x1d8] sm:$0x3f] %vm2925_vm4, %v2881_v27  ;;  %v1655_v35 = vpop.f32.mrf.mxu0  ;;  %v2702_v50 = vrot.slane %v2202_v28, 1 }
 0x1cd   : > { %1842 = vst.msk [vmem:[#allocation4 + $0x378] sm:$0xff] %vm386_vm3, %v1664_v31  ;;  %v2882_v40 = vsel %vm1180_vm1, %v2880_v33, %v2881_v27  ;;  %v1656_v41 = vadd.f32 %v10033_v42, %v1655_v35  ;;  %2764 = vrot.lane.b32.xlu1 %v2703_v34, %s9294_s14  ;;  %v2281_v51 = vsel %vm2242_vm6, %v2279_v38, %v2280_v39  ;;  %v1913_v62 = vld [vmem:[#allocation4 + $0x350] ss:$2 sm:$0xff]  ;;  %v1977_v63 = vld [vmem:[#allocation4 + $0x351] ss:$2 sm:$0xff]  ;;  %v3103_v33 = vld [vmem:[#allocation2 + $0x108] sm:$0xff] }
 0x1ce   : > { %v2557_v43 = vpop.permute.xlu0 %2556  ;;  %2949 = vst.msk [vmem:[#allocation2 + $0x1c8] sm:$0xff] %vm386_vm3, %v2882_v40  ;;  %v8720_v46 = vpop.f32.mrf.mxu0  ;;  %2350 = vst.msk [vmem:[#allocation2 + $0x1d0] sm:$0xff] %vm386_vm3, %v2281_v51  ;;  %v2396_v57 = vsel %vm2357_vm7, %v2394_v36, %v2395_v48  ;;  %v2704_v61 = vsel %vm2665_vm8, %v2702_v50, %v2703_v34  ;;  %v2013_v10 = vmax.f32 %v1913_v62, %v1977_v63 }
 0x1cf   : > { %v3096_v13 = vld [vmem:[#allocation2 + $0xd0] sm:$0xff]  ;;  %2349 = vst.msk [vmem:[#allocation2 + $0x1c0] sm:$0xfc] %vm2324_vm5, %v2279_v38  ;;  %v1677_v52 = vadd.f32 %v10033_v42, %v8720_v46  ;;  %v2737_v53 = vpop.permute.xlu1 %2736  ;;  %2454 = vrot.lane.b32.xlu0 %v2394_v36, %s9293_s30  ;;  %v3105_v46 = vld [vmem:[#allocation2 + $0x118] sm:$0xff] }
 0x1d0   : > { %v3094_v44 = vld [vmem:[#allocation2 + $0xc0] sm:$0xff]  ;;  %1840 = vst.msk [vmem:[#allocation4 + $0x368] sm:$0xff] %vm386_vm3, %v1656_v41  ;;  %v1668_v56 = vpop.f32.mrf.mxu0  ;;  %v9081_v41 = vld [vmem:[%s12041_s3 + $0x48] sm:$0xff]   ;;  %v3153_v51 = vpack.c.bf16 %v3105_v46, %v3103_v33 }
 0x1d1   : > { %v3148_v47 = vpack.c.bf16 %v3096_v13, %v3094_v44  ;;  %1845 = vst.msk [vmem:[#allocation4 + $0x390] sm:$0xff] %vm386_vm3, %v1677_v52  ;;  %v1669_v58 = vadd.f32 %v10033_v42, %v1668_v56  ;;  %2456 = vrot.lane.b32.xlu1 %v2396_v57, %s9293_s30  ;;  %v10296_v42 = vld [vmem:[%s12040_s2] ss:$0 sm:$0xff]  ;;  %v1975_v7 = vld [vmem:[#allocation4 + $0x341] ss:$2 sm:$0xff]  ;;  %3597 = vmatpush2.bf16.msra.mxu1 %v9081_v41 }
 0x1d2   : > { %v2427_v59 = vpop.permute.xlu0 %2426  ;;  %v8721_v60 = vpop.f32.mrf.mxu0  ;;  %v1911_v2 = vld [vmem:[#allocation4 + $0x340] ss:$2 sm:$0xff]  ;;  %3598 = vmatprep.subr.bf16.mxu1 %v12050_v29 }
 0x1d3   : > { %3372 = vmatmul.mubr.bf16.gmra.mxu1 %v3148_v47  ;;  %4019 = vmatmul.mubr.bf16.gmra.mxu0 %v3148_v47  ;;  %2514 = vst.msk [vmem:[#allocation2 + $0xe0] sm:$0xfe] %vm2502_vm9, %v2427_v59  ;;  %v1680_v0 = vadd.f32 %v10296_v42, %v8721_v60  ;;  %v2429_v1 = vpop.permute.xlu1 %2428  ;;  %v2012_v18 = vmax.f32 %v1911_v2, %v1975_v7 }
 0x1d4   : > { %7907 = vmatprep.mubr.msk.bf16.mxu1 %vm386_vm3, %v3151_v54  ;;  %7978 = vmatprep.mubr.msk.bf16.mxu0 %vm386_vm3, %v3151_v54  ;;  %1843 = vst.msk [vmem:[#allocation4 + $0x380] sm:$0xff] %vm386_vm3, %v1669_v58  ;;  %v1671_v4 = vpop.f32.mrf.mxu0  ;;  %v2073_v5 = vld [vmem:[#allocation4 + $0x370] ss:$2 sm:$0xff]  ;;  %v2137_v6 = vld [vmem:[#allocation4 + $0x371] ss:$2 sm:$0xff] }
 0x1d5   : > { %2643 = vst.msk [vmem:[#allocation2 + $0xe0] sm:$0xff] %vm2632_vm10, %v2557_v43  ;;  %2762 = vrot.lane.b32.xlu0 %v2704_v61, %s9294_s14  ;;  %v1672_v8 = vadd.f32 %v10296_v42, %v1671_v4  ;;  %v2173_v11 = vmax.f32 %v2073_v5, %v2137_v6  ;;  %v9082_v54 = vld [vmem:[%s12041_s3 + $0x178] sm:$0xff]   ;;  %v9083_v4 = vld [vmem:[%s12041_s3 + $0x170] sm:$0xff]  }
 0x1d6   : > { %2515 = vst.msk [vmem:[#allocation2 + $0xf0] sm:$0xff] %vm2504_vm11, %v2429_v1  ;;  %v2735_v9 = vpop.permute.xlu0 %2734  ;;  %v8724_v12 = vpop.f32.mrf.mxu0  ;;  %4793 = vmatpush1.bf16.msra.mxu0 %v9082_v54 }
 0x1d7   : > { %1846 = vst.msk [vmem:[#allocation4 + $0x398] sm:$0xff] %vm386_vm3, %v1680_v0  ;;  %v2071_v14 = vld [vmem:[#allocation4 + $0x360] ss:$2 sm:$0xff]  ;;  %v2135_v15 = vld [vmem:[#allocation4 + $0x361] ss:$2 sm:$0xff]  ;;  %1844 = vst.msk [vmem:[#allocation4 + $0x388] sm:$0xff] %vm386_vm3, %v1672_v8  ;;  %v1693_v16 = vadd.f32 %v10296_v42, %v8724_v12  ;;  %v2205_v17 = vmax.f32 %v2013_v10, %v2173_v11  ;;  %4794 = vmatprep.subr.bf16.mxu0 %v12050_v29 }
 0x1d8   : > { %2644 = vst.msk [vmem:[#allocation2 + $0xf0] sm:$0xff] %vm2632_vm10, %v2559_v32  ;;  %v2172_v20 = vmax.f32 %v2071_v14, %v2135_v15  ;;  %v1684_v21 = vpop.f32.mrf.mxu0 }
 0x1d9   : > { %2823 = vst.msk [vmem:[#allocation2 + $0xf0] sm:$0x7f] %vm2812_vm12, %v2737_v53  ;;  %v1685_v22 = vadd.f32 %v10296_v42, %v1684_v21  ;;  %v2884_v23 = vrot.slane %v2205_v17, 2  ;;  %2590 = vrot.lane.b32.xlu1 %v2205_v17, %s9292_s22  ;;  %v2706_v30 = vrot.slane %v2205_v17, 1  ;;  %v2283_v35 = vrot.slane %v2205_v17, 6 }
 0x1da   : > { %2822 = vst.msk [vmem:[#allocation2 + $0xe0] sm:$0xff] %vm2810_vm13, %v2735_v9  ;;  %v2204_v24 = vmax.f32 %v2012_v18, %v2172_v20  ;;  %v8725_v25 = vpop.f32.mrf.mxu0  ;;  %v2398_v13 = vrot.slane %v2205_v17, 7  ;;  %4795 = vmatpush1.bf16.msra.mxu0 %v9083_v4  ;;  %v9084_v17 = vld [vmem:[%s12041_s3 + $0x168] sm:$0xff]   ;;  %v9085_v18 = vld [vmem:[%s12041_s3 + $0x40] sm:$0xff]  }
 0x1db   : > { %1849 = vst.msk [vmem:[#allocation4 + $0x3b0] sm:$0xff] %vm386_vm3, %v1693_v16  ;;  %1847 = vst.msk [vmem:[#allocation4 + $0x3a0] sm:$0xff] %vm386_vm3, %v1685_v22  ;;  %v1696_v26 = vadd.f32 %v10296_v42, %v8725_v25  ;;  %v10318_v27 = vpop.permute.xlu1 %2562  ;;  %4796 = vmatprep.subr.bf16.mxu0 %v12050_v29  ;;  %3599 = vmatpush2.bf16.msra.mxu1 %v9085_v18  ;;  %v9090_v4 = vld [vmem:[%s12041_s3 + $0x148] sm:$0xff]  }
 0x1dc   : > { %2952 = vst.msk [vmem:[#allocation2 + $0x1f8] sm:$0x3f] %vm2925_vm4, %v2884_v23  ;;  %v2883_v28 = vrot.slane %v2204_v24, 2  ;;  %2588 = vrot.lane.b32.xlu0 %v2204_v24, %s9292_s22  ;;  %v1687_v31 = vpop.f32.mrf.mxu0  ;;  %v2397_v32 = vrot.slane %v2204_v24, 7  ;;  %v2282_v34 = vrot.slane %v2204_v24, 6  ;;  %v2705_v47 = vrot.slane %v2204_v24, 1  ;;  %4373 = vmatprep.subr.bf16.mxu1 %v12050_v29 }
 0x1dd   : > { %1850 = vst.msk [vmem:[#allocation4 + $0x3b8] sm:$0xff] %vm386_vm3, %v1696_v26  ;;  %v1688_v37 = vadd.f32 %v10296_v42, %v1687_v31  ;;  %2768 = vrot.lane.b32.xlu1 %v2706_v30, %s9294_s14  ;;  %v2561_v38 = vpop.permute.xlu0 %2560 }
 0x1de   : > { %v2885_v36 = vsel %vm1180_vm1, %v2883_v28, %v2884_v23  ;;  %v8728_v43 = vpop.f32.mrf.mxu0  ;;  %2351 = vst.msk [vmem:[#allocation2 + $0x1e0] sm:$0xfc] %vm2324_vm5, %v2282_v34  ;;  %v2284_v48 = vsel %vm2242_vm6, %v2282_v34, %v2283_v35  ;;  %v2399_v53 = vsel %vm2357_vm7, %v2397_v32, %v2398_v13  ;;  %v2707_v58 = vsel %vm2665_vm8, %v2705_v47, %v2706_v30  ;;  %v1917_v59 = vld [vmem:[#allocation4 + $0x390] ss:$2 sm:$0xff]  ;;  %v1981_v60 = vld [vmem:[#allocation4 + $0x391] ss:$2 sm:$0xff] }
 0x1df   : > { %2951 = vst.msk [vmem:[#allocation2 + $0x1e8] sm:$0xff] %vm386_vm3, %v2885_v36  ;;  %1848 = vst.msk [vmem:[#allocation4 + $0x3a8] sm:$0xff] %vm386_vm3, %v1688_v37  ;;  %v1709_v49 = vadd.f32 %v10296_v42, %v8728_v43  ;;  %v2741_v50 = vpop.permute.xlu1 %2740  ;;  %v1915_v63 = vld [vmem:[#allocation4 + $0x380] ss:$2 sm:$0xff]  ;;  %v1979_v0 = vld [vmem:[#allocation4 + $0x381] ss:$2 sm:$0xff]  ;;  %v2015_v7 = vmax.f32 %v1917_v59, %v1981_v60  ;;  %4797 = vmatpush1.bf16.msra.mxu0 %v9084_v17 }
 0x1e0   : > { %v3100_v40 = vld [vmem:[#allocation2 + $0xf0] sm:$0xff]  ;;  %2458 = vrot.lane.b32.xlu0 %v2397_v32, %s9293_s30  ;;  %2352 = vst.msk [vmem:[#allocation2 + $0x1f0] sm:$0xff] %vm386_vm3, %v2284_v48  ;;  %v1700_v52 = vpop.f32.mrf.mxu0  ;;  %v2014_v15 = vmax.f32 %v1915_v63, %v1979_v0  ;;  %4798 = vmatprep.subr.bf16.mxu0 %v12050_v29  ;;  %v3107_v32 = vld [vmem:[#allocation2 + $0x128] sm:$0xff]  ;;  %v9086_v35 = vld [vmem:[%s12041_s3 + $0x160] sm:$0xff]  }
 0x1e1   : > { %v3098_v39 = vld [vmem:[#allocation2 + $0xe0] sm:$0xff]  ;;  %1853 = vst.msk [vmem:[#allocation4 + $0x3d0] sm:$0xff] %vm386_vm3, %v1709_v49  ;;  %v1701_v55 = vadd.f32 %v10296_v42, %v1700_v52  ;;  %2460 = vrot.lane.b32.xlu1 %v2399_v53, %s9293_s30  ;;  %v2431_v56 = vpop.permute.xlu0 %2430  ;;  %v9088_v60 = vld [vmem:[%s12041_s3 + $0x150] sm:$0xff]  }
 0x1e2   : > { %v3150_v44 = vpack.c.bf16 %v3100_v40, %v3098_v39  ;;  %2516 = vst.msk [vmem:[#allocation2 + $0x100] sm:$0xfe] %vm2502_vm9, %v2431_v56  ;;  %v8729_v57 = vpop.f32.mrf.mxu0 }
 0x1e3   : > { %1851 = vst.msk [vmem:[#allocation4 + $0x3c0] sm:$0xff] %vm386_vm3, %v1701_v55  ;;  %v1712_v61 = vadd.f32 %v10296_v42, %v8729_v57  ;;  %v2433_v62 = vpop.permute.xlu1 %2432  ;;  %4799 = vmatpush1.bf16.msra.mxu0 %v9086_v35 }
 0x1e4   : > { %3380 = vmatmul.mubr.bf16.gmra.mxu1 %v3150_v44  ;;  %4027 = vmatmul.mubr.bf16.gmra.mxu0 %v3150_v44  ;;  %2645 = vst.msk [vmem:[#allocation2 + $0x100] sm:$0xff] %vm2632_vm10, %v2561_v38  ;;  %v1703_v1 = vpop.f32.mrf.mxu0  ;;  %v2077_v2 = vld [vmem:[#allocation4 + $0x3b0] ss:$2 sm:$0xff]  ;;  %v2141_v3 = vld [vmem:[#allocation4 + $0x3b1] ss:$2 sm:$0xff] }
 0x1e5   : > { %7908 = vmatprep.mubr.msk.bf16.mxu1 %vm386_vm3, %v3153_v51  ;;  %7979 = vmatprep.mubr.msk.bf16.mxu0 %vm386_vm3, %v3153_v51  ;;  %2517 = vst.msk [vmem:[#allocation2 + $0x110] sm:$0xff] %vm2504_vm11, %v2433_v62  ;;  %v1704_v5 = vadd.f32 %v10296_v42, %v1703_v1  ;;  %v2739_v6 = vpop.permute.xlu0 %2738  ;;  %v2175_v8 = vmax.f32 %v2077_v2, %v2141_v3  ;;  %v3109_v44 = vld [vmem:[#allocation2 + $0x138] sm:$0xff] }
 0x1e6   : > { %2766 = vrot.lane.b32.xlu0 %v2707_v58, %s9294_s14  ;;  %1854 = vst.msk [vmem:[#allocation4 + $0x3d8] sm:$0xff] %vm386_vm3, %v1712_v61  ;;  %v8732_v9 = vpop.f32.mrf.mxu0  ;;  %v2075_v10 = vld [vmem:[#allocation4 + $0x3a0] ss:$2 sm:$0xff]  ;;  %v2139_v11 = vld [vmem:[#allocation4 + $0x3a1] ss:$2 sm:$0xff]  ;;  %v3155_v47 = vpack.c.bf16 %v3109_v44, %v3107_v32  ;;  %4800 = vmatprep.subr.bf16.mxu0 %v12050_v29  ;;  %v9087_v51 = vld [vmem:[%s12041_s3 + $0x158] sm:$0xff]  }
 0x1e7   : > { %2646 = vst.msk [vmem:[#allocation2 + $0x110] sm:$0xff] %vm2632_vm10, %v10318_v27  ;;  %v1725_v12 = vadd.f32 %v10296_v42, %v8732_v9  ;;  %v10364_v14 = vmax.f32 %v2015_v7, %v2175_v8  ;;  %v2174_v16 = vmax.f32 %v2075_v10, %v2139_v11  ;;  %4801 = vmatpush1.bf16.msra.mxu0 %v9087_v51  ;;  %v9091_v9 = vld [vmem:[%s12041_s3 + $0x140] sm:$0xff]  }
 0x1e8   : > { %2825 = vst.msk [vmem:[#allocation2 + $0x110] sm:$0x7f] %vm2812_vm12, %v2741_v50  ;;  %v1716_v20 = vpop.f32.mrf.mxu0  ;;  %4802 = vmatprep.subr.bf16.mxu0 %v12050_v29 }
 0x1e9   : > { %2824 = vst.msk [vmem:[#allocation2 + $0x100] sm:$0xff] %vm2810_vm13, %v2739_v6  ;;  %v1717_v21 = vadd.f32 %v10296_v42, %v1716_v20  ;;  %v2887_v22 = vrot.slane %v10364_v14, 2  ;;  %2594 = vrot.lane.b32.xlu1 %v10364_v14, %s9292_s22  ;;  %v2206_v23 = vmax.f32 %v2014_v15, %v2174_v16  ;;  %v2401_v30 = vrot.slane %v10364_v14, 7  ;;  %v3111_v15 = vld [vmem:[#allocation2 + $0x148] sm:$0xff] }
 0x1ea   : > { %1852 = vst.msk [vmem:[#allocation4 + $0x3c8] sm:$0xff] %vm386_vm3, %v1704_v5  ;;  %1857 = vst.msk [vmem:[#allocation4 + $0x3f0] sm:$0xff] %vm386_vm3, %v1725_v12  ;;  %v8733_v24 = vpop.f32.mrf.mxu0  ;;  %v2286_v34 = vrot.slane %v10364_v14, 6  ;;  %v2709_v48 = vrot.slane %v10364_v14, 1 }
 0x1eb   : > { %1855 = vst.msk [vmem:[#allocation4 + $0x3e0] sm:$0xff] %vm386_vm3, %v1717_v21  ;;  %v1728_v25 = vadd.f32 %v10296_v42, %v8733_v24  ;;  %v2567_v26 = vpop.permute.xlu1 %2566  ;;  %v2886_v27 = vrot.slane %v2206_v23, 2  ;;  %2592 = vrot.lane.b32.xlu0 %v2206_v23, %s9292_s22  ;;  %v2400_v28 = vrot.slane %v2206_v23, 7  ;;  %v2285_v33 = vrot.slane %v2206_v23, 6  ;;  %4803 = vmatpush1.bf16.msra.mxu0 %v9088_v60 }
 0x1ec   : > { %2954 = vst.msk [vmem:[#allocation2 + $0x218] sm:$0x3f] %vm2925_vm4, %v2887_v22  ;;  %v1719_v31 = vpop.f32.mrf.mxu0  ;;  %v2708_v13 = vrot.slane %v2206_v23, 1  ;;  %4804 = vmatprep.subr.bf16.mxu0 %v12050_v29 }
 0x1ed   : > { %1858 = vst.msk [vmem:[#allocation4 + $0x3f8] sm:$0xff] %vm386_vm3, %v1728_v25  ;;  %v2888_v36 = vsel %vm1180_vm1, %v2886_v27, %v2887_v22  ;;  %v1720_v37 = vadd.f32 %v10296_v42, %v1719_v31  ;;  %v2402_v39 = vsel %vm2357_vm7, %v2400_v28, %v2401_v30  ;;  %v2287_v46 = vsel %vm2242_vm6, %v2285_v33, %v2286_v34  ;;  %v1921_v49 = vld [vmem:[#allocation4 + $0x3d0] ss:$2 sm:$0xff]  ;;  %v1985_v50 = vld [vmem:[#allocation4 + $0x3d1] ss:$2 sm:$0xff]  ;;  %v9092_v31 = vld [vmem:[%s12041_s3 + $0x188] sm:$0xff]  }
 0x1ee   : > { %v2565_v38 = vpop.permute.xlu0 %2564  ;;  %2953 = vst.msk [vmem:[#allocation2 + $0x208] sm:$0xff] %vm386_vm3, %v2888_v36  ;;  %2464 = vrot.lane.b32.xlu1 %v2402_v39, %s9293_s30  ;;  %2354 = vst.msk [vmem:[#allocation2 + $0x210] sm:$0xff] %vm386_vm3, %v2287_v46  ;;  %v2710_v53 = vsel %vm2665_vm8, %v2708_v13, %v2709_v48  ;;  %v2017_v57 = vmax.f32 %v1921_v49, %v1985_v50  ;;  %v9094_v34 = vld [vmem:[%s12041_s3 + $0x180] sm:$0xff]   ;;  %v3119_v49 = vld [vmem:[#allocation2 + $0x188] sm:$0xff] }
 0x1ef   : > { %v3104_v41 = vld [vmem:[#allocation2 + $0x110] sm:$0xff]  ;;  %2353 = vst.msk [vmem:[#allocation2 + $0x200] sm:$0xfc] %vm2324_vm5, %v2285_v33  ;;  %v2745_v42 = vpop.permute.xlu1 %2744  ;;  %2462 = vrot.lane.b32.xlu0 %v2400_v28, %s9293_s30  ;;  %4805 = vmatpush1.bf16.msra.mxu0 %v9090_v4 }
 0x1f0   : > { %v3102_v40 = vld [vmem:[#allocation2 + $0x100] sm:$0xff]  ;;  %1856 = vst.msk [vmem:[#allocation4 + $0x3e8] sm:$0xff] %vm386_vm3, %v1720_v37  ;;  %4806 = vmatprep.subr.bf16.mxu0 %v12050_v29  ;;  %v3115_v37 = vld [vmem:[#allocation2 + $0x168] sm:$0xff] }
 0x1f1   : > { %v3152_v43 = vpack.c.bf16 %v3104_v41, %v3102_v40  ;;  %v1919_v54 = vld [vmem:[#allocation4 + $0x3c0] ss:$2 sm:$0xff]  ;;  %v1983_v55 = vld [vmem:[#allocation4 + $0x3c1] ss:$2 sm:$0xff] }
 0x1f2   : > { %v2435_v52 = vpop.permute.xlu0 %2434  ;;  %2772 = vrot.lane.b32.xlu1 %v2709_v48, %s9294_s14  ;;  %v2016_v63 = vmax.f32 %v1919_v54, %v1983_v55  ;;  %v3121_v54 = vld [vmem:[#allocation2 + $0x198] sm:$0xff] }
 0x1f3   : > { %3388 = vmatmul.mubr.bf16.gmra.mxu1 %v3152_v43  ;;  %4035 = vmatmul.mubr.bf16.gmra.mxu0 %v3152_v43  ;;  %2518 = vst.msk [vmem:[#allocation2 + $0x120] sm:$0xfe] %vm2502_vm9, %v2435_v52  ;;  %v2437_v56 = vpop.permute.xlu1 %2436  ;;  %v3117_v43 = vld [vmem:[#allocation2 + $0x178] sm:$0xff] }
 0x1f4   : > { %7909 = vmatprep.mubr.msk.bf16.mxu1 %vm386_vm3, %v3155_v47  ;;  %7980 = vmatprep.mubr.msk.bf16.mxu0 %vm386_vm3, %v3155_v47  ;;  %2647 = vst.msk [vmem:[#allocation2 + $0x120] sm:$0xff] %vm2632_vm10, %v2565_v38  ;;  %v2081_v58 = vld [vmem:[#allocation4 + $0x3f0] ss:$2 sm:$0xff]  ;;  %v2145_v59 = vld [vmem:[#allocation4 + $0x3f1] ss:$2 sm:$0xff]  ;;  %v3159_v13 = vpack.c.bf16 %v3117_v43, %v3115_v37 }
 0x1f5   : > { %2770 = vrot.lane.b32.xlu0 %v2710_v53, %s9294_s14  ;;  %2519 = vst.msk [vmem:[#allocation2 + $0x130] sm:$0xff] %vm2504_vm11, %v2437_v56  ;;  %v2177_v62 = vmax.f32 %v2081_v58, %v2145_v59  ;;  %4807 = vmatpush1.bf16.msra.mxu0 %v9091_v9  ;;  %v10469_v56 = vpack.c.bf16 %v3121_v54, %v3119_v49  ;;  %v3127_v9 = vld [vmem:[#allocation2 + $0x1c8] sm:$0xff]  ;;  %v3137_v49 = vld [vmem:[#allocation2 + $0x218] sm:$0xff] }
 0x1f6   : > { %2648 = vst.msk [vmem:[#allocation2 + $0x130] sm:$0xff] %vm2632_vm10, %v2567_v26  ;;  %v2743_v61 = vpop.permute.xlu0 %2742  ;;  %v3113_v26 = vld [vmem:[#allocation2 + $0x158] sm:$0xff]  ;;  %4820 = vmatprep.subr.bf16.mxu0 %v12050_v29 }
 0x1f7   : > { %2827 = vst.msk [vmem:[#allocation2 + $0x130] sm:$0x7f] %vm2812_vm12, %v2745_v42  ;;  %v2079_v0 = vld [vmem:[#allocation4 + $0x3e0] ss:$2 sm:$0xff]  ;;  %v2143_v1 = vld [vmem:[#allocation4 + $0x3e1] ss:$2 sm:$0xff]  ;;  %v2209_v2 = vmax.f32 %v2017_v57, %v2177_v62  ;;  %v3157_v28 = vpack.c.bf16 %v3113_v26, %v3111_v15 }
 0x1f8   : > { %2826 = vst.msk [vmem:[#allocation2 + $0x120] sm:$0xff] %vm2810_vm13, %v2743_v61  ;;  %v2176_v3 = vmax.f32 %v2079_v0, %v2143_v1  ;;  %v3123_v61 = vld [vmem:[#allocation2 + $0x1a8] sm:$0xff]  ;;  %v3129_v15 = vld [vmem:[#allocation2 + $0x1d8] sm:$0xff] }
 0x1f9   : > { %v2890_v5 = vrot.slane %v2209_v2, 2  ;;  %2598 = vrot.lane.b32.xlu1 %v2209_v2, %s9292_s22  ;;  %v2404_v7 = vrot.slane %v2209_v2, 7  ;;  %v2289_v8 = vrot.slane %v2209_v2, 6  ;;  %v2712_v16 = vrot.slane %v2209_v2, 1  ;;  %4821 = vmatpush2.bf16.msra.mxu0 %v9092_v31  ;;  %v3125_v2 = vld [vmem:[#allocation2 + $0x1b8] sm:$0xff] }
 0x1fa   : > { %v2208_v6 = vmax.f32 %v2016_v63, %v2176_v3  ;;  %4822 = vmatprep.subr.bf16.mxu0 %v12050_v29  ;;  %v10485_v4 = vpack.c.bf16 %v3125_v2, %v3123_v61  ;;  %v2958_v2 = vld [vmem:[#allocation2 + $0x8] sm:$0xff] }
 0x1fb   : > { %2956 = vst.msk [vmem:[#allocation2 + $0x238] sm:$0x3f] %vm2925_vm4, %v2890_v5  ;;  %v2571_v10 = vpop.permute.xlu1 %2570 }
 0x1fc   : > { %v2889_v11 = vrot.slane %v2208_v6, 2  ;;  %2596 = vrot.lane.b32.xlu0 %v2208_v6, %s9292_s22  ;;  %v2403_v12 = vrot.slane %v2208_v6, 7  ;;  %v2288_v14 = vrot.slane %v2208_v6, 6  ;;  %v2711_v17 = vrot.slane %v2208_v6, 1 }
 0x1fd   : > { %v2569_v20 = vpop.permute.xlu0 %2568  ;;  %4823 = vmatpush2.bf16.msra.mxu0 %v9094_v34 }
 0x1fe   : > { %v2891_v18 = vsel %vm1180_vm1, %v2889_v11, %v2890_v5  ;;  %v2405_v21 = vsel %vm2357_vm7, %v2403_v12, %v2404_v7  ;;  %v3108_v23 = vld [vmem:[#allocation2 + $0x130] sm:$0xff]  ;;  %v2290_v24 = vsel %vm2242_vm6, %v2288_v14, %v2289_v8  ;;  %2355 = vst.msk [vmem:[#allocation2 + $0x220] sm:$0xfc] %vm2324_vm5, %v2288_v14  ;;  %v2713_v30 = vsel %vm2665_vm8, %v2711_v17, %v2712_v16 }
 0x1ff   : > { %v3106_v22 = vld [vmem:[#allocation2 + $0x120] sm:$0xff]  ;;  %2955 = vst.msk [vmem:[#allocation2 + $0x228] sm:$0xff] %vm386_vm3, %v2891_v18  ;;  %2468 = vrot.lane.b32.xlu1 %v2405_v21, %s9293_s30  ;;  %2356 = vst.msk [vmem:[#allocation2 + $0x230] sm:$0xff] %vm386_vm3, %v2290_v24  ;;  %v2749_v27 = vpop.permute.xlu1 %2748  ;;  %5983 = vmatprep.subr.bf16.mxu0 %v12050_v29  ;;  %v10501_v17 = vpack.c.bf16 %v3129_v15, %v3127_v9  ;;  %vm7661_vm1 = vcmask 73728  }
 0x200   : > { %v3154_v25 = vpack.c.bf16 %v3108_v23, %v3106_v22  ;;  %2466 = vrot.lane.b32.xlu0 %v2403_v12, %s9293_s30  ;;  %v3131_v23 = vld [vmem:[#allocation2 + $0x1e8] sm:$0xff] }
 0x201   : > { %v2439_v32 = vpop.permute.xlu0 %2438 }
 0x202   : > { %3396 = vmatmul.mubr.bf16.gmra.mxu1 %v3154_v25  ;;  %4043 = vmatmul.mubr.bf16.gmra.mxu0 %v3154_v25  ;;  %2520 = vst.msk [vmem:[#allocation2 + $0x140] sm:$0xfe] %vm2502_vm9, %v2439_v32 }
 0x203   : > { %7910 = vmatprep.mubr.msk.bf16.mxu1 %vm386_vm3, %v3157_v28  ;;  %7981 = vmatprep.mubr.msk.bf16.mxu0 %vm386_vm3, %v3157_v28  ;;  %2649 = vst.msk [vmem:[#allocation2 + $0x140] sm:$0xff] %vm2632_vm10, %v2569_v20  ;;  %v2441_v33 = vpop.permute.xlu1 %2440  ;;  %v3133_v28 = vld [vmem:[#allocation2 + $0x1f8] sm:$0xff] }
 0x204   : > { %2776 = vrot.lane.b32.xlu1 %v2712_v16, %s9294_s14  ;;  %2774 = vrot.lane.b32.xlu0 %v2713_v30, %s9294_s14  ;;  %2521 = vst.msk [vmem:[#allocation2 + $0x150] sm:$0xff] %vm2504_vm11, %v2441_v33  ;;  %v10517_v31 = vpack.c.bf16 %v3133_v28, %v3131_v23 }
 0x205   : > { %2650 = vst.msk [vmem:[#allocation2 + $0x150] sm:$0xff] %vm2632_vm10, %v2571_v10  ;;  %v2747_v35 = vpop.permute.xlu0 %2746 }
 0x206   : > { %2829 = vst.msk [vmem:[#allocation2 + $0x150] sm:$0x7f] %vm2812_vm12, %v2749_v27 }
 0x207   : > { %2828 = vst.msk [vmem:[#allocation2 + $0x140] sm:$0xff] %vm2810_vm13, %v2747_v35 }
 0x20b   : > { %v2575_v36 = vpop.permute.xlu1 %2574 }
 0x20d   : > { %v3112_v40 = vld [vmem:[#allocation2 + $0x150] sm:$0xff] }
 0x20e   : > { %v2573_v38 = vpop.permute.xlu0 %2572  ;;  %v3110_v39 = vld [vmem:[#allocation2 + $0x140] sm:$0xff] }
 0x20f   : > { %v3156_v41 = vpack.c.bf16 %v3112_v40, %v3110_v39  ;;  %v2753_v44 = vpop.permute.xlu1 %2752 }
 0x211   : > { %3404 = vmatmul.mubr.bf16.gmra.mxu1 %v3156_v41  ;;  %4051 = vmatmul.mubr.bf16.gmra.mxu0 %v3156_v41 }
 0x212   : > { %v2443_v46 = vpop.permute.xlu0 %2442  ;;  %7911 = vmatprep.mubr.msk.bf16.mxu1 %vm386_vm3, %v3159_v13  ;;  %7982 = vmatprep.mubr.msk.bf16.mxu0 %vm386_vm3, %v3159_v13  ;;  %v3135_v13 = vld [vmem:[#allocation2 + $0x208] sm:$0xff] }
 0x213   : > { %2522 = vst.msk [vmem:[#allocation2 + $0x160] sm:$0xfe] %vm2502_vm9, %v2443_v46  ;;  %v2445_v42 = vpop.permute.xlu1 %2444 }
 0x214   : > { %2651 = vst.msk [vmem:[#allocation2 + $0x160] sm:$0xff] %vm2632_vm10, %v2573_v38 }
 0x215   : > { %2523 = vst.msk [vmem:[#allocation2 + $0x170] sm:$0xff] %vm2504_vm11, %v2445_v42 }
 0x216   : > { %2652 = vst.msk [vmem:[#allocation2 + $0x170] sm:$0xff] %vm2632_vm10, %v2575_v36 }
 0x217   : > { %2831 = vst.msk [vmem:[#allocation2 + $0x170] sm:$0x7f] %vm2812_vm12, %v2753_v44 }
 0x218   : > { %v2751_v47 = vpop.permute.xlu0 %2750 }
 0x219   : > { %2830 = vst.msk [vmem:[#allocation2 + $0x160] sm:$0xff] %vm2810_vm13, %v2751_v47 }
 0x21b   : > { %v2579_v48 = vpop.permute.xlu1 %2578 }
 0x21d   : > { %v2577_v50 = vpop.permute.xlu0 %2576 }
 0x21e   : > { %v3116_v52 = vld [vmem:[#allocation2 + $0x170] sm:$0xff] }
 0x21f   : > { %v2757_v55 = vpop.permute.xlu1 %2756 }
 0x220   : > { %v3114_v51 = vld [vmem:[#allocation2 + $0x160] sm:$0xff] }
 0x221   : > { %v10467_v53 = vpack.c.bf16 %v3116_v52, %v3114_v51  ;;  %v2447_v57 = vpop.permute.xlu0 %2446 }
 0x222   : > { %2524 = vst.msk [vmem:[#allocation2 + $0x180] sm:$0xfe] %vm2502_vm9, %v2447_v57 }
 0x223   : > { %3412 = vmatmul.mubr.bf16.gmra.mxu1 %v10467_v53  ;;  %4059 = vmatmul.mubr.bf16.gmra.mxu0 %v10467_v53  ;;  %2653 = vst.msk [vmem:[#allocation2 + $0x180] sm:$0xff] %vm2632_vm10, %v2577_v50  ;;  %v2449_v58 = vpop.permute.xlu1 %2448  ;;  %v10541_v50 = vpack.c.bf16 %v3137_v49, %v3135_v13  ;;  %v2966_v13 = vld [vmem:[#allocation2 + $0x48] sm:$0xff] }
 0x224   : > { %7912 = vmatprep.mubr.msk.bf16.mxu1 %vm386_vm3, %v10469_v56  ;;  %7983 = vmatprep.mubr.msk.bf16.mxu0 %vm386_vm3, %v10469_v56  ;;  %2525 = vst.msk [vmem:[#allocation2 + $0x190] sm:$0xff] %vm2504_vm11, %v2449_v58 }
 0x225   : > { %2654 = vst.msk [vmem:[#allocation2 + $0x190] sm:$0xff] %vm2632_vm10, %v2579_v48 }
 0x226   : > { %2833 = vst.msk [vmem:[#allocation2 + $0x190] sm:$0x7f] %vm2812_vm12, %v2757_v55 }
 0x227   : > { %v2755_v59 = vpop.permute.xlu0 %2754 }
 0x228   : > { %2832 = vst.msk [vmem:[#allocation2 + $0x180] sm:$0xff] %vm2810_vm13, %v2755_v59 }
 0x22b   : > { %v2583_v60 = vpop.permute.xlu1 %2582 }
 0x22d   : > { %v3120_v0 = vld [vmem:[#allocation2 + $0x190] sm:$0xff] }
 0x22e   : > { %v2581_v62 = vpop.permute.xlu0 %2580 }
 0x22f   : > { %v3118_v63 = vld [vmem:[#allocation2 + $0x180] sm:$0xff]  ;;  %v2761_v3 = vpop.permute.xlu1 %2760 }
 0x230   : > { %v10483_v1 = vpack.c.bf16 %v3120_v0, %v3118_v63 }
 0x232   : > { %3420 = vmatmul.mubr.bf16.gmra.mxu1 %v10483_v1  ;;  %4067 = vmatmul.mubr.bf16.gmra.mxu0 %v10483_v1  ;;  %v2451_v5 = vpop.permute.xlu0 %2450 }
 0x233   : > { %7913 = vmatprep.mubr.msk.bf16.mxu1 %vm386_vm3, %v10485_v4  ;;  %7984 = vmatprep.mubr.msk.bf16.mxu0 %vm386_vm3, %v10485_v4  ;;  %2526 = vst.msk [vmem:[#allocation2 + $0x1a0] sm:$0xfe] %vm2502_vm9, %v2451_v5  ;;  %v2453_v6 = vpop.permute.xlu1 %2452 }
 0x234   : > { %2655 = vst.msk [vmem:[#allocation2 + $0x1a0] sm:$0xff] %vm2632_vm10, %v2581_v62 }
 0x235   : > { %2527 = vst.msk [vmem:[#allocation2 + $0x1b0] sm:$0xff] %vm2504_vm11, %v2453_v6 }
 0x236   : > { %2656 = vst.msk [vmem:[#allocation2 + $0x1b0] sm:$0xff] %vm2632_vm10, %v2583_v60 }
 0x237   : > { %2835 = vst.msk [vmem:[#allocation2 + $0x1b0] sm:$0x7f] %vm2812_vm12, %v2761_v3  ;;  %v2960_v3 = vld [vmem:[#allocation2 + $0x18] sm:$0xff] }
 0x238   : > { %v2759_v7 = vpop.permute.xlu0 %2758 }
 0x239   : > { %2834 = vst.msk [vmem:[#allocation2 + $0x1a0] sm:$0xff] %vm2810_vm13, %v2759_v7  ;;  %v3790_v7 = vld [vmem:[#allocation2 + $0x228] sm:$0xff] }
 0x23b   : > { %v2587_v8 = vpop.permute.xlu1 %2586 }
 0x23d   : > { %v2585_v10 = vpop.permute.xlu0 %2584 }
 0x23e   : > { %v3124_v12 = vld [vmem:[#allocation2 + $0x1b0] sm:$0xff] }
 0x23f   : > { %v2765_v16 = vpop.permute.xlu1 %2764 }
 0x240   : > { %v3122_v11 = vld [vmem:[#allocation2 + $0x1a0] sm:$0xff] }
 0x241   : > { %v10499_v14 = vpack.c.bf16 %v3124_v12, %v3122_v11  ;;  %v2455_v18 = vpop.permute.xlu0 %2454  ;;  %v3022_v11 = vpack.c.bf16 %v2960_v3, %v2958_v2  ;;  %v9096_v3 = vld [vmem:[%s12041_s3 + $0x110] sm:$0xff]  }
 0x242   : > { %2528 = vst.msk [vmem:[#allocation2 + $0x1c0] sm:$0xfe] %vm2502_vm9, %v2455_v18 }
 0x243   : > { %3428 = vmatmul.mubr.bf16.gmra.mxu1 %v10499_v14  ;;  %4075 = vmatmul.mubr.bf16.gmra.mxu0 %v10499_v14  ;;  %2657 = vst.msk [vmem:[#allocation2 + $0x1c0] sm:$0xff] %vm2632_vm10, %v2585_v10  ;;  %v2457_v20 = vpop.permute.xlu1 %2456 }
 0x244   : > { %7914 = vmatprep.mubr.msk.bf16.mxu1 %vm386_vm3, %v10501_v17  ;;  %7985 = vmatprep.mubr.msk.bf16.mxu0 %vm386_vm3, %v10501_v17  ;;  %2529 = vst.msk [vmem:[#allocation2 + $0x1d0] sm:$0xff] %vm2504_vm11, %v2457_v20 }
 0x245   : > { %2658 = vst.msk [vmem:[#allocation2 + $0x1d0] sm:$0xff] %vm2632_vm10, %v2587_v8  ;;  %v3792_v8 = vld [vmem:[#allocation2 + $0x238] sm:$0xff] }
 0x246   : > { %2837 = vst.msk [vmem:[#allocation2 + $0x1d0] sm:$0x7f] %vm2812_vm12, %v2765_v16  ;;  %v10565_v15 = vpack.c.bf16 %v3792_v8, %v3790_v7  ;;  %v4569_v7 = vld [vmem:[#allocation2 + $0x90] sm:$0xff] }
 0x247   : > { %v2763_v21 = vpop.permute.xlu0 %2762 }
 0x248   : > { %2836 = vst.msk [vmem:[#allocation2 + $0x1c0] sm:$0xff] %vm2810_vm13, %v2763_v21 }
 0x24b   : > { %v2591_v22 = vpop.permute.xlu1 %2590 }
 0x24d   : > { %v3128_v26 = vld [vmem:[#allocation2 + $0x1d0] sm:$0xff] }
 0x24e   : > { %v2589_v24 = vpop.permute.xlu0 %2588 }
 0x24f   : > { %v3126_v25 = vld [vmem:[#allocation2 + $0x1c0] sm:$0xff]  ;;  %v2769_v30 = vpop.permute.xlu1 %2768 }
 0x250   : > { %v10515_v27 = vpack.c.bf16 %v3128_v26, %v3126_v25  ;;  %v2964_v25 = vld [vmem:[#allocation2 + $0x38] sm:$0xff] }
 0x252   : > { %3436 = vmatmul.mubr.bf16.gmra.mxu1 %v10515_v27  ;;  %4083 = vmatmul.mubr.bf16.gmra.mxu0 %v10515_v27  ;;  %v2459_v32 = vpop.permute.xlu0 %2458 }
 0x253   : > { %7915 = vmatprep.mubr.msk.bf16.mxu1 %vm386_vm3, %v10517_v31  ;;  %7986 = vmatprep.mubr.msk.bf16.mxu0 %vm386_vm3, %v10517_v31  ;;  %2530 = vst.msk [vmem:[#allocation2 + $0x1e0] sm:$0xfe] %vm2502_vm9, %v2459_v32  ;;  %v2461_v35 = vpop.permute.xlu1 %2460 }
 0x254   : > { %v10526_v33 = vpop.f32.mrf.mxu1  ;;  %v10528_v34 = vpop.f32.mrf.mxu0  ;;  %2659 = vst.msk [vmem:[#allocation2 + $0x1e0] sm:$0xff] %vm2632_vm10, %v2589_v24  ;;  %v2962_v24 = vld [vmem:[#allocation2 + $0x28] sm:$0xff] }
 0x255   : > { %2531 = vst.msk [vmem:[#allocation2 + $0x1f0] sm:$0xff] %vm2504_vm11, %v2461_v35 }
 0x256   : > { %v3343_v36 = vpop.f32.mrf.mxu1  ;;  %v3990_v37 = vpop.f32.mrf.mxu0  ;;  %2660 = vst.msk [vmem:[#allocation2 + $0x1f0] sm:$0xff] %vm2632_vm10, %v2591_v22 }
 0x257   : > { %2839 = vst.msk [vmem:[#allocation2 + $0x1f0] sm:$0x7f] %vm2812_vm12, %v2769_v30  ;;  %v9223_v30 = vld [vmem:[#allocation2] sm:$0xff]  ;;  %v9089_v37 = vld [vmem:[%s12041_s3 + $0x128] sm:$0xff]  }
 0x258   : > { %v2767_v38 = vpop.permute.xlu0 %2766  ;;  %v10535_v39 = vpop.f32.mrf.mxu1  ;;  %v10584_v32 = vpack.c.bf16 %v9223_v30, %v9223_v30  ;;  %v4574_v30 = vld [vmem:[#allocation2 + $0xb8] sm:$0xff] }
 0x259   : > { %2838 = vst.msk [vmem:[#allocation2 + $0x1e0] sm:$0xff] %vm2810_vm13, %v2767_v38  ;;  %v10537_v40 = vpop.f32.mrf.mxu0  ;;  %v3024_v38 = vpack.c.bf16 %v2964_v25, %v2962_v24  ;;  %v2972_v25 = vld [vmem:[#allocation2 + $0x78] sm:$0xff] }
 0x25a   : > { %v3346_v41 = vpop.f32.mrf.mxu1 }
 0x25b   : > { %v3993_v43 = vpop.f32.mrf.mxu0  ;;  %v2595_v44 = vpop.permute.xlu1 %2594 }
 0x25d   : > { %v2593_v46 = vpop.permute.xlu0 %2592 }
 0x25e   : > { %v3132_v47 = vld [vmem:[#allocation2 + $0x1f0] sm:$0xff] }
 0x260   : > { %v3130_v42 = vld [vmem:[#allocation2 + $0x1e0] sm:$0xff]  ;;  %v2465_v51 = vpop.permute.xlu1 %2464 }
 0x261   : > { %v10539_v48 = vpack.c.bf16 %v3132_v47, %v3130_v42  ;;  %2533 = vst.msk [vmem:[#allocation2 + $0x210] sm:$0xff] %vm2504_vm11, %v2465_v51  ;;  %v2463_v55 = vpop.permute.xlu0 %2462  ;;  %v2968_v51 = vld [vmem:[#allocation2 + $0x58] sm:$0xff] }
 0x262   : > { %2662 = vst.msk [vmem:[#allocation2 + $0x210] sm:$0xff] %vm2632_vm10, %v2595_v44  ;;  %v9093_v44 = vld [vmem:[%s12041_s3 + $0x120] sm:$0xff]  }
 0x263   : > { %3444 = vmatmul.mubr.bf16.gmra.mxu1 %v10539_v48  ;;  %4091 = vmatmul.mubr.bf16.gmra.mxu0 %v10539_v48  ;;  %2532 = vst.msk [vmem:[#allocation2 + $0x200] sm:$0xfe] %vm2502_vm9, %v2463_v55  ;;  %v4570_v55 = vld [vmem:[#allocation2 + $0x98] sm:$0xff] }
 0x264   : > { %v10543_v52 = vpop.f32.mrf.mxu1  ;;  %v10548_v54 = vpop.f32.mrf.mxu0  ;;  %7916 = vmatprep.mubr.msk.bf16.mxu1 %vm386_vm3, %v10541_v50  ;;  %7987 = vmatprep.mubr.msk.bf16.mxu0 %vm386_vm3, %v10541_v50  ;;  %2661 = vst.msk [vmem:[#allocation2 + $0x200] sm:$0xff] %vm2632_vm10, %v2593_v46  ;;  %v4568_v46 = vld [vmem:[#allocation2 + $0x88] sm:$0xff] }
 0x265   : > { %v2773_v59 = vpop.permute.xlu1 %2772 }
 0x266   : > { %v3351_v57 = vpop.f32.mrf.mxu1  ;;  %v3998_v58 = vpop.f32.mrf.mxu0  ;;  %2841 = vst.msk [vmem:[#allocation2 + $0x210] sm:$0x7f] %vm2812_vm12, %v2773_v59  ;;  %v10603_v59 = vpack.c.bf16 %v4570_v55, %v4568_v46  ;;  %v4576_v46 = vld [vmem:[#allocation2 + $0xc8] sm:$0xff]  ;;  %v9099_v55 = vld [vmem:[%s12041_s3 + $0xf8] sm:$0xff]  }
 0x267   : > { %v2771_v62 = vpop.permute.xlu0 %2770  ;;  %v9095_v57 = vld [vmem:[%s12041_s3 + $0x118] sm:$0xff]   ;;  %v3026_v58 = vpack.c.bf16 %v2968_v51, %v2966_v13  ;;  %v4573_v13 = vld [vmem:[#allocation2 + $0xb0] sm:$0xff] }
 0x268   : > { %v10557_v60 = vpop.f32.mrf.mxu1  ;;  %v10560_v61 = vpop.f32.mrf.mxu0  ;;  %2840 = vst.msk [vmem:[#allocation2 + $0x200] sm:$0xff] %vm2810_vm13, %v2771_v62  ;;  %v4578_v51 = vld [vmem:[#allocation2 + $0xd8] sm:$0xff] }
 0x26a   : > { %v3354_v63 = vpop.f32.mrf.mxu1  ;;  %v4001_v0 = vpop.f32.mrf.mxu0 }
 0x26b   : > { %v2599_v5 = vpop.permute.xlu1 %2598 }
 0x26d   : > { %v3136_v6 = vld [vmem:[#allocation2 + $0x210] sm:$0xff] }
 0x26e   : > { %v2597_v9 = vpop.permute.xlu0 %2596 }
 0x26f   : > { %v3134_v10 = vld [vmem:[#allocation2 + $0x200] sm:$0xff] }
 0x270   : > { %v10563_v12 = vpack.c.bf16 %v3136_v6, %v3134_v10  ;;  %v4567_v6 = vld [vmem:[#allocation2 + $0x80] sm:$0xff]  ;;  %v2970_v10 = vld [vmem:[#allocation2 + $0x68] sm:$0xff] }
 0x271   : > { %v2469_v20 = vpop.permute.xlu1 %2468  ;;  %v10622_v24 = vpack.c.bf16 %v4569_v7, %v4567_v6  ;;  %v4575_v6 = vld [vmem:[#allocation2 + $0xc0] sm:$0xff]  ;;  %v4577_v7 = vld [vmem:[#allocation2 + $0xd0] sm:$0xff] }
 0x272   : > { %3452 = vmatmul.mubr.bf16.gmra.mxu1 %v10563_v12  ;;  %4099 = vmatmul.mubr.bf16.gmra.mxu0 %v10563_v12  ;;  %v2467_v21 = vpop.permute.xlu0 %2466  ;;  %2535 = vst.msk [vmem:[#allocation2 + $0x230] sm:$0xff] %vm2504_vm11, %v2469_v20  ;;  %v2967_v20 = vld [vmem:[#allocation2 + $0x50] sm:$0xff] }
 0x273   : > { %v10567_v16 = vpop.f32.mrf.mxu1  ;;  %v10570_v18 = vpop.f32.mrf.mxu0  ;;  %7988 = vmatprep.mubr.msk.bf16.mxu0 %vm386_vm3, %v10565_v15  ;;  %7927 = vmatprep.mubr.msk.bf16.mxu1 %vm386_vm3, %v3022_v11  ;;  %2534 = vst.msk [vmem:[#allocation2 + $0x220] sm:$0xfe] %vm2502_vm9, %v2467_v21  ;;  %v4572_v11 = vld [vmem:[#allocation2 + $0xa8] sm:$0xff] }
 0x274   : > { %2664 = vst.msk [vmem:[#allocation2 + $0x230] sm:$0xff] %vm2632_vm10, %v2599_v5  ;;  %2663 = vst.msk [vmem:[#allocation2 + $0x220] sm:$0xff] %vm2632_vm10, %v2597_v9  ;;  %v2965_v5 = vld [vmem:[#allocation2 + $0x40] sm:$0xff] }
 0x275   : > { %v3359_v22 = vpop.f32.mrf.mxu1  ;;  %v4006_v23 = vpop.f32.mrf.mxu0 }
 0x276   : > { %v2777_v35 = vpop.permute.xlu1 %2776  ;;  %v2775_v36 = vpop.permute.xlu0 %2774  ;;  %v3025_v23 = vpack.c.bf16 %v2967_v20, %v2965_v5  ;;  %v9100_v5 = vld [vmem:[%s12041_s3 + $0xf0] sm:$0xff]   ;;  %v4580_v20 = vld [vmem:[#allocation2 + $0xe8] sm:$0xff] }
 0x277   : > { %v10580_v26 = vpop.f32.mrf.mxu1  ;;  %v10582_v28 = vpop.f32.mrf.mxu0  ;;  %2843 = vst.msk [vmem:[#allocation2 + $0x230] sm:$0x7f] %vm2812_vm12, %v2777_v35  ;;  %v9097_v35 = vld [vmem:[%s12041_s3 + $0x108] sm:$0xff]  }
 0x278   : > { %2842 = vst.msk [vmem:[#allocation2 + $0x220] sm:$0xff] %vm2810_vm13, %v2775_v36  ;;  %v10627_v36 = vpack.c.bf16 %v2972_v25, %v2970_v10  ;;  %v4582_v25 = vld [vmem:[#allocation2 + $0xf8] sm:$0xff] }
 0x279   : > { %v3362_v41 = vpop.f32.mrf.mxu1  ;;  %v4009_v43 = vpop.f32.mrf.mxu0 }
 0x27a   : > { %3601 = vmatmul.mubr.bf16.vlgmr.msra.gmra.mxu1 %v10584_v32  ;;  %v9098_v41 = vld [vmem:[%s12041_s3 + $0x100] sm:$0xff]   ;;  %v2971_v43 = vld [vmem:[#allocation2 + $0x70] sm:$0xff] }
 0x27b   : > { %4374 = vmatpush1.bf16.msra.mxu1 %v9089_v37  ;;  %7928 = vmatprep.mubr.msk.bf16.mxu1 %vm386_vm3, %v3024_v38  ;;  %v10629_v37 = vpack.c.bf16 %v4574_v30, %v4572_v11  ;;  %v2969_v38 = vld [vmem:[#allocation2 + $0x60] sm:$0xff]  ;;  %v9101_v30 = vld [vmem:[%s12041_s3 + $0x138] sm:$0xff]  }
 0x27c   : > { %4375 = vmatprep.subr.bf16.mxu1 %v12050_v29 }
 0x27e   : > { %v3791_v47 = vld [vmem:[#allocation2 + $0x230] sm:$0xff] }
 0x27f   : > { %v3789_v42 = vld [vmem:[#allocation2 + $0x220] sm:$0xff]  ;;  %4376 = vmatpush1.bf16.msra.mxu1 %v9093_v44 }
 0x280   : > { %v10597_v49 = vpack.c.bf16 %v3791_v47, %v3789_v42  ;;  %4377 = vmatprep.subr.bf16.mxu1 %v12050_v29  ;;  %v4571_v44 = vld [vmem:[#allocation2 + $0xa0] sm:$0xff]  ;;  %v10641_v42 = vpack.c.bf16 %v2971_v43, %v2969_v38  ;;  %v9102_v38 = vld [vmem:[%s12041_s3 + $0x130] sm:$0xff]  }
 0x281   : > { %v10643_v47 = vpack.c.bf16 %v4573_v13, %v4571_v44  ;;  %v4581_v43 = vld [vmem:[#allocation2 + $0xf0] sm:$0xff]  ;;  %v4584_v44 = vld [vmem:[#allocation2 + $0x108] sm:$0xff] }
 0x282   : > { %3609 = vmatmul.mubr.bf16.gmra.mxu1 %v10584_v32  ;;  %4107 = vmatmul.mubr.bf16.gmra.mxu0 %v10597_v49 }
 0x283   : > { %7929 = vmatprep.mubr.msk.bf16.mxu1 %vm386_vm3, %v3026_v58  ;;  %8065 = vmatprep.mubr.msk.bf16.mxu0 %vm386_vm3, %v10603_v59 }
 0x284   : > { %v10605_v62 = vpop.f32.mrf.mxu1  ;;  %v10608_v63 = vpop.f32.mrf.mxu0  ;;  %4378 = vmatpush1.bf16.msra.mxu1 %v9095_v57  ;;  %v10648_v57 = vpack.c.bf16 %v4578_v51, %v4576_v46  ;;  %v4586_v46 = vld [vmem:[#allocation2 + $0x118] sm:$0xff] }
 0x285   : > { %4379 = vmatprep.subr.bf16.mxu1 %v12050_v29  ;;  %v10689_v51 = vpack.c.bf16 %v4586_v46, %v4584_v44  ;;  %v4587_v44 = vld [vmem:[#allocation2 + $0x120] sm:$0xff]  ;;  %v4589_v46 = vld [vmem:[#allocation2 + $0x130] sm:$0xff] }
 0x286   : > { %v3367_v0 = vpop.f32.mrf.mxu1  ;;  %v4014_v2 = vpop.f32.mrf.mxu0 }
 0x288   : > { %v10618_v8 = vpop.f32.mrf.mxu1  ;;  %v10620_v9 = vpop.f32.mrf.mxu0  ;;  %4380 = vmatpush1.bf16.msra.mxu1 %v9096_v3 }
 0x289   : > { %4381 = vmatprep.subr.bf16.mxu1 %v12050_v29 }
 0x28a   : > { %v3370_v21 = vpop.f32.mrf.mxu1  ;;  %v4017_v22 = vpop.f32.mrf.mxu0  ;;  %3617 = vmatmul.mubr.bf16.gmra.mxu1 %v3025_v23  ;;  %4825 = vmatmul.mubr.bf16.vlgmr.msra.gmra.mxu0 %v10622_v24  ;;  %v10669_v23 = vpack.c.bf16 %v4577_v7, %v4575_v6  ;;  %v4583_v6 = vld [vmem:[#allocation2 + $0x100] sm:$0xff]  ;;  %v4585_v7 = vld [vmem:[#allocation2 + $0x110] sm:$0xff] }
 0x28b   : > { %7930 = vmatprep.mubr.msk.bf16.mxu1 %vm386_vm3, %v10627_v36  ;;  %8066 = vmatprep.mubr.msk.bf16.mxu0 %vm386_vm3, %v10629_v37 }
 0x28c   : > { %4382 = vmatpush1.bf16.msra.mxu1 %v9097_v35  ;;  %v10674_v35 = vpack.c.bf16 %v4582_v25, %v4580_v20 }
 0x28d   : > { %4383 = vmatprep.subr.bf16.mxu1 %v12050_v29 }
 0x290   : > { %4384 = vmatpush1.bf16.msra.mxu1 %v9098_v41  ;;  %v4579_v41 = vld [vmem:[#allocation2 + $0xe0] sm:$0xff] }
 0x291   : > { %4385 = vmatprep.subr.bf16.mxu1 %v12050_v29  ;;  %v10687_v13 = vpack.c.bf16 %v4581_v43, %v4579_v41  ;;  %v4590_v41 = vld [vmem:[#allocation2 + $0x138] sm:$0xff] }
 0x292   : > { %3625 = vmatmul.mubr.bf16.gmra.mxu1 %v10641_v42  ;;  %4833 = vmatmul.mubr.bf16.gmra.mxu0 %v10643_v47 }
 0x293   : > { %v10651_v58 = vpop.f32.mrf.mxu1  ;;  %v10654_v0 = vpop.f32.mrf.mxu0  ;;  %7931 = vmatprep.mubr.msk.bf16.mxu1 %vm386_vm3, %v10603_v59  ;;  %8067 = vmatprep.mubr.msk.bf16.mxu0 %vm386_vm3, %v10648_v57 }
 0x294   : > { %4386 = vmatpush1.bf16.msra.mxu1 %v9099_v55 }
 0x295   : > { %v3375_v2 = vpop.f32.mrf.mxu1  ;;  %v4022_v3 = vpop.f32.mrf.mxu0  ;;  %4387 = vmatprep.subr.bf16.mxu1 %v12050_v29 }
 0x297   : > { %v10665_v10 = vpop.f32.mrf.mxu1  ;;  %v10667_v11 = vpop.f32.mrf.mxu0 }
 0x298   : > { %4388 = vmatpush1.bf16.msra.mxu1 %v9100_v5 }
 0x299   : > { %v3378_v21 = vpop.f32.mrf.mxu1  ;;  %v4025_v22 = vpop.f32.mrf.mxu0  ;;  %4401 = vmatprep.subr.bf16.mxu1 %v12050_v29 }
 0x29a   : > { %3633 = vmatmul.mubr.bf16.gmra.mxu1 %v10622_v24  ;;  %4841 = vmatmul.mubr.bf16.gmra.mxu0 %v10669_v23  ;;  %v4588_v22 = vld [vmem:[#allocation2 + $0x128] sm:$0xff] }
 0x29b   : > { %7932 = vmatprep.mubr.msk.bf16.mxu1 %vm386_vm3, %v10629_v37  ;;  %8068 = vmatprep.mubr.msk.bf16.mxu0 %vm386_vm3, %v10674_v35  ;;  %v10708_v43 = vpack.c.bf16 %v4590_v41, %v4588_v22 }
 0x29c   : > { %4402 = vmatpush2.bf16.msra.mxu1 %v9101_v30 }
 0x29d   : > { %4403 = vmatprep.subr.bf16.mxu1 %v12050_v29 }
 0x2a0   : > { %4404 = vmatpush2.bf16.msra.mxu1 %v9102_v38  ;;  %v10706_v38 = vpack.c.bf16 %v4585_v7, %v4583_v6  ;;  %v4594_v6 = vld [vmem:[#allocation2 + $0x158] sm:$0xff] }
 0x2a1   : > { %5473 = vmatprep.subr.bf16.mxu1 %v12050_v29  ;;  %v4596_v29 = vld [vmem:[#allocation2 + $0x168] sm:$0xff] }
 0x2a2   : > { %3641 = vmatmul.mubr.bf16.gmra.mxu1 %v10643_v47  ;;  %4849 = vmatmul.mubr.bf16.gmra.mxu0 %v10687_v13 }
 0x2a3   : > { %7933 = vmatprep.mubr.msk.bf16.mxu1 %vm386_vm3, %v10648_v57  ;;  %8069 = vmatprep.mubr.msk.bf16.mxu0 %vm386_vm3, %v10689_v51 }
 0x2a4   : > { %v10692_v55 = vpop.f32.mrf.mxu1  ;;  %v10695_v2 = vpop.f32.mrf.mxu0 }
 0x2a5   : > { %12056 = vst [vmem:[#allocation11_spill] sm:$0xff] %v10692_v55  ;;  %v4598_v55 = vld [vmem:[#allocation2 + $0x178] sm:$0xff] }
 0x2a6   : > { %v3383_v3 = vpop.f32.mrf.mxu1  ;;  %v4030_v5 = vpop.f32.mrf.mxu0 }
 0x2a7   : > { %v4592_v3 = vld [vmem:[#allocation2 + $0x148] sm:$0xff]  ;;  %v10716_v5 = vpack.c.bf16 %v4589_v46, %v4587_v44  ;;  %v4591_v44 = vld [vmem:[#allocation2 + $0x140] sm:$0xff]  ;;  %v4593_v46 = vld [vmem:[#allocation2 + $0x150] sm:$0xff] }
 0x2a8   : > { %v10702_v20 = vpop.f32.mrf.mxu1  ;;  %v10704_v21 = vpop.f32.mrf.mxu0  ;;  %v10718_v7 = vpack.c.bf16 %v4594_v6, %v4592_v3 }
 0x2a9   : > { %12057 = vst [vmem:[#allocation12_spill] sm:$0xff] %v10702_v20  ;;  %12058 = vst [vmem:[#allocation13_spill] sm:$0xff] %v10704_v21  ;;  %v10736_v21 = vpack.c.bf16 %v4598_v55, %v4596_v29 }
 0x2aa   : > { %v3386_v25 = vpop.f32.mrf.mxu1  ;;  %v4033_v30 = vpop.f32.mrf.mxu0  ;;  %3649 = vmatmul.mubr.bf16.gmra.mxu1 %v10669_v23  ;;  %4857 = vmatmul.mubr.bf16.gmra.mxu0 %v10706_v38 }
 0x2ab   : > { %7934 = vmatprep.mubr.msk.bf16.mxu1 %vm386_vm3, %v10674_v35  ;;  %8070 = vmatprep.mubr.msk.bf16.mxu0 %vm386_vm3, %v10708_v43 }
 0x2b2   : > { %3657 = vmatmul.mubr.bf16.gmra.mxu1 %v10687_v13  ;;  %4865 = vmatmul.mubr.bf16.gmra.mxu0 %v10716_v5 }
 0x2b3   : > { %v10720_v22 = vpop.f32.mrf.mxu1  ;;  %v10723_v25 = vpop.f32.mrf.mxu0  ;;  %7935 = vmatprep.mubr.msk.bf16.mxu1 %vm386_vm3, %v10689_v51  ;;  %8071 = vmatprep.mubr.msk.bf16.mxu0 %vm386_vm3, %v10718_v7 }
 0x2b4   : > { %12059 = vst [vmem:[#allocation14_spill] sm:$0xff] %v10720_v22  ;;  %12060 = vst [vmem:[#allocation15_spill] sm:$0xff] %v10723_v25  ;;  %v10734_v25 = vpack.c.bf16 %v4593_v46, %v4591_v44 }
 0x2b5   : > { %v3391_v30 = vpop.f32.mrf.mxu1  ;;  %v4038_v41 = vpop.f32.mrf.mxu0 }
 0x2b7   : > { %v10730_v3 = vpop.f32.mrf.mxu1  ;;  %v10732_v6 = vpop.f32.mrf.mxu0 }
 0x2b8   : > { %12061 = vst [vmem:[#allocation16_spill] sm:$0xff] %v10730_v3  ;;  %12062 = vst [vmem:[#allocation17_spill] sm:$0xff] %v10732_v6 }
 0x2b9   : > { %v3394_v22 = vpop.f32.mrf.mxu1  ;;  %v4041_v20 = vpop.f32.mrf.mxu0 }
 0x2ba   : > { %3665 = vmatmul.mubr.bf16.gmra.mxu1 %v10706_v38  ;;  %4873 = vmatmul.mubr.bf16.gmra.mxu0 %v10734_v25 }
 0x2bb   : > { %7936 = vmatprep.mubr.msk.bf16.mxu1 %vm386_vm3, %v10708_v43  ;;  %8072 = vmatprep.mubr.msk.bf16.mxu0 %vm386_vm3, %v10736_v21 }
 0x2c2   : > { %v10744_v30 = vpop.f32.mrf.mxu1  ;;  %3673 = vmatmul.mubr.bf16.gmra.mxu1 %v10716_v5  ;;  %v10747_v20 = vpop.f32.mrf.mxu0  ;;  %4881 = vmatmul.mubr.bf16.gmra.mxu0 %v10467_v53  ;;  %v3001_v53 = vld [vmem:[#allocation2 + $0x160] sm:$0xff] }
 0x2c3   : > { %12063 = vst [vmem:[#allocation18_spill] sm:$0xff] %v10744_v30  ;;  %12064 = vst [vmem:[#allocation19_spill] sm:$0xff] %v10747_v20  ;;  %7937 = vmatprep.mubr.msk.bf16.mxu1 %vm386_vm3, %v10718_v7  ;;  %8073 = vmatprep.mubr.msk.bf16.mxu0 %vm386_vm3, %v10469_v56  ;;  %v3003_v56 = vld [vmem:[#allocation2 + $0x170] sm:$0xff] }
 0x2c4   : > { %v3399_v29 = vpop.f32.mrf.mxu1  ;;  %v4046_v55 = vpop.f32.mrf.mxu0 }
 0x2c5   : > { %v3006_v29 = vld [vmem:[#allocation2 + $0x188] sm:$0xff]  ;;  %v10764_v55 = vpack.c.bf16 %v3003_v56, %v3001_v53  ;;  %v3005_v53 = vld [vmem:[#allocation2 + $0x180] sm:$0xff]  ;;  %v3007_v56 = vld [vmem:[#allocation2 + $0x190] sm:$0xff] }
 0x2c6   : > { %v10754_v22 = vpop.f32.mrf.mxu1  ;;  %v10756_v41 = vpop.f32.mrf.mxu0 }
 0x2c7   : > { %12065 = vst [vmem:[#allocation20_spill] sm:$0xff] %v10754_v22  ;;  %12066 = vst [vmem:[#allocation21_spill] sm:$0xff] %v10756_v41  ;;  %v3008_v22 = vld [vmem:[#allocation2 + $0x198] sm:$0xff] }
 0x2c8   : > { %v3402_v44 = vpop.f32.mrf.mxu1  ;;  %v4049_v46 = vpop.f32.mrf.mxu0  ;;  %v10766_v30 = vpack.c.bf16 %v3008_v22, %v3006_v29 }
 0x2ca   : > { %3681 = vmatmul.mubr.bf16.gmra.mxu1 %v10734_v25  ;;  %4889 = vmatmul.mubr.bf16.gmra.mxu0 %v10483_v1 }
 0x2cb   : > { %7938 = vmatprep.mubr.msk.bf16.mxu1 %vm386_vm3, %v10736_v21  ;;  %8074 = vmatprep.mubr.msk.bf16.mxu0 %vm386_vm3, %v10485_v4 }
 0x2d1   : > { %v10768_v44 = vpop.f32.mrf.mxu1  ;;  %v10771_v46 = vpop.f32.mrf.mxu0 }
 0x2d2   : > { %12067 = vst [vmem:[#allocation22_spill] sm:$0xff] %v10768_v44  ;;  %3689 = vmatmul.mubr.bf16.gmra.mxu1 %v10764_v55  ;;  %12068 = vst [vmem:[#allocation23_spill] sm:$0xff] %v10771_v46  ;;  %4897 = vmatmul.mubr.bf16.gmra.mxu0 %v10499_v14  ;;  %v3010_v44 = vld [vmem:[#allocation2 + $0x1a8] sm:$0xff]  ;;  %v10782_v46 = vpack.c.bf16 %v3007_v56, %v3005_v53  ;;  %v3012_v14 = vld [vmem:[#allocation2 + $0x1b8] sm:$0xff] }
 0x2d3   : > { %7939 = vmatprep.mubr.msk.bf16.mxu1 %vm386_vm3, %v10766_v30  ;;  %8075 = vmatprep.mubr.msk.bf16.mxu0 %vm386_vm3, %v10501_v17  ;;  %v3407_v1 = vpop.f32.mrf.mxu1  ;;  %v4054_v4 = vpop.f32.mrf.mxu0  ;;  %v10784_v3 = vpack.c.bf16 %v3012_v14, %v3010_v44  ;;  %v3009_v17 = vld [vmem:[#allocation2 + $0x1a0] sm:$0xff] }
 0x2d4   : > { %v3011_v1 = vld [vmem:[#allocation2 + $0x1b0] sm:$0xff]  ;;  %v3014_v4 = vld [vmem:[#allocation2 + $0x1c8] sm:$0xff] }
 0x2d5   : > { %v10778_v22 = vpop.f32.mrf.mxu1  ;;  %v10780_v29 = vpop.f32.mrf.mxu0 }
 0x2d6   : > { %12069 = vst [vmem:[#allocation24_spill] sm:$0xff] %v10778_v22  ;;  %12070 = vst [vmem:[#allocation25_spill] sm:$0xff] %v10780_v29 }
 0x2d7   : > { %v3410_v41 = vpop.f32.mrf.mxu1  ;;  %v4057_v20 = vpop.f32.mrf.mxu0 }
 0x2d8   : > { %v10792_v41 = vpack.c.bf16 %v3011_v1, %v3009_v17  ;;  %v3016_v20 = vld [vmem:[#allocation2 + $0x1d8] sm:$0xff] }
 0x2d9   : > { %v10794_v53 = vpack.c.bf16 %v3016_v20, %v3014_v4 }
 0x2da   : > { %3697 = vmatmul.mubr.bf16.gmra.mxu1 %v10782_v46  ;;  %4905 = vmatmul.mubr.bf16.gmra.mxu0 %v10515_v27 }
 0x2db   : > { %7940 = vmatprep.mubr.msk.bf16.mxu1 %vm386_vm3, %v10784_v3  ;;  %8076 = vmatprep.mubr.msk.bf16.mxu0 %vm386_vm3, %v10517_v31 }
 0x2e2   : > { %3705 = vmatmul.mubr.bf16.gmra.mxu1 %v10792_v41  ;;  %4913 = vmatmul.mubr.bf16.gmra.mxu0 %v10539_v48 }
 0x2e3   : > { %v10796_v44 = vpop.f32.mrf.mxu1  ;;  %v10799_v56 = vpop.f32.mrf.mxu0  ;;  %7941 = vmatprep.mubr.msk.bf16.mxu1 %vm386_vm3, %v10794_v53  ;;  %8077 = vmatprep.mubr.msk.bf16.mxu0 %vm386_vm3, %v10541_v50  ;;  %v4626_v50 = vld [vmem:[#allocation2 + $0x258] sm:$0xff] }
 0x2e4   : > { %12071 = vst [vmem:[#allocation26_spill] sm:$0xff] %v10796_v44  ;;  %12072 = vst [vmem:[#allocation27_spill] sm:$0xff] %v10799_v56  ;;  %v4624_v56 = vld [vmem:[#allocation2 + $0x248] sm:$0xff] }
 0x2e5   : > { %v3415_v14 = vpop.f32.mrf.mxu1  ;;  %v4062_v17 = vpop.f32.mrf.mxu0 }
 0x2e6   : > { %v10816_v14 = vpack.c.bf16 %v4626_v50, %v4624_v56 }
 0x2e7   : > { %v10806_v1 = vpop.f32.mrf.mxu1  ;;  %v10808_v4 = vpop.f32.mrf.mxu0 }
 0x2e8   : > { %12073 = vst [vmem:[#allocation28_spill] sm:$0xff] %v10806_v1  ;;  %12074 = vst [vmem:[#allocation29_spill] sm:$0xff] %v10808_v4 }
 0x2e9   : > { %v3418_v20 = vpop.f32.mrf.mxu1  ;;  %v4065_v44 = vpop.f32.mrf.mxu0 }
 0x2ea   : > { %3713 = vmatmul.mubr.bf16.gmra.mxu1 %v10515_v27  ;;  %4921 = vmatmul.mubr.bf16.gmra.mxu0 %v10563_v12  ;;  %v4628_v12 = vld [vmem:[#allocation2 + $0x268] sm:$0xff] }
 0x2eb   : > { %7942 = vmatprep.mubr.msk.bf16.mxu1 %vm386_vm3, %v10517_v31  ;;  %8078 = vmatprep.mubr.msk.bf16.mxu0 %vm386_vm3, %v10565_v15  ;;  %v4630_v15 = vld [vmem:[#allocation2 + $0x278] sm:$0xff] }
 0x2ec   : > { %v4662_v50 = vpack.c.bf16 %v4630_v15, %v4628_v12 }
 0x2f2   : > { %v10818_v17 = vpop.f32.mrf.mxu1  ;;  %3721 = vmatmul.mubr.bf16.gmra.mxu1 %v10539_v48  ;;  %v10821_v20 = vpop.f32.mrf.mxu0  ;;  %4929 = vmatmul.mubr.bf16.gmra.mxu0 %v10597_v49 }
 0x2f3   : > { %12075 = vst [vmem:[#allocation30_spill] sm:$0xff] %v10818_v17  ;;  %12076 = vst [vmem:[#allocation31_spill] sm:$0xff] %v10821_v20  ;;  %8019 = vmatprep.mubr.msk.bf16.mxu1 %vm386_vm3, %v10627_v36  ;;  %8079 = vmatprep.mubr.msk.bf16.mxu0 %vm386_vm3, %v10816_v14 }
 0x2f4   : > { %v3423_v27 = vpop.f32.mrf.mxu1  ;;  %v4070_v31 = vpop.f32.mrf.mxu0 }
 0x2f6   : > { %v10828_v44 = vpop.f32.mrf.mxu1  ;;  %v10830_v56 = vpop.f32.mrf.mxu0 }
 0x2f7   : > { %12077 = vst [vmem:[#allocation32_spill] sm:$0xff] %v10828_v44  ;;  %12078 = vst [vmem:[#allocation33_spill] sm:$0xff] %v10830_v56 }
 0x2f8   : > { %v3426_v48 = vpop.f32.mrf.mxu1  ;;  %v4073_v17 = vpop.f32.mrf.mxu0 }
 0x2fa   : > { %4406 = vmatmul.mubr.bf16.vlgmr.msra.gmra.mxu1 %v10641_v42  ;;  %4937 = vmatmul.mubr.bf16.gmra.mxu0 %v10584_v32 }
 0x2fb   : > { %8020 = vmatprep.mubr.msk.bf16.mxu1 %vm386_vm3, %v10603_v59  ;;  %8080 = vmatprep.mubr.msk.bf16.mxu0 %vm386_vm3, %v4662_v50 }
 0x302   : > { %4414 = vmatmul.mubr.bf16.gmra.mxu1 %v10622_v24  ;;  %4945 = vmatmul.mubr.bf16.gmra.mxu0 %v10584_v32 }
 0x303   : > { %v10837_v49 = vpop.f32.mrf.mxu1  ;;  %v10839_v36 = vpop.f32.mrf.mxu0  ;;  %8021 = vmatprep.mubr.msk.bf16.mxu1 %vm386_vm3, %v10629_v37 }
 0x304   : > { %12079 = vst [vmem:[#allocation34_spill] sm:$0xff] %v10837_v49  ;;  %12080 = vst [vmem:[#allocation35_spill] sm:$0xff] %v10839_v36 }
 0x305   : > { %v3431_v17 = vpop.f32.mrf.mxu1  ;;  %v4078_v42 = vpop.f32.mrf.mxu0 }
 0x307   : > { %v10845_v27 = vpop.f32.mrf.mxu1  ;;  %v10847_v31 = vpop.f32.mrf.mxu0 }
 0x308   : > { %12081 = vst [vmem:[#allocation36_spill] sm:$0xff] %v10845_v27  ;;  %12082 = vst [vmem:[#allocation37_spill] sm:$0xff] %v10847_v31  ;;  %v4206_v31 = vld [vmem:[#allocation2 + $0x230] sm:$0xff] }
 0x309   : > { %v3434_v59 = vpop.f32.mrf.mxu1  ;;  %v4081_v12 = vpop.f32.mrf.mxu0 }
 0x30a   : > { %4422 = vmatmul.mubr.bf16.gmra.mxu1 %v10643_v47 }
 0x30b   : > { %8022 = vmatprep.mubr.msk.bf16.mxu1 %vm386_vm3, %v10648_v57 }
 0x312   : > { %v10852_v15 = vpop.f32.mrf.mxu1  ;;  %v10854_v24 = vpop.f32.mrf.mxu0  ;;  %4430 = vmatmul.mubr.bf16.gmra.mxu1 %v10669_v23 }
 0x313   : > { %12083 = vst [vmem:[#allocation38_spill] sm:$0xff] %v10852_v15  ;;  %12084 = vst [vmem:[#allocation39_spill] sm:$0xff] %v10854_v24  ;;  %8023 = vmatprep.mubr.msk.bf16.mxu1 %vm386_vm3, %v10674_v35  ;;  %v4202_v15 = vld [vmem:[#allocation2 + $0x210] sm:$0xff] }
 0x314   : > { %v3439_v37 = vpop.f32.mrf.mxu1  ;;  %v4086_v50 = vpop.f32.mrf.mxu0 }
 0x316   : > { %v10859_v48 = vpop.f32.mrf.mxu1  ;;  %v10861_v17 = vpop.f32.mrf.mxu0 }
 0x317   : > { %12085 = vst [vmem:[#allocation40_spill] sm:$0xff] %v10859_v48  ;;  %12086 = vst [vmem:[#allocation41_spill] sm:$0xff] %v10861_v17 }
 0x318   : > { %v3442_v42 = vpop.f32.mrf.mxu1  ;;  %v4089_v47 = vpop.f32.mrf.mxu0 }
 0x31a   : > { %4438 = vmatmul.mubr.bf16.gmra.mxu1 %v10687_v13 }
 0x31b   : > { %8024 = vmatprep.mubr.msk.bf16.mxu1 %vm386_vm3, %v10689_v51 }
 0x322   : > { %4446 = vmatmul.mubr.bf16.gmra.mxu1 %v10706_v38 }
 0x323   : > { %v10866_v57 = vpop.f32.mrf.mxu1  ;;  %v10868_v59 = vpop.f32.mrf.mxu0  ;;  %8025 = vmatprep.mubr.msk.bf16.mxu1 %vm386_vm3, %v10708_v43 }
 0x324   : > { %12087 = vst [vmem:[#allocation42_spill] sm:$0xff] %v10866_v57  ;;  %12088 = vst [vmem:[#allocation43_spill] sm:$0xff] %v10868_v59 }
 0x325   : > { %v3447_v23 = vpop.f32.mrf.mxu1  ;;  %v4094_v35 = vpop.f32.mrf.mxu0 }
 0x327   : > { %v10873_v12 = vpop.f32.mrf.mxu1  ;;  %v10875_v37 = vpop.f32.mrf.mxu0 }
 0x328   : > { %12089 = vst [vmem:[#allocation44_spill] sm:$0xff] %v10873_v12  ;;  %12090 = vst [vmem:[#allocation45_spill] sm:$0xff] %v10875_v37  ;;  %v4198_v37 = vld [vmem:[#allocation2 + $0x1f0] sm:$0xff] }
 0x329   : > { %v3450_v50 = vpop.f32.mrf.mxu1  ;;  %v4097_v13 = vpop.f32.mrf.mxu0 }
 0x32a   : > { %4454 = vmatmul.mubr.bf16.gmra.mxu1 %v10716_v5 }
 0x32b   : > { %8026 = vmatprep.mubr.msk.bf16.mxu1 %vm386_vm3, %v10718_v7 }
 0x332   : > { %v10880_v51 = vpop.f32.mrf.mxu1  ;;  %v10882_v42 = vpop.f32.mrf.mxu0  ;;  %4462 = vmatmul.mubr.bf16.gmra.mxu1 %v10734_v25 }
 0x333   : > { %12091 = vst [vmem:[#allocation46_spill] sm:$0xff] %v10880_v51  ;;  %12092 = vst [vmem:[#allocation47_spill] sm:$0xff] %v10882_v42  ;;  %8027 = vmatprep.mubr.msk.bf16.mxu1 %vm386_vm3, %v10736_v21  ;;  %v4199_v42 = vld [vmem:[#allocation2 + $0x1f8] sm:$0xff] }
 0x334   : > { %v3455_v38 = vpop.f32.mrf.mxu1  ;;  %v4102_v43 = vpop.f32.mrf.mxu0 }
 0x336   : > { %v10887_v47 = vpop.f32.mrf.mxu1  ;;  %v10889_v23 = vpop.f32.mrf.mxu0 }
 0x337   : > { %12093 = vst [vmem:[#allocation48_spill] sm:$0xff] %v10887_v47  ;;  %12094 = vst [vmem:[#allocation49_spill] sm:$0xff] %v10889_v23 }
 0x338   : > { %v3458_v35 = vpop.f32.mrf.mxu1  ;;  %v4105_v5 = vpop.f32.mrf.mxu0 }
 0x33a   : > { %v10891_v50 = vpop.f32.mrf.mxu1  ;;  %4470 = vmatmul.mubr.bf16.gmra.mxu1 %v10764_v55 }
 0x33b   : > { %8028 = vmatprep.mubr.msk.bf16.mxu1 %vm386_vm3, %v10766_v30 }
 0x33c   : > { %v3604_v7 = vpop.f32.mrf.mxu1 }
 0x33e   : > { %v10896_v25 = vpop.f32.mrf.mxu1 }
 0x340   : > { %v3607_v13 = vpop.f32.mrf.mxu1 }
 0x342   : > { %v10898_v21 = vpop.f32.mrf.mxu1  ;;  %v10900_v38 = vpop.f32.mrf.mxu0  ;;  %4478 = vmatmul.mubr.bf16.gmra.mxu1 %v10782_v46 }
 0x343   : > { %12095 = vst [vmem:[#allocation50_spill] sm:$0xff] %v10900_v38  ;;  %8029 = vmatprep.mubr.msk.bf16.mxu1 %vm386_vm3, %v10784_v3  ;;  %v4192_v3 = vld [vmem:[#allocation2 + $0x1c0] sm:$0xff] }
 0x344   : > { %v3612_v43 = vpop.f32.mrf.mxu1  ;;  %v4110_v35 = vpop.f32.mrf.mxu0 }
 0x345   : > { %v4194_v43 = vld [vmem:[#allocation2 + $0x1d0] sm:$0xff] }
 0x346   : > { %v10905_v5 = vpop.f32.mrf.mxu1  ;;  %v10907_v55 = vpop.f32.mrf.mxu0  ;;  %v4234_v51 = vpack.c.bf16 %v4194_v43, %v4192_v3 }
 0x347   : > { %12096 = vst [vmem:[#allocation51_spill] sm:$0xff] %v10907_v55  ;;  %v4197_v55 = vld [vmem:[#allocation2 + $0x1e8] sm:$0xff] }
 0x348   : > { %v3615_v30 = vpop.f32.mrf.mxu1  ;;  %v4113_v7 = vpop.f32.mrf.mxu0  ;;  %v4237_v12 = vpack.c.bf16 %v4199_v42, %v4197_v55  ;;  %v4203_v42 = vld [vmem:[#allocation2 + $0x218] sm:$0xff] }
 0x34a   : > { %v10909_v47 = vpop.f32.mrf.mxu1  ;;  %4486 = vmatmul.mubr.bf16.gmra.mxu1 %v10792_v41  ;;  %v10912_v13 = vpop.f32.mrf.mxu0 }
 0x34b   : > { %8030 = vmatprep.mubr.msk.bf16.mxu1 %vm386_vm3, %v10794_v53 }
 0x34c   : > { %v3620_v46 = vpop.f32.mrf.mxu1  ;;  %v4828_v38 = vpop.f32.mrf.mxu0 }
 0x34d   : > { %v4196_v46 = vld [vmem:[#allocation2 + $0x1e0] sm:$0xff] }
 0x34e   : > { %v10916_v35 = vpop.f32.mrf.mxu1  ;;  %v10918_v23 = vpop.f32.mrf.mxu0  ;;  %v4236_v43 = vpack.c.bf16 %v4198_v37, %v4196_v46 }
 0x350   : > { %v3623_v30 = vpop.f32.mrf.mxu1  ;;  %v4831_v7 = vpop.f32.mrf.mxu0 }
 0x351   : > { %v4201_v30 = vld [vmem:[#allocation2 + $0x208] sm:$0xff] }
 0x352   : > { %v10920_v41 = vpop.f32.mrf.mxu1  ;;  %4494 = vmatmul.mubr.bf16.gmra.mxu1 %v4234_v51  ;;  %v10922_v57 = vpop.f32.mrf.mxu0  ;;  %v4239_v55 = vpack.c.bf16 %v4203_v42, %v4201_v30 }
 0x353   : > { %8031 = vmatprep.mubr.msk.bf16.mxu1 %vm386_vm3, %v4237_v12 }
 0x354   : > { %v3628_v53 = vpop.f32.mrf.mxu1  ;;  %v4836_v38 = vpop.f32.mrf.mxu0 }
 0x355   : > { %v4200_v38 = vld [vmem:[#allocation2 + $0x200] sm:$0xff] }
 0x356   : > { %v10925_v59 = vpop.f32.mrf.mxu1  ;;  %v10927_v48 = vpop.f32.mrf.mxu0  ;;  %v4238_v30 = vpack.c.bf16 %v4202_v15, %v4200_v38 }
 0x358   : > { %v3631_v7 = vpop.f32.mrf.mxu1  ;;  %v4839_v3 = vpop.f32.mrf.mxu0 }
 0x359   : > { %v4205_v7 = vld [vmem:[#allocation2 + $0x228] sm:$0xff]  ;;  %v4207_v3 = vld [vmem:[#allocation2 + $0x238] sm:$0xff] }
 0x35a   : > { %v10929_v17 = vpop.f32.mrf.mxu1  ;;  %4502 = vmatmul.mubr.bf16.gmra.mxu1 %v4236_v43  ;;  %v10931_v51 = vpop.f32.mrf.mxu0  ;;  %v4241_v42 = vpack.c.bf16 %v4207_v3, %v4205_v7 }
 0x35b   : > { %8032 = vmatprep.mubr.msk.bf16.mxu1 %vm386_vm3, %v4239_v55 }
 0x35c   : > { %v3636_v12 = vpop.f32.mrf.mxu1  ;;  %v4844_v53 = vpop.f32.mrf.mxu0 }
 0x35d   : > { %v4204_v53 = vld [vmem:[#allocation2 + $0x220] sm:$0xff] }
 0x35e   : > { %v10934_v24 = vpop.f32.mrf.mxu1  ;;  %v10936_v27 = vpop.f32.mrf.mxu0 }
 0x360   : > { %v3639_v37 = vpop.f32.mrf.mxu1  ;;  %v4847_v46 = vpop.f32.mrf.mxu0 }
 0x361   : > { %v4240_v46 = vpack.c.bf16 %v4206_v31, %v4204_v53 }
 0x362   : > { %v10938_v49 = vpop.f32.mrf.mxu1  ;;  %4510 = vmatmul.mubr.bf16.gmra.mxu1 %v4238_v30  ;;  %v10940_v43 = vpop.f32.mrf.mxu0 }
 0x363   : > { %8033 = vmatprep.mubr.msk.bf16.mxu1 %vm386_vm3, %v4241_v42 }
 0x364   : > { %v3644_v55 = vpop.f32.mrf.mxu1  ;;  %v4852_v12 = vpop.f32.mrf.mxu0 }
 0x366   : > { %v10943_v36 = vpop.f32.mrf.mxu1  ;;  %v10945_v44 = vpop.f32.mrf.mxu0 }
 0x368   : > { %v3647_v56 = vpop.f32.mrf.mxu1  ;;  %v4855_v37 = vpop.f32.mrf.mxu0 }
 0x36a   : > { %v10947_v15 = vpop.f32.mrf.mxu1  ;;  %4518 = vmatmul.mubr.bf16.gmra.mxu1 %v4240_v46  ;;  %v10949_v38 = vpop.f32.mrf.mxu0 }
 0x36b   : > { %8034 = vmatprep.mubr.msk.bf16.mxu1 %vm386_vm3, %v10816_v14 }
 0x36c   : > { %v3652_v7 = vpop.f32.mrf.mxu1  ;;  %v4860_v3 = vpop.f32.mrf.mxu0 }
 0x36e   : > { %v10953_v30 = vpop.f32.mrf.mxu1  ;;  %v10955_v42 = vpop.f32.mrf.mxu0 }
 0x370   : > { %v3655_v55 = vpop.f32.mrf.mxu1  ;;  %v4863_v12 = vpop.f32.mrf.mxu0 }
 0x372   : > { %v10957_v20 = vpop.f32.mrf.mxu1  ;;  %4526 = vmatmul.mubr.bf16.gmra.mxu1 %v10584_v32  ;;  %v10960_v56 = vpop.f32.mrf.mxu0 }
 0x374   : > { %v3660_v31 = vpop.f32.mrf.mxu1  ;;  %v4868_v53 = vpop.f32.mrf.mxu0 }
 0x376   : > { %v10962_v37 = vpop.f32.mrf.mxu1  ;;  %v10964_v46 = vpop.f32.mrf.mxu0 }
 0x377   : > { %12097 = vst [vmem:[#allocation52_spill] sm:$0xff] %v10962_v37 }
 0x378   : > { %v3663_v14 = vpop.f32.mrf.mxu1  ;;  %v4871_v7 = vpop.f32.mrf.mxu0 }
 0x37a   : > { %v10966_v3 = vpop.f32.mrf.mxu1  ;;  %v10968_v1 = vpop.f32.mrf.mxu0 }
 0x37b   : > { %12098 = vst [vmem:[#allocation53_spill] sm:$0xff] %v10966_v3  ;;  %12099 = vst [vmem:[#allocation54_spill] sm:$0xff] %v10968_v1 }
 0x37c   : > { %v3668_v55 = vpop.f32.mrf.mxu1  ;;  %v4876_v12 = vpop.f32.mrf.mxu0 }
 0x37e   : > { %v10970_v4 = vpop.f32.mrf.mxu1  ;;  %v10972_v22 = vpop.f32.mrf.mxu0 }
 0x37f   : > { %12100 = vst [vmem:[#allocation55_spill] sm:$0xff] %v10970_v4  ;;  %12101 = vst [vmem:[#allocation56_spill] sm:$0xff] %v10972_v22 }
 0x380   : > { %v3671_v32 = vpop.f32.mrf.mxu1  ;;  %v4879_v29 = vpop.f32.mrf.mxu0 }
 0x382   : > { %v10974_v31 = vpop.f32.mrf.mxu1  ;;  %v10976_v53 = vpop.f32.mrf.mxu0 }
 0x383   : > { %12102 = vst [vmem:[#allocation57_spill] sm:$0xff] %v10974_v31  ;;  %12103 = vst [vmem:[#allocation58_spill] sm:$0xff] %v10976_v53 }
 0x384   : > { %v3676_v37 = vpop.f32.mrf.mxu1  ;;  %v4884_v6 = vpop.f32.mrf.mxu0 }
 0x386   : > { %v10978_v14 = vpop.f32.mrf.mxu1  ;;  %v10980_v7 = vpop.f32.mrf.mxu0 }
 0x387   : > { %12104 = vst [vmem:[#allocation59_spill] sm:$0xff] %v10978_v14  ;;  %12105 = vst [vmem:[#allocation60_spill] sm:$0xff] %v10980_v7 }
 0x388   : > { %v3679_v3 = vpop.f32.mrf.mxu1  ;;  %v4887_v1 = vpop.f32.mrf.mxu0 }
 0x38a   : > { %v10982_v55 = vpop.f32.mrf.mxu1  ;;  %v10984_v12 = vpop.f32.mrf.mxu0 }
 0x38b   : > { %12106 = vst [vmem:[#allocation61_spill] sm:$0xff] %v10982_v55  ;;  %12107 = vst [vmem:[#allocation62_spill] sm:$0xff] %v10984_v12 }
 0x38c   : > { %v3684_v4 = vpop.f32.mrf.mxu1  ;;  %v4892_v22 = vpop.f32.mrf.mxu0 }
 0x38e   : > { %v10986_v32 = vpop.f32.mrf.mxu1  ;;  %v10988_v29 = vpop.f32.mrf.mxu0 }
 0x38f   : > { %12108 = vst [vmem:[#allocation63_spill] sm:$0xff] %v10986_v32  ;;  %12109 = vst [vmem:[#allocation64_spill] sm:$0xff] %v10988_v29 }
 0x390   : > { %v3687_v31 = vpop.f32.mrf.mxu1  ;;  %v4895_v53 = vpop.f32.mrf.mxu0 }
 0x392   : > { %v10990_v37 = vpop.f32.mrf.mxu1  ;;  %v10992_v6 = vpop.f32.mrf.mxu0 }
 0x393   : > { %12110 = vst [vmem:[#allocation65_spill] sm:$0xff] %v10990_v37  ;;  %12111 = vst [vmem:[#allocation66_spill] sm:$0xff] %v10992_v6 }
 0x394   : > { %v3692_v14 = vpop.f32.mrf.mxu1  ;;  %v4900_v7 = vpop.f32.mrf.mxu0 }
 0x396   : > { %v10994_v3 = vpop.f32.mrf.mxu1  ;;  %v10996_v1 = vpop.f32.mrf.mxu0 }
 0x397   : > { %12112 = vst [vmem:[#allocation67_spill] sm:$0xff] %v10994_v3  ;;  %12113 = vst [vmem:[#allocation68_spill] sm:$0xff] %v10996_v1 }
 0x398   : > { %v3695_v55 = vpop.f32.mrf.mxu1  ;;  %v4903_v12 = vpop.f32.mrf.mxu0 }
 0x399   : > { %v9103_v55 = vld [vmem:[%s12043_s5 + $0x88] sm:$0xff]  }
 0x39a   : > { %v10998_v4 = vpop.f32.mrf.mxu1  ;;  %v11000_v22 = vpop.f32.mrf.mxu0  ;;  %5474 = vmatpush1.bf16.msra.mxu1 %v9103_v55 }
 0x39b   : > { %12114 = vst [vmem:[#allocation69_spill] sm:$0xff] %v10998_v4  ;;  %v12121_v4 = vmov 0  }
 0x39c   : > { %v3700_v32 = vpop.f32.mrf.mxu1  ;;  %v4908_v29 = vpop.f32.mrf.mxu0  ;;  %5475 = vmatprep.subr.bf16.mxu1 %v12121_v4 }
 0x39e   : > { %v11002_v31 = vpop.f32.mrf.mxu1  ;;  %v11004_v53 = vpop.f32.mrf.mxu0 }
 0x39f   : > { %12115 = vst [vmem:[#allocation70_spill] sm:$0xff] %v11002_v31  ;;  %12116 = vst [vmem:[#allocation71_spill] sm:$0xff] %v11004_v53 }
 0x3a0   : > { %v3703_v37 = vpop.f32.mrf.mxu1  ;;  %v4911_v6 = vpop.f32.mrf.mxu0 }
 0x3a2   : > { %v11006_v14 = vpop.f32.mrf.mxu1  ;;  %v11008_v7 = vpop.f32.mrf.mxu0 }
 0x3a3   : > { %12117 = vst [vmem:[#allocation72_spill] sm:$0xff] %v11006_v14  ;;  %12118 = vst [vmem:[#allocation73_spill] sm:$0xff] %v11008_v7 }
 0x3a4   : > { %v3708_v3 = vpop.f32.mrf.mxu1  ;;  %v4916_v1 = vpop.f32.mrf.mxu0 }
 0x3a5   : > { %v9104_v1 = vld [vmem:[%s12043_s5 + $0x80] sm:$0xff]  }
 0x3a6   : > { %v11013_v12 = vpop.f32.mrf.mxu1  ;;  %v11015_v32 = vpop.f32.mrf.mxu0  ;;  %5476 = vmatpush1.bf16.msra.mxu1 %v9104_v1  ;;  %v3606_v1 = vadd.f32 %v10896_v25, %v10274_v45 }
 0x3a7   : > { %12119 = vst [vmem:[#allocation74_spill] sm:$0xff] %v11013_v12  ;;  %12120 = vst [vmem:[#allocation75_spill] sm:$0xff] %v11015_v32  ;;  %5477 = vmatprep.subr.bf16.mxu1 %v12121_v4 }
 0x3a8   : > { %v3711_v29 = vpop.f32.mrf.mxu1  ;;  %v4919_v31 = vpop.f32.mrf.mxu0  ;;  %v4116_v45 = vadd.f32 %v10537_v40, %v3606_v1  ;;  %v3614_v40 = vadd.f32 %v10905_v5, %v10535_v39  ;;  %v3619_v39 = vadd.f32 %v10909_v47, %v10543_v52 }
 0x3aa   : > { %v11018_v37 = vpop.f32.mrf.mxu1  ;;  %v11020_v6 = vpop.f32.mrf.mxu0  ;;  %v4119_v47 = vadd.f32 %v10570_v18, %v3619_v39 }
 0x3ab   : > { %12122 = vst [vmem:[#allocation76_spill] sm:$0xff] %v11018_v37  ;;  %12123 = vst [vmem:[#allocation77_spill] sm:$0xff] %v11020_v6 }
 0x3ac   : > { %v3716_v14 = vpop.f32.mrf.mxu1  ;;  %v4924_v3 = vpop.f32.mrf.mxu0 }
 0x3ad   : > { %v3603_v3 = vadd.f32 %v10891_v50, %v10258_v19 }
 0x3ae   : > { %v11025_v7 = vpop.f32.mrf.mxu1  ;;  %v11027_v12 = vpop.f32.mrf.mxu0 }
 0x3af   : > { %12124 = vst [vmem:[#allocation78_spill] sm:$0xff] %v11025_v7  ;;  %12125 = vst [vmem:[#allocation79_spill] sm:$0xff] %v11027_v12 }
 0x3b0   : > { %v3719_v55 = vpop.f32.mrf.mxu1  ;;  %v4927_v29 = vpop.f32.mrf.mxu0 }
 0x3b1   : > { %v4115_v55 = vadd.f32 %v10528_v34, %v3603_v3  ;;  %v9105_v34 = vld [vmem:[%s12043_s5 + $0x78] sm:$0xff]  }
 0x3b2   : > { %v11030_v31 = vpop.f32.mrf.mxu1  ;;  %v11032_v37 = vpop.f32.mrf.mxu0  ;;  %5478 = vmatpush1.bf16.msra.mxu1 %v9105_v34 }
 0x3b3   : > { %12126 = vst [vmem:[#allocation80_spill] sm:$0xff] %v11030_v31  ;;  %12127 = vst [vmem:[#allocation81_spill] sm:$0xff] %v11032_v37  ;;  %5479 = vmatprep.subr.bf16.mxu1 %v12121_v4 }
 0x3b4   : > { %v3724_v6 = vpop.f32.mrf.mxu1  ;;  %v4932_v14 = vpop.f32.mrf.mxu0 }
 0x3b5   : > { %v11048_v6 = vld [vmem:[%s12042_s4] ss:$0 sm:$0xff] }
 0x3b6   : > { %v11036_v32 = vpop.f32.mrf.mxu1  ;;  %v11038_v53 = vpop.f32.mrf.mxu0 }
 0x3b8   : > { %v3727_v7 = vpop.f32.mrf.mxu1  ;;  %v4935_v12 = vpop.f32.mrf.mxu0 }
 0x3b9   : > { %v3611_v7 = vadd.f32 %v10898_v21, %v10526_v33 }
 0x3ba   : > { %v4407_v29 = vpop.f32.mrf.mxu1  ;;  %v11043_v31 = vpop.f32.mrf.mxu0 }
 0x3bb   : > { %v4534_v37 = vadd.f32 %v4407_v29, %v4115_v55  ;;  %v9106_v29 = vld [vmem:[%s12043_s5 + $0x70] sm:$0xff]  }
 0x3bc   : > { %v4409_v19 = vpop.f32.mrf.mxu1  ;;  %v4940_v50 = vpop.f32.mrf.mxu0  ;;  %5480 = vmatpush1.bf16.msra.mxu1 %v9106_v29  ;;  %v9108_v29 = vld [vmem:[%s12043_s5 + $0x60] sm:$0xff]  }
 0x3bd   : > { %v4953_v12 = vadd.f32 %v10912_v13, %v4534_v37  ;;  %v4117_v37 = vadd.f32 %v10548_v54, %v3611_v7  ;;  %5481 = vmatprep.subr.bf16.mxu1 %v12121_v4 }
 0x3be   : > { %v4410_v25 = vpop.f32.mrf.mxu1  ;;  %v11057_v14 = vpop.f32.mrf.mxu0 }
 0x3bf   : > { %v4991_v3 = vadd.f32 %v11048_v6, %v4953_v12  ;;  %v4535_v55 = vadd.f32 %v4410_v25, %v4116_v45  ;;  %v9107_v45 = vld [vmem:[%s12043_s5 + $0x68] sm:$0xff]  }
 0x3c0   : > { %v4412_v33 = vpop.f32.mrf.mxu1  ;;  %v4943_v21 = vpop.f32.mrf.mxu0  ;;  %5482 = vmatpush1.bf16.msra.mxu1 %v9107_v45  ;;  %v9110_v45 = vld [vmem:[%s12043_s5 + $0x50] sm:$0xff]  }
 0x3c1   : > { %5023 = vst.msk [vmem:[#allocation5] sm:$0xff] %vm386_vm3, %v4991_v3  ;;  %v4954_v13 = vadd.f32 %v10918_v23, %v4535_v55  ;;  %v4118_v23 = vadd.f32 %v10560_v61, %v3614_v40  ;;  %5483 = vmatprep.subr.bf16.mxu1 %v12121_v4 }
 0x3c2   : > { %v4415_v1 = vpop.f32.mrf.mxu1  ;;  %v11069_v19 = vpop.f32.mrf.mxu0 }
 0x3c3   : > { %v4992_v50 = vadd.f32 %v11048_v6, %v4954_v13  ;;  %v4536_v12 = vadd.f32 %v4415_v1, %v4117_v37  ;;  %v9109_v37 = vld [vmem:[%s12043_s5 + $0x58] sm:$0xff]  }
 0x3c4   : > { %v4417_v34 = vpop.f32.mrf.mxu1  ;;  %v4948_v25 = vpop.f32.mrf.mxu0  ;;  %5484 = vmatpush1.bf16.msra.mxu1 %v9108_v29 }
 0x3c5   : > { %5024 = vst.msk [vmem:[#allocation5 + $0x8] sm:$0xff] %vm386_vm3, %v4992_v50  ;;  %v4955_v54 = vadd.f32 %v10922_v57, %v4536_v12  ;;  %v3622_v57 = vadd.f32 %v10916_v35, %v10557_v60  ;;  %5485 = vmatprep.subr.bf16.mxu1 %v12121_v4  ;;  %v3627_v60 = vadd.f32 %v10920_v41, %v10567_v16 }
 0x3c6   : > { %v4418_v5 = vpop.f32.mrf.mxu1  ;;  %v11081_v7 = vpop.f32.mrf.mxu0  ;;  %v3630_v16 = vadd.f32 %v10925_v59, %v10580_v26  ;;  %v9111_v26 = vld [vmem:[%s12043_s5 + $0x98] sm:$0xff]  }
 0x3c7   : > { %v4993_v3 = vadd.f32 %v11048_v6, %v4955_v54  ;;  %v4537_v55 = vadd.f32 %v4418_v5, %v4118_v23  ;;  %v4120_v18 = vadd.f32 %v10582_v28, %v3622_v57  ;;  %v4121_v28 = vadd.f32 %v10608_v63, %v3627_v60  ;;  %v9112_v54 = vld [vmem:[%s12043_s5 + $0x128] sm:$0xff]  }
 0x3c8   : > { %v4420_v33 = vpop.f32.mrf.mxu1  ;;  %v4951_v52 = vpop.f32.mrf.mxu0  ;;  %5486 = vmatpush1.bf16.msra.mxu1 %v9109_v37  ;;  %5984 = vmatpush1.bf16.msra.mxu0 %v9112_v54 }
 0x3c9   : > { %5025 = vst.msk [vmem:[#allocation5 + $0x10] sm:$0xff] %vm386_vm3, %v4993_v3  ;;  %v4956_v61 = vadd.f32 %v10927_v48, %v4537_v55  ;;  %5487 = vmatprep.subr.bf16.mxu1 %v12121_v4  ;;  %v9114_v55 = vld [vmem:[%s12043_s5 + $0x120] sm:$0xff]   ;;  %v4122_v33 = vadd.f32 %v10620_v9, %v3630_v16  ;;  %5985 = vmatprep.subr.bf16.mxu0 %v12121_v4 }
 0x3ca   : > { %v4423_v21 = vpop.f32.mrf.mxu1  ;;  %v3638_v9 = vadd.f32 %v10934_v24, %v10618_v8 }
 0x3cb   : > { %v4994_v40 = vadd.f32 %v11048_v6, %v4956_v61  ;;  %v4538_v13 = vadd.f32 %v4423_v21, %v4119_v47  ;;  %v9113_v21 = vld [vmem:[%s12043_s5 + $0x90] sm:$0xff]  }
 0x3cc   : > { %v4425_v1 = vpop.f32.mrf.mxu1  ;;  %v5055_v25 = vld [vmem:[#allocation5] ss:$2 sm:$0xff]  ;;  %v5071_v39 = vld [vmem:[#allocation5 + $0x1] ss:$2 sm:$0xff]  ;;  %5488 = vmatpush1.bf16.msra.mxu1 %v9110_v45  ;;  %5986 = vmatpush1.bf16.msra.mxu0 %v9114_v55 }
 0x3cd   : > { %5026 = vst.msk [vmem:[#allocation5 + $0x18] sm:$0xff] %vm386_vm3, %v4994_v40  ;;  %v4957_v48 = vadd.f32 %v10931_v51, %v4538_v13  ;;  %5501 = vmatprep.subr.bf16.mxu1 %v12121_v4  ;;  %v5086_v52 = vmax.f32 %v5055_v25, %v5071_v39  ;;  %5987 = vmatprep.subr.bf16.mxu0 %v12121_v4 }
 0x3ce   : > { %v4426_v35 = vpop.f32.mrf.mxu1 }
 0x3cf   : > { %v4995_v50 = vadd.f32 %v11048_v6, %v4957_v48  ;;  %v4539_v12 = vadd.f32 %v4426_v35, %v4120_v18  ;;  %v4124_v35 = vadd.f32 %v10667_v11, %v3638_v9 }
 0x3d0   : > { %v4428_v34 = vpop.f32.mrf.mxu1  ;;  %5502 = vmatpush2.bf16.msra.mxu1 %v9111_v26  ;;  %v12128_v26 = vld [vmem:[#allocation13_spill] sm:$0xff] }
 0x3d1   : > { %5027 = vst.msk [vmem:[#allocation5 + $0x20] sm:$0xff] %vm386_vm3, %v4995_v50  ;;  %v4958_v41 = vadd.f32 %v10936_v27, %v4539_v12  ;;  %v3635_v27 = vadd.f32 %v10929_v17, %v10605_v62  ;;  %5503 = vmatprep.subr.bf16.mxu1 %v12121_v4  ;;  %v9115_v12 = vld [vmem:[%s12043_s5 + $0x118] sm:$0xff]  }
 0x3d2   : > { %v4431_v51 = vpop.f32.mrf.mxu1  ;;  %5988 = vmatpush1.bf16.msra.mxu0 %v9115_v12 }
 0x3d3   : > { %v4996_v23 = vadd.f32 %v11048_v6, %v4958_v41  ;;  %v4540_v5 = vadd.f32 %v4431_v51, %v4121_v28  ;;  %v4123_v13 = vadd.f32 %v10654_v0, %v3635_v27  ;;  %v5357_v41 = vld [vmem:[#allocation3 + $0x18] sm:$0xff]  ;;  %5989 = vmatprep.subr.bf16.mxu0 %v12121_v4  ;;  %v9116_v28 = vld [vmem:[%s12043_s5 + $0x110] sm:$0xff]  }
 0x3d4   : > { %v4433_v59 = vpop.f32.mrf.mxu1  ;;  %v5095_v63 = vld [vmem:[#allocation5 + $0x10] ss:$2 sm:$0xff]  ;;  %v5111_v3 = vld [vmem:[#allocation5 + $0x11] ss:$2 sm:$0xff]  ;;  %5504 = vmatpush2.bf16.msra.mxu1 %v9113_v21 }
 0x3d5   : > { %5028 = vst.msk [vmem:[#allocation5 + $0x28] sm:$0xff] %vm386_vm3, %v4996_v23  ;;  %v4959_v29 = vadd.f32 %v10940_v43, %v4540_v5  ;;  %v5126_v57 = vmax.f32 %v5095_v63, %v5111_v3  ;;  %5610 = vmatprep.subr.bf16.mxu1 %v12121_v4  ;;  %v12129_v63 = vld [vmem:[#allocation11_spill] sm:$0xff] }
 0x3d6   : > { %v4434_v62 = vpop.f32.mrf.mxu1  ;;  %5990 = vmatpush1.bf16.msra.mxu0 %v9116_v28  ;;  %v3651_v3 = vadd.f32 %v10947_v15, %v12129_v63  ;;  %v12130_v15 = vld [vmem:[#allocation12_spill] sm:$0xff]  ;;  %v12141_v63 = vld [vmem:[#allocation53_spill] sm:$0xff] }
 0x3d7   : > { %v4997_v17 = vadd.f32 %v11048_v6, %v4959_v29  ;;  %v4541_v61 = vadd.f32 %v4434_v62, %v4122_v33  ;;  %v5134_v47 = vmax.f32 %v5086_v52, %v5126_v57  ;;  %5991 = vmatprep.subr.bf16.mxu0 %v12121_v4 }
 0x3d8   : > { %v4436_v40 = vpop.f32.mrf.mxu1 }
 0x3d9   : > { %5029 = vst.msk [vmem:[#allocation5 + $0x30] sm:$0xff] %vm386_vm3, %v4997_v17  ;;  %v4960_v43 = vadd.f32 %v10945_v44, %v4541_v61  ;;  %5215 = vrot.lane.b32.xlu1 %v5134_v47, %s9292_s22  ;;  %v5287_v37 = vrot.slane %v5134_v47, 2  ;;  %v5175_v1 = vrot.slane %v5134_v47, 7  ;;  %v5150_v48 = vrot.slane %v5134_v47, 6  ;;  %v9118_v61 = vld [vmem:[%s12043_s5 + $0x100] sm:$0xff]  }
 0x3da   : > { %v4439_v60 = vpop.f32.mrf.mxu1  ;;  %v3643_v44 = vadd.f32 %v10938_v49, %v10651_v58  ;;  %v5247_v50 = vrot.slane %v5134_v47, 1  ;;  %v3646_v58 = vadd.f32 %v10943_v36, %v10665_v10 }
 0x3db   : > { %v4998_v0 = vadd.f32 %v11048_v6, %v4960_v43  ;;  %5303 = vst.msk [vmem:[#allocation3 + $0x28] sm:$0x3f] %vm2925_vm4, %v5287_v37  ;;  %v4542_v18 = vadd.f32 %v4439_v60, %v4123_v13  ;;  %5183 = vrot.lane.b32.xlu0 %v5175_v1, %s9293_s30  ;;  %v12131_v13 = vld [vmem:[#allocation15_spill] sm:$0xff] }
 0x3dc   : > { %v4441_v8 = vpop.f32.mrf.mxu1  ;;  %5167 = vst.msk [vmem:[#allocation3 + $0x20] sm:$0xfc] %vm2324_vm5, %v5150_v48  ;;  %v5057_v39 = vld [vmem:[#allocation5 + $0x20] ss:$2 sm:$0xff]  ;;  %v5073_v54 = vld [vmem:[#allocation5 + $0x21] ss:$2 sm:$0xff]  ;;  %v4126_v27 = vadd.f32 %v12128_v26, %v3646_v58  ;;  %v4127_v9 = vadd.f32 %v12131_v13, %v3651_v3 }
 0x3dd   : > { %5030 = vst.msk [vmem:[#allocation5 + $0x38] sm:$0xff] %vm386_vm3, %v4998_v0  ;;  %v4961_v24 = vadd.f32 %v10949_v38, %v4542_v18  ;;  %v4125_v38 = vadd.f32 %v10695_v2, %v3643_v44  ;;  %v9117_v2 = vld [vmem:[%s12043_s5 + $0x108] sm:$0xff]   ;;  %v5087_v29 = vmax.f32 %v5057_v39, %v5073_v54  ;;  %v12136_v58 = vld [vmem:[#allocation52_spill] sm:$0xff] }
 0x3de   : > { %v4442_v45 = vpop.f32.mrf.mxu1  ;;  %5992 = vmatpush1.bf16.msra.mxu0 %v9117_v2  ;;  %v12133_v8 = vld [vmem:[#allocation54_spill] sm:$0xff]  ;;  %v12145_v13 = vld [vmem:[#allocation60_spill] sm:$0xff] }
 0x3df   : > { %v4999_v34 = vadd.f32 %v11048_v6, %v4961_v24  ;;  %v4543_v16 = vadd.f32 %v4442_v45, %v4124_v35  ;;  %5255 = vrot.lane.b32.xlu0 %v5247_v50, %s9294_s14  ;;  %5993 = vmatprep.subr.bf16.mxu0 %v12121_v4  ;;  %v12134_v24 = vld [vmem:[#allocation17_spill] sm:$0xff]  ;;  %v12140_v2 = vld [vmem:[#allocation18_spill] sm:$0xff] }
 0x3e0   : > { %v4444_v49 = vpop.f32.mrf.mxu1  ;;  %v3667_v3 = vadd.f32 %v12141_v63, %v12140_v2  ;;  %v12155_v63 = vld [vmem:[#allocation29_spill] sm:$0xff] }
 0x3e1   : > { %5031 = vst.msk [vmem:[#allocation5 + $0x40] sm:$0xff] %vm386_vm3, %v4999_v34  ;;  %v4962_v11 = vadd.f32 %v10955_v42, %v4543_v16  ;;  %v12135_v16 = vld [vmem:[#allocation16_spill] sm:$0xff] }
 0x3e2   : > { %v4447_v51 = vpop.f32.mrf.mxu1  ;;  %v5359_v25 = vld [vmem:[#allocation3 + $0x28] sm:$0xff]  ;;  %5994 = vmatpush1.bf16.msra.mxu0 %v9118_v61  ;;  %v3662_v49 = vadd.f32 %v12136_v58, %v12135_v16 }
 0x3e3   : > { %v5000_v10 = vadd.f32 %v11048_v6, %v4962_v11  ;;  %v4544_v36 = vadd.f32 %v4447_v51, %v4125_v38  ;;  %v5373_v23 = vpack.c.bf16 %v5359_v25, %v5357_v41  ;;  %5995 = vmatprep.subr.bf16.mxu0 %v12121_v4  ;;  %v12138_v38 = vld [vmem:[#allocation19_spill] sm:$0xff] }
 0x3e4   : > { %v4449_v5 = vpop.f32.mrf.mxu1  ;;  %v5097_v59 = vld [vmem:[#allocation5 + $0x30] ss:$2 sm:$0xff]  ;;  %v5113_v42 = vld [vmem:[#allocation5 + $0x31] ss:$2 sm:$0xff] }
 0x3e5   : > { %5032 = vst.msk [vmem:[#allocation5 + $0x48] sm:$0xff] %vm386_vm3, %v5000_v10  ;;  %v4963_v55 = vadd.f32 %v10960_v56, %v4544_v36  ;;  %8112 = vmatprep.mubr.msk.bf16.mxu1 %vm386_vm3, %v5373_v23  ;;  %v5127_v33 = vmax.f32 %v5097_v59, %v5113_v42  ;;  %v3654_v56 = vadd.f32 %v10953_v30, %v12130_v15  ;;  %v9119_v30 = vld [vmem:[%s12043_s5 + $0xf8] sm:$0xff]   ;;  %v9120_v51 = vld [vmem:[%s12043_s5 + $0xf0] sm:$0xff]   ;;  %v12139_v5 = vld [vmem:[#allocation21_spill] sm:$0xff] }
 0x3e6   : > { %v4450_v52 = vpop.f32.mrf.mxu1  ;;  %5996 = vmatpush1.bf16.msra.mxu0 %v9119_v30  ;;  %v4130_v26 = vadd.f32 %v12139_v5, %v3662_v49  ;;  %v9121_v42 = vld [vmem:[%s12043_s5 + $0x138] sm:$0xff]  }
 0x3e7   : > { %v5001_v57 = vadd.f32 %v11048_v6, %v4963_v55  ;;  %v4545_v62 = vadd.f32 %v4450_v52, %v4126_v27  ;;  %v5135_v17 = vmax.f32 %v5087_v29, %v5127_v33  ;;  %v4128_v35 = vadd.f32 %v12134_v24, %v3654_v56  ;;  %5997 = vmatprep.subr.bf16.mxu0 %v12121_v4  ;;  %v12142_v55 = vld [vmem:[#allocation58_spill] sm:$0xff]  ;;  %v12143_v56 = vld [vmem:[#allocation20_spill] sm:$0xff]  ;;  %v12148_v24 = vld [vmem:[#allocation57_spill] sm:$0xff] }
 0x3e8   : > { %v4452_v47 = vpop.f32.mrf.mxu1 }
 0x3e9   : > { %5033 = vst.msk [vmem:[#allocation5 + $0x50] sm:$0xff] %vm386_vm3, %v5001_v57  ;;  %v4964_v21 = vadd.f32 %v10964_v46, %v4545_v62  ;;  %5217 = vrot.lane.b32.xlu1 %v5135_v17, %s9292_s22  ;;  %v5288_v40 = vrot.slane %v5135_v17, 2  ;;  %v5151_v37 = vrot.slane %v5135_v17, 6  ;;  %v5176_v48 = vrot.slane %v5135_v17, 7  ;;  %v12132_v46 = vld [vmem:[#allocation14_spill] sm:$0xff] }
 0x3ea   : > { %v4455_v43 = vpop.f32.mrf.mxu1  ;;  %v3659_v18 = vadd.f32 %v10957_v20, %v12132_v46  ;;  %v5248_v34 = vrot.slane %v5135_v17, 1  ;;  %v12137_v20 = vld [vmem:[#allocation56_spill] sm:$0xff]  ;;  %5998 = vmatpush1.bf16.msra.mxu0 %v9120_v51  ;;  %v9122_v47 = vld [vmem:[%s12043_s5 + $0x130] sm:$0xff]  }
 0x3eb   : > { %v5002_v1 = vadd.f32 %v11048_v6, %v4964_v21  ;;  %5304 = vst.msk [vmem:[#allocation3 + $0x38] sm:$0x3f] %vm2925_vm4, %v5288_v40  ;;  %v4546_v60 = vadd.f32 %v4455_v43, %v4127_v9  ;;  %6011 = vmatprep.subr.bf16.mxu0 %v12121_v4  ;;  %v12144_v21 = vld [vmem:[#allocation55_spill] sm:$0xff]  ;;  %v12153_v51 = vld [vmem:[#allocation64_spill] sm:$0xff] }
 0x3ec   : > { %v4457_v0 = vpop.f32.mrf.mxu1  ;;  %5168 = vst.msk [vmem:[#allocation3 + $0x30] sm:$0xfc] %vm2324_vm5, %v5151_v37  ;;  %v4129_v28 = vadd.f32 %v12138_v38, %v3659_v18  ;;  %v5059_v39 = vld [vmem:[#allocation5 + $0x40] ss:$2 sm:$0xff]  ;;  %v5075_v54 = vld [vmem:[#allocation5 + $0x41] ss:$2 sm:$0xff]  ;;  %v3670_v40 = vadd.f32 %v12144_v21, %v12143_v56 }
 0x3ed   : > { %5034 = vst.msk [vmem:[#allocation5 + $0x58] sm:$0xff] %vm386_vm3, %v5002_v1  ;;  %v4965_v44 = vadd.f32 %v12133_v8, %v4546_v60  ;;  %5185 = vrot.lane.b32.xlu1 %v5176_v48, %s9293_s30  ;;  %v5088_v33 = vmax.f32 %v5059_v39, %v5075_v54  ;;  %v12146_v37 = vld [vmem:[#allocation23_spill] sm:$0xff]  ;;  %v11236_v8 = vld [vmem:[#allocation2] sm:$0xff] }
 0x3ee   : > { %v4458_v50 = vpop.f32.mrf.mxu1  ;;  %6012 = vmatpush2.bf16.msra.mxu0 %v9121_v42  ;;  %v4131_v1 = vadd.f32 %v12146_v37, %v3667_v3  ;;  %v12154_v39 = vld [vmem:[#allocation27_spill] sm:$0xff] }
 0x3ef   : > { %v5003_v12 = vadd.f32 %v11048_v6, %v4965_v44  ;;  %v4547_v45 = vadd.f32 %v4458_v50, %v4128_v35  ;;  %6013 = vmatprep.subr.bf16.mxu0 %v12121_v4  ;;  %v12147_v44 = vld [vmem:[#allocation22_spill] sm:$0xff] }
 0x3f0   : > { %v4460_v41 = vpop.f32.mrf.mxu1  ;;  %v3675_v35 = vadd.f32 %v12148_v24, %v12147_v44  ;;  %v12149_v50 = vld [vmem:[#allocation62_spill] sm:$0xff] }
 0x3f1   : > { %5035 = vst.msk [vmem:[#allocation5 + $0x60] sm:$0xff] %vm386_vm3, %v5003_v12  ;;  %v4966_v11 = vadd.f32 %v12137_v20, %v4547_v45  ;;  %5257 = vrot.lane.b32.xlu1 %v5248_v34, %s9294_s14  ;;  %v12150_v45 = vld [vmem:[#allocation25_spill] sm:$0xff]  ;;  %v12151_v20 = vld [vmem:[#allocation24_spill] sm:$0xff] }
 0x3f2   : > { %v4463_v25 = vpop.f32.mrf.mxu1  ;;  %6014 = vmatpush2.bf16.msra.mxu0 %v9122_v47  ;;  %v4132_v34 = vadd.f32 %v12150_v45, %v3670_v40  ;;  %v4133_v54 = vadd.f32 %v12154_v39, %v3675_v35  ;;  %v12164_v45 = vld [vmem:[#allocation65_spill] sm:$0xff] }
 0x3f3   : > { %v5004_v10 = vadd.f32 %v11048_v6, %v4966_v11  ;;  %v4548_v36 = vadd.f32 %v4463_v25, %v4129_v28  ;;  %8734 = vmatprep.subr.bf16.mxu0 %v11236_v8  ;;  %v12152_v11 = vld [vmem:[#allocation59_spill] sm:$0xff] }
 0x3f4   : > { %v4465_v23 = vpop.f32.mrf.mxu1  ;;  %v5099_v27 = vld [vmem:[#allocation5 + $0x50] ss:$2 sm:$0xff]  ;;  %v5115_v59 = vld [vmem:[#allocation5 + $0x51] ss:$2 sm:$0xff]  ;;  %v3678_v38 = vadd.f32 %v12152_v11, %v12151_v20 }
 0x3f5   : > { %5036 = vst.msk [vmem:[#allocation5 + $0x68] sm:$0xff] %vm386_vm3, %v5004_v10  ;;  %v4967_v29 = vadd.f32 %v12142_v55, %v4548_v36  ;;  %v5128_v52 = vmax.f32 %v5099_v27, %v5115_v59  ;;  %v11252_v10 = vld [vmem:[#allocation3 + $0x38] sm:$0xff] }
 0x3f6   : > { %v4466_v57 = vpop.f32.mrf.mxu1  ;;  %v4134_v3 = vadd.f32 %v12155_v63, %v3678_v38 }
 0x3f7   : > { %v5005_v62 = vadd.f32 %v11048_v6, %v4967_v29  ;;  %v4549_v17 = vadd.f32 %v4466_v57, %v4130_v26  ;;  %v5136_v61 = vmax.f32 %v5088_v33, %v5128_v52  ;;  %v12156_v33 = vld [vmem:[#allocation26_spill] sm:$0xff]  ;;  %v12157_v52 = vld [vmem:[#allocation61_spill] sm:$0xff] }
 0x3f8   : > { %v4468_v15 = vpop.f32.mrf.mxu1  ;;  %v3683_v57 = vadd.f32 %v12157_v52, %v12156_v33  ;;  %v12170_v33 = vld [vmem:[#allocation37_spill] sm:$0xff] }
 0x3f9   : > { %5037 = vst.msk [vmem:[#allocation5 + $0x70] sm:$0xff] %vm386_vm3, %v5005_v62  ;;  %v4968_v9 = vadd.f32 %v12145_v13, %v4549_v17  ;;  %5219 = vrot.lane.b32.xlu0 %v5136_v61, %s9292_s22  ;;  %v5289_v43 = vrot.slane %v5136_v61, 2  ;;  %v5152_v48 = vrot.slane %v5136_v61, 6  ;;  %v5177_v46 = vrot.slane %v5136_v61, 7  ;;  %v12158_v62 = vld [vmem:[#allocation66_spill] sm:$0xff] }
 0x3fa   : > { %v4471_v60 = vpop.f32.mrf.mxu1  ;;  %v5249_v41 = vrot.slane %v5136_v61, 1 }
 0x3fb   : > { %v5006_v30 = vadd.f32 %v11048_v6, %v4968_v9  ;;  %5305 = vst.msk [vmem:[#allocation3 + $0x48] sm:$0x3f] %vm2925_vm4, %v5289_v43  ;;  %v4550_v0 = vadd.f32 %v4471_v60, %v4131_v1  ;;  %v12159_v9 = vld [vmem:[#allocation28_spill] sm:$0xff]  ;;  %v12160_v43 = vld [vmem:[#allocation63_spill] sm:$0xff] }
 0x3fc   : > { %v4473_v18 = vpop.f32.mrf.mxu1  ;;  %5169 = vst.msk [vmem:[#allocation3 + $0x40] sm:$0xfc] %vm2324_vm5, %v5152_v48  ;;  %v5061_v5 = vld [vmem:[#allocation5 + $0x60] ss:$2 sm:$0xff]  ;;  %v5077_v26 = vld [vmem:[#allocation5 + $0x61] ss:$2 sm:$0xff]  ;;  %v3686_v37 = vadd.f32 %v12160_v43, %v12159_v9 }
 0x3fd   : > { %5038 = vst.msk [vmem:[#allocation5 + $0x78] sm:$0xff] %vm386_vm3, %v5006_v30  ;;  %v4969_v12 = vadd.f32 %v12149_v50, %v4550_v0  ;;  %5187 = vrot.lane.b32.xlu0 %v5177_v46, %s9293_s30  ;;  %v5089_v61 = vmax.f32 %v5061_v5, %v5077_v26  ;;  %v12161_v1 = vld [vmem:[#allocation68_spill] sm:$0xff]  ;;  %v12162_v30 = vld [vmem:[#allocation31_spill] sm:$0xff] }
 0x3fe   : > { %v4474_v16 = vpop.f32.mrf.mxu1  ;;  %v4135_v0 = vadd.f32 %v12162_v30, %v3683_v57 }
 0x3ff   : > { %v5007_v58 = vadd.f32 %v11048_v6, %v4969_v12  ;;  %v4551_v49 = vadd.f32 %v4474_v16, %v4132_v34  ;;  %v12163_v12 = vld [vmem:[#allocation30_spill] sm:$0xff] }
 0x400   : > { %v4476_v28 = vpop.f32.mrf.mxu1  ;;  %v3691_v34 = vadd.f32 %v12164_v45, %v12163_v12 }
 0x401   : > { %5039 = vst.msk [vmem:[#allocation5 + $0x80] sm:$0xff] %vm386_vm3, %v5007_v58  ;;  %v4970_v25 = vadd.f32 %v12153_v51, %v4551_v49  ;;  %5259 = vrot.lane.b32.xlu0 %v5249_v41, %s9294_s14  ;;  %v12165_v58 = vld [vmem:[#allocation33_spill] sm:$0xff]  ;;  %v12166_v28 = vld [vmem:[#allocation32_spill] sm:$0xff]  ;;  %v12167_v51 = vld [vmem:[#allocation67_spill] sm:$0xff] }
 0x402   : > { %v4479_v36 = vpop.f32.mrf.mxu1  ;;  %v11254_v23 = vld [vmem:[#allocation3 + $0x48] sm:$0xff]  ;;  %v4136_v49 = vadd.f32 %v12165_v58, %v3686_v37 }
 0x403   : > { %v5008_v27 = vadd.f32 %v11048_v6, %v4970_v25  ;;  %v4552_v59 = vadd.f32 %v4479_v36, %v4133_v54  ;;  %v11259_v42 = vpack.c.bf16 %v11254_v23, %v11252_v10  ;;  %v3694_v25 = vadd.f32 %v12167_v51, %v12166_v28  ;;  %v12168_v54 = vld [vmem:[#allocation71_spill] sm:$0xff]  ;;  %v12178_v58 = vld [vmem:[#allocation38_spill] sm:$0xff] }
 0x404   : > { %v4481_v2 = vpop.f32.mrf.mxu1  ;;  %v5101_v55 = vld [vmem:[#allocation5 + $0x70] ss:$2 sm:$0xff]  ;;  %v5117_v29 = vld [vmem:[#allocation5 + $0x71] ss:$2 sm:$0xff] }
 0x405   : > { %5040 = vst.msk [vmem:[#allocation5 + $0x88] sm:$0xff] %vm386_vm3, %v5008_v27  ;;  %v4971_v17 = vadd.f32 %v12158_v62, %v4552_v59  ;;  %8194 = vmatprep.mubr.msk.bf16.mxu0 %vm386_vm3, %v11259_v42  ;;  %v5129_v47 = vmax.f32 %v5101_v55, %v5117_v29  ;;  %v4138_v52 = vadd.f32 %v12170_v33, %v3694_v25 }
 0x406   : > { %v4482_v15 = vpop.f32.mrf.mxu1 }
 0x407   : > { %v5009_v56 = vadd.f32 %v11048_v6, %v4971_v17  ;;  %v4553_v21 = vadd.f32 %v4482_v15, %v4134_v3  ;;  %v5137_v40 = vmax.f32 %v5089_v61, %v5129_v47  ;;  %v12171_v17 = vld [vmem:[#allocation34_spill] sm:$0xff]  ;;  %v12172_v61 = vld [vmem:[#allocation69_spill] sm:$0xff] }
 0x408   : > { %v4484_v13 = vpop.f32.mrf.mxu1  ;;  %v3699_v47 = vadd.f32 %v12172_v61, %v12171_v17  ;;  %v12173_v15 = vld [vmem:[#allocation73_spill] sm:$0xff] }
 0x409   : > { %5041 = vst.msk [vmem:[#allocation5 + $0x90] sm:$0xff] %vm386_vm3, %v5009_v56  ;;  %v4972_v60 = vadd.f32 %v12161_v1, %v4553_v21  ;;  %v5290_v48 = vrot.slane %v5137_v40, 2  ;;  %5221 = vrot.lane.b32.xlu1 %v5137_v40, %s9292_s22  ;;  %v5153_v18 = vrot.slane %v5137_v40, 6  ;;  %v5178_v35 = vrot.slane %v5137_v40, 7  ;;  %v12186_v61 = vld [vmem:[#allocation45_spill] sm:$0xff] }
 0x40a   : > { %v4487_v46 = vpop.f32.mrf.mxu1  ;;  %v5250_v38 = vrot.slane %v5137_v40, 1 }
 0x40b   : > { %v5010_v44 = vadd.f32 %v11048_v6, %v4972_v60  ;;  %5306 = vst.msk [vmem:[#allocation3 + $0x58] sm:$0x3f] %vm2925_vm4, %v5290_v48  ;;  %v4554_v24 = vadd.f32 %v4487_v46, %v4135_v0  ;;  %v12174_v60 = vld [vmem:[#allocation36_spill] sm:$0xff]  ;;  %v12175_v48 = vld [vmem:[#allocation70_spill] sm:$0xff]  ;;  %v12176_v0 = vld [vmem:[#allocation75_spill] sm:$0xff] }
 0x40c   : > { %v4489_v50 = vpop.f32.mrf.mxu1  ;;  %5170 = vst.msk [vmem:[#allocation3 + $0x50] sm:$0xfc] %vm2324_vm5, %v5153_v18  ;;  %v5063_v27 = vld [vmem:[#allocation5 + $0x80] ss:$2 sm:$0xff]  ;;  %v5079_v59 = vld [vmem:[#allocation5 + $0x81] ss:$2 sm:$0xff]  ;;  %v3702_v30 = vadd.f32 %v12175_v48, %v12174_v60 }
 0x40d   : > { %5042 = vst.msk [vmem:[#allocation5 + $0x98] sm:$0xff] %vm386_vm3, %v5010_v44  ;;  %v4973_v16 = vadd.f32 %v11000_v22, %v4554_v24  ;;  %5189 = vrot.lane.b32.xlu1 %v5178_v35, %s9293_s30  ;;  %v12169_v22 = vld [vmem:[#allocation35_spill] sm:$0xff]  ;;  %v5090_v21 = vmax.f32 %v5063_v27, %v5079_v59 }
 0x40e   : > { %v4490_v41 = vpop.f32.mrf.mxu1  ;;  %v4137_v5 = vadd.f32 %v12169_v22, %v3691_v34  ;;  %v12177_v44 = vld [vmem:[#allocation39_spill] sm:$0xff]  ;;  %v12183_v22 = vld [vmem:[#allocation74_spill] sm:$0xff] }
 0x40f   : > { %v5011_v20 = vadd.f32 %v11048_v6, %v4973_v16  ;;  %v4555_v11 = vadd.f32 %v4490_v41, %v4136_v49  ;;  %v4139_v24 = vadd.f32 %v12177_v44, %v3699_v47  ;;  %v12179_v49 = vld [vmem:[#allocation72_spill] sm:$0xff]  ;;  %v12184_v27 = vld [vmem:[#allocation79_spill] sm:$0xff]  ;;  %v12191_v44 = vld [vmem:[#allocation78_spill] sm:$0xff] }
 0x410   : > { %v4492_v39 = vpop.f32.mrf.mxu1  ;;  %v3707_v41 = vadd.f32 %v12179_v49, %v12178_v58 }
 0x411   : > { %5043 = vst.msk [vmem:[#allocation5 + $0xa0] sm:$0xff] %vm386_vm3, %v5011_v20  ;;  %v4974_v36 = vadd.f32 %v12168_v54, %v4555_v11  ;;  %5261 = vrot.lane.b32.xlu1 %v5250_v38, %s9294_s14  ;;  %v12180_v20 = vld [vmem:[#allocation77_spill] sm:$0xff] }
 0x412   : > { %v4495_v26 = vpop.f32.mrf.mxu1  ;;  %v11291_v2 = vld [vmem:[#allocation3 + $0x58] sm:$0xff]  ;;  %v12181_v38 = vld [vmem:[#allocation41_spill] sm:$0xff] }
 0x413   : > { %v5012_v63 = vadd.f32 %v11048_v6, %v4974_v36  ;;  %v4556_v3 = vadd.f32 %v4495_v26, %v4137_v5  ;;  %v5332_v55 = vpack.c.bf16 %v11291_v2, %v11254_v23  ;;  %v4140_v28 = vadd.f32 %v12181_v38, %v3702_v30  ;;  %v12182_v36 = vld [vmem:[#allocation40_spill] sm:$0xff] }
 0x414   : > { %v4497_v29 = vpop.f32.mrf.mxu1  ;;  %v5103_v57 = vld [vmem:[#allocation5 + $0x90] ss:$2 sm:$0xff]  ;;  %v5119_v62 = vld [vmem:[#allocation5 + $0x91] ss:$2 sm:$0xff]  ;;  %v3710_v5 = vadd.f32 %v12183_v22, %v12182_v36 }
 0x415   : > { %5044 = vst.msk [vmem:[#allocation5 + $0xa8] sm:$0xff] %vm386_vm3, %v5012_v63  ;;  %v4975_v56 = vadd.f32 %v12173_v15, %v4556_v3  ;;  %v5130_v40 = vmax.f32 %v5103_v57, %v5119_v62  ;;  %v12185_v63 = vld [vmem:[#allocation43_spill] sm:$0xff]  ;;  %v12194_v38 = vld [vmem:[#allocation80_spill] sm:$0xff] }
 0x416   : > { %v4498_v13 = vpop.f32.mrf.mxu1  ;;  %v4141_v3 = vadd.f32 %v12185_v63, %v3707_v41  ;;  %v4142_v47 = vadd.f32 %v12186_v61, %v3710_v5 }
 0x417   : > { %v5013_v9 = vadd.f32 %v11048_v6, %v4975_v56  ;;  %v4557_v43 = vadd.f32 %v4498_v13, %v4138_v52  ;;  %v5138_v37 = vmax.f32 %v5090_v21, %v5130_v40  ;;  %v12187_v21 = vld [vmem:[#allocation42_spill] sm:$0xff]  ;;  %v12188_v40 = vld [vmem:[#allocation76_spill] sm:$0xff] }
 0x418   : > { %v4500_v1 = vpop.f32.mrf.mxu1  ;;  %v3715_v13 = vadd.f32 %v12188_v40, %v12187_v21 }
 0x419   : > { %5045 = vst.msk [vmem:[#allocation5 + $0xb0] sm:$0xff] %vm386_vm3, %v5013_v9  ;;  %v4976_v46 = vadd.f32 %v12176_v0, %v4557_v43  ;;  %v5291_v18 = vrot.slane %v5138_v37, 2  ;;  %5223 = vrot.lane.b32.xlu0 %v5138_v37, %s9292_s22  ;;  %v5154_v50 = vrot.slane %v5138_v37, 6  ;;  %v5179_v34 = vrot.slane %v5138_v37, 7  ;;  %v12189_v9 = vld [vmem:[#allocation81_spill] sm:$0xff] }
 0x41a   : > { %v4503_v35 = vpop.f32.mrf.mxu1  ;;  %v5251_v54 = vrot.slane %v5138_v37, 1 }
 0x41b   : > { %v5014_v12 = vadd.f32 %v11048_v6, %v4976_v46  ;;  %5307 = vst.msk [vmem:[#allocation3 + $0x68] sm:$0x3f] %vm2925_vm4, %v5291_v18  ;;  %v4558_v45 = vadd.f32 %v4503_v35, %v4139_v24  ;;  %v12190_v18 = vld [vmem:[#allocation44_spill] sm:$0xff] }
 0x41c   : > { %v4505_v16 = vpop.f32.mrf.mxu1  ;;  %5171 = vst.msk [vmem:[#allocation3 + $0x60] sm:$0xfc] %vm2324_vm5, %v5154_v50  ;;  %v5065_v33 = vld [vmem:[#allocation5 + $0xa0] ss:$2 sm:$0xff]  ;;  %v5081_v52 = vld [vmem:[#allocation5 + $0xa1] ss:$2 sm:$0xff]  ;;  %v3718_v24 = vadd.f32 %v12191_v44, %v12190_v18 }
 0x41d   : > { %5046 = vst.msk [vmem:[#allocation5 + $0xb8] sm:$0xff] %vm386_vm3, %v5014_v12  ;;  %v4977_v11 = vadd.f32 %v12180_v20, %v4558_v45  ;;  %5191 = vrot.lane.b32.xlu0 %v5179_v34, %s9293_s30  ;;  %v5091_v37 = vmax.f32 %v5065_v33, %v5081_v52  ;;  %v12192_v12 = vld [vmem:[#allocation47_spill] sm:$0xff] }
 0x41e   : > { %v4506_v51 = vpop.f32.mrf.mxu1  ;;  %v4143_v45 = vadd.f32 %v12192_v12, %v3715_v13 }
 0x41f   : > { %v5015_v25 = vadd.f32 %v11048_v6, %v4977_v11  ;;  %v4559_v39 = vadd.f32 %v4506_v51, %v4140_v28  ;;  %v12193_v11 = vld [vmem:[#allocation46_spill] sm:$0xff]  ;;  %v12195_v51 = vld [vmem:[#allocation49_spill] sm:$0xff] }
 0x420   : > { %v4508_v26 = vpop.f32.mrf.mxu1  ;;  %v3723_v28 = vadd.f32 %v12194_v38, %v12193_v11  ;;  %v9123_v38 = vld [vmem:[%s12043_s5 + $0x38] sm:$0xff]  }
 0x421   : > { %5047 = vst.msk [vmem:[#allocation5 + $0xc0] sm:$0xff] %vm386_vm3, %v5015_v25  ;;  %v4978_v59 = vadd.f32 %v12184_v27, %v4559_v39  ;;  %5263 = vrot.lane.b32.xlu0 %v5251_v54, %s9294_s14  ;;  %v4144_v25 = vadd.f32 %v12195_v51, %v3718_v24  ;;  %v12196_v26 = vld [vmem:[#allocation48_spill] sm:$0xff]  ;;  %v9124_v51 = vld [vmem:[%s12043_s5 + $0x30] sm:$0xff]  }
 0x422   : > { %v4511_v29 = vpop.f32.mrf.mxu1  ;;  %v3726_v27 = vadd.f32 %v11036_v32, %v12196_v26 }
 0x423   : > { %v5016_v57 = vadd.f32 %v11048_v6, %v4978_v59  ;;  %v4560_v62 = vadd.f32 %v4511_v29, %v4141_v3 }
 0x424   : > { %v4513_v17 = vpop.f32.mrf.mxu1  ;;  %v5105_v15 = vld [vmem:[#allocation5 + $0xb0] ss:$2 sm:$0xff]  ;;  %v5121_v56 = vld [vmem:[#allocation5 + $0xb1] ss:$2 sm:$0xff] }
 0x425   : > { %5048 = vst.msk [vmem:[#allocation5 + $0xc8] sm:$0xff] %vm386_vm3, %v5016_v57  ;;  %v4979_v43 = vadd.f32 %v12189_v9, %v4560_v62  ;;  %v5131_v1 = vmax.f32 %v5105_v15, %v5121_v56 }
 0x426   : > { %v4514_v60 = vpop.f32.mrf.mxu1 }
 0x427   : > { %v5017_v48 = vadd.f32 %v11048_v6, %v4979_v43  ;;  %v4561_v30 = vadd.f32 %v4514_v60, %v4142_v47  ;;  %v5139_v0 = vmax.f32 %v5091_v37, %v5131_v1  ;;  %v12198_v47 = vld [vmem:[#allocation51_spill] sm:$0xff] }
 0x428   : > { %v4516_v46 = vpop.f32.mrf.mxu1  ;;  %v4146_v15 = vadd.f32 %v12198_v47, %v3726_v27  ;;  %v9128_v27 = vld [vmem:[%s12043_s5 + $0x10] sm:$0xff]  }
 0x429   : > { %5049 = vst.msk [vmem:[#allocation5 + $0xd0] sm:$0xff] %vm386_vm3, %v5017_v48  ;;  %v4980_v35 = vadd.f32 %v11038_v53, %v4561_v30  ;;  %v5292_v50 = vrot.slane %v5139_v0, 2  ;;  %5225 = vrot.lane.b32.xlu1 %v5139_v0, %s9292_s22  ;;  %v5155_v16 = vrot.slane %v5139_v0, 6  ;;  %v5180_v41 = vrot.slane %v5139_v0, 7 }
 0x42a   : > { %v4519_v34 = vpop.f32.mrf.mxu1  ;;  %v5252_v22 = vrot.slane %v5139_v0, 1 }
 0x42b   : > { %v5018_v58 = vadd.f32 %v11048_v6, %v4980_v35  ;;  %5308 = vst.msk [vmem:[#allocation3 + $0x78] sm:$0x3f] %vm2925_vm4, %v5292_v50  ;;  %v4562_v49 = vadd.f32 %v4519_v34, %v4143_v45 }
 0x42c   : > { %v4521_v20 = vpop.f32.mrf.mxu1  ;;  %5172 = vst.msk [vmem:[#allocation3 + $0x70] sm:$0xfc] %vm2324_vm5, %v5155_v16  ;;  %v5067_v29 = vld [vmem:[#allocation5 + $0xc0] ss:$2 sm:$0xff]  ;;  %v5083_v33 = vld [vmem:[#allocation5 + $0xc1] ss:$2 sm:$0xff] }
 0x42d   : > { %5050 = vst.msk [vmem:[#allocation5 + $0xd8] sm:$0xff] %vm386_vm3, %v5018_v58  ;;  %v4981_v53 = vadd.f32 %v11043_v31, %v4562_v49  ;;  %5193 = vrot.lane.b32.xlu1 %v5180_v41, %s9293_s30  ;;  %v12197_v31 = vld [vmem:[#allocation50_spill] sm:$0xff] }
 0x42e   : > { %v4522_v39 = vpop.f32.mrf.mxu1  ;;  %v4145_v63 = vadd.f32 %v12197_v31, %v3723_v28  ;;  %v9129_v31 = vld [vmem:[%s12043_s5 + $0x8] sm:$0xff]  }
 0x42f   : > { %v5019_v54 = vadd.f32 %v11048_v6, %v4981_v53  ;;  %v4563_v36 = vadd.f32 %v4522_v39, %v4144_v25  ;;  %v9125_v39 = vld [vmem:[%s12043_s5 + $0x28] sm:$0xff]  }
 0x430   : > { %v4524_v5 = vpop.f32.mrf.mxu1 }
 0x431   : > { %5051 = vst.msk [vmem:[#allocation5 + $0xe0] sm:$0xff] %vm386_vm3, %v5019_v54  ;;  %v4982_v59 = vadd.f32 %v11057_v14, %v4563_v36  ;;  %5265 = vrot.lane.b32.xlu1 %v5252_v22, %s9294_s14  ;;  %v5092_v14 = vmax.f32 %v5067_v29, %v5083_v33  ;;  %v9126_v54 = vld [vmem:[%s12043_s5 + $0x20] sm:$0xff]   ;;  %v9127_v36 = vld [vmem:[%s12043_s5 + $0x18] sm:$0xff]   ;;  %v9131_v29 = vld [vmem:[%s12043_s5 + $0x48] sm:$0xff]  }
 0x432   : > { %v4527_v3 = vpop.f32.mrf.mxu1  ;;  %v11428_v33 = vld [vmem:[#allocation3 + $0x68] sm:$0xff] }
 0x433   : > { %v5020_v52 = vadd.f32 %v11048_v6, %v4982_v59  ;;  %v4564_v57 = vadd.f32 %v4527_v3, %v4145_v63  ;;  %v9130_v3 = vld [vmem:[%s12043_s5] sm:$0xff]  }
 0x434   : > { %v4529_v62 = vpop.f32.mrf.mxu1  ;;  %v5107_v17 = vld [vmem:[#allocation5 + $0xd0] ss:$2 sm:$0xff]  ;;  %v5123_v61 = vld [vmem:[#allocation5 + $0xd1] ss:$2 sm:$0xff] }
 0x435   : > { %5052 = vst.msk [vmem:[#allocation5 + $0xe8] sm:$0xff] %vm386_vm3, %v5020_v52  ;;  %v4983_v32 = vadd.f32 %v11069_v19, %v4564_v57  ;;  %v5132_v56 = vmax.f32 %v5107_v17, %v5123_v61  ;;  %v5377_v17 = vpack.c.bf16 %v11428_v33, %v11291_v2  ;;  %v9132_v61 = vld [vmem:[%s12043_s5 + $0x40] sm:$0xff]  }
 0x436   : > { %v4530_v21 = vpop.f32.mrf.mxu1 }
 0x437   : > { %v5021_v40 = vadd.f32 %v11048_v6, %v4983_v32  ;;  %v4565_v13 = vadd.f32 %v4530_v21, %v4146_v15  ;;  %v5140_v9 = vmax.f32 %v5092_v14, %v5132_v56 }
 0x438   : > { %v4532_v43 = vpop.f32.mrf.mxu1 }
 0x439   : > { %5053 = vst.msk [vmem:[#allocation5 + $0xf0] sm:$0xff] %vm386_vm3, %v5021_v40  ;;  %v4984_v37 = vadd.f32 %v11081_v7, %v4565_v13  ;;  %v5293_v1 = vrot.slane %v5140_v9, 2  ;;  %5227 = vrot.lane.b32.xlu0 %v5140_v9, %s9292_s22  ;;  %v5156_v60 = vrot.slane %v5140_v9, 6  ;;  %v5181_v48 = vrot.slane %v5140_v9, 7  ;;  %v5369_v43 = vld [vmem:[#allocation3 + $0x78] sm:$0xff] }
 0x43a   : > { %v5253_v30 = vrot.slane %v5140_v9, 1  ;;  %v11512_v23 = vpack.c.bf16 %v5369_v43, %v11428_v33  ;;  %v9150_v33 = vld [vmem:[%s12043_s5 + $0x140] sm:$0xff]  }
 0x43b   : > { %v5022_v19 = vadd.f32 %v11048_v6, %v4984_v37  ;;  %5309 = vst.msk [vmem:[#allocation3 + $0x88] sm:$0x3f] %vm2925_vm4, %v5293_v1 }
 0x43c   : > { %5173 = vst.msk [vmem:[#allocation3 + $0x80] sm:$0xfc] %vm2324_vm5, %v5156_v60  ;;  %v5069_v0 = vld [vmem:[#allocation5 + $0xe0] ss:$2 sm:$0xff]  ;;  %v5085_v7 = vld [vmem:[#allocation5 + $0xe1] ss:$2 sm:$0xff] }
 0x43d   : > { %5054 = vst.msk [vmem:[#allocation5 + $0xf8] sm:$0xff] %vm386_vm3, %v5022_v19  ;;  %5195 = vrot.lane.b32.xlu0 %v5181_v48, %s9293_s30  ;;  %v5093_v44 = vmax.f32 %v5069_v0, %v5085_v7  ;;  %v5312_v0 = vld [vmem:[#allocation3 + $0x8] sm:$0xff]  ;;  %v5314_v7 = vld [vmem:[#allocation3 + $0x18] sm:$0xff] }
 0x441   : > { %5267 = vrot.lane.b32.xlu0 %v5253_v30, %s9294_s14 }
 0x442   : > { %v11375_v49 = vld [vmem:[#allocation3 + $0x88] sm:$0xff] }
 0x443   : > { %v5379_v37 = vpack.c.bf16 %v11375_v49, %v5369_v43  ;;  %v9153_v43 = vld [vmem:[%s12045_s7 + $0x38] sm:$0xff]  }
 0x444   : > { %v5109_v46 = vld [vmem:[#allocation5 + $0xf0] ss:$2 sm:$0xff]  ;;  %v5125_v18 = vld [vmem:[#allocation5 + $0xf1] ss:$2 sm:$0xff] }
 0x445   : > { %v5133_v24 = vmax.f32 %v5109_v46, %v5125_v18  ;;  %v11461_v46 = vld [vmem:[#allocation3 + $0xa8] sm:$0xff] }
 0x447   : > { %v5141_v35 = vmax.f32 %v5093_v44, %v5133_v24  ;;  %v5328_v24 = vpack.c.bf16 %v5314_v7, %v5312_v0  ;;  %v9154_v0 = vld [vmem:[%s12045_s7 + $0x18] sm:$0xff]  }
 0x449   : > { %v5294_v6 = vrot.slane %v5141_v35, 2  ;;  %5229 = vrot.lane.b32.xlu0 %v5141_v35, %s9292_s22  ;;  %v5182_v50 = vrot.slane %v5141_v35, 7  ;;  %v5157_v12 = vrot.slane %v5141_v35, 6  ;;  %v5254_v34 = vrot.slane %v5141_v35, 1  ;;  %s377_s22 = sand.u32 1, %s9278_s18  }
 0x44a   : > { %s378_s16 = scalar_lea.vmem [#allocation8], %s377_s22  ;;  %s7664_s29 = scalar_lea.sflag [#allocation9], %s377_s22 }
 0x44b   : > { %5310 = vst.msk [vmem:[#allocation3 + $0x98] sm:$0x3f] %vm2925_vm4, %v5294_v6  ;;  %5197 = vrot.lane.b32.xlu1 %v5182_v50, %s9293_s30  ;;  %v5216_v16 = vpop.permute.xlu1 %5215  ;;  %s7676_s24 = sshll.u32 %s378_s16, 4  ;;  %s9296_s30 = smov [#allocation8]   ;;  %s11999_s24 = int_to_ptr.vmem [resolvable:$true] %s7676_s24 }
 0x44c   : > { %5174 = vst.msk [vmem:[#allocation3 + $0x90] sm:$0xfc] %vm2324_vm5, %v5157_v12  ;;  %s9226_s21 = scalar_lea.vmem %s11999_s24, 16 }
 0x44d   : > { %v5184_v45 = vpop.permute.xlu0 %5183  ;;  %p9227_p11 = scmp.ne.s32.totalorder %s11999_s24, %s9226_s21 }
 0x44e   : > { %5207 = vst.msk [vmem:[#allocation3 + $0x20] sm:$0xfe] %vm2502_vm9, %v5184_v45 }
 0x44f   : > { %5239 = vst.msk [vmem:[#allocation3 + $0x20] sm:$0xff] %vm2632_vm10, %v5216_v16  ;;  %5269 = vrot.lane.b32.xlu1 %v5254_v34, %s9294_s14  ;;  %v11475_v34 = vpack.c.bf16 %v11236_v8, %v11236_v8  ;;  %v9133_v16 = vld [vmem:[%s12043_s5 + $0xd8] sm:$0xff]   ;;  %p9228_p12 = pnand %p9227_p11, %p9395_p5  ;;  %s9230_s14 = sshll.u32 %s9296_s30, 4  ;;  %s9231_s14 = int_to_ptr.vmem [resolvable:$false] %s9230_s14 }
 0x450   : > { %s9232_s25 = scalar_lea.vmem %s9231_s14, 32  ;;  %p9233_p0 = scmp.lt.s32.totalorder %s11999_s24, %s9231_s14 }
 0x451   : > { %v5256_v58 = vpop.permute.xlu0 %5255  ;;  %p9229_p13 = pneg %p9228_p12  ;;  %p9234_p1 = scmp.lt.s32.totalorder %s9232_s25, %s9226_s21 }
 0x452   : > { %5279 = vst.msk [vmem:[#allocation3 + $0x20] sm:$0x7f] %vm2812_vm12, %v5256_v58  ;;  %v11377_v41 = vld [vmem:[#allocation3 + $0x98] sm:$0xff]  ;;  %v5316_v58 = vld [vmem:[#allocation3 + $0x28] sm:$0xff] }
 0x453   : > { %v11381_v20 = vpack.c.bf16 %v11377_v41, %v11375_v49  ;;  %v5889_v50 = vpack.c.bf16 %v11461_v46, %v11377_v41  ;;  %v5330_v49 = vpack.c.bf16 %v11252_v10, %v5316_v58  ;;  %v9134_v41 = vld [vmem:[%s12043_s5 + $0xd0] sm:$0xff]   ;;  %v9135_v10 = vld [vmem:[%s12043_s5 + $0xc8] sm:$0xff]   ;;  %p9235_p2 = por %p9234_p1, %p9233_p0 }
 0x455   : > { %p9236_p3 = pnand %p9235_p2, %p9229_p13 }
 0x459   : > { %v5358_v11 = vld [vmem:[#allocation3 + $0x20] sm:$0xff] }
 0x45a   : > { %v5372_v28 = vpack.c.bf16 %v5358_v11, %v11236_v8 }
 0x45b   : > { %v5218_v53 = vpop.permute.xlu1 %5217 }
 0x45c   : > { %5506 = vmatmul.mubr.bf16.vlgmr.msra.gmra.mxu1 %v5372_v28  ;;  %v9136_v28 = vld [vmem:[%s12043_s5 + $0xc0] sm:$0xff]  }
 0x45d   : > { %8113 = vmatprep.mubr.msk.bf16.mxu1 %vm386_vm3, %v11259_v42  ;;  %5611 = vmatpush1.bf16.msra.mxu1 %v9123_v38 }
 0x45e   : > { %5612 = vmatprep.subr.bf16.mxu1 %v12121_v4 }
 0x45f   : > { %v5186_v25 = vpop.permute.xlu1 %5185 }
 0x460   : > { %5208 = vst.msk [vmem:[#allocation3 + $0x30] sm:$0xfe] %vm2502_vm9, %v5186_v25  ;;  %v9139_v25 = vld [vmem:[%s12043_s5 + $0xa8] sm:$0xff]  }
 0x461   : > { %5240 = vst.msk [vmem:[#allocation3 + $0x30] sm:$0xff] %vm2632_vm10, %v5218_v53  ;;  %5613 = vmatpush1.bf16.msra.mxu1 %v9124_v51  ;;  %v9137_v53 = vld [vmem:[%s12043_s5 + $0xb8] sm:$0xff]  }
 0x462   : > { %5614 = vmatprep.subr.bf16.mxu1 %v12121_v4 }
 0x463   : > { %v5258_v42 = vpop.permute.xlu1 %5257 }
 0x464   : > { %5280 = vst.msk [vmem:[#allocation3 + $0x30] sm:$0x7f] %vm2812_vm12, %v5258_v42  ;;  %v9140_v42 = vld [vmem:[%s12043_s5 + $0xa0] sm:$0xff]  }
 0x465   : > { %5615 = vmatpush1.bf16.msra.mxu1 %v9125_v39 }
 0x466   : > { %5616 = vmatprep.subr.bf16.mxu1 %v12121_v4 }
 0x469   : > { %5617 = vmatpush1.bf16.msra.mxu1 %v9126_v54  ;;  %v9141_v54 = vld [vmem:[%s12043_s5 + $0xe8] sm:$0xff]  }
 0x46a   : > { %5618 = vmatprep.subr.bf16.mxu1 %v12121_v4 }
 0x46b   : > { %v5220_v22 = vpop.permute.xlu0 %5219  ;;  %v5360_v5 = vld [vmem:[#allocation3 + $0x30] sm:$0xff] }
 0x46c   : > { %v11408_v26 = vpack.c.bf16 %v5360_v5, %v5358_v11 }
 0x46d   : > { %5619 = vmatpush1.bf16.msra.mxu1 %v9127_v36  ;;  %v9142_v36 = vld [vmem:[%s12043_s5 + $0xe0] sm:$0xff]  }
 0x46e   : > { %5620 = vmatprep.subr.bf16.mxu1 %v12121_v4 }
 0x46f   : > { %v5188_v59 = vpop.permute.xlu0 %5187 }
 0x470   : > { %5209 = vst.msk [vmem:[#allocation3 + $0x40] sm:$0xfe] %vm2502_vm9, %v5188_v59  ;;  %v9144_v59 = vld [vmem:[%s12043_s5 + $0x170] sm:$0xff]  }
 0x471   : > { %5241 = vst.msk [vmem:[#allocation3 + $0x40] sm:$0xff] %vm2632_vm10, %v5220_v22  ;;  %5621 = vmatpush1.bf16.msra.mxu1 %v9128_v27  ;;  %v9143_v22 = vld [vmem:[%s12043_s5 + $0x178] sm:$0xff]  }
 0x472   : > { %5622 = vmatprep.subr.bf16.mxu1 %v12121_v4 }
 0x473   : > { %v5260_v63 = vpop.permute.xlu0 %5259 }
 0x474   : > { %5281 = vst.msk [vmem:[#allocation3 + $0x40] sm:$0x7f] %vm2812_vm12, %v5260_v63  ;;  %v9148_v63 = vld [vmem:[%s12043_s5 + $0x150] sm:$0xff]  }
 0x475   : > { %5623 = vmatpush1.bf16.msra.mxu1 %v9129_v31  ;;  %v9145_v31 = vld [vmem:[%s12043_s5 + $0x168] sm:$0xff]  }
 0x476   : > { %5624 = vmatprep.subr.bf16.mxu1 %v12121_v4 }
 0x479   : > { %5625 = vmatpush1.bf16.msra.mxu1 %v9130_v3  ;;  %v9149_v3 = vld [vmem:[%s12043_s5 + $0x148] sm:$0xff]  }
 0x47a   : > { %5638 = vmatprep.subr.bf16.mxu1 %v12121_v4 }
 0x47b   : > { %v5222_v52 = vpop.permute.xlu1 %5221  ;;  %v11431_v57 = vld [vmem:[#allocation3 + $0x40] sm:$0xff] }
 0x47c   : > { %v5374_v62 = vpack.c.bf16 %v11431_v57, %v5360_v5  ;;  %v5680_v5 = vld [vmem:[#allocation3 + $0x48] sm:$0xff] }
 0x47d   : > { %5639 = vmatpush2.bf16.msra.mxu1 %v9131_v29  ;;  %v5694_v27 = vpack.c.bf16 %v11291_v2, %v5680_v5  ;;  %v9146_v2 = vld [vmem:[%s12043_s5 + $0x160] sm:$0xff]  }
 0x47e   : > { %5514 = vmatmul.mubr.bf16.gmra.mxu1 %v5374_v62  ;;  %6016 = vmatmul.mubr.bf16.vlgmr.msra.gmra.mxu0 %v5374_v62 }
 0x47f   : > { %v5190_v32 = vpop.permute.xlu1 %5189  ;;  %8114 = vmatprep.mubr.msk.bf16.mxu1 %vm386_vm3, %v5377_v17  ;;  %8195 = vmatprep.mubr.msk.bf16.mxu0 %vm386_vm3, %v5377_v17 }
 0x480   : > { %5210 = vst.msk [vmem:[#allocation3 + $0x50] sm:$0xfe] %vm2502_vm9, %v5190_v32  ;;  %5640 = vmatprep.subr.bf16.mxu1 %v12121_v4  ;;  %v6072_v32 = vld [vmem:[#allocation3 + $0xb8] sm:$0xff]  ;;  %8735 = vmatpush3.bf16.msra.mxu0 %v9153_v43 }
 0x481   : > { %5242 = vst.msk [vmem:[#allocation3 + $0x50] sm:$0xff] %vm2632_vm10, %v5222_v52  ;;  %5641 = vmatpush2.bf16.msra.mxu1 %v9132_v61  ;;  %v9151_v52 = vld [vmem:[%s12043_s5 + $0x188] sm:$0xff]   ;;  %8736 = vmatprep.subr.bf16.mxu0 %v11236_v8 }
 0x482   : > { %5792 = vmatprep.subr.bf16.mxu1 %v12121_v4 }
 0x483   : > { %v5262_v47 = vpop.permute.xlu1 %5261 }
 0x484   : > { %5282 = vst.msk [vmem:[#allocation3 + $0x50] sm:$0x7f] %vm2812_vm12, %v5262_v47 }
 0x48b   : > { %v5224_v15 = vpop.permute.xlu0 %5223  ;;  %v5364_v40 = vld [vmem:[#allocation3 + $0x50] sm:$0xff] }
 0x48c   : > { %v11509_v51 = vpack.c.bf16 %v5364_v40, %v11431_v57  ;;  %v9152_v57 = vld [vmem:[%s12043_s5 + $0x180] sm:$0xff]  }
 0x48f   : > { %v5192_v14 = vpop.permute.xlu0 %5191 }
 0x490   : > { %5211 = vst.msk [vmem:[#allocation3 + $0x60] sm:$0xfe] %vm2502_vm9, %v5192_v14 }
 0x491   : > { %5243 = vst.msk [vmem:[#allocation3 + $0x60] sm:$0xff] %vm2632_vm10, %v5224_v15 }
 0x493   : > { %v5264_v56 = vpop.permute.xlu0 %5263 }
 0x494   : > { %5283 = vst.msk [vmem:[#allocation3 + $0x60] sm:$0x7f] %vm2812_vm12, %v5264_v56 }
 0x49b   : > { %v5226_v21 = vpop.permute.xlu1 %5225  ;;  %v11449_v13 = vld [vmem:[#allocation3 + $0x60] sm:$0xff] }
 0x49c   : > { %v5376_v9 = vpack.c.bf16 %v11449_v13, %v5364_v40 }
 0x49e   : > { %5522 = vmatmul.mubr.bf16.gmra.mxu1 %v5376_v9  ;;  %6024 = vmatmul.mubr.bf16.gmra.mxu0 %v5376_v9 }
 0x49f   : > { %v5194_v1 = vpop.permute.xlu1 %5193  ;;  %8115 = vmatprep.mubr.msk.bf16.mxu1 %vm386_vm3, %v5379_v37  ;;  %8196 = vmatprep.mubr.msk.bf16.mxu0 %vm386_vm3, %v5379_v37 }
 0x4a0   : > { %5212 = vst.msk [vmem:[#allocation3 + $0x70] sm:$0xfe] %vm2502_vm9, %v5194_v1 }
 0x4a1   : > { %5244 = vst.msk [vmem:[#allocation3 + $0x70] sm:$0xff] %vm2632_vm10, %v5226_v21 }
 0x4a3   : > { %v5266_v60 = vpop.permute.xlu1 %5265 }
 0x4a4   : > { %5284 = vst.msk [vmem:[#allocation3 + $0x70] sm:$0x7f] %vm2812_vm12, %v5266_v60 }
 0x4ab   : > { %v5228_v19 = vpop.permute.xlu0 %5227  ;;  %v5368_v18 = vld [vmem:[#allocation3 + $0x70] sm:$0xff] }
 0x4ac   : > { %v5333_v39 = vpack.c.bf16 %v5368_v18, %v11449_v13 }
 0x4af   : > { %v5196_v48 = vpop.permute.xlu0 %5195 }
 0x4b0   : > { %5213 = vst.msk [vmem:[#allocation3 + $0x80] sm:$0xfe] %vm2502_vm9, %v5196_v48 }
 0x4b1   : > { %5245 = vst.msk [vmem:[#allocation3 + $0x80] sm:$0xff] %vm2632_vm10, %v5228_v19 }
 0x4b3   : > { %v5268_v30 = vpop.permute.xlu0 %5267 }
 0x4b4   : > { %5285 = vst.msk [vmem:[#allocation3 + $0x80] sm:$0x7f] %vm2812_vm12, %v5268_v30 }
 0x4bb   : > { %v11463_v44 = vld [vmem:[#allocation3 + $0x80] sm:$0xff]  ;;  %v5230_v12 = vpop.permute.xlu0 %5229 }
 0x4bc   : > { %v5378_v35 = vpack.c.bf16 %v11463_v44, %v5368_v18  ;;  %v9155_v18 = vld [vmem:[%s12045_s7 + $0x30] sm:$0xff]  }
 0x4bd   : > { %v5198_v6 = vpop.permute.xlu1 %5197  ;;  %8737 = vmatpush3.bf16.msra.mxu0 %v9155_v18 }
 0x4be   : > { %5214 = vst.msk [vmem:[#allocation3 + $0x90] sm:$0xfe] %vm2502_vm9, %v5198_v6  ;;  %5530 = vmatmul.mubr.bf16.gmra.mxu1 %v5378_v35  ;;  %6032 = vmatmul.mubr.bf16.gmra.mxu0 %v5378_v35  ;;  %v9158_v35 = vld [vmem:[%s12045_s7 + $0x8] sm:$0xff]   ;;  %v9159_v6 = vld [vmem:[%s12045_s7 + $0x20] sm:$0xff]  }
 0x4bf   : > { %5246 = vst.msk [vmem:[#allocation3 + $0x90] sm:$0xff] %vm2632_vm10, %v5230_v12  ;;  %8197 = vmatprep.mubr.msk.bf16.mxu0 %vm386_vm3, %v5889_v50  ;;  %8126 = vmatprep.mubr.msk.bf16.mxu1 %vm386_vm3, %v5328_v24  ;;  %v9157_v24 = vld [vmem:[%s12045_s7 + $0x28] sm:$0xff]   ;;  %v9160_v50 = vld [vmem:[%s12045_s7] sm:$0xff]  }
 0x4c0   : > { %8738 = vmatprep.subr.bf16.mxu0 %v11236_v8 }
 0x4c1   : > { %v5270_v45 = vpop.permute.xlu1 %5269  ;;  %8739 = vmatpush3.bf16.msra.mxu0 %v9157_v24 }
 0x4c2   : > { %5286 = vst.msk [vmem:[#allocation3 + $0x90] sm:$0x7f] %vm2812_vm12, %v5270_v45  ;;  %8740 = vmatprep.subr.bf16.mxu0 %v11236_v8 }
 0x4c5   : > { %8741 = vmatpush3.bf16.msra.mxu0 %v9159_v6 }
 0x4c6   : > { %5643 = vmatmul.mubr.bf16.vlgmr.msra.gmra.mxu1 %v11475_v34  ;;  %8758 = vmatprep.subr.bf16.mxu0 %v11236_v8 }
 0x4c7   : > { %5793 = vmatpush1.bf16.msra.mxu1 %v9133_v16  ;;  %8127 = vmatprep.mubr.msk.bf16.mxu1 %vm386_vm3, %v5330_v49 }
 0x4c8   : > { %5794 = vmatprep.subr.bf16.mxu1 %v12121_v4 }
 0x4c9   : > { %v11487_v11 = vld [vmem:[#allocation3 + $0x90] sm:$0xff] }
 0x4ca   : > { %v5888_v38 = vpack.c.bf16 %v11236_v8, %v11487_v11  ;;  %v5697_v29 = vpack.c.bf16 %v11487_v11, %v11463_v44  ;;  %v9156_v44 = vld [vmem:[%s12045_s7 + $0x10] sm:$0xff]  }
 0x4cb   : > { %5795 = vmatpush1.bf16.msra.mxu1 %v9134_v41 }
 0x4cc   : > { %6040 = vmatmul.mubr.bf16.gmra.mxu0 %v5888_v38  ;;  %5796 = vmatprep.subr.bf16.mxu1 %v12121_v4 }
 0x4cd   : > { %8742 = vmatprep.mubr.msk.bf16.mxu0 %vm9295_vm14, %v11236_v8 }
 0x4ce   : > { %5651 = vmatmul.mubr.bf16.gmra.mxu1 %v11408_v26 }
 0x4cf   : > { %5797 = vmatpush1.bf16.msra.mxu1 %v9135_v10  ;;  %8128 = vmatprep.mubr.msk.bf16.mxu1 %vm386_vm3, %v5332_v55  ;;  %v9138_v55 = vld [vmem:[%s12043_s5 + $0xb0] sm:$0xff]  }
 0x4d0   : > { %5798 = vmatprep.subr.bf16.mxu1 %v12121_v4 }
 0x4d3   : > { %5799 = vmatpush1.bf16.msra.mxu1 %v9136_v28 }
 0x4d4   : > { %5800 = vmatprep.subr.bf16.mxu1 %v12121_v4 }
 0x4d6   : > { %5659 = vmatmul.mubr.bf16.gmra.mxu1 %v11509_v51 }
 0x4d7   : > { %5801 = vmatpush1.bf16.msra.mxu1 %v9137_v53  ;;  %8129 = vmatprep.mubr.msk.bf16.mxu1 %vm386_vm3, %v11512_v23 }
 0x4d8   : > { %5802 = vmatprep.subr.bf16.mxu1 %v12121_v4 }
 0x4db   : > { %5803 = vmatpush1.bf16.msra.mxu1 %v9138_v55 }
 0x4dc   : > { %5804 = vmatprep.subr.bf16.mxu1 %v12121_v4 }
 0x4de   : > { %5667 = vmatmul.mubr.bf16.gmra.mxu1 %v5333_v39 }
 0x4df   : > { %5805 = vmatpush1.bf16.msra.mxu1 %v9139_v25  ;;  %8160 = vmatprep.mubr.msk.bf16.mxu1 %vm386_vm3, %v5330_v49 }
 0x4e0   : > { %5806 = vmatprep.subr.bf16.mxu1 %v12121_v4 }
 0x4e3   : > { %5807 = vmatpush1.bf16.msra.mxu1 %v9140_v42 }
 0x4e4   : > { %5820 = vmatprep.subr.bf16.mxu1 %v12121_v4 }
 0x4e7   : > { %5821 = vmatpush2.bf16.msra.mxu1 %v9141_v54 }
 0x4e8   : > { %5822 = vmatprep.subr.bf16.mxu1 %v12121_v4 }
 0x4eb   : > { %5823 = vmatpush2.bf16.msra.mxu1 %v9142_v36 }
 0x4ec   : > { %6174 = vmatprep.subr.bf16.mxu1 %v12121_v4 }
 0x4ee   : > { %5825 = vmatmul.mubr.bf16.vlgmr.msra.gmra.mxu1 %v11408_v26  ;;  %v9147_v26 = vld [vmem:[%s12043_s5 + $0x158] sm:$0xff]  }
 0x4ef   : > { %8161 = vmatprep.mubr.msk.bf16.mxu1 %vm386_vm3, %v5694_v27  ;;  %6175 = vmatpush1.bf16.msra.mxu1 %v9143_v22 }
 0x4f0   : > { %6176 = vmatprep.subr.bf16.mxu1 %v12121_v4 }
 0x4f3   : > { %6177 = vmatpush1.bf16.msra.mxu1 %v9144_v59 }
 0x4f4   : > { %6178 = vmatprep.subr.bf16.mxu1 %v12121_v4 }
 0x4f6   : > { %5833 = vmatmul.mubr.bf16.gmra.mxu1 %v11509_v51 }
 0x4f7   : > { %8162 = vmatprep.mubr.msk.bf16.mxu1 %vm386_vm3, %v11512_v23  ;;  %6179 = vmatpush1.bf16.msra.mxu1 %v9145_v31 }
 0x4f8   : > { %6180 = vmatprep.subr.bf16.mxu1 %v12121_v4 }
 0x4fb   : > { %6181 = vmatpush1.bf16.msra.mxu1 %v9146_v2 }
 0x4fc   : > { %6182 = vmatprep.subr.bf16.mxu1 %v12121_v4 }
 0x4fe   : > { %5841 = vmatmul.mubr.bf16.gmra.mxu1 %v5333_v39 }
 0x4ff   : > { %8163 = vmatprep.mubr.msk.bf16.mxu1 %vm386_vm3, %v11381_v20  ;;  %6183 = vmatpush1.bf16.msra.mxu1 %v9147_v26 }
 0x500   : > { %6184 = vmatprep.subr.bf16.mxu1 %v12121_v4 }
 0x503   : > { %6185 = vmatpush1.bf16.msra.mxu1 %v9148_v63 }
 0x504   : > { %6186 = vmatprep.subr.bf16.mxu1 %v12121_v4 }
 0x506   : > { %5849 = vmatmul.mubr.bf16.gmra.mxu1 %v5697_v29 }
 0x507   : > { %6187 = vmatpush1.bf16.msra.mxu1 %v9149_v3  ;;  %8228 = vmatprep.mubr.msk.bf16.mxu1 %vm386_vm3, %v5694_v27 }
 0x508   : > { %6188 = vmatprep.subr.bf16.mxu1 %v12121_v4 }
 0x50b   : > { %6189 = vmatpush1.bf16.msra.mxu1 %v9150_v33 }
 0x50c   : > { %6202 = vmatprep.subr.bf16.mxu1 %v12121_v4 }
 0x50f   : > { %6203 = vmatpush2.bf16.msra.mxu1 %v9151_v52 }
 0x510   : > { %6204 = vmatprep.subr.bf16.mxu1 %v12121_v4  ;;  %v6080_v4 = vpack.c.bf16 %v6072_v32, %v11461_v46 }
 0x513   : > { %6205 = vmatpush2.bf16.msra.mxu1 %v9152_v57 }
 0x514   : > { %8746 = vmatprep.subr.bf16.mxu1 %v11236_v8 }
 0x516   : > { %6207 = vmatmul.mubr.bf16.vlgmr.msra.gmra.mxu1 %v11509_v51 }
 0x517   : > { %8229 = vmatprep.mubr.msk.bf16.mxu1 %vm386_vm3, %v11512_v23  ;;  %8747 = vmatpush3.bf16.msra.mxu1 %v9154_v0 }
 0x518   : > { %8748 = vmatprep.subr.bf16.mxu1 %v11236_v8 }
 0x51b   : > { %8749 = vmatpush3.bf16.msra.mxu1 %v9156_v44 }
 0x51c   : > { %v11594_v62 = vpop.f32.mrf.mxu1  ;;  %8750 = vmatprep.subr.bf16.mxu1 %v11236_v8 }
 0x51e   : > { %6215 = vmatmul.mubr.bf16.gmra.mxu1 %v5333_v39  ;;  %v5509_v17 = vpop.f32.mrf.mxu1 }
 0x51f   : > { %8230 = vmatprep.mubr.msk.bf16.mxu1 %vm386_vm3, %v11381_v20  ;;  %8751 = vmatpush3.bf16.msra.mxu1 %v9158_v35 }
 0x520   : > { %v11598_v61 = vpop.f32.mrf.mxu1  ;;  %8752 = vmatprep.subr.bf16.mxu1 %v11236_v8 }
 0x522   : > { %v5512_v47 = vpop.f32.mrf.mxu1 }
 0x523   : > { %8753 = vmatpush3.bf16.msra.mxu1 %v9160_v50 }
 0x524   : > { %8770 = vmatprep.subr.bf16.mxu1 %v11236_v8 }
 0x526   : > { %6223 = vmatmul.mubr.bf16.gmra.mxu1 %v5697_v29 }
 0x527   : > { %8231 = vmatprep.mubr.msk.bf16.mxu1 %vm386_vm3, %v6080_v4 }
 0x52e   : > { %6231 = vmatmul.mubr.bf16.gmra.mxu1 %v11475_v34 }
 0x52f   : > { %8754 = vmatprep.mubr.msk.bf16.mxu1 %vm9295_vm14, %v11236_v8 }
 0x53e   : > { %v11603_v15 = vpop.f32.mrf.mxu1  ;;  %v11605_v14 = vpop.f32.mrf.mxu0 }
 0x540   : > { %v5517_v56 = vpop.f32.mrf.mxu1  ;;  %v6019_v21 = vpop.f32.mrf.mxu0 }
 0x542   : > { %v11607_v40 = vpop.f32.mrf.mxu1  ;;  %v11609_v20 = vpop.f32.mrf.mxu0 }
 0x544   : > { %v5520_v13 = vpop.f32.mrf.mxu1  ;;  %v6022_v9 = vpop.f32.mrf.mxu0 }
 0x55e   : > { %v5523_v37 = vpop.f32.mrf.mxu1  ;;  %v11615_v1 = vpop.f32.mrf.mxu0 }
 0x560   : > { %v5525_v60 = vpop.f32.mrf.mxu1  ;;  %v6027_v19 = vpop.f32.mrf.mxu0 }
 0x562   : > { %v5526_v48 = vpop.f32.mrf.mxu1  ;;  %v11617_v30 = vpop.f32.mrf.mxu0 }
 0x564   : > { %v5528_v7 = vpop.f32.mrf.mxu1  ;;  %v6030_v46 = vpop.f32.mrf.mxu0 }
 0x57e   : > { %v5531_v12 = vpop.f32.mrf.mxu1  ;;  %v11651_v45 = vpop.f32.mrf.mxu0 }
 0x580   : > { %v5533_v34 = vpop.f32.mrf.mxu1  ;;  %v6035_v16 = vpop.f32.mrf.mxu0 }
 0x581   : > { %v11667_v34 = vld [vmem:[%s12044_s6] ss:$0 sm:$0xff] }
 0x582   : > { %v5534_v58 = vpop.f32.mrf.mxu1  ;;  %v11653_v49 = vpop.f32.mrf.mxu0 }
 0x584   : > { %v5536_v41 = vpop.f32.mrf.mxu1  ;;  %v6038_v11 = vpop.f32.mrf.mxu0 }
 0x586   : > { %v5644_v38 = vpop.f32.mrf.mxu1 }
 0x587   : > { %v5645_v24 = vadd.f32 %v5644_v38, %v11594_v62 }
 0x588   : > { %v5646_v10 = vpop.f32.mrf.mxu1 }
 0x58a   : > { %v5647_v28 = vpop.f32.mrf.mxu1 }
 0x58b   : > { %v5648_v6 = vadd.f32 %v5647_v28, %v11598_v61 }
 0x58c   : > { %v5649_v53 = vpop.f32.mrf.mxu1  ;;  %v6041_v51 = vpop.f32.mrf.mxu0 }
 0x58e   : > { %v5652_v23 = vpop.f32.mrf.mxu1  ;;  %v6043_v55 = vpop.f32.mrf.mxu0 }
 0x590   : > { %v5654_v25 = vpop.f32.mrf.mxu1  ;;  %v6044_v39 = vpop.f32.mrf.mxu0 }
 0x592   : > { %v5655_v8 = vpop.f32.mrf.mxu1  ;;  %v6046_v42 = vpop.f32.mrf.mxu0 }
 0x593   : > { %v5656_v28 = vadd.f32 %v5655_v8, %v11607_v40 }
 0x594   : > { %v5657_v54 = vpop.f32.mrf.mxu1 }
 0x596   : > { %v5660_v36 = vpop.f32.mrf.mxu1 }
 0x597   : > { %v5661_v22 = vadd.f32 %v5660_v36, %v5523_v37 }
 0x598   : > { %v5662_v5 = vpop.f32.mrf.mxu1 }
 0x59a   : > { %v5663_v27 = vpop.f32.mrf.mxu1 }
 0x59b   : > { %v11655_v59 = vadd.f32 %v5663_v27, %v5526_v48 }
 0x59c   : > { %v5665_v31 = vpop.f32.mrf.mxu1 }
 0x59e   : > { %v5668_v2 = vpop.f32.mrf.mxu1 }
 0x59f   : > { %v5669_v26 = vadd.f32 %v5668_v2, %v5531_v12 }
 0x5a0   : > { %v5670_v63 = vpop.f32.mrf.mxu1 }
 0x5a2   : > { %v5671_v3 = vpop.f32.mrf.mxu1 }
 0x5a3   : > { %v5672_v29 = vadd.f32 %v5671_v3, %v5534_v58  ;;  %v5653_v58 = vadd.f32 %v5652_v23, %v11603_v15 }
 0x5a4   : > { %v5673_v33 = vpop.f32.mrf.mxu1 }
 0x5ae   : > { %v5826_v52 = vpop.f32.mrf.mxu1 }
 0x5af   : > { %v5857_v35 = vadd.f32 %v5826_v52, %v5645_v24 }
 0x5b0   : > { %v5828_v57 = vpop.f32.mrf.mxu1 }
 0x5b1   : > { %v6048_v12 = vadd.f32 %v11605_v14, %v5857_v35 }
 0x5b2   : > { %v5829_v17 = vpop.f32.mrf.mxu1 }
 0x5b3   : > { %v5858_v50 = vadd.f32 %v5829_v17, %v5648_v6 }
 0x5b4   : > { %v5831_v32 = vpop.f32.mrf.mxu1 }
 0x5b5   : > { %v6049_v38 = vadd.f32 %v11609_v20, %v5858_v50 }
 0x5b6   : > { %v5834_v47 = vpop.f32.mrf.mxu1 }
 0x5b7   : > { %v5859_v10 = vadd.f32 %v5834_v47, %v5653_v58 }
 0x5b8   : > { %v5836_v4 = vpop.f32.mrf.mxu1 }
 0x5b9   : > { %v6050_v15 = vadd.f32 %v11615_v1, %v5859_v10 }
 0x5ba   : > { %v5837_v56 = vpop.f32.mrf.mxu1 }
 0x5bc   : > { %v5839_v21 = vpop.f32.mrf.mxu1 }
 0x5be   : > { %v5842_v13 = vpop.f32.mrf.mxu1 }
 0x5bf   : > { %v5861_v42 = vadd.f32 %v5842_v13, %v5661_v22 }
 0x5c0   : > { %v5844_v9 = vpop.f32.mrf.mxu1 }
 0x5c1   : > { %v6052_v2 = vadd.f32 %v11651_v45, %v5861_v42  ;;  %v9167_v42 = vld [vmem:[%s12045_s7 + $0x40] sm:$0xff]  }
 0x5c2   : > { %v5845_v43 = vpop.f32.mrf.mxu1 }
 0x5c3   : > { %v5862_v31 = vadd.f32 %v5845_v43, %v11655_v59 }
 0x5c4   : > { %v5847_v37 = vpop.f32.mrf.mxu1 }
 0x5c5   : > { %v6053_v17 = vadd.f32 %v11653_v49, %v5862_v31 }
 0x5c6   : > { %v5850_v60 = vpop.f32.mrf.mxu1 }
 0x5c7   : > { %v5863_v19 = vadd.f32 %v5850_v60, %v5669_v26 }
 0x5c8   : > { %v5852_v48 = vpop.f32.mrf.mxu1 }
 0x5c9   : > { %v11657_v0 = vadd.f32 %v6041_v51, %v5863_v19  ;;  %v5860_v51 = vadd.f32 %v5837_v56, %v5656_v28 }
 0x5ca   : > { %v5853_v7 = vpop.f32.mrf.mxu1 }
 0x5cb   : > { %v5864_v46 = vadd.f32 %v5853_v7, %v5672_v29  ;;  %v6051_v54 = vadd.f32 %v11617_v30, %v5860_v51 }
 0x5cc   : > { %v5855_v18 = vpop.f32.mrf.mxu1 }
 0x5cd   : > { %v11659_v44 = vadd.f32 %v6044_v39, %v5864_v46  ;;  %v9161_v46 = vld [vmem:[%s12045_s7 + $0x58] sm:$0xff]  }
 0x5d6   : > { %v6208_v16 = vpop.f32.mrf.mxu1 }
 0x5d7   : > { %v6239_v41 = vadd.f32 %v6208_v16, %v6048_v12 }
 0x5d8   : > { %v6210_v11 = vpop.f32.mrf.mxu1 }
 0x5d9   : > { %v6253_v62 = vadd.f32 %v11667_v34, %v6239_v41 }
 0x5da   : > { %v6211_v61 = vpop.f32.mrf.mxu1 }
 0x5db   : > { %6262 = vst.msk [vmem:[#allocation6] sm:$0xff] %vm6261_vm15, %v6253_v62  ;;  %v6240_v14 = vadd.f32 %v6211_v61, %v6049_v38  ;;  %v9163_v38 = vld [vmem:[%s12045_s7 + $0x50] sm:$0xff]   ;;  %v11711_v61 = vld [vmem:[#allocation2] sm:$0xff] }
 0x5dc   : > { %v6213_v53 = vpop.f32.mrf.mxu1 }
 0x5dd   : > { %v6254_v55 = vadd.f32 %v11667_v34, %v6240_v14  ;;  %v9165_v14 = vld [vmem:[%s12045_s7 + $0x48] sm:$0xff]  }
 0x5de   : > { %v6216_v23 = vpop.f32.mrf.mxu1  ;;  %v9166_v53 = vld [vmem:[%s12045_s7 + $0x68] sm:$0xff]  }
 0x5df   : > { %6263 = vst.msk [vmem:[#allocation6 + $0x8] sm:$0xff] %vm6261_vm15, %v6254_v55  ;;  %v6241_v25 = vadd.f32 %v6216_v23, %v6050_v15 }
 0x5e0   : > { %v6218_v39 = vpop.f32.mrf.mxu1 }
 0x5e1   : > { %v6255_v20 = vadd.f32 %v11667_v34, %v6241_v25 }
 0x5e2   : > { %v6219_v40 = vpop.f32.mrf.mxu1  ;;  %v6270_v36 = vld [vmem:[#allocation6] ss:$2 sm:$0xf]  ;;  %v6278_v5 = vld [vmem:[#allocation6 + $0x1] ss:$2 sm:$0xf] }
 0x5e3   : > { %6264 = vst.msk [vmem:[#allocation6 + $0x10] sm:$0xff] %vm6261_vm15, %v6255_v20  ;;  %v6242_v8 = vadd.f32 %v6219_v40, %v6051_v54  ;;  %v6285_v3 = vmax.f32 %v6270_v36, %v6278_v5  ;;  %v9168_v20 = vld [vmem:[%s12045_s7 + $0x60] sm:$0xff]   ;;  %v9169_v36 = vld [vmem:[%s12045_s7 + $0x98] sm:$0xff]  }
 0x5e4   : > { %v6221_v27 = vpop.f32.mrf.mxu1  ;;  %v9170_v5 = vld [vmem:[%s12045_s7 + $0xb8] sm:$0xff]  }
 0x5e5   : > { %v6256_v1 = vadd.f32 %v11667_v34, %v6242_v8 }
 0x5e6   : > { %v6290_v26 = vld [vmem:[#allocation6 + $0x8] ss:$2 sm:$0xf]  ;;  %v6298_v63 = vld [vmem:[#allocation6 + $0x9] ss:$2 sm:$0xf]  ;;  %v6224_v22 = vpop.f32.mrf.mxu1 }
 0x5e7   : > { %v6305_v29 = vmax.f32 %v6290_v26, %v6298_v63  ;;  %6265 = vst.msk [vmem:[#allocation6 + $0x18] sm:$0xff] %vm6261_vm15, %v6256_v1  ;;  %v6243_v30 = vadd.f32 %v6224_v22, %v6052_v2  ;;  %v9171_v1 = vld [vmem:[%s12045_s7 + $0x90] sm:$0xff]   ;;  %v9173_v26 = vld [vmem:[%s12045_s7 + $0x88] sm:$0xff]   ;;  %v9175_v22 = vld [vmem:[%s12045_s7 + $0x80] sm:$0xff]  }
 0x5e8   : > { %v6226_v33 = vpop.f32.mrf.mxu1  ;;  %v9172_v2 = vld [vmem:[%s12045_s7 + $0xb0] sm:$0xff]   ;;  %v9174_v63 = vld [vmem:[%s12045_s7 + $0xa8] sm:$0xff]  }
 0x5e9   : > { %v6309_v52 = vmax.f32 %v6285_v3, %v6305_v29  ;;  %v6257_v57 = vadd.f32 %v11667_v34, %v6243_v30  ;;  %v9176_v3 = vld [vmem:[%s12045_s7 + $0xa0] sm:$0xff]   ;;  %v9177_v33 = vld [vmem:[%s12045_s7 + $0xd8] sm:$0xff]  }
 0x5ea   : > { %v6227_v59 = vpop.f32.mrf.mxu1  ;;  %v6272_v32 = vld [vmem:[#allocation6 + $0x10] ss:$2 sm:$0xf]  ;;  %v6280_v47 = vld [vmem:[#allocation6 + $0x11] ss:$2 sm:$0xf] }
 0x5eb   : > { %6314 = vst.msk [vmem:[#allocation7] sm:$0xf] %vm6313_vm0, %v6309_v52  ;;  %v6244_v45 = vadd.f32 %v6227_v59, %v6053_v17  ;;  %v6286_v43 = vmax.f32 %v6272_v32, %v6280_v47  ;;  %v9178_v52 = vld [vmem:[%s12045_s7 + $0xf8] sm:$0xff]   ;;  %v9179_v59 = vld [vmem:[%s12045_s7 + $0xd0] sm:$0xff]   ;;  %v9181_v32 = vld [vmem:[%s12045_s7 + $0xc8] sm:$0xff]  }
 0x5ec   : > { %6266 = vst.msk [vmem:[#allocation6 + $0x20] sm:$0xff] %vm6261_vm15, %v6257_v57  ;;  %v6229_v4 = vpop.f32.mrf.mxu1  ;;  %v9182_v47 = vld [vmem:[%s12045_s7 + $0xe8] sm:$0xff]  }
 0x5ed   : > { %v6258_v56 = vadd.f32 %v11667_v34, %v6244_v45  ;;  %v9180_v45 = vld [vmem:[%s12045_s7 + $0xf0] sm:$0xff]   ;;  %v9183_v4 = vld [vmem:[%s12045_s7 + $0xc0] sm:$0xff]  }
 0x5ee   : > { %v6292_v21 = vld [vmem:[#allocation6 + $0x18] ss:$2 sm:$0xf]  ;;  %v6300_v13 = vld [vmem:[#allocation6 + $0x19] ss:$2 sm:$0xf]  ;;  %v6232_v9 = vpop.f32.mrf.mxu1 }
 0x5ef   : > { %v6306_v37 = vmax.f32 %v6292_v21, %v6300_v13  ;;  %6267 = vst.msk [vmem:[#allocation6 + $0x28] sm:$0xff] %vm6261_vm15, %v6258_v56  ;;  %v6245_v49 = vadd.f32 %v6232_v9, %v11657_v0  ;;  %v9162_v0 = vld [vmem:[%s12045_s7 + $0x78] sm:$0xff]   ;;  %v9184_v56 = vld [vmem:[%s12045_s7 + $0xe0] sm:$0xff]  }
 0x5f0   : > { %v6234_v60 = vpop.f32.mrf.mxu1  ;;  %v9185_v9 = vld [vmem:[%s12045_s7 + $0x118] sm:$0xff]  }
 0x5f1   : > { %v6310_v19 = vmax.f32 %v6286_v43, %v6306_v37  ;;  %v6259_v48 = vadd.f32 %v11667_v34, %v6245_v49  ;;  %v9186_v43 = vld [vmem:[%s12045_s7 + $0x138] sm:$0xff]   ;;  %v9187_v60 = vld [vmem:[%s12045_s7 + $0x110] sm:$0xff]  }
 0x5f2   : > { %v6235_v7 = vpop.f32.mrf.mxu1  ;;  %v6328_v24 = vld [vmem:[#allocation7 + $0x1] sm:$0x1]  ;;  %v6318_v35 = vld [vmem:[#allocation7] sm:$0x1]  ;;  %v6473_v40 = vld [vmem:[#allocation7 + $0x2] sm:$0x1] }
 0x5f3   : > { %6315 = vst.msk [vmem:[#allocation7 + $0x4] sm:$0xf] %vm6313_vm0, %v6310_v19  ;;  %v6246_v18 = vadd.f32 %v6235_v7, %v11659_v44  ;;  %v6274_v6 = vld [vmem:[#allocation6 + $0x20] ss:$2 sm:$0xf]  ;;  %v6329_v12 = vpack.c.bf16 %v6328_v24, %v6328_v24  ;;  %v6319_v16 = vpack.c.bf16 %v6318_v35, %v6318_v35  ;;  %v6474_v27 = vpack.c.bf16 %v6473_v40, %v6473_v40  ;;  %v9188_v19 = vld [vmem:[%s12045_s7 + $0x130] sm:$0xff]  }
 0x5f4   : > { %6268 = vst.msk [vmem:[#allocation6 + $0x30] sm:$0xff] %vm6261_vm15, %v6259_v48  ;;  %v6282_v50 = vld [vmem:[#allocation6 + $0x21] ss:$2 sm:$0xf]  ;;  %v6237_v58 = vpop.f32.mrf.mxu1  ;;  %v9189_v48 = vld [vmem:[%s12045_s7 + $0x108] sm:$0xff]   ;;  %v9210_v40 = vld [vmem:[%s12045_s7 + $0x1f8] sm:$0xff]  }
 0x5f5   : > { %v6260_v41 = vadd.f32 %v11667_v34, %v6246_v18  ;;  %8743 = vmatmul.mubr.msk.bf16.vlgmr.msra.gmra.mxu0 %vm6261_vm15, %v6329_v12  ;;  %8755 = vmatmul.mubr.msk.bf16.vlgmr.msra.gmra.mxu1 %vm6261_vm15, %v6319_v16  ;;  %v6287_v44 = vmax.f32 %v6274_v6, %v6282_v50  ;;  %v9164_v34 = vld [vmem:[%s12045_s7 + $0x70] sm:$0xff]   ;;  %v6552_v8 = vld [vmem:[#allocation7 + $0x3] sm:$0x1]  ;;  %v9190_v7 = vld [vmem:[%s12045_s7 + $0x128] sm:$0xff]  }
 0x5f6   : > { %v6294_v11 = vld [vmem:[#allocation6 + $0x28] ss:$2 sm:$0xf]  ;;  %v6302_v10 = vld [vmem:[#allocation6 + $0x29] ss:$2 sm:$0xf]  ;;  %8759 = vmatpush3.bf16.msra.mxu0 %v9161_v46  ;;  %8771 = vmatpush3.bf16.msra.mxu1 %v9162_v0  ;;  %v6553_v31 = vpack.c.bf16 %v6552_v8, %v6552_v8 }
 0x5f7   : > { %v6307_v62 = vmax.f32 %v6294_v11, %v6302_v10  ;;  %6269 = vst.msk [vmem:[#allocation6 + $0x38] sm:$0xff] %vm6261_vm15, %v6260_v41  ;;  %8760 = vmatprep.subr.bf16.mxu0 %v11711_v61  ;;  %8772 = vmatprep.subr.bf16.mxu1 %v11711_v61  ;;  %v9191_v46 = vld [vmem:[%s12045_s7 + $0x100] sm:$0xff]   ;;  %v9193_v0 = vld [vmem:[%s12045_s7 + $0x158] sm:$0xff]   ;;  %v9195_v16 = vld [vmem:[%s12045_s7 + $0x150] sm:$0xff]  }
 0x5f8   : > { %8766 = vmatprep.mubr.msk.bf16.mxu0 %vm9295_vm14, %v11711_v61  ;;  %8778 = vmatprep.mubr.msk.bf16.mxu1 %vm9295_vm14, %v11711_v61  ;;  %v9192_v18 = vld [vmem:[%s12045_s7 + $0x120] sm:$0xff]   ;;  %v9194_v6 = vld [vmem:[%s12045_s7 + $0x178] sm:$0xff]   ;;  %v9196_v58 = vld [vmem:[%s12045_s7 + $0x170] sm:$0xff]  }
 0x5f9   : > { %v6311_v28 = vmax.f32 %v6287_v44, %v6307_v62  ;;  %v9197_v41 = vld [vmem:[%s12045_s7 + $0x148] sm:$0xff]   ;;  %v9199_v10 = vld [vmem:[%s12045_s7 + $0x140] sm:$0xff]  }
 0x5fa   : > { %8761 = vmatpush3.bf16.msra.mxu0 %v9163_v38  ;;  %8773 = vmatpush3.bf16.msra.mxu1 %v9164_v34  ;;  %v6632_v29 = vld [vmem:[#allocation7 + $0x4] sm:$0x1]  ;;  %v6711_v30 = vld [vmem:[#allocation7 + $0x5] sm:$0x1]  ;;  %v6790_v21 = vld [vmem:[#allocation7 + $0x6] sm:$0x1] }
 0x5fb   : > { %6316 = vst.msk [vmem:[#allocation7 + $0x8] sm:$0xf] %vm6313_vm0, %v6311_v28  ;;  %v6276_v51 = vld [vmem:[#allocation6 + $0x30] ss:$2 sm:$0xf]  ;;  %8762 = vmatprep.subr.bf16.mxu0 %v11711_v61  ;;  %8774 = vmatprep.subr.bf16.mxu1 %v11711_v61  ;;  %v6633_v57 = vpack.c.bf16 %v6632_v29, %v6632_v29  ;;  %v6712_v17 = vpack.c.bf16 %v6711_v30, %v6711_v30  ;;  %v9198_v11 = vld [vmem:[%s12045_s7 + $0x168] sm:$0xff]  }
 0x5fc   : > { %v6284_v55 = vld [vmem:[#allocation6 + $0x31] ss:$2 sm:$0xf]  ;;  %v6869_v13 = vld [vmem:[#allocation7 + $0x7] sm:$0x1]  ;;  %v6791_v37 = vpack.c.bf16 %v6790_v21, %v6790_v21  ;;  %v9201_v34 = vld [vmem:[%s12045_s7 + $0x198] sm:$0xff]  }
 0x5fd   : > { %v6288_v25 = vmax.f32 %v6276_v51, %v6284_v55  ;;  %v6870_v49 = vpack.c.bf16 %v6869_v13, %v6869_v13  ;;  %v9200_v44 = vld [vmem:[%s12045_s7 + $0x160] sm:$0xff]   ;;  %v9202_v28 = vld [vmem:[%s12045_s7 + $0x1b8] sm:$0xff]   ;;  %v9203_v51 = vld [vmem:[%s12045_s7 + $0x190] sm:$0xff]  }
 0x5fe   : > { %v6296_v15 = vld [vmem:[#allocation6 + $0x38] ss:$2 sm:$0xf]  ;;  %v6304_v23 = vld [vmem:[#allocation6 + $0x39] ss:$2 sm:$0xf]  ;;  %8763 = vmatpush3.bf16.msra.mxu0 %v9165_v14  ;;  %8775 = vmatpush3.bf16.msra.mxu1 %v9166_v53 }
 0x5ff   : > { %v6308_v39 = vmax.f32 %v6296_v15, %v6304_v23  ;;  %8764 = vmatprep.subr.bf16.mxu0 %v11711_v61  ;;  %8776 = vmatprep.subr.bf16.mxu1 %v11711_v61  ;;  %v9204_v55 = vld [vmem:[%s12045_s7 + $0x1b0] sm:$0xff]   ;;  %v9205_v15 = vld [vmem:[%s12045_s7 + $0x188] sm:$0xff]   ;;  %v9217_v30 = vld [vmem:[%s12047_s9 + $0x18] sm:$0xff]  }
 0x600   : > { %v9206_v23 = vld [vmem:[%s12045_s7 + $0x1a8] sm:$0xff]  }
 0x601   : > { %v6312_v54 = vmax.f32 %v6288_v25, %v6308_v39  ;;  %v9207_v25 = vld [vmem:[%s12045_s7 + $0x180] sm:$0xff]  }
 0x602   : > { %8765 = vmatpush3.bf16.msra.mxu0 %v9167_v42  ;;  %8777 = vmatpush3.bf16.msra.mxu1 %v9168_v20  ;;  %v6949_v24 = vld [vmem:[#allocation7 + $0x8] sm:$0x1]  ;;  %v7028_v35 = vld [vmem:[#allocation7 + $0x9] sm:$0x1]  ;;  %v7107_v62 = vld [vmem:[#allocation7 + $0xa] sm:$0x1] }
 0x603   : > { %6317 = vst.msk [vmem:[#allocation7 + $0xc] sm:$0xf] %vm6313_vm0, %v6312_v54  ;;  %8782 = vmatprep.subr.bf16.mxu0 %v11711_v61  ;;  %8794 = vmatprep.subr.bf16.mxu1 %v11711_v61  ;;  %v6950_v50 = vpack.c.bf16 %v6949_v24, %v6949_v24  ;;  %v7029_v12 = vpack.c.bf16 %v7028_v35, %v7028_v35  ;;  %v7186_v38 = vld [vmem:[#allocation7 + $0xb] sm:$0x1]  ;;  %v9208_v39 = vld [vmem:[%s12045_s7 + $0x1a0] sm:$0xff]   ;;  %v9209_v54 = vld [vmem:[%s12045_s7 + $0x1d8] sm:$0xff]  }
 0x604   : > { %v7108_v14 = vpack.c.bf16 %v7107_v62, %v7107_v62  ;;  %v7187_v53 = vpack.c.bf16 %v7186_v38, %v7186_v38 }
 0x605   : > { %8767 = vmatmul.mubr.msk.bf16.vlgmr.msra.gmra.mxu0 %vm6261_vm15, %v6474_v27  ;;  %8779 = vmatmul.mubr.msk.bf16.vlgmr.msra.gmra.mxu1 %vm6261_vm15, %v6553_v31  ;;  %v9212_v27 = vld [vmem:[%s12045_s7 + $0x1f0] sm:$0xff]   ;;  %v9213_v31 = vld [vmem:[%s12045_s7 + $0x1c8] sm:$0xff]  }
 0x606   : > { %8783 = vmatpush3.bf16.msra.mxu0 %v9169_v36  ;;  %8795 = vmatpush3.bf16.msra.mxu1 %v9170_v5  ;;  %v9211_v5 = vld [vmem:[%s12045_s7 + $0x1d0] sm:$0xff]  }
 0x607   : > { %8784 = vmatprep.subr.bf16.mxu0 %v11711_v61  ;;  %8796 = vmatprep.subr.bf16.mxu1 %v11711_v61 }
 0x608   : > { %8790 = vmatprep.mubr.msk.bf16.mxu0 %vm9295_vm14, %v11711_v61  ;;  %8802 = vmatprep.mubr.msk.bf16.mxu1 %vm9295_vm14, %v11711_v61 }
 0x60a   : > { %8785 = vmatpush3.bf16.msra.mxu0 %v9171_v1  ;;  %8797 = vmatpush3.bf16.msra.mxu1 %v9172_v2  ;;  %v7266_v42 = vld [vmem:[#allocation7 + $0xc] sm:$0x1]  ;;  %v7345_v20 = vld [vmem:[#allocation7 + $0xd] sm:$0x1]  ;;  %v9215_v2 = vld [vmem:[%s12045_s7 + $0x1c0] sm:$0xff]  }
 0x60b   : > { %8786 = vmatprep.subr.bf16.mxu0 %v11711_v61  ;;  %8798 = vmatprep.subr.bf16.mxu1 %v11711_v61  ;;  %v7267_v8 = vpack.c.bf16 %v7266_v42, %v7266_v42  ;;  %v7346_v36 = vpack.c.bf16 %v7345_v20, %v7345_v20  ;;  %v9214_v1 = vld [vmem:[%s12045_s7 + $0x1e8] sm:$0xff]  }
 0x60e   : > { %8787 = vmatpush3.bf16.msra.mxu0 %v9173_v26  ;;  %8799 = vmatpush3.bf16.msra.mxu1 %v9174_v63  ;;  %v9216_v26 = vld [vmem:[%s12045_s7 + $0x1e0] sm:$0xff]   ;;  %v7424_v63 = vld [vmem:[#allocation7 + $0xe] sm:$0x1] }
 0x60f   : > { %8788 = vmatprep.subr.bf16.mxu0 %v11711_v61  ;;  %8800 = vmatprep.subr.bf16.mxu1 %v11711_v61 }
 0x612   : > { %8789 = vmatpush3.bf16.msra.mxu0 %v9175_v22  ;;  %8801 = vmatpush3.bf16.msra.mxu1 %v9176_v3  ;;  %v7503_v22 = vld [vmem:[#allocation7 + $0xf] sm:$0x1]  ;;  %v7425_v3 = vpack.c.bf16 %v7424_v63, %v7424_v63 }
 0x613   : > { %8806 = vmatprep.subr.bf16.mxu0 %v11711_v61  ;;  %8818 = vmatprep.subr.bf16.mxu1 %v11711_v61  ;;  %v7504_v29 = vpack.c.bf16 %v7503_v22, %v7503_v22 }
 0x615   : > { %8791 = vmatmul.mubr.msk.bf16.vlgmr.msra.gmra.mxu0 %vm6261_vm15, %v6633_v57  ;;  %8803 = vmatmul.mubr.msk.bf16.vlgmr.msra.gmra.mxu1 %vm6261_vm15, %v6712_v17  ;;  %v9220_v57 = vld [vmem:[%s12047_s9] sm:$0xff]  }
 0x616   : > { %8807 = vmatpush3.bf16.msra.mxu0 %v9177_v33  ;;  %8819 = vmatpush3.bf16.msra.mxu1 %v9178_v52  ;;  %v9218_v33 = vld [vmem:[%s12047_s9 + $0x10] sm:$0xff]   ;;  %v9219_v52 = vld [vmem:[%s12047_s9 + $0x8] sm:$0xff]  }
 0x617   : > { %8808 = vmatprep.subr.bf16.mxu0 %v11711_v61  ;;  %8820 = vmatprep.subr.bf16.mxu1 %v11711_v61 }
 0x618   : > { %8814 = vmatprep.mubr.msk.bf16.mxu0 %vm9295_vm14, %v11711_v61  ;;  %8826 = vmatprep.mubr.msk.bf16.mxu1 %vm9295_vm14, %v11711_v61 }
 0x61a   : > { %8809 = vmatpush3.bf16.msra.mxu0 %v9179_v59  ;;  %8821 = vmatpush3.bf16.msra.mxu1 %v9180_v45 }
 0x61b   : > { %8810 = vmatprep.subr.bf16.mxu0 %v11711_v61  ;;  %8822 = vmatprep.subr.bf16.mxu1 %v11711_v61 }
 0x61e   : > { %8811 = vmatpush3.bf16.msra.mxu0 %v9181_v32  ;;  %8823 = vmatpush3.bf16.msra.mxu1 %v9182_v47 }
 0x61f   : > { %8812 = vmatprep.subr.bf16.mxu0 %v11711_v61  ;;  %8824 = vmatprep.subr.bf16.mxu1 %v11711_v61 }
 0x622   : > { %8813 = vmatpush3.bf16.msra.mxu0 %v9183_v4  ;;  %8825 = vmatpush3.bf16.msra.mxu1 %v9184_v56 }
 0x623   : > { %8830 = vmatprep.subr.bf16.mxu0 %v11711_v61  ;;  %8842 = vmatprep.subr.bf16.mxu1 %v11711_v61 }
 0x625   : > { %8815 = vmatmul.mubr.msk.bf16.vlgmr.msra.gmra.mxu0 %vm6261_vm15, %v6791_v37  ;;  %8827 = vmatmul.mubr.msk.bf16.vlgmr.msra.gmra.mxu1 %vm6261_vm15, %v6870_v49 }
 0x626   : > { %8831 = vmatpush3.bf16.msra.mxu0 %v9185_v9  ;;  %8843 = vmatpush3.bf16.msra.mxu1 %v9186_v43 }
 0x627   : > { %8832 = vmatprep.subr.bf16.mxu0 %v11711_v61  ;;  %8844 = vmatprep.subr.bf16.mxu1 %v11711_v61 }
 0x628   : > { %8838 = vmatprep.mubr.msk.bf16.mxu0 %vm9295_vm14, %v11711_v61  ;;  %8850 = vmatprep.mubr.msk.bf16.mxu1 %vm9295_vm14, %v11711_v61 }
 0x62a   : > { %8833 = vmatpush3.bf16.msra.mxu0 %v9187_v60  ;;  %8845 = vmatpush3.bf16.msra.mxu1 %v9188_v19 }
 0x62b   : > { %8834 = vmatprep.subr.bf16.mxu0 %v11711_v61  ;;  %8846 = vmatprep.subr.bf16.mxu1 %v11711_v61 }
 0x62e   : > { %8835 = vmatpush3.bf16.msra.mxu0 %v9189_v48  ;;  %8847 = vmatpush3.bf16.msra.mxu1 %v9190_v7 }
 0x62f   : > { %8836 = vmatprep.subr.bf16.mxu0 %v11711_v61  ;;  %8848 = vmatprep.subr.bf16.mxu1 %v11711_v61 }
 0x632   : > { %8837 = vmatpush3.bf16.msra.mxu0 %v9191_v46  ;;  %8849 = vmatpush3.bf16.msra.mxu1 %v9192_v18 }
 0x633   : > { %8854 = vmatprep.subr.bf16.mxu0 %v11711_v61  ;;  %8866 = vmatprep.subr.bf16.mxu1 %v11711_v61 }
 0x635   : > { %8839 = vmatmul.mubr.msk.bf16.vlgmr.msra.gmra.mxu0 %vm6261_vm15, %v6950_v50  ;;  %8851 = vmatmul.mubr.msk.bf16.vlgmr.msra.gmra.mxu1 %vm6261_vm15, %v7029_v12 }
 0x636   : > { %8855 = vmatpush3.bf16.msra.mxu0 %v9193_v0  ;;  %8867 = vmatpush3.bf16.msra.mxu1 %v9194_v6 }
 0x637   : > { %8856 = vmatprep.subr.bf16.mxu0 %v11711_v61  ;;  %8868 = vmatprep.subr.bf16.mxu1 %v11711_v61 }
 0x638   : > { %8862 = vmatprep.mubr.msk.bf16.mxu0 %vm9295_vm14, %v11711_v61  ;;  %8874 = vmatprep.mubr.msk.bf16.mxu1 %vm9295_vm14, %v11711_v61 }
 0x63a   : > { %8857 = vmatpush3.bf16.msra.mxu0 %v9195_v16  ;;  %8869 = vmatpush3.bf16.msra.mxu1 %v9196_v58 }
 0x63b   : > { %8858 = vmatprep.subr.bf16.mxu0 %v11711_v61  ;;  %8870 = vmatprep.subr.bf16.mxu1 %v11711_v61 }
 0x63e   : > { %8859 = vmatpush3.bf16.msra.mxu0 %v9197_v41  ;;  %8871 = vmatpush3.bf16.msra.mxu1 %v9198_v11 }
 0x63f   : > { %8860 = vmatprep.subr.bf16.mxu0 %v11711_v61  ;;  %8872 = vmatprep.subr.bf16.mxu1 %v11711_v61 }
 0x642   : > { %8861 = vmatpush3.bf16.msra.mxu0 %v9199_v10  ;;  %8873 = vmatpush3.bf16.msra.mxu1 %v9200_v44 }
 0x643   : > { %8878 = vmatprep.subr.bf16.mxu0 %v11711_v61  ;;  %8890 = vmatprep.subr.bf16.mxu1 %v11711_v61 }
 0x645   : > { %8863 = vmatmul.mubr.msk.bf16.vlgmr.msra.gmra.mxu0 %vm6261_vm15, %v7108_v14  ;;  %8875 = vmatmul.mubr.msk.bf16.vlgmr.msra.gmra.mxu1 %vm6261_vm15, %v7187_v53 }
 0x646   : > { %8879 = vmatpush3.bf16.msra.mxu0 %v9201_v34  ;;  %8891 = vmatpush3.bf16.msra.mxu1 %v9202_v28 }
 0x647   : > { %8880 = vmatprep.subr.bf16.mxu0 %v11711_v61  ;;  %8892 = vmatprep.subr.bf16.mxu1 %v11711_v61 }
 0x648   : > { %8886 = vmatprep.mubr.msk.bf16.mxu0 %vm9295_vm14, %v11711_v61  ;;  %8898 = vmatprep.mubr.msk.bf16.mxu1 %vm9295_vm14, %v11711_v61 }
 0x64a   : > { %8881 = vmatpush3.bf16.msra.mxu0 %v9203_v51  ;;  %8893 = vmatpush3.bf16.msra.mxu1 %v9204_v55 }
 0x64b   : > { %8882 = vmatprep.subr.bf16.mxu0 %v11711_v61  ;;  %8894 = vmatprep.subr.bf16.mxu1 %v11711_v61 }
 0x64e   : > { %8883 = vmatpush3.bf16.msra.mxu0 %v9205_v15  ;;  %8895 = vmatpush3.bf16.msra.mxu1 %v9206_v23 }
 0x64f   : > { %8884 = vmatprep.subr.bf16.mxu0 %v11711_v61  ;;  %8896 = vmatprep.subr.bf16.mxu1 %v11711_v61 }
 0x652   : > { %8885 = vmatpush3.bf16.msra.mxu0 %v9207_v25  ;;  %8897 = vmatpush3.bf16.msra.mxu1 %v9208_v39 }
 0x653   : > { %8902 = vmatprep.subr.bf16.mxu0 %v11711_v61  ;;  %8914 = vmatprep.subr.bf16.mxu1 %v11711_v61 }
 0x655   : > { %8887 = vmatmul.mubr.msk.bf16.vlgmr.msra.gmra.mxu0 %vm6261_vm15, %v7267_v8  ;;  %8899 = vmatmul.mubr.msk.bf16.vlgmr.msra.gmra.mxu1 %vm6261_vm15, %v7346_v36 }
 0x656   : > { %8903 = vmatpush3.bf16.msra.mxu0 %v9209_v54  ;;  %8915 = vmatpush3.bf16.msra.mxu1 %v9210_v40 }
 0x657   : > { %8904 = vmatprep.subr.bf16.mxu0 %v11711_v61  ;;  %8916 = vmatprep.subr.bf16.mxu1 %v11711_v61 }
 0x658   : > { %8910 = vmatprep.mubr.msk.bf16.mxu0 %vm9295_vm14, %v11711_v61  ;;  %8922 = vmatprep.mubr.msk.bf16.mxu1 %vm9295_vm14, %v11711_v61 }
 0x65a   : > { %8905 = vmatpush3.bf16.msra.mxu0 %v9211_v5  ;;  %8917 = vmatpush3.bf16.msra.mxu1 %v9212_v27 }
 0x65b   : > { %8906 = vmatprep.subr.bf16.mxu0 %v11711_v61  ;;  %8918 = vmatprep.subr.bf16.mxu1 %v11711_v61 }
 0x65e   : > { %8907 = vmatpush3.bf16.msra.mxu0 %v9213_v31  ;;  %8919 = vmatpush3.bf16.msra.mxu1 %v9214_v1 }
 0x65f   : > { %8908 = vmatprep.subr.bf16.mxu0 %v11711_v61  ;;  %8920 = vmatprep.subr.bf16.mxu1 %v11711_v61 }
 0x662   : > { %8909 = vmatpush3.bf16.msra.mxu0 %v9215_v2  ;;  %8921 = vmatpush3.bf16.msra.mxu1 %v9216_v26 }
 0x663   : > { %8926 = vmatprep.subr.bf16.mxu0 %v11711_v61 }
 0x665   : > { %8911 = vmatmul.mubr.msk.bf16.vlgmr.msra.gmra.mxu0 %vm6261_vm15, %v7425_v3  ;;  %8923 = vmatmul.mubr.msk.bf16.vlgmr.msra.gmra.mxu1 %vm6261_vm15, %v7504_v29 }
 0x666   : > { %8934 = vmatprep.mubr.msk.bf16.mxu0 %vm9295_vm14, %v11711_v61  ;;  %8927 = vmatpush3.bf16.msra.mxu0 %v9217_v30 }
 0x667   : > { %8928 = vmatprep.subr.bf16.mxu0 %v11711_v61 }
 0x66a   : > { %8929 = vmatpush3.bf16.msra.mxu0 %v9218_v33 }
 0x66b   : > { %8930 = vmatprep.subr.bf16.mxu0 %v11711_v61 }
 0x66e   : > { %8931 = vmatpush3.bf16.msra.mxu0 %v9219_v52 }
 0x66f   : > { %8932 = vmatprep.subr.bf16.mxu0 %v11711_v61 }
 0x672   : > { %8933 = vmatpush3.bf16.msra.mxu0 %v9220_v57 }
 0x6b5   : > { %v6400_v17 = vpop.f32.mrf.mxu0  ;;  %v6467_v59 = vpop.f32.mrf.mxu1 }
 0x6b6   : > { %v6468_v45 = vadd.f32 %v6467_v59, %v6400_v17 }
 0x6b7   : > { %v8744_v32 = vpop.f32.mrf.mxu0  ;;  %v8756_v47 = vpop.f32.mrf.mxu1 }
 0x6b9   : > { %v6403_v4 = vpop.f32.mrf.mxu0  ;;  %v6470_v56 = vpop.f32.mrf.mxu1 }
 0x6bb   : > { %v8745_v21 = vpop.f32.mrf.mxu0  ;;  %v8757_v13 = vpop.f32.mrf.mxu1 }
 0x6bc   : > { %v7582_v13 = vld [vmem:[%s12046_s8] sm:$0x1] }
 0x6c5   : > { %v6545_v9 = vpop.f32.mrf.mxu0  ;;  %v6624_v43 = vpop.f32.mrf.mxu1 }
 0x6c6   : > { %v6551_v37 = vadd.f32 %v6545_v9, %v6468_v45 }
 0x6c7   : > { %v8768_v49 = vpop.f32.mrf.mxu0  ;;  %v8780_v60 = vpop.f32.mrf.mxu1 }
 0x6c8   : > { %v6630_v61 = vadd.f32 %v6624_v43, %v6551_v37 }
 0x6c9   : > { %v6548_v19 = vpop.f32.mrf.mxu0  ;;  %v6627_v48 = vpop.f32.mrf.mxu1 }
 0x6cb   : > { %v8769_v7 = vpop.f32.mrf.mxu0  ;;  %v8781_v46 = vpop.f32.mrf.mxu1 }
 0x6cc   : > { %v7593_v46 = vld [vmem:[%s12048_s10] sm:$0x1] }
 0x6d5   : > { %v6704_v18 = vpop.f32.mrf.mxu0  ;;  %v6783_v24 = vpop.f32.mrf.mxu1 }
 0x6d6   : > { %v6710_v40 = vadd.f32 %v6704_v18, %v6630_v61 }
 0x6d7   : > { %v8792_v35 = vpop.f32.mrf.mxu0  ;;  %v8804_v0 = vpop.f32.mrf.mxu1 }
 0x6d8   : > { %v6789_v31 = vadd.f32 %v6783_v24, %v6710_v40 }
 0x6d9   : > { %v6707_v6 = vpop.f32.mrf.mxu0  ;;  %v6786_v50 = vpop.f32.mrf.mxu1 }
 0x6db   : > { %v8793_v12 = vpop.f32.mrf.mxu0  ;;  %v8805_v16 = vpop.f32.mrf.mxu1 }
 0x6e5   : > { %v6862_v58 = vpop.f32.mrf.mxu0  ;;  %v6941_v41 = vpop.f32.mrf.mxu1 }
 0x6e6   : > { %v6868_v1 = vadd.f32 %v6862_v58, %v6789_v31 }
 0x6e7   : > { %v8816_v11 = vpop.f32.mrf.mxu0  ;;  %v8828_v10 = vpop.f32.mrf.mxu1 }
 0x6e8   : > { %v6947_v2 = vadd.f32 %v6941_v41, %v6868_v1 }
 0x6e9   : > { %v6865_v44 = vpop.f32.mrf.mxu0  ;;  %v6944_v62 = vpop.f32.mrf.mxu1 }
 0x6eb   : > { %v8817_v38 = vpop.f32.mrf.mxu0  ;;  %v8829_v34 = vpop.f32.mrf.mxu1 }
 0x6f5   : > { %v7021_v28 = vpop.f32.mrf.mxu0  ;;  %v7100_v14 = vpop.f32.mrf.mxu1 }
 0x6f6   : > { %v7027_v26 = vadd.f32 %v7021_v28, %v6947_v2 }
 0x6f7   : > { %v8840_v53 = vpop.f32.mrf.mxu0  ;;  %v8852_v51 = vpop.f32.mrf.mxu1 }
 0x6f8   : > { %v7106_v30 = vadd.f32 %v7100_v14, %v7027_v26 }
 0x6f9   : > { %v7024_v55 = vpop.f32.mrf.mxu0  ;;  %v7103_v15 = vpop.f32.mrf.mxu1 }
 0x6fb   : > { %v8841_v23 = vpop.f32.mrf.mxu0  ;;  %v8853_v25 = vpop.f32.mrf.mxu1 }
 0x705   : > { %v7179_v39 = vpop.f32.mrf.mxu0  ;;  %v7258_v42 = vpop.f32.mrf.mxu1 }
 0x706   : > { %v7185_v57 = vadd.f32 %v7179_v39, %v7106_v30 }
 0x707   : > { %v8864_v20 = vpop.f32.mrf.mxu0  ;;  %v8876_v54 = vpop.f32.mrf.mxu1 }
 0x708   : > { %v7264_v45 = vadd.f32 %v7258_v42, %v7185_v57 }
 0x709   : > { %v7182_v8 = vpop.f32.mrf.mxu0  ;;  %v7261_v36 = vpop.f32.mrf.mxu1 }
 0x70b   : > { %v8865_v5 = vpop.f32.mrf.mxu0  ;;  %v8877_v27 = vpop.f32.mrf.mxu1 }
 0x715   : > { %v7338_v63 = vpop.f32.mrf.mxu0  ;;  %v7417_v22 = vpop.f32.mrf.mxu1 }
 0x716   : > { %v7344_v32 = vadd.f32 %v7338_v63, %v7264_v45 }
 0x717   : > { %v8888_v3 = vpop.f32.mrf.mxu0  ;;  %v8900_v29 = vpop.f32.mrf.mxu1 }
 0x718   : > { %v7423_v47 = vadd.f32 %v7417_v22, %v7344_v32 }
 0x719   : > { %v7341_v33 = vpop.f32.mrf.mxu0  ;;  %v7420_v52 = vpop.f32.mrf.mxu1 }
 0x71b   : > { %v8889_v17 = vpop.f32.mrf.mxu0  ;;  %v8901_v59 = vpop.f32.mrf.mxu1 }
 0x725   : > { %v7496_v4 = vpop.f32.mrf.mxu0  ;;  %v7575_v56 = vpop.f32.mrf.mxu1 }
 0x726   : > { %v7502_v21 = vadd.f32 %v7496_v4, %v7423_v47 }
 0x727   : > { %v8912_v9 = vpop.f32.mrf.mxu0  ;;  %v8924_v43 = vpop.f32.mrf.mxu1 }
 0x728   : > { %v7581_v37 = vadd.f32 %v7575_v56, %v7502_v21 }
 0x729   : > { %v7499_v49 = vpop.f32.mrf.mxu0  ;;  %v7578_v60 = vpop.f32.mrf.mxu1 }
 0x72a   : > { %v7583_v61 = vadd.f32 %v7582_v13, %v7581_v37 }
 0x72b   : > { %v8913_v19 = vpop.f32.mrf.mxu0  ;;  %v8925_v48 = vpop.f32.mrf.mxu1 }
 0x72c   : > { %v7584_v7 = vpack.c.bf16 %v7583_v61, %v7583_v61 }
 0x72e   : > { %8935 = vmatmul.mubr.msk.bf16.vlgmr.msra.gmra.mxu0 %vm6261_vm15, %v7584_v7 }
 0x7ee   : > { %v7655_v18 = vpop.f32.mrf.mxu0 }
 0x7ef   : > { %v7656_v24 = vadd.f32 %v7655_v18, %v7593_v46 }
 0x7f0   : > { %v8936_v35 = vpop.f32.mrf.mxu0 }
 0x7f1   : > { %7662 = vst.msk [vmem:[%s378_s16] sm:$0x1] %vm7661_vm1, %v7656_v24 }
 0x7f2   : > { %v7658_v0 = vpop.f32.mrf.mxu0 }
 0x7f3   : > { %9239 = shalt.err (!%p9236_p3)
}
 0x7f4   : > { %s9240_s15 = scalar_lea.hbm %s11997_s13, 16  ;;  %s9244_s12 = scalar_lea.hbm %s12049_s11, 32 }
 0x7f5   : > { %p9241_p4 = scmp.ne.s32.totalorder %s11997_s13, %s9240_s15  ;;  %p9245_p9 = scmp.lt.s32.totalorder %s11997_s13, %s12049_s11 }
 0x7f6   : > { %p9246_p10 = scmp.lt.s32.totalorder %s9244_s12, %s9240_s15 }
 0x7f7   : > { %p9242_p7 = pnand %p9241_p4, %p9395_p5 }
 0x7f8   : > { %p9247_p11 = por %p9246_p10, %p9245_p9 }
 0x7f9   : > { %p9243_p8 = pneg %p9242_p7 }
 0x7fb   : > { %p9248_p12 = pnand %p9247_p11, %p9243_p8 }
 0x7fd   : > { %9251 = shalt.err (!%p9248_p12)
}
 0x7fe   : > { %8938 = dma.vmem_to_hbm [thread:$0]  (%p9395_p5), %s11999_s24, 16, %s11997_s13, %s7664_s29   ;;  %v8937_v6 = vpop.f32.mrf.mxu0 }
 0x7ff PF: > { %p8944_p13 = scmp.ge.s32.totalorder %s9286_s20, 2  ;;  %s7688_s21 = sand.u32 1, %s9274_s17  }
 0x800   : > { %s7689_s0 = scalar_lea.sflag [#allocation9], %s7688_s21 }
 0x801   : > { %p8941_p0 = pnand %p8944_p13, %p9399_p6 }
 0x803   : > { %p8942_p1 = pneg %p8941_p0 }
 0x805   : > { %9269 = dma.done.wait (%p8942_p1), %s7689_s0, 16  }
 0x806   : > { %9271 = vsyncadd (%p8942_p1), %s7689_s0, 4294967280  ;;  %p21_p2 = scmp.ge.s32.totalorder %s9382_s23, 4   ;;  %s12199_s17 = smov %s9278_s18 }
 0x807   : > { %s12200_s18 = smov %s9282_s19  ;;  %s12201_s19 = smov %s9393_s26 }
 0x808   : > { %s12202_s20 = smov %s9382_s23  ;;  %23 = sbr.rel (!%p21_p2) target bundleno = 5 (0x5), region = 306 }
 0x80d   :  { %7693 = vsyncpa [#allocation9], 1 }
 0x80e   :  { %7695 = vsyncpa [#allocation9 + $0x1], 1 }

</bundles_post_ra>
